<compile_context>
chip_gen: v6e
topology: v6e:2x2x1
jax: 0.10.0
libtpu: 0.0.40
codegen_flags: <defaults>
</compile_context>

<pallas_src>
import math
from functools import partial

import jax
import jax.numpy as jnp
from jax import lax
from jax.experimental import pallas as pl
from jax.experimental.pallas import tpu as pltpu

# ----- model dimensions (from FMTModel.__init__) -----
IMG = 12          # after tensorCenter
PATCH = 2
GRID = IMG // PATCH          # 6
NP = GRID * GRID             # 36 patches
PDIM = 3 * PATCH * PATCH     # 12 (C*kh*kw)
SEQ = NP + 1                 # 37 tokens (cls + patches)
HID = 120
HEADS = 12
HDIM = HID // HEADS          # 10
MLP = 600
LAYERS = 12
NCLS = 2
EPS = 1e-6

# padded (TPU-friendly) sizes used inside the kernel
SEQ_P = 40                   # 37 -> multiple of 8 sublanes
HID_P = 128                  # 120 -> full lane width
MLP_P = 640                  # 600 -> multiple of 128
NCLS_P = 128                 # lane-dense classifier output
NEG = -1e30


# ---------------------------------------------------------------------------
# small math helpers (pure-JAX reference)
# ---------------------------------------------------------------------------
def _layernorm(x, w, b, eps=EPS):
    mu = jnp.mean(x, axis=-1, keepdims=True)
    xc = x - mu
    var = jnp.mean(xc * xc, axis=-1, keepdims=True)
    return xc * jax.lax.rsqrt(var + eps) * w + b


def _gelu_exact(x):
    # nn.GELU() default (erf-based)
    return 0.5 * x * (1.0 + jax.lax.erf(x * (1.0 / math.sqrt(2.0))))


def tensor_center(x, size):
    r, c = x.shape[2] // 2, x.shape[3] // 2
    sr, sc = size[0] // 2, size[1] // 2
    return x[:, :, r - sr:r + sr, c - sc:c + sc]


# ---------------------------------------------------------------------------
# Fused kernel.
#   grid = (batch_shards, LAYERS), semantics = ("parallel", "arbitrary")
#   step (s, 0)       : patch embed + cls token + pos embed for shard s
#   step (s, l)       : encoder layer l on shard s (token stream in VMEM)
#   step (s, LAYERS-1): final LayerNorm on cls rows + classifier head
# ---------------------------------------------------------------------------
def fmt_fused_kernel(patches, wp, bp, cls_t, pos, hmask,
                     ln1w, ln1b, qkvw, qkvb, ow, ob,
                     ln2w, ln2b, w1, b1, w2, b2,
                     lnfw, lnfb, hw, hb,
                     out_ref, tok_ref):
    layer = pl.program_id(1)
    nb = patches.shape[1]            # batch elements owned by this shard/core
    scale = 1.0 / math.sqrt(HDIM)

    # hoisted once per grid step (NOT per head / per layer)
    lane = lax.broadcasted_iota(jnp.int32, (1, HID_P), 1)
    lane_f = (lane < HID).astype(jnp.float32)               # real-hidden lanes
    kcol = lax.broadcasted_iota(jnp.int32, (1, SEQ_P), 1)
    kbias = jnp.where(kcol < SEQ, 0.0, NEG).astype(jnp.float32)   # (1, 40)
    rowv = (lax.broadcasted_iota(jnp.int32, (SEQ_P, 1), 0)
            < SEQ).astype(jnp.float32)                       # (40, 1)
    rowv_all = jnp.concatenate([rowv] * nb, axis=0)          # (nb*40, 1)

    def layernorm(x, w, b):
        # padded lanes of x are exactly 0, so sums == sums over the 120 lanes
        mu = jnp.sum(x, axis=-1, keepdims=True) * (1.0 / HID)
        xc = (x - mu) * lane_f
        var = jnp.sum(xc * xc, axis=-1, keepdims=True) * (1.0 / HID)
        return xc * lax.rsqrt(var + EPS) * w + b

    # ---- step 0: patch embedding + cls token + positional embedding ----
    @pl.when(layer == 0)
    def _init():
        pad_rows = jnp.zeros((SEQ_P - SEQ, HID_P), jnp.float32)
        for b in range(nb):                                   # static, tiny
            emb = jnp.dot(patches[0, b], wp[...],
                          preferred_element_type=jnp.float32)  # (36, 128)
            emb = emb + bp[...] + pos[1:SEQ, :]
            row0 = cls_t[...] + pos[0:1, :]                    # (1, 128)
            # one aligned 40-row store per image; pad rows start exactly zero
            tok_ref[b * SEQ_P:(b + 1) * SEQ_P, :] = jnp.concatenate(
                [row0, emb, pad_rows], axis=0)

    # ---- one encoder layer per grid step ----
    x = tok_ref[...]                                          # (nb*40, 128) f32

    # self-attention block (QKV batch-folded, bf16 MXU path)
    y = layernorm(x, ln1w[0], ln1b[0])
    qkv = jnp.dot(y.astype(jnp.bfloat16), qkvw[0],
                  preferred_element_type=jnp.float32) + qkvb[0]
    q = qkv[:, 0:HID_P] * scale                               # aligned lane slices
    k = qkv[:, HID_P:2 * HID_P]
    v = qkv[:, 2 * HID_P:3 * HID_P]

    accs = []
    for b in range(nb):                                       # per-batch attention
        r0 = b * SEQ_P
        qb = q[r0:r0 + SEQ_P, :]                              # aligned 40-row slice
        kb = k[r0:r0 + SEQ_P, :]
        vb = v[r0:r0 + SEQ_P, :]
        ab = jnp.zeros((SEQ_P, HID_P), jnp.float32)
        for h in range(HEADS):                                # static head loop
            hm = hmask[h:h + 1, :]                            # hoisted lane mask
            s = lax.dot_general(qb, kb * hm, (((1,), (1,)), ((), ())),
                                preferred_element_type=jnp.float32)   # (40, 40)
            s = s + kbias                                     # mask padded keys
            s = s - jnp.max(s, axis=-1, keepdims=True)
            p = jnp.exp(s)
            p = p * pl.reciprocal(jnp.sum(p, axis=-1, keepdims=True),
                                  approx=True)
            # head-h output lands only in its own 10 lanes -> sum == concat
            ab = ab + jnp.dot(p, vb * hm, preferred_element_type=jnp.float32)
        accs.append(ab)
    acc = jnp.concatenate(accs, axis=0) if nb > 1 else accs[0]

    x = x + jnp.dot(acc.astype(jnp.bfloat16), ow[0],
                    preferred_element_type=jnp.float32) + ob[0]

    # MLP block (bf16 MXU path)
    y2 = layernorm(x, ln2w[0], ln2b[0])
    m = jnp.dot(y2.astype(jnp.bfloat16), w1[0],
                preferred_element_type=jnp.float32) + b1[0]
    m = 0.5 * m * (1.0 + lax.erf(m * (1.0 / math.sqrt(2.0))))     # exact GELU
    x = x + jnp.dot(m.astype(jnp.bfloat16), w2[0],
                    preferred_element_type=jnp.float32) + b2[0]

    # keep padded token rows exactly zero (no garbage can ever leak)
    x = x * rowv_all
    tok_ref[...] = x

    # ---- last step: final LayerNorm on cls tokens + classifier head ----
    @pl.when(layer == LAYERS - 1)
    def _head():
        cls_rows = jnp.concatenate(
            [x[b * SEQ_P:b * SEQ_P + 1, :] for b in range(nb)], axis=0)  # (nb,128)
        yf = layernorm(cls_rows, lnfw[...], lnfb[...])
        out_ref[0] = (jnp.dot(yf, hw[...], preferred_element_type=jnp.float32)
                      + hb[...])                               # lane-dense (nb,128)


# ---------------------------------------------------------------------------
# Parameter construction (deterministic, synthetic) — PyTorch-layout params
# ---------------------------------------------------------------------------
def init_params(key):
    def nrm(k, shape, scale=0.02):
        return (scale * jax.random.normal(k, shape)).astype(jnp.float32)

    ks = jax.random.split(key, 24)
    P = {}
    conv_w = nrm(ks[0], (HID, 3, PATCH, PATCH))            # Conv2d(3,120,2,2)
    P["w_patch_t"] = conv_w.reshape(HID, PDIM).T           # (12, 120)
    P["b_patch"] = nrm(ks[1], (1, HID))
    P["cls"] = nrm(ks[2], (1, HID))
    P["pos"] = nrm(ks[3], (SEQ, HID))

    P["ln1_w"] = jnp.ones((LAYERS, 1, HID), jnp.float32)
    P["ln1_b"] = jnp.zeros((LAYERS, 1, HID), jnp.float32)
    P["ln2_w"] = jnp.ones((LAYERS, 1, HID), jnp.float32)
    P["ln2_b"] = jnp.zeros((LAYERS, 1, HID), jnp.float32)
    in_proj_w = nrm(ks[4], (LAYERS, 3 * HID, HID))         # PyTorch layout
    P["qkv_w_t"] = jnp.transpose(in_proj_w, (0, 2, 1))     # (L, 120, 360)
    P["qkv_b"] = nrm(ks[5], (LAYERS, 1, 3 * HID))
    out_proj_w = nrm(ks[6], (LAYERS, HID, HID))
    P["out_w_t"] = jnp.transpose(out_proj_w, (0, 2, 1))
    P["out_b"] = nrm(ks[7], (LAYERS, 1, HID))
    w1 = nrm(ks[8], (LAYERS, MLP, HID))
    P["w1_t"] = jnp.transpose(w1, (0, 2, 1))               # (L, 120, 600)
    P["b1"] = nrm(ks[9], (LAYERS, 1, MLP))
    w2 = nrm(ks[10], (LAYERS, HID, MLP))
    P["w2_t"] = jnp.transpose(w2, (0, 2, 1))               # (L, 600, 120)
    P["b2"] = nrm(ks[11], (LAYERS, 1, HID))

    P["lnf_w"] = jnp.ones((1, HID), jnp.float32)
    P["lnf_b"] = jnp.zeros((1, HID), jnp.float32)
    head_w = nrm(ks[12], (NCLS, HID))
    P["head_w_t"] = head_w.T                               # (120, 2)
    P["head_b"] = nrm(ks[13], (1, NCLS))
    return P


def pad_params(P):
    """Zero-pad to lane/sublane friendly shapes; big matmul weights -> bf16."""
    def padlast(a, t):
        return jnp.pad(a, [(0, 0)] * (a.ndim - 1) + [(0, t - a.shape[-1])])

    def pad2(a, tr, tc):
        return jnp.pad(a, [(0, 0)] * (a.ndim - 2)
                       + [(0, tr - a.shape[-2]), (0, tc - a.shape[-1])])

    K = {}
    K["w_patch"] = pad2(P["w_patch_t"], PDIM, HID_P)       # (12, 128) f32
    K["b_patch"] = padlast(P["b_patch"], HID_P)
    K["cls"] = padlast(P["cls"], HID_P)
    K["pos"] = pad2(P["pos"], SEQ_P, HID_P)                # (40, 128)

    K["ln1_w"] = padlast(P["ln1_w"], HID_P)                # padded lanes -> 0
    K["ln1_b"] = padlast(P["ln1_b"], HID_P)
    K["ln2_w"] = padlast(P["ln2_w"], HID_P)
    K["ln2_b"] = padlast(P["ln2_b"], HID_P)

    W = P["qkv_w_t"]                                       # (L, 120, 360)
    K["qkv_w"] = jnp.concatenate(
        [pad2(W[..., 0:HID], HID_P, HID_P),
         pad2(W[..., HID:2 * HID], HID_P, HID_P),
         pad2(W[..., 2 * HID:3 * HID], HID_P, HID_P)],
        axis=-1).astype(jnp.bfloat16)                      # (L,128,384) bf16
    B = P["qkv_b"]                                         # (L, 1, 360)
    K["qkv_b"] = jnp.concatenate(
        [padlast(B[..., 0:HID], HID_P),
         padlast(B[..., HID:2 * HID], HID_P),
         padlast(B[..., 2 * HID:3 * HID], HID_P)], axis=-1)       # (L,1,384) f32

    K["out_w"] = pad2(P["out_w_t"], HID_P, HID_P).astype(jnp.bfloat16)
    K["out_b"] = padlast(P["out_b"], HID_P)
    K["w1"] = pad2(P["w1_t"], HID_P, MLP_P).astype(jnp.bfloat16)
    K["b1"] = padlast(P["b1"], MLP_P)
    K["w2"] = pad2(P["w2_t"], MLP_P, HID_P).astype(jnp.bfloat16)
    K["b2"] = padlast(P["b2"], HID_P)

    K["lnf_w"] = padlast(P["lnf_w"], HID_P)
    K["lnf_b"] = padlast(P["lnf_b"], HID_P)
    K["head_w"] = pad2(P["head_w_t"], HID_P, NCLS_P)       # (128, 128) f32
    K["head_b"] = padlast(P["head_b"], NCLS_P)             # (1, 128)
    return K


# ---------------------------------------------------------------------------
# Forward pass (glue + one pallas_call)
# ---------------------------------------------------------------------------
def _resident(shape):
    nd = len(shape)
    return pl.BlockSpec(shape, lambda s, l, _nd=nd: (0,) * _nd)


def _per_layer(tail):
    return pl.BlockSpec((1,) + tuple(tail), lambda s, l: (l, 0, 0))


@jax.jit
def fmt_forward(x, Pk):
    n = x.shape[0]
    # v7x: split the batch over the two TensorCores via a parallel grid axis.
    # On 1-TC chips (v5e/v6e) the extra axis just runs sequentially.
    NB = 2 if (n % 2 == 0 and n >= 2) else 1
    nb = n // NB

    xc = tensor_center(x, (IMG, IMG))                      # (N, 3, 12, 12)
    # non-overlapping 2x2 patches, vector order (c, kh, kw) matches conv weight
    patches = (xc.reshape(n, 3, GRID, PATCH, GRID, PATCH)
                 .transpose(0, 2, 4, 1, 3, 5)
                 .reshape(NB, nb, NP, PDIM)).astype(jnp.float32)

    # hoisted per-head lane masks (HEADS, 128): 1.0 on head-h's 10 lanes
    hid = jnp.arange(HID_P)
    hh = jnp.arange(HEADS)[:, None]
    hmask = ((hid[None, :] >= hh * HDIM) &
             (hid[None, :] < (hh + 1) * HDIM)).astype(jnp.float32)

    in_specs = [
        pl.BlockSpec((1, nb, NP, PDIM), lambda s, l: (s, 0, 0, 0)),  # patches
        _resident((PDIM, HID_P)),              # w_patch
        _resident((1, HID_P)),                 # b_patch
        _resident((1, HID_P)),                 # cls
        _resident((SEQ_P, HID_P)),             # pos
        _resident((HEADS, HID_P)),             # head lane masks
        _per_layer((1, HID_P)),                # ln1_w
        _per_layer((1, HID_P)),                # ln1_b
        _per_layer((HID_P, 3 * HID_P)),        # qkv_w (bf16)
        _per_layer((1, 3 * HID_P)),            # qkv_b
        _per_layer((HID_P, HID_P)),            # out_w (bf16)
        _per_layer((1, HID_P)),                # out_b
        _per_layer((1, HID_P)),                # ln2_w
        _per_layer((1, HID_P)),                # ln2_b
        _per_layer((HID_P, MLP_P)),            # w1 (bf16)
        _per_layer((1, MLP_P)),                # b1
        _per_layer((MLP_P, HID_P)),            # w2 (bf16)
        _per_layer((1, HID_P)),                # b2
        _resident((1, HID_P)),                 # lnf_w
        _resident((1, HID_P)),                 # lnf_b
        _resident((HID_P, NCLS_P)),            # head_w
        _resident((1, NCLS_P)),                # head_b
    ]

    logits_p = pl.pallas_call(
        fmt_fused_kernel,
        out_shape=jax.ShapeDtypeStruct((NB, nb, NCLS_P), jnp.float32),
        grid=(NB, LAYERS),
        in_specs=in_specs,
        out_specs=pl.BlockSpec((1, nb, NCLS_P), lambda s, l: (s, 0, 0)),
        scratch_shapes=[pltpu.VMEM((nb * SEQ_P, HID_P), jnp.float32)],
        compiler_params=pltpu.CompilerParams(
            dimension_semantics=("parallel", "arbitrary")),
    )(patches, Pk["w_patch"], Pk["b_patch"], Pk["cls"], Pk["pos"], hmask,
      Pk["ln1_w"], Pk["ln1_b"], Pk["qkv_w"], Pk["qkv_b"],
      Pk["out_w"], Pk["out_b"], Pk["ln2_w"], Pk["ln2_b"],
      Pk["w1"], Pk["b1"], Pk["w2"], Pk["b2"],
      Pk["lnf_w"], Pk["lnf_b"], Pk["head_w"], Pk["head_b"])

    return logits_p.reshape(n, NCLS_P)[:, :NCLS]


# ---------------------------------------------------------------------------
# Pure-JAX reference (mirrors torchvision VisionTransformer forward, eval mode)
# ---------------------------------------------------------------------------
def fmt_reference(x, P):
    n = x.shape[0]
    xc = tensor_center(x, (IMG, IMG))
    p = (xc.reshape(n, 3, GRID, PATCH, GRID, PATCH)
           .transpose(0, 2, 4, 1, 3, 5)
           .reshape(n, NP, PDIM)).astype(jnp.float32)
    emb = p @ P["w_patch_t"] + P["b_patch"]
    cls = jnp.broadcast_to(P["cls"][None], (n, 1, HID))
    h = jnp.concatenate([cls, emb], axis=1) + P["pos"]
    scale = 1.0 / math.sqrt(HDIM)
    for l in range(LAYERS):
        y = _layernorm(h, P["ln1_w"][l, 0], P["ln1_b"][l, 0])
        qkv = y @ P["qkv_w_t"][l] + P["qkv_b"][l, 0]
        q, k, v = qkv[..., :HID], qkv[..., HID:2 * HID], qkv[..., 2 * HID:]
        q = q.reshape(n, SEQ, HEADS, HDIM).transpose(0, 2, 1, 3)
        k = k.reshape(n, SEQ, HEADS, HDIM).transpose(0, 2, 1, 3)
        v = v.reshape(n, SEQ, HEADS, HDIM).transpose(0, 2, 1, 3)
        s = jnp.einsum("nhqd,nhkd->nhqk", q, k) * scale
        a = jax.nn.softmax(s, axis=-1)
        o = jnp.einsum("nhqk,nhkd->nhqd", a, v).transpose(0, 2, 1, 3).reshape(n, SEQ, HID)
        h = h + (o @ P["out_w_t"][l] + P["out_b"][l, 0])
        y2 = _layernorm(h, P["ln2_w"][l, 0], P["ln2_b"][l, 0])
        m = _gelu_exact(y2 @ P["w1_t"][l] + P["b1"][l, 0])
        h = h + (m @ P["w2_t"][l] + P["b2"][l, 0])
    y = _layernorm(h[:, 0], P["lnf_w"][0], P["lnf_b"][0])
    return y @ P["head_w_t"] + P["head_b"]


if __name__ == "__main__":
    key = jax.random.PRNGKey(0)
    kx, kp = jax.random.split(key)
    # FMTModel's ViT conv stem requires 3 input channels; spatial >= 12.
    x = jax.random.normal(kx, (2, 3, 16, 16), dtype=jnp.float32)
    params = init_params(kp)
    params_padded = pad_params(params)

    out = fmt_forward(x, params_padded)
    out = jax.block_until_ready(out)

    ref = fmt_reference(x, params)
    assert out.shape == (2, NCLS)
    # bf16 matmul operands (adopted per the perf review) introduce ~1e-3-level
    # drift across the 12 residual layers vs. the pure-f32 reference; genuine
    # structural bugs would show up as O(0.1-1) errors, so this still validates.
    assert jnp.allclose(out, ref, atol=2e-3, rtol=1e-3), (out, ref)
    print("KERNEL_OK")
</pallas_src>

<mosaic_0001>
module attributes {stable_mosaic.version = 11 : i64} {
  func.func @fmt_fused_kernel(%arg0: i32, %arg1: i32, %arg2: memref<1x1x36x12xf32, #tpu.memory_space<vmem>>, %arg3: memref<12x128xf32, #tpu.memory_space<vmem>>, %arg4: memref<1x128xf32, #tpu.memory_space<vmem>>, %arg5: memref<1x128xf32, #tpu.memory_space<vmem>>, %arg6: memref<40x128xf32, #tpu.memory_space<vmem>>, %arg7: memref<12x128xf32, #tpu.memory_space<vmem>>, %arg8: memref<1x1x128xf32, #tpu.memory_space<vmem>>, %arg9: memref<1x1x128xf32, #tpu.memory_space<vmem>>, %arg10: memref<1x128x384xbf16, #tpu.memory_space<vmem>>, %arg11: memref<1x1x384xf32, #tpu.memory_space<vmem>>, %arg12: memref<1x128x128xbf16, #tpu.memory_space<vmem>>, %arg13: memref<1x1x128xf32, #tpu.memory_space<vmem>>, %arg14: memref<1x1x128xf32, #tpu.memory_space<vmem>>, %arg15: memref<1x1x128xf32, #tpu.memory_space<vmem>>, %arg16: memref<1x128x640xbf16, #tpu.memory_space<vmem>>, %arg17: memref<1x1x640xf32, #tpu.memory_space<vmem>>, %arg18: memref<1x640x128xbf16, #tpu.memory_space<vmem>>, %arg19: memref<1x1x128xf32, #tpu.memory_space<vmem>>, %arg20: memref<1x128xf32, #tpu.memory_space<vmem>>, %arg21: memref<1x128xf32, #tpu.memory_space<vmem>>, %arg22: memref<128x128xf32, #tpu.memory_space<vmem>>, %arg23: memref<1x128xf32, #tpu.memory_space<vmem>>, %arg24: memref<1x1x128xf32, #tpu.memory_space<vmem>>, %arg25: memref<40x128xf32, #tpu.memory_space<vmem>>) attributes {dimension_semantics = [#tpu.dimension_semantics<parallel>, #tpu.dimension_semantics<arbitrary>], iteration_bounds = array<i64: 2, 12>, scalar_prefetch = 0 : i64, scratch_operands = 1 : i64, tpu.core_type = #tpu.core_type<tc>, window_params = [{transform_indices = @transform_0, window_bounds = array<i64: 1, 1, 36, 12>}, {pipeline_mode = #tpu.pipeline_mode<synchronous>, transform_indices = @transform_1, window_bounds = array<i64: 12, 128>}, {pipeline_mode = #tpu.pipeline_mode<synchronous>, transform_indices = @transform_2, window_bounds = array<i64: 1, 128>}, {pipeline_mode = #tpu.pipeline_mode<synchronous>, transform_indices = @transform_3, window_bounds = array<i64: 1, 128>}, {pipeline_mode = #tpu.pipeline_mode<synchronous>, transform_indices = @transform_4, window_bounds = array<i64: 40, 128>}, {pipeline_mode = #tpu.pipeline_mode<synchronous>, transform_indices = @transform_5, window_bounds = array<i64: 12, 128>}, {transform_indices = @transform_6, window_bounds = array<i64: 1, 1, 128>}, {transform_indices = @transform_7, window_bounds = array<i64: 1, 1, 128>}, {transform_indices = @transform_8, window_bounds = array<i64: 1, 128, 384>}, {transform_indices = @transform_9, window_bounds = array<i64: 1, 1, 384>}, {transform_indices = @transform_10, window_bounds = array<i64: 1, 128, 128>}, {transform_indices = @transform_11, window_bounds = array<i64: 1, 1, 128>}, {transform_indices = @transform_12, window_bounds = array<i64: 1, 1, 128>}, {transform_indices = @transform_13, window_bounds = array<i64: 1, 1, 128>}, {transform_indices = @transform_14, window_bounds = array<i64: 1, 128, 640>}, {transform_indices = @transform_15, window_bounds = array<i64: 1, 1, 640>}, {transform_indices = @transform_16, window_bounds = array<i64: 1, 640, 128>}, {transform_indices = @transform_17, window_bounds = array<i64: 1, 1, 128>}, {pipeline_mode = #tpu.pipeline_mode<synchronous>, transform_indices = @transform_18, window_bounds = array<i64: 1, 128>}, {pipeline_mode = #tpu.pipeline_mode<synchronous>, transform_indices = @transform_19, window_bounds = array<i64: 1, 128>}, {pipeline_mode = #tpu.pipeline_mode<synchronous>, transform_indices = @transform_20, window_bounds = array<i64: 128, 128>}, {pipeline_mode = #tpu.pipeline_mode<synchronous>, transform_indices = @transform_21, window_bounds = array<i64: 1, 128>}, {transform_indices = @transform_22, window_bounds = array<i64: 1, 1, 128>}]} {
    %0 = tpu.iota {dimensions = array<i32: 1>} : vector<1x128xi32>
    %c120_i32 = arith.constant 120 : i32
    %1 = vector.broadcast %c120_i32 : i32 to vector<1x128xi32>
    %2 = arith.cmpi slt, %0, %1 : vector<1x128xi32>
    %3 = arith.extui %2 : vector<1x128xi1> to vector<1x128xi32>
    %4 = arith.sitofp %3 : vector<1x128xi32> to vector<1x128xf32>
    %5 = tpu.iota {dimensions = array<i32: 1>} : vector<1x40xi32>
    %c37_i32 = arith.constant 37 : i32
    %6 = vector.broadcast %c37_i32 : i32 to vector<1x40xi32>
    %7 = arith.cmpi slt, %5, %6 : vector<1x40xi32>
    %cst = arith.constant 0.000000e+00 : f32
    %cst_0 = arith.constant -1.000000e+30 : f32
    %8 = vector.broadcast %cst : f32 to vector<1x40xf32>
    %9 = vector.broadcast %cst_0 : f32 to vector<1x40xf32>
    %10 = arith.select %7, %8, %9 : vector<1x40xi1>, vector<1x40xf32>
    %11 = tpu.iota {dimensions = array<i32: 0>} : vector<40x1xi32>
    %c37_i32_1 = arith.constant 37 : i32
    %12 = vector.broadcast %c37_i32_1 : i32 to vector<40x1xi32>
    %13 = arith.cmpi slt, %11, %12 : vector<40x1xi32>
    %14 = arith.extui %13 : vector<40x1xi1> to vector<40x1xi32>
    %15 = arith.sitofp %14 : vector<40x1xi32> to vector<40x1xf32>
    %c0_i32 = arith.constant 0 : i32
    %16 = arith.cmpi eq, %arg1, %c0_i32 : i32
    %17 = arith.extui %16 : i1 to i32
    %c0_i32_2 = arith.constant 0 : i32
    %18 = arith.cmpi ne, %17, %c0_i32_2 : i32
    scf.if %18 {
      %cst_123 = arith.constant 0.000000e+00 : f32
      %366 = vector.broadcast %cst_123 : f32 to vector<3x128xf32>
      %c0_124 = arith.constant 0 : index
      %c0_125 = arith.constant 0 : index
      %c0_126 = arith.constant 0 : index
      %c0_127 = arith.constant 0 : index
      %367 = vector.load %arg2[%c0_124, %c0_125, %c0_126, %c0_127] : memref<1x1x36x12xf32, #tpu.memory_space<vmem>>, vector<1x1x36x12xf32>
      %368 = vector.shape_cast %367 : vector<1x1x36x12xf32> to vector<36x12xf32>
      %c0_128 = arith.constant 0 : index
      %c0_129 = arith.constant 0 : index
      %369 = vector.load %arg3[%c0_128, %c0_129] : memref<12x128xf32, #tpu.memory_space<vmem>>, vector<12x128xf32>
      %cst_130 = arith.constant dense<0.000000e+00> : vector<36x128xf32>
      %370 = tpu.matmul %368, %369, %cst_130 {dimension_numbers = #tpu.dot_dimension_numbers<[1], [0], [0], [1], [0, 0, 1, 1], [], []>} : vector<36x12xf32>, vector<12x128xf32>, vector<36x128xf32> -> vector<36x128xf32>
      %c0_131 = arith.constant 0 : index
      %c0_132 = arith.constant 0 : index
      %371 = vector.load %arg4[%c0_131, %c0_132] : memref<1x128xf32, #tpu.memory_space<vmem>>, vector<1x128xf32>
      %372 = vector.broadcast %371 : vector<1x128xf32> to vector<36x128xf32>
      %373 = arith.addf %370, %372 : vector<36x128xf32>
      %c1_133 = arith.constant 1 : index
      %c0_134 = arith.constant 0 : index
      %374 = vector.load %arg6[%c1_133, %c0_134] : memref<40x128xf32, #tpu.memory_space<vmem>>, vector<36x128xf32>
      %375 = arith.addf %373, %374 : vector<36x128xf32>
      %c0_135 = arith.constant 0 : index
      %c0_136 = arith.constant 0 : index
      %376 = vector.load %arg5[%c0_135, %c0_136] : memref<1x128xf32, #tpu.memory_space<vmem>>, vector<1x128xf32>
      %c0_137 = arith.constant 0 : index
      %c0_138 = arith.constant 0 : index
      %377 = vector.load %arg6[%c0_137, %c0_138] : memref<40x128xf32, #tpu.memory_space<vmem>>, vector<1x128xf32>
      %378 = arith.addf %376, %377 : vector<1x128xf32>
      %379 = tpu.concatenate %378, %375, %366 in 0 : vector<1x128xf32>, vector<36x128xf32>, vector<3x128xf32> -> vector<40x128xf32>
      %c0_139 = arith.constant 0 : index
      %c0_140 = arith.constant 0 : index
      %380 = vector.load %arg25[%c0_139, %c0_140] : memref<40x128xf32, #tpu.memory_space<vmem>>, vector<40x128xf32>
      tpu.vector_store %arg25[%c0_139, %c0_140], %379 {strides = array<i32>} : memref<40x128xf32, #tpu.memory_space<vmem>>, vector<40x128xf32>,
    } else {
    }
    %c0 = arith.constant 0 : index
    %c0_3 = arith.constant 0 : index
    %19 = vector.load %arg25[%c0, %c0_3] : memref<40x128xf32, #tpu.memory_space<vmem>>, vector<40x128xf32>
    %c0_4 = arith.constant 0 : index
    %c0_5 = arith.constant 0 : index
    %c0_6 = arith.constant 0 : index
    %20 = vector.load %arg8[%c0_4, %c0_5, %c0_6] : memref<1x1x128xf32, #tpu.memory_space<vmem>>, vector<1x1x128xf32>
    %21 = vector.shape_cast %20 : vector<1x1x128xf32> to vector<1x128xf32>
    %c0_7 = arith.constant 0 : index
    %c0_8 = arith.constant 0 : index
    %c0_9 = arith.constant 0 : index
    %22 = vector.load %arg9[%c0_7, %c0_8, %c0_9] : memref<1x1x128xf32, #tpu.memory_space<vmem>>, vector<1x1x128xf32>
    %23 = vector.shape_cast %22 : vector<1x1x128xf32> to vector<1x128xf32>
    %cst_10 = arith.constant dense<0.000000e+00> : vector<40xf32>
    %24 = vector.multi_reduction <add>, %19, %cst_10 [1] : vector<40x128xf32> to vector<40xf32>
    %25 = vector.shape_cast %24 : vector<40xf32> to vector<40x1xf32>
    %cst_11 = arith.constant 0.00833333377 : f32
    %26 = vector.broadcast %cst_11 : f32 to vector<40x1xf32>
    %27 = arith.mulf %25, %26 : vector<40x1xf32>
    %28 = vector.broadcast %27 : vector<40x1xf32> to vector<40x128xf32>
    %29 = arith.subf %19, %28 : vector<40x128xf32>
    %30 = vector.broadcast %4 : vector<1x128xf32> to vector<40x128xf32>
    %31 = arith.mulf %29, %30 : vector<40x128xf32>
    %32 = arith.mulf %31, %31 : vector<40x128xf32>
    %cst_12 = arith.constant dense<0.000000e+00> : vector<40xf32>
    %33 = vector.multi_reduction <add>, %32, %cst_12 [1] : vector<40x128xf32> to vector<40xf32>
    %34 = vector.shape_cast %33 : vector<40xf32> to vector<40x1xf32>
    %cst_13 = arith.constant 0.00833333377 : f32
    %35 = vector.broadcast %cst_13 : f32 to vector<40x1xf32>
    %36 = arith.mulf %34, %35 : vector<40x1xf32>
    %cst_14 = arith.constant 9.99999997E-7 : f32
    %37 = vector.broadcast %cst_14 : f32 to vector<40x1xf32>
    %38 = arith.addf %36, %37 : vector<40x1xf32>
    %39 = math.rsqrt %38 : vector<40x1xf32>
    %40 = vector.broadcast %39 : vector<40x1xf32> to vector<40x128xf32>
    %41 = arith.mulf %31, %40 : vector<40x128xf32>
    %42 = vector.broadcast %21 : vector<1x128xf32> to vector<40x128xf32>
    %43 = arith.mulf %41, %42 : vector<40x128xf32>
    %44 = vector.broadcast %23 : vector<1x128xf32> to vector<40x128xf32>
    %45 = arith.addf %43, %44 : vector<40x128xf32>
    %46 = arith.truncf %45 : vector<40x128xf32> to vector<40x128xbf16>
    %c0_15 = arith.constant 0 : index
    %c0_16 = arith.constant 0 : index
    %c0_17 = arith.constant 0 : index
    %47 = vector.load %arg10[%c0_15, %c0_16, %c0_17] : memref<1x128x384xbf16, #tpu.memory_space<vmem>>, vector<1x128x384xbf16>
    %48 = vector.shape_cast %47 : vector<1x128x384xbf16> to vector<128x384xbf16>
    %cst_18 = arith.constant dense<0.000000e+00> : vector<40x384xf32>
    %49 = tpu.matmul %46, %48, %cst_18 {dimension_numbers = #tpu.dot_dimension_numbers<[1], [0], [0], [1], [0, 0, 1, 1], [], []>} : vector<40x128xbf16>, vector<128x384xbf16>, vector<40x384xf32> -> vector<40x384xf32>
    %c0_19 = arith.constant 0 : index
    %c0_20 = arith.constant 0 : index
    %c0_21 = arith.constant 0 : index
    %50 = vector.load %arg11[%c0_19, %c0_20, %c0_21] : memref<1x1x384xf32, #tpu.memory_space<vmem>>, vector<1x1x384xf32>
    %51 = vector.shape_cast %50 : vector<1x1x384xf32> to vector<1x384xf32>
    %52 = vector.broadcast %51 : vector<1x384xf32> to vector<40x384xf32>
    %53 = arith.addf %49, %52 : vector<40x384xf32>
    %54 = vector.extract_strided_slice %53 {offsets = [0, 0], sizes = [40, 128], strides = [1, 1]} : vector<40x384xf32> to vector<40x128xf32>
    %cst_22 = arith.constant 0.316227764 : f32
    %55 = vector.broadcast %cst_22 : f32 to vector<40x128xf32>
    %56 = arith.mulf %54, %55 : vector<40x128xf32>
    %57 = vector.extract_strided_slice %53 {offsets = [0, 128], sizes = [40, 128], strides = [1, 1]} : vector<40x384xf32> to vector<40x128xf32>
    %58 = vector.extract_strided_slice %53 {offsets = [0, 256], sizes = [40, 128], strides = [1, 1]} : vector<40x384xf32> to vector<40x128xf32>
    %cst_23 = arith.constant 0.000000e+00 : f32
    %59 = vector.broadcast %cst_23 : f32 to vector<40x128xf32>
    %c0_24 = arith.constant 0 : index
    %c0_25 = arith.constant 0 : index
    %60 = vector.load %arg7[%c0_24, %c0_25] : memref<12x128xf32, #tpu.memory_space<vmem>>, vector<1x128xf32>
    %61 = vector.broadcast %60 : vector<1x128xf32> to vector<40x128xf32>
    %62 = arith.mulf %57, %61 : vector<40x128xf32>
    %cst_26 = arith.constant dense<0.000000e+00> : vector<40x40xf32>
    %63 = tpu.matmul %56, %62, %cst_26 {dimension_numbers = #tpu.dot_dimension_numbers<[1], [1], [0], [0], [0, 0, 1, 0], [], []>} : vector<40x128xf32>, vector<40x128xf32>, vector<40x40xf32> -> vector<40x40xf32>
    %64 = vector.broadcast %10 : vector<1x40xf32> to vector<40x40xf32>
    %65 = arith.addf %63, %64 : vector<40x40xf32>
    %cst_27 = arith.constant dense<0xFF800000> : vector<40xf32>
    %66 = vector.multi_reduction <maximumf>, %65, %cst_27 [1] : vector<40x40xf32> to vector<40xf32>
    %67 = vector.shape_cast %66 : vector<40xf32> to vector<40x1xf32>
    %68 = vector.broadcast %67 : vector<40x1xf32> to vector<40x40xf32>
    %69 = arith.subf %65, %68 : vector<40x40xf32>
    %70 = math.exp %69 : vector<40x40xf32>
    %cst_28 = arith.constant dense<0.000000e+00> : vector<40xf32>
    %71 = vector.multi_reduction <add>, %70, %cst_28 [1] : vector<40x40xf32> to vector<40xf32>
    %72 = vector.shape_cast %71 : vector<40xf32> to vector<40x1xf32>
    %73 = tpu.reciprocal %72 {approx = true} : vector<40x1xf32> -> vector<40x1xf32>
    %74 = vector.broadcast %73 : vector<40x1xf32> to vector<40x40xf32>
    %75 = arith.mulf %70, %74 : vector<40x40xf32>
    %76 = vector.broadcast %60 : vector<1x128xf32> to vector<40x128xf32>
    %77 = arith.mulf %58, %76 : vector<40x128xf32>
    %cst_29 = arith.constant dense<0.000000e+00> : vector<40x128xf32>
    %78 = tpu.matmul %75, %77, %cst_29 {dimension_numbers = #tpu.dot_dimension_numbers<[1], [0], [0], [1], [0, 0, 1, 1], [], []>} : vector<40x40xf32>, vector<40x128xf32>, vector<40x128xf32> -> vector<40x128xf32>
    %79 = arith.addf %59, %78 : vector<40x128xf32>
    %c1 = arith.constant 1 : index
    %c0_30 = arith.constant 0 : index
    %80 = vector.load %arg7[%c1, %c0_30] : memref<12x128xf32, #tpu.memory_space<vmem>>, vector<1x128xf32>
    %81 = vector.broadcast %80 : vector<1x128xf32> to vector<40x128xf32>
    %82 = arith.mulf %57, %81 : vector<40x128xf32>
    %cst_31 = arith.constant dense<0.000000e+00> : vector<40x40xf32>
    %83 = tpu.matmul %56, %82, %cst_31 {dimension_numbers = #tpu.dot_dimension_numbers<[1], [1], [0], [0], [0, 0, 1, 0], [], []>} : vector<40x128xf32>, vector<40x128xf32>, vector<40x40xf32> -> vector<40x40xf32>
    %84 = vector.broadcast %10 : vector<1x40xf32> to vector<40x40xf32>
    %85 = arith.addf %83, %84 : vector<40x40xf32>
    %cst_32 = arith.constant dense<0xFF800000> : vector<40xf32>
    %86 = vector.multi_reduction <maximumf>, %85, %cst_32 [1] : vector<40x40xf32> to vector<40xf32>
    %87 = vector.shape_cast %86 : vector<40xf32> to vector<40x1xf32>
    %88 = vector.broadcast %87 : vector<40x1xf32> to vector<40x40xf32>
    %89 = arith.subf %85, %88 : vector<40x40xf32>
    %90 = math.exp %89 : vector<40x40xf32>
    %cst_33 = arith.constant dense<0.000000e+00> : vector<40xf32>
    %91 = vector.multi_reduction <add>, %90, %cst_33 [1] : vector<40x40xf32> to vector<40xf32>
    %92 = vector.shape_cast %91 : vector<40xf32> to vector<40x1xf32>
    %93 = tpu.reciprocal %92 {approx = true} : vector<40x1xf32> -> vector<40x1xf32>
    %94 = vector.broadcast %93 : vector<40x1xf32> to vector<40x40xf32>
    %95 = arith.mulf %90, %94 : vector<40x40xf32>
    %96 = vector.broadcast %80 : vector<1x128xf32> to vector<40x128xf32>
    %97 = arith.mulf %58, %96 : vector<40x128xf32>
    %cst_34 = arith.constant dense<0.000000e+00> : vector<40x128xf32>
    %98 = tpu.matmul %95, %97, %cst_34 {dimension_numbers = #tpu.dot_dimension_numbers<[1], [0], [0], [1], [0, 0, 1, 1], [], []>} : vector<40x40xf32>, vector<40x128xf32>, vector<40x128xf32> -> vector<40x128xf32>
    %99 = arith.addf %79, %98 : vector<40x128xf32>
    %c2 = arith.constant 2 : index
    %c0_35 = arith.constant 0 : index
    %100 = vector.load %arg7[%c2, %c0_35] : memref<12x128xf32, #tpu.memory_space<vmem>>, vector<1x128xf32>
    %101 = vector.broadcast %100 : vector<1x128xf32> to vector<40x128xf32>
    %102 = arith.mulf %57, %101 : vector<40x128xf32>
    %cst_36 = arith.constant dense<0.000000e+00> : vector<40x40xf32>
    %103 = tpu.matmul %56, %102, %cst_36 {dimension_numbers = #tpu.dot_dimension_numbers<[1], [1], [0], [0], [0, 0, 1, 0], [], []>} : vector<40x128xf32>, vector<40x128xf32>, vector<40x40xf32> -> vector<40x40xf32>
    %104 = vector.broadcast %10 : vector<1x40xf32> to vector<40x40xf32>
    %105 = arith.addf %103, %104 : vector<40x40xf32>
    %cst_37 = arith.constant dense<0xFF800000> : vector<40xf32>
    %106 = vector.multi_reduction <maximumf>, %105, %cst_37 [1] : vector<40x40xf32> to vector<40xf32>
    %107 = vector.shape_cast %106 : vector<40xf32> to vector<40x1xf32>
    %108 = vector.broadcast %107 : vector<40x1xf32> to vector<40x40xf32>
    %109 = arith.subf %105, %108 : vector<40x40xf32>
    %110 = math.exp %109 : vector<40x40xf32>
    %cst_38 = arith.constant dense<0.000000e+00> : vector<40xf32>
    %111 = vector.multi_reduction <add>, %110, %cst_38 [1] : vector<40x40xf32> to vector<40xf32>
    %112 = vector.shape_cast %111 : vector<40xf32> to vector<40x1xf32>
    %113 = tpu.reciprocal %112 {approx = true} : vector<40x1xf32> -> vector<40x1xf32>
    %114 = vector.broadcast %113 : vector<40x1xf32> to vector<40x40xf32>
    %115 = arith.mulf %110, %114 : vector<40x40xf32>
    %116 = vector.broadcast %100 : vector<1x128xf32> to vector<40x128xf32>
    %117 = arith.mulf %58, %116 : vector<40x128xf32>
    %cst_39 = arith.constant dense<0.000000e+00> : vector<40x128xf32>
    %118 = tpu.matmul %115, %117, %cst_39 {dimension_numbers = #tpu.dot_dimension_numbers<[1], [0], [0], [1], [0, 0, 1, 1], [], []>} : vector<40x40xf32>, vector<40x128xf32>, vector<40x128xf32> -> vector<40x128xf32>
    %119 = arith.addf %99, %118 : vector<40x128xf32>
    %c3 = arith.constant 3 : index
    %c0_40 = arith.constant 0 : index
    %120 = vector.load %arg7[%c3, %c0_40] : memref<12x128xf32, #tpu.memory_space<vmem>>, vector<1x128xf32>
    %121 = vector.broadcast %120 : vector<1x128xf32> to vector<40x128xf32>
    %122 = arith.mulf %57, %121 : vector<40x128xf32>
    %cst_41 = arith.constant dense<0.000000e+00> : vector<40x40xf32>
    %123 = tpu.matmul %56, %122, %cst_41 {dimension_numbers = #tpu.dot_dimension_numbers<[1], [1], [0], [0], [0, 0, 1, 0], [], []>} : vector<40x128xf32>, vector<40x128xf32>, vector<40x40xf32> -> vector<40x40xf32>
    %124 = vector.broadcast %10 : vector<1x40xf32> to vector<40x40xf32>
    %125 = arith.addf %123, %124 : vector<40x40xf32>
    %cst_42 = arith.constant dense<0xFF800000> : vector<40xf32>
    %126 = vector.multi_reduction <maximumf>, %125, %cst_42 [1] : vector<40x40xf32> to vector<40xf32>
    %127 = vector.shape_cast %126 : vector<40xf32> to vector<40x1xf32>
    %128 = vector.broadcast %127 : vector<40x1xf32> to vector<40x40xf32>
    %129 = arith.subf %125, %128 : vector<40x40xf32>
    %130 = math.exp %129 : vector<40x40xf32>
    %cst_43 = arith.constant dense<0.000000e+00> : vector<40xf32>
    %131 = vector.multi_reduction <add>, %130, %cst_43 [1] : vector<40x40xf32> to vector<40xf32>
    %132 = vector.shape_cast %131 : vector<40xf32> to vector<40x1xf32>
    %133 = tpu.reciprocal %132 {approx = true} : vector<40x1xf32> -> vector<40x1xf32>
    %134 = vector.broadcast %133 : vector<40x1xf32> to vector<40x40xf32>
    %135 = arith.mulf %130, %134 : vector<40x40xf32>
    %136 = vector.broadcast %120 : vector<1x128xf32> to vector<40x128xf32>
    %137 = arith.mulf %58, %136 : vector<40x128xf32>
    %cst_44 = arith.constant dense<0.000000e+00> : vector<40x128xf32>
    %138 = tpu.matmul %135, %137, %cst_44 {dimension_numbers = #tpu.dot_dimension_numbers<[1], [0], [0], [1], [0, 0, 1, 1], [], []>} : vector<40x40xf32>, vector<40x128xf32>, vector<40x128xf32> -> vector<40x128xf32>
    %139 = arith.addf %119, %138 : vector<40x128xf32>
    %c4 = arith.constant 4 : index
    %c0_45 = arith.constant 0 : index
    %140 = vector.load %arg7[%c4, %c0_45] : memref<12x128xf32, #tpu.memory_space<vmem>>, vector<1x128xf32>
    %141 = vector.broadcast %140 : vector<1x128xf32> to vector<40x128xf32>
    %142 = arith.mulf %57, %141 : vector<40x128xf32>
    %cst_46 = arith.constant dense<0.000000e+00> : vector<40x40xf32>
    %143 = tpu.matmul %56, %142, %cst_46 {dimension_numbers = #tpu.dot_dimension_numbers<[1], [1], [0], [0], [0, 0, 1, 0], [], []>} : vector<40x128xf32>, vector<40x128xf32>, vector<40x40xf32> -> vector<40x40xf32>
    %144 = vector.broadcast %10 : vector<1x40xf32> to vector<40x40xf32>
    %145 = arith.addf %143, %144 : vector<40x40xf32>
    %cst_47 = arith.constant dense<0xFF800000> : vector<40xf32>
    %146 = vector.multi_reduction <maximumf>, %145, %cst_47 [1] : vector<40x40xf32> to vector<40xf32>
    %147 = vector.shape_cast %146 : vector<40xf32> to vector<40x1xf32>
    %148 = vector.broadcast %147 : vector<40x1xf32> to vector<40x40xf32>
    %149 = arith.subf %145, %148 : vector<40x40xf32>
    %150 = math.exp %149 : vector<40x40xf32>
    %cst_48 = arith.constant dense<0.000000e+00> : vector<40xf32>
    %151 = vector.multi_reduction <add>, %150, %cst_48 [1] : vector<40x40xf32> to vector<40xf32>
    %152 = vector.shape_cast %151 : vector<40xf32> to vector<40x1xf32>
    %153 = tpu.reciprocal %152 {approx = true} : vector<40x1xf32> -> vector<40x1xf32>
    %154 = vector.broadcast %153 : vector<40x1xf32> to vector<40x40xf32>
    %155 = arith.mulf %150, %154 : vector<40x40xf32>
    %156 = vector.broadcast %140 : vector<1x128xf32> to vector<40x128xf32>
    %157 = arith.mulf %58, %156 : vector<40x128xf32>
    %cst_49 = arith.constant dense<0.000000e+00> : vector<40x128xf32>
    %158 = tpu.matmul %155, %157, %cst_49 {dimension_numbers = #tpu.dot_dimension_numbers<[1], [0], [0], [1], [0, 0, 1, 1], [], []>} : vector<40x40xf32>, vector<40x128xf32>, vector<40x128xf32> -> vector<40x128xf32>
    %159 = arith.addf %139, %158 : vector<40x128xf32>
    %c5 = arith.constant 5 : index
    %c0_50 = arith.constant 0 : index
    %160 = vector.load %arg7[%c5, %c0_50] : memref<12x128xf32, #tpu.memory_space<vmem>>, vector<1x128xf32>
    %161 = vector.broadcast %160 : vector<1x128xf32> to vector<40x128xf32>
    %162 = arith.mulf %57, %161 : vector<40x128xf32>
    %cst_51 = arith.constant dense<0.000000e+00> : vector<40x40xf32>
    %163 = tpu.matmul %56, %162, %cst_51 {dimension_numbers = #tpu.dot_dimension_numbers<[1], [1], [0], [0], [0, 0, 1, 0], [], []>} : vector<40x128xf32>, vector<40x128xf32>, vector<40x40xf32> -> vector<40x40xf32>
    %164 = vector.broadcast %10 : vector<1x40xf32> to vector<40x40xf32>
    %165 = arith.addf %163, %164 : vector<40x40xf32>
    %cst_52 = arith.constant dense<0xFF800000> : vector<40xf32>
    %166 = vector.multi_reduction <maximumf>, %165, %cst_52 [1] : vector<40x40xf32> to vector<40xf32>
    %167 = vector.shape_cast %166 : vector<40xf32> to vector<40x1xf32>
    %168 = vector.broadcast %167 : vector<40x1xf32> to vector<40x40xf32>
    %169 = arith.subf %165, %168 : vector<40x40xf32>
    %170 = math.exp %169 : vector<40x40xf32>
    %cst_53 = arith.constant dense<0.000000e+00> : vector<40xf32>
    %171 = vector.multi_reduction <add>, %170, %cst_53 [1] : vector<40x40xf32> to vector<40xf32>
    %172 = vector.shape_cast %171 : vector<40xf32> to vector<40x1xf32>
    %173 = tpu.reciprocal %172 {approx = true} : vector<40x1xf32> -> vector<40x1xf32>
    %174 = vector.broadcast %173 : vector<40x1xf32> to vector<40x40xf32>
    %175 = arith.mulf %170, %174 : vector<40x40xf32>
    %176 = vector.broadcast %160 : vector<1x128xf32> to vector<40x128xf32>
    %177 = arith.mulf %58, %176 : vector<40x128xf32>
    %cst_54 = arith.constant dense<0.000000e+00> : vector<40x128xf32>
    %178 = tpu.matmul %175, %177, %cst_54 {dimension_numbers = #tpu.dot_dimension_numbers<[1], [0], [0], [1], [0, 0, 1, 1], [], []>} : vector<40x40xf32>, vector<40x128xf32>, vector<40x128xf32> -> vector<40x128xf32>
    %179 = arith.addf %159, %178 : vector<40x128xf32>
    %c6 = arith.constant 6 : index
    %c0_55 = arith.constant 0 : index
    %180 = vector.load %arg7[%c6, %c0_55] : memref<12x128xf32, #tpu.memory_space<vmem>>, vector<1x128xf32>
    %181 = vector.broadcast %180 : vector<1x128xf32> to vector<40x128xf32>
    %182 = arith.mulf %57, %181 : vector<40x128xf32>
    %cst_56 = arith.constant dense<0.000000e+00> : vector<40x40xf32>
    %183 = tpu.matmul %56, %182, %cst_56 {dimension_numbers = #tpu.dot_dimension_numbers<[1], [1], [0], [0], [0, 0, 1, 0], [], []>} : vector<40x128xf32>, vector<40x128xf32>, vector<40x40xf32> -> vector<40x40xf32>
    %184 = vector.broadcast %10 : vector<1x40xf32> to vector<40x40xf32>
    %185 = arith.addf %183, %184 : vector<40x40xf32>
    %cst_57 = arith.constant dense<0xFF800000> : vector<40xf32>
    %186 = vector.multi_reduction <maximumf>, %185, %cst_57 [1] : vector<40x40xf32> to vector<40xf32>
    %187 = vector.shape_cast %186 : vector<40xf32> to vector<40x1xf32>
    %188 = vector.broadcast %187 : vector<40x1xf32> to vector<40x40xf32>
    %189 = arith.subf %185, %188 : vector<40x40xf32>
    %190 = math.exp %189 : vector<40x40xf32>
    %cst_58 = arith.constant dense<0.000000e+00> : vector<40xf32>
    %191 = vector.multi_reduction <add>, %190, %cst_58 [1] : vector<40x40xf32> to vector<40xf32>
    %192 = vector.shape_cast %191 : vector<40xf32> to vector<40x1xf32>
    %193 = tpu.reciprocal %192 {approx = true} : vector<40x1xf32> -> vector<40x1xf32>
    %194 = vector.broadcast %193 : vector<40x1xf32> to vector<40x40xf32>
    %195 = arith.mulf %190, %194 : vector<40x40xf32>
    %196 = vector.broadcast %180 : vector<1x128xf32> to vector<40x128xf32>
    %197 = arith.mulf %58, %196 : vector<40x128xf32>
    %cst_59 = arith.constant dense<0.000000e+00> : vector<40x128xf32>
    %198 = tpu.matmul %195, %197, %cst_59 {dimension_numbers = #tpu.dot_dimension_numbers<[1], [0], [0], [1], [0, 0, 1, 1], [], []>} : vector<40x40xf32>, vector<40x128xf32>, vector<40x128xf32> -> vector<40x128xf32>
    %199 = arith.addf %179, %198 : vector<40x128xf32>
    %c7 = arith.constant 7 : index
    %c0_60 = arith.constant 0 : index
    %200 = vector.load %arg7[%c7, %c0_60] : memref<12x128xf32, #tpu.memory_space<vmem>>, vector<1x128xf32>
    %201 = vector.broadcast %200 : vector<1x128xf32> to vector<40x128xf32>
    %202 = arith.mulf %57, %201 : vector<40x128xf32>
    %cst_61 = arith.constant dense<0.000000e+00> : vector<40x40xf32>
    %203 = tpu.matmul %56, %202, %cst_61 {dimension_numbers = #tpu.dot_dimension_numbers<[1], [1], [0], [0], [0, 0, 1, 0], [], []>} : vector<40x128xf32>, vector<40x128xf32>, vector<40x40xf32> -> vector<40x40xf32>
    %204 = vector.broadcast %10 : vector<1x40xf32> to vector<40x40xf32>
    %205 = arith.addf %203, %204 : vector<40x40xf32>
    %cst_62 = arith.constant dense<0xFF800000> : vector<40xf32>
    %206 = vector.multi_reduction <maximumf>, %205, %cst_62 [1] : vector<40x40xf32> to vector<40xf32>
    %207 = vector.shape_cast %206 : vector<40xf32> to vector<40x1xf32>
    %208 = vector.broadcast %207 : vector<40x1xf32> to vector<40x40xf32>
    %209 = arith.subf %205, %208 : vector<40x40xf32>
    %210 = math.exp %209 : vector<40x40xf32>
    %cst_63 = arith.constant dense<0.000000e+00> : vector<40xf32>
    %211 = vector.multi_reduction <add>, %210, %cst_63 [1] : vector<40x40xf32> to vector<40xf32>
    %212 = vector.shape_cast %211 : vector<40xf32> to vector<40x1xf32>
    %213 = tpu.reciprocal %212 {approx = true} : vector<40x1xf32> -> vector<40x1xf32>
    %214 = vector.broadcast %213 : vector<40x1xf32> to vector<40x40xf32>
    %215 = arith.mulf %210, %214 : vector<40x40xf32>
    %216 = vector.broadcast %200 : vector<1x128xf32> to vector<40x128xf32>
    %217 = arith.mulf %58, %216 : vector<40x128xf32>
    %cst_64 = arith.constant dense<0.000000e+00> : vector<40x128xf32>
    %218 = tpu.matmul %215, %217, %cst_64 {dimension_numbers = #tpu.dot_dimension_numbers<[1], [0], [0], [1], [0, 0, 1, 1], [], []>} : vector<40x40xf32>, vector<40x128xf32>, vector<40x128xf32> -> vector<40x128xf32>
    %219 = arith.addf %199, %218 : vector<40x128xf32>
    %c8 = arith.constant 8 : index
    %c0_65 = arith.constant 0 : index
    %220 = vector.load %arg7[%c8, %c0_65] : memref<12x128xf32, #tpu.memory_space<vmem>>, vector<1x128xf32>
    %221 = vector.broadcast %220 : vector<1x128xf32> to vector<40x128xf32>
    %222 = arith.mulf %57, %221 : vector<40x128xf32>
    %cst_66 = arith.constant dense<0.000000e+00> : vector<40x40xf32>
    %223 = tpu.matmul %56, %222, %cst_66 {dimension_numbers = #tpu.dot_dimension_numbers<[1], [1], [0], [0], [0, 0, 1, 0], [], []>} : vector<40x128xf32>, vector<40x128xf32>, vector<40x40xf32> -> vector<40x40xf32>
    %224 = vector.broadcast %10 : vector<1x40xf32> to vector<40x40xf32>
    %225 = arith.addf %223, %224 : vector<40x40xf32>
    %cst_67 = arith.constant dense<0xFF800000> : vector<40xf32>
    %226 = vector.multi_reduction <maximumf>, %225, %cst_67 [1] : vector<40x40xf32> to vector<40xf32>
    %227 = vector.shape_cast %226 : vector<40xf32> to vector<40x1xf32>
    %228 = vector.broadcast %227 : vector<40x1xf32> to vector<40x40xf32>
    %229 = arith.subf %225, %228 : vector<40x40xf32>
    %230 = math.exp %229 : vector<40x40xf32>
    %cst_68 = arith.constant dense<0.000000e+00> : vector<40xf32>
    %231 = vector.multi_reduction <add>, %230, %cst_68 [1] : vector<40x40xf32> to vector<40xf32>
    %232 = vector.shape_cast %231 : vector<40xf32> to vector<40x1xf32>
    %233 = tpu.reciprocal %232 {approx = true} : vector<40x1xf32> -> vector<40x1xf32>
    %234 = vector.broadcast %233 : vector<40x1xf32> to vector<40x40xf32>
    %235 = arith.mulf %230, %234 : vector<40x40xf32>
    %236 = vector.broadcast %220 : vector<1x128xf32> to vector<40x128xf32>
    %237 = arith.mulf %58, %236 : vector<40x128xf32>
    %cst_69 = arith.constant dense<0.000000e+00> : vector<40x128xf32>
    %238 = tpu.matmul %235, %237, %cst_69 {dimension_numbers = #tpu.dot_dimension_numbers<[1], [0], [0], [1], [0, 0, 1, 1], [], []>} : vector<40x40xf32>, vector<40x128xf32>, vector<40x128xf32> -> vector<40x128xf32>
    %239 = arith.addf %219, %238 : vector<40x128xf32>
    %c9 = arith.constant 9 : index
    %c0_70 = arith.constant 0 : index
    %240 = vector.load %arg7[%c9, %c0_70] : memref<12x128xf32, #tpu.memory_space<vmem>>, vector<1x128xf32>
    %241 = vector.broadcast %240 : vector<1x128xf32> to vector<40x128xf32>
    %242 = arith.mulf %57, %241 : vector<40x128xf32>
    %cst_71 = arith.constant dense<0.000000e+00> : vector<40x40xf32>
    %243 = tpu.matmul %56, %242, %cst_71 {dimension_numbers = #tpu.dot_dimension_numbers<[1], [1], [0], [0], [0, 0, 1, 0], [], []>} : vector<40x128xf32>, vector<40x128xf32>, vector<40x40xf32> -> vector<40x40xf32>
    %244 = vector.broadcast %10 : vector<1x40xf32> to vector<40x40xf32>
    %245 = arith.addf %243, %244 : vector<40x40xf32>
    %cst_72 = arith.constant dense<0xFF800000> : vector<40xf32>
    %246 = vector.multi_reduction <maximumf>, %245, %cst_72 [1] : vector<40x40xf32> to vector<40xf32>
    %247 = vector.shape_cast %246 : vector<40xf32> to vector<40x1xf32>
    %248 = vector.broadcast %247 : vector<40x1xf32> to vector<40x40xf32>
    %249 = arith.subf %245, %248 : vector<40x40xf32>
    %250 = math.exp %249 : vector<40x40xf32>
    %cst_73 = arith.constant dense<0.000000e+00> : vector<40xf32>
    %251 = vector.multi_reduction <add>, %250, %cst_73 [1] : vector<40x40xf32> to vector<40xf32>
    %252 = vector.shape_cast %251 : vector<40xf32> to vector<40x1xf32>
    %253 = tpu.reciprocal %252 {approx = true} : vector<40x1xf32> -> vector<40x1xf32>
    %254 = vector.broadcast %253 : vector<40x1xf32> to vector<40x40xf32>
    %255 = arith.mulf %250, %254 : vector<40x40xf32>
    %256 = vector.broadcast %240 : vector<1x128xf32> to vector<40x128xf32>
    %257 = arith.mulf %58, %256 : vector<40x128xf32>
    %cst_74 = arith.constant dense<0.000000e+00> : vector<40x128xf32>
    %258 = tpu.matmul %255, %257, %cst_74 {dimension_numbers = #tpu.dot_dimension_numbers<[1], [0], [0], [1], [0, 0, 1, 1], [], []>} : vector<40x40xf32>, vector<40x128xf32>, vector<40x128xf32> -> vector<40x128xf32>
    %259 = arith.addf %239, %258 : vector<40x128xf32>
    %c10 = arith.constant 10 : index
    %c0_75 = arith.constant 0 : index
    %260 = vector.load %arg7[%c10, %c0_75] : memref<12x128xf32, #tpu.memory_space<vmem>>, vector<1x128xf32>
    %261 = vector.broadcast %260 : vector<1x128xf32> to vector<40x128xf32>
    %262 = arith.mulf %57, %261 : vector<40x128xf32>
    %cst_76 = arith.constant dense<0.000000e+00> : vector<40x40xf32>
    %263 = tpu.matmul %56, %262, %cst_76 {dimension_numbers = #tpu.dot_dimension_numbers<[1], [1], [0], [0], [0, 0, 1, 0], [], []>} : vector<40x128xf32>, vector<40x128xf32>, vector<40x40xf32> -> vector<40x40xf32>
    %264 = vector.broadcast %10 : vector<1x40xf32> to vector<40x40xf32>
    %265 = arith.addf %263, %264 : vector<40x40xf32>
    %cst_77 = arith.constant dense<0xFF800000> : vector<40xf32>
    %266 = vector.multi_reduction <maximumf>, %265, %cst_77 [1] : vector<40x40xf32> to vector<40xf32>
    %267 = vector.shape_cast %266 : vector<40xf32> to vector<40x1xf32>
    %268 = vector.broadcast %267 : vector<40x1xf32> to vector<40x40xf32>
    %269 = arith.subf %265, %268 : vector<40x40xf32>
    %270 = math.exp %269 : vector<40x40xf32>
    %cst_78 = arith.constant dense<0.000000e+00> : vector<40xf32>
    %271 = vector.multi_reduction <add>, %270, %cst_78 [1] : vector<40x40xf32> to vector<40xf32>
    %272 = vector.shape_cast %271 : vector<40xf32> to vector<40x1xf32>
    %273 = tpu.reciprocal %272 {approx = true} : vector<40x1xf32> -> vector<40x1xf32>
    %274 = vector.broadcast %273 : vector<40x1xf32> to vector<40x40xf32>
    %275 = arith.mulf %270, %274 : vector<40x40xf32>
    %276 = vector.broadcast %260 : vector<1x128xf32> to vector<40x128xf32>
    %277 = arith.mulf %58, %276 : vector<40x128xf32>
    %cst_79 = arith.constant dense<0.000000e+00> : vector<40x128xf32>
    %278 = tpu.matmul %275, %277, %cst_79 {dimension_numbers = #tpu.dot_dimension_numbers<[1], [0], [0], [1], [0, 0, 1, 1], [], []>} : vector<40x40xf32>, vector<40x128xf32>, vector<40x128xf32> -> vector<40x128xf32>
    %279 = arith.addf %259, %278 : vector<40x128xf32>
    %c11 = arith.constant 11 : index
    %c0_80 = arith.constant 0 : index
    %280 = vector.load %arg7[%c11, %c0_80] : memref<12x128xf32, #tpu.memory_space<vmem>>, vector<1x128xf32>
    %281 = vector.broadcast %280 : vector<1x128xf32> to vector<40x128xf32>
    %282 = arith.mulf %57, %281 : vector<40x128xf32>
    %cst_81 = arith.constant dense<0.000000e+00> : vector<40x40xf32>
    %283 = tpu.matmul %56, %282, %cst_81 {dimension_numbers = #tpu.dot_dimension_numbers<[1], [1], [0], [0], [0, 0, 1, 0], [], []>} : vector<40x128xf32>, vector<40x128xf32>, vector<40x40xf32> -> vector<40x40xf32>
    %284 = vector.broadcast %10 : vector<1x40xf32> to vector<40x40xf32>
    %285 = arith.addf %283, %284 : vector<40x40xf32>
    %cst_82 = arith.constant dense<0xFF800000> : vector<40xf32>
    %286 = vector.multi_reduction <maximumf>, %285, %cst_82 [1] : vector<40x40xf32> to vector<40xf32>
    %287 = vector.shape_cast %286 : vector<40xf32> to vector<40x1xf32>
    %288 = vector.broadcast %287 : vector<40x1xf32> to vector<40x40xf32>
    %289 = arith.subf %285, %288 : vector<40x40xf32>
    %290 = math.exp %289 : vector<40x40xf32>
    %cst_83 = arith.constant dense<0.000000e+00> : vector<40xf32>
    %291 = vector.multi_reduction <add>, %290, %cst_83 [1] : vector<40x40xf32> to vector<40xf32>
    %292 = vector.shape_cast %291 : vector<40xf32> to vector<40x1xf32>
    %293 = tpu.reciprocal %292 {approx = true} : vector<40x1xf32> -> vector<40x1xf32>
    %294 = vector.broadcast %293 : vector<40x1xf32> to vector<40x40xf32>
    %295 = arith.mulf %290, %294 : vector<40x40xf32>
    %296 = vector.broadcast %280 : vector<1x128xf32> to vector<40x128xf32>
    %297 = arith.mulf %58, %296 : vector<40x128xf32>
    %cst_84 = arith.constant dense<0.000000e+00> : vector<40x128xf32>
    %298 = tpu.matmul %295, %297, %cst_84 {dimension_numbers = #tpu.dot_dimension_numbers<[1], [0], [0], [1], [0, 0, 1, 1], [], []>} : vector<40x40xf32>, vector<40x128xf32>, vector<40x128xf32> -> vector<40x128xf32>
    %299 = arith.addf %279, %298 : vector<40x128xf32>
    %300 = arith.truncf %299 : vector<40x128xf32> to vector<40x128xbf16>
    %c0_85 = arith.constant 0 : index
    %c0_86 = arith.constant 0 : index
    %c0_87 = arith.constant 0 : index
    %301 = vector.load %arg12[%c0_85, %c0_86, %c0_87] : memref<1x128x128xbf16, #tpu.memory_space<vmem>>, vector<1x128x128xbf16>
    %302 = vector.shape_cast %301 : vector<1x128x128xbf16> to vector<128x128xbf16>
    %cst_88 = arith.constant dense<0.000000e+00> : vector<40x128xf32>
    %303 = tpu.matmul %300, %302, %cst_88 {dimension_numbers = #tpu.dot_dimension_numbers<[1], [0], [0], [1], [0, 0, 1, 1], [], []>} : vector<40x128xbf16>, vector<128x128xbf16>, vector<40x128xf32> -> vector<40x128xf32>
    %304 = arith.addf %19, %303 : vector<40x128xf32>
    %c0_89 = arith.constant 0 : index
    %c0_90 = arith.constant 0 : index
    %c0_91 = arith.constant 0 : index
    %305 = vector.load %arg13[%c0_89, %c0_90, %c0_91] : memref<1x1x128xf32, #tpu.memory_space<vmem>>, vector<1x1x128xf32>
    %306 = vector.shape_cast %305 : vector<1x1x128xf32> to vector<1x128xf32>
    %307 = vector.broadcast %306 : vector<1x128xf32> to vector<40x128xf32>
    %308 = arith.addf %304, %307 : vector<40x128xf32>
    %c0_92 = arith.constant 0 : index
    %c0_93 = arith.constant 0 : index
    %c0_94 = arith.constant 0 : index
    %309 = vector.load %arg14[%c0_92, %c0_93, %c0_94] : memref<1x1x128xf32, #tpu.memory_space<vmem>>, vector<1x1x128xf32>
    %310 = vector.shape_cast %309 : vector<1x1x128xf32> to vector<1x128xf32>
    %c0_95 = arith.constant 0 : index
    %c0_96 = arith.constant 0 : index
    %c0_97 = arith.constant 0 : index
    %311 = vector.load %arg15[%c0_95, %c0_96, %c0_97] : memref<1x1x128xf32, #tpu.memory_space<vmem>>, vector<1x1x128xf32>
    %312 = vector.shape_cast %311 : vector<1x1x128xf32> to vector<1x128xf32>
    %cst_98 = arith.constant dense<0.000000e+00> : vector<40xf32>
    %313 = vector.multi_reduction <add>, %308, %cst_98 [1] : vector<40x128xf32> to vector<40xf32>
    %314 = vector.shape_cast %313 : vector<40xf32> to vector<40x1xf32>
    %cst_99 = arith.constant 0.00833333377 : f32
    %315 = vector.broadcast %cst_99 : f32 to vector<40x1xf32>
    %316 = arith.mulf %314, %315 : vector<40x1xf32>
    %317 = vector.broadcast %316 : vector<40x1xf32> to vector<40x128xf32>
    %318 = arith.subf %308, %317 : vector<40x128xf32>
    %319 = vector.broadcast %4 : vector<1x128xf32> to vector<40x128xf32>
    %320 = arith.mulf %318, %319 : vector<40x128xf32>
    %321 = arith.mulf %320, %320 : vector<40x128xf32>
    %cst_100 = arith.constant dense<0.000000e+00> : vector<40xf32>
    %322 = vector.multi_reduction <add>, %321, %cst_100 [1] : vector<40x128xf32> to vector<40xf32>
    %323 = vector.shape_cast %322 : vector<40xf32> to vector<40x1xf32>
    %cst_101 = arith.constant 0.00833333377 : f32
    %324 = vector.broadcast %cst_101 : f32 to vector<40x1xf32>
    %325 = arith.mulf %323, %324 : vector<40x1xf32>
    %cst_102 = arith.constant 9.99999997E-7 : f32
    %326 = vector.broadcast %cst_102 : f32 to vector<40x1xf32>
    %327 = arith.addf %325, %326 : vector<40x1xf32>
    %328 = math.rsqrt %327 : vector<40x1xf32>
    %329 = vector.broadcast %328 : vector<40x1xf32> to vector<40x128xf32>
    %330 = arith.mulf %320, %329 : vector<40x128xf32>
    %331 = vector.broadcast %310 : vector<1x128xf32> to vector<40x128xf32>
    %332 = arith.mulf %330, %331 : vector<40x128xf32>
    %333 = vector.broadcast %312 : vector<1x128xf32> to vector<40x128xf32>
    %334 = arith.addf %332, %333 : vector<40x128xf32>
    %335 = arith.truncf %334 : vector<40x128xf32> to vector<40x128xbf16>
    %c0_103 = arith.constant 0 : index
    %c0_104 = arith.constant 0 : index
    %c0_105 = arith.constant 0 : index
    %336 = vector.load %arg16[%c0_103, %c0_104, %c0_105] : memref<1x128x640xbf16, #tpu.memory_space<vmem>>, vector<1x128x640xbf16>
    %337 = vector.shape_cast %336 : vector<1x128x640xbf16> to vector<128x640xbf16>
    %cst_106 = arith.constant dense<0.000000e+00> : vector<40x640xf32>
    %338 = tpu.matmul %335, %337, %cst_106 {dimension_numbers = #tpu.dot_dimension_numbers<[1], [0], [0], [1], [0, 0, 1, 1], [], []>} : vector<40x128xbf16>, vector<128x640xbf16>, vector<40x640xf32> -> vector<40x640xf32>
    %c0_107 = arith.constant 0 : index
    %c0_108 = arith.constant 0 : index
    %c0_109 = arith.constant 0 : index
    %339 = vector.load %arg17[%c0_107, %c0_108, %c0_109] : memref<1x1x640xf32, #tpu.memory_space<vmem>>, vector<1x1x640xf32>
    %340 = vector.shape_cast %339 : vector<1x1x640xf32> to vector<1x640xf32>
    %341 = vector.broadcast %340 : vector<1x640xf32> to vector<40x640xf32>
    %342 = arith.addf %338, %341 : vector<40x640xf32>
    %cst_110 = arith.constant 5.000000e-01 : f32
    %343 = vector.broadcast %cst_110 : f32 to vector<40x640xf32>
    %344 = arith.mulf %343, %342 : vector<40x640xf32>
    %cst_111 = arith.constant 0.707106769 : f32
    %345 = vector.broadcast %cst_111 : f32 to vector<40x640xf32>
    %346 = arith.mulf %342, %345 : vector<40x640xf32>
    %347 = math.erf %346 : vector<40x640xf32>
    %cst_112 = arith.constant 1.000000e+00 : f32
    %348 = vector.broadcast %cst_112 : f32 to vector<40x640xf32>
    %349 = arith.addf %348, %347 : vector<40x640xf32>
    %350 = arith.mulf %344, %349 : vector<40x640xf32>
    %351 = arith.truncf %350 : vector<40x640xf32> to vector<40x640xbf16>
    %c0_113 = arith.constant 0 : index
    %c0_114 = arith.constant 0 : index
    %c0_115 = arith.constant 0 : index
    %352 = vector.load %arg18[%c0_113, %c0_114, %c0_115] : memref<1x640x128xbf16, #tpu.memory_space<vmem>>, vector<1x640x128xbf16>
    %353 = vector.shape_cast %352 : vector<1x640x128xbf16> to vector<640x128xbf16>
    %cst_116 = arith.constant dense<0.000000e+00> : vector<40x128xf32>
    %354 = tpu.matmul %351, %353, %cst_116 {dimension_numbers = #tpu.dot_dimension_numbers<[1], [0], [0], [1], [0, 0, 1, 1], [], []>} : vector<40x640xbf16>, vector<640x128xbf16>, vector<40x128xf32> -> vector<40x128xf32>
    %355 = arith.addf %308, %354 : vector<40x128xf32>
    %c0_117 = arith.constant 0 : index
    %c0_118 = arith.constant 0 : index
    %c0_119 = arith.constant 0 : index
    %356 = vector.load %arg19[%c0_117, %c0_118, %c0_119] : memref<1x1x128xf32, #tpu.memory_space<vmem>>, vector<1x1x128xf32>
    %357 = vector.shape_cast %356 : vector<1x1x128xf32> to vector<1x128xf32>
    %358 = vector.broadcast %357 : vector<1x128xf32> to vector<40x128xf32>
    %359 = arith.addf %355, %358 : vector<40x128xf32>
    %360 = vector.broadcast %15 : vector<40x1xf32> to vector<40x128xf32>
    %361 = arith.mulf %359, %360 : vector<40x128xf32>
    %c0_120 = arith.constant 0 : index
    %c0_121 = arith.constant 0 : index
    %362 = vector.load %arg25[%c0_120, %c0_121] : memref<40x128xf32, #tpu.memory_space<vmem>>, vector<40x128xf32>
    tpu.vector_store %arg25[%c0_120, %c0_121], %361 {strides = array<i32>} : memref<40x128xf32, #tpu.memory_space<vmem>>, vector<40x128xf32>,
    %c11_i32 = arith.constant 11 : i32
    %363 = arith.cmpi eq, %arg1, %c11_i32 : i32
    %364 = arith.extui %363 : i1 to i32
    %c0_i32_122 = arith.constant 0 : i32
    %365 = arith.cmpi ne, %364, %c0_i32_122 : i32
    scf.if %365 {
      %366 = vector.extract_strided_slice %361 {offsets = [0, 0], sizes = [1, 128], strides = [1, 1]} : vector<40x128xf32> to vector<1x128xf32>
      %c0_123 = arith.constant 0 : index
      %c0_124 = arith.constant 0 : index
      %367 = vector.load %arg20[%c0_123, %c0_124] : memref<1x128xf32, #tpu.memory_space<vmem>>, vector<1x128xf32>
      %c0_125 = arith.constant 0 : index
      %c0_126 = arith.constant 0 : index
      %368 = vector.load %arg21[%c0_125, %c0_126] : memref<1x128xf32, #tpu.memory_space<vmem>>, vector<1x128xf32>
      %cst_127 = arith.constant dense<0.000000e+00> : vector<1xf32>
      %369 = vector.multi_reduction <add>, %366, %cst_127 [1] : vector<1x128xf32> to vector<1xf32>
      %370 = vector.shape_cast %369 : vector<1xf32> to vector<1x1xf32>
      %cst_128 = arith.constant 0.00833333377 : f32
      %371 = vector.broadcast %cst_128 : f32 to vector<1x1xf32>
      %372 = arith.mulf %370, %371 : vector<1x1xf32>
      %373 = vector.broadcast %372 : vector<1x1xf32> to vector<1x128xf32>
      %374 = arith.subf %366, %373 : vector<1x128xf32>
      %375 = arith.mulf %374, %4 : vector<1x128xf32>
      %376 = arith.mulf %375, %375 : vector<1x128xf32>
      %cst_129 = arith.constant dense<0.000000e+00> : vector<1xf32>
      %377 = vector.multi_reduction <add>, %376, %cst_129 [1] : vector<1x128xf32> to vector<1xf32>
      %378 = vector.shape_cast %377 : vector<1xf32> to vector<1x1xf32>
      %cst_130 = arith.constant 0.00833333377 : f32
      %379 = vector.broadcast %cst_130 : f32 to vector<1x1xf32>
      %380 = arith.mulf %378, %379 : vector<1x1xf32>
      %cst_131 = arith.constant 9.99999997E-7 : f32
      %381 = vector.broadcast %cst_131 : f32 to vector<1x1xf32>
      %382 = arith.addf %380, %381 : vector<1x1xf32>
      %383 = math.rsqrt %382 : vector<1x1xf32>
      %384 = vector.broadcast %383 : vector<1x1xf32> to vector<1x128xf32>
      %385 = arith.mulf %375, %384 : vector<1x128xf32>
      %386 = arith.mulf %385, %367 : vector<1x128xf32>
      %387 = arith.addf %386, %368 : vector<1x128xf32>
      %c0_132 = arith.constant 0 : index
      %c0_133 = arith.constant 0 : index
      %388 = vector.load %arg22[%c0_132, %c0_133] : memref<128x128xf32, #tpu.memory_space<vmem>>, vector<128x128xf32>
      %cst_134 = arith.constant dense<0.000000e+00> : vector<1x128xf32>
      %389 = tpu.matmul %387, %388, %cst_134 {dimension_numbers = #tpu.dot_dimension_numbers<[1], [0], [0], [1], [0, 0, 1, 1], [], []>} : vector<1x128xf32>, vector<128x128xf32>, vector<1x128xf32> -> vector<1x128xf32>
      %c0_135 = arith.constant 0 : index
      %c0_136 = arith.constant 0 : index
      %390 = vector.load %arg23[%c0_135, %c0_136] : memref<1x128xf32, #tpu.memory_space<vmem>>, vector<1x128xf32>
      %391 = arith.addf %389, %390 : vector<1x128xf32>
      %c0_137 = arith.constant 0 : index
      %c0_138 = arith.constant 0 : index
      %c0_139 = arith.constant 0 : index
      %392 = vector.load %arg24[%c0_137, %c0_138, %c0_139] : memref<1x1x128xf32, #tpu.memory_space<vmem>>, vector<1x1x128xf32>
      %393 = vector.shape_cast %392 : vector<1x1x128xf32> to vector<1x128xf32>
      %394 = vector.shape_cast %391 : vector<1x128xf32> to vector<1x1x128xf32>
      tpu.vector_store %arg24[%c0_137, %c0_138, %c0_139], %394 {strides = array<i32>} : memref<1x1x128xf32, #tpu.memory_space<vmem>>, vector<1x1x128xf32>,
    } else {
    }
    return
  }
  func.func @transform_0(%arg0: i32, %arg1: i32) -> (i32, i32, i32, i32) {
    %c0_i32 = arith.constant 0 : i32
    %c0_i32_0 = arith.constant 0 : i32
    %c0_i32_1 = arith.constant 0 : i32
    %c0_i32_2 = arith.constant 0 : i32
    return %arg0, %c0_i32, %c0_i32_0, %c0_i32_1 : i32, i32, i32, i32
  }
  func.func @transform_1(%arg0: i32, %arg1: i32) -> (i32, i32) {
    %c0_i32 = arith.constant 0 : i32
    %c0_i32_0 = arith.constant 0 : i32
    %c0_i32_1 = arith.constant 0 : i32
    return %c0_i32, %c0_i32_0 : i32, i32
  }
  func.func @transform_2(%arg0: i32, %arg1: i32) -> (i32, i32) {
    %c0_i32 = arith.constant 0 : i32
    %c0_i32_0 = arith.constant 0 : i32
    %c0_i32_1 = arith.constant 0 : i32
    return %c0_i32, %c0_i32_0 : i32, i32
  }
  func.func @transform_3(%arg0: i32, %arg1: i32) -> (i32, i32) {
    %c0_i32 = arith.constant 0 : i32
    %c0_i32_0 = arith.constant 0 : i32
    %c0_i32_1 = arith.constant 0 : i32
    return %c0_i32, %c0_i32_0 : i32, i32
  }
  func.func @transform_4(%arg0: i32, %arg1: i32) -> (i32, i32) {
    %c0_i32 = arith.constant 0 : i32
    %c0_i32_0 = arith.constant 0 : i32
    %c0_i32_1 = arith.constant 0 : i32
    return %c0_i32, %c0_i32_0 : i32, i32
  }
  func.func @transform_5(%arg0: i32, %arg1: i32) -> (i32, i32) {
    %c0_i32 = arith.constant 0 : i32
    %c0_i32_0 = arith.constant 0 : i32
    %c0_i32_1 = arith.constant 0 : i32
    return %c0_i32, %c0_i32_0 : i32, i32
  }
  func.func @transform_6(%arg0: i32, %arg1: i32) -> (i32, i32, i32) {
    %c0_i32 = arith.constant 0 : i32
    %c0_i32_0 = arith.constant 0 : i32
    %c0_i32_1 = arith.constant 0 : i32
    return %arg1, %c0_i32, %c0_i32_0 : i32, i32, i32
  }
  func.func @transform_7(%arg0: i32, %arg1: i32) -> (i32, i32, i32) {
    %c0_i32 = arith.constant 0 : i32
    %c0_i32_0 = arith.constant 0 : i32
    %c0_i32_1 = arith.constant 0 : i32
    return %arg1, %c0_i32, %c0_i32_0 : i32, i32, i32
  }
  func.func @transform_8(%arg0: i32, %arg1: i32) -> (i32, i32, i32) {
    %c0_i32 = arith.constant 0 : i32
    %c0_i32_0 = arith.constant 0 : i32
    %c0_i32_1 = arith.constant 0 : i32
    return %arg1, %c0_i32, %c0_i32_0 : i32, i32, i32
  }
  func.func @transform_9(%arg0: i32, %arg1: i32) -> (i32, i32, i32) {
    %c0_i32 = arith.constant 0 : i32
    %c0_i32_0 = arith.constant 0 : i32
    %c0_i32_1 = arith.constant 0 : i32
    return %arg1, %c0_i32, %c0_i32_0 : i32, i32, i32
  }
  func.func @transform_10(%arg0: i32, %arg1: i32) -> (i32, i32, i32) {
    %c0_i32 = arith.constant 0 : i32
    %c0_i32_0 = arith.constant 0 : i32
    %c0_i32_1 = arith.constant 0 : i32
    return %arg1, %c0_i32, %c0_i32_0 : i32, i32, i32
  }
  func.func @transform_11(%arg0: i32, %arg1: i32) -> (i32, i32, i32) {
    %c0_i32 = arith.constant 0 : i32
    %c0_i32_0 = arith.constant 0 : i32
    %c0_i32_1 = arith.constant 0 : i32
    return %arg1, %c0_i32, %c0_i32_0 : i32, i32, i32
  }
  func.func @transform_12(%arg0: i32, %arg1: i32) -> (i32, i32, i32) {
    %c0_i32 = arith.constant 0 : i32
    %c0_i32_0 = arith.constant 0 : i32
    %c0_i32_1 = arith.constant 0 : i32
    return %arg1, %c0_i32, %c0_i32_0 : i32, i32, i32
  }
  func.func @transform_13(%arg0: i32, %arg1: i32) -> (i32, i32, i32) {
    %c0_i32 = arith.constant 0 : i32
    %c0_i32_0 = arith.constant 0 : i32
    %c0_i32_1 = arith.constant 0 : i32
    return %arg1, %c0_i32, %c0_i32_0 : i32, i32, i32
  }
  func.func @transform_14(%arg0: i32, %arg1: i32) -> (i32, i32, i32) {
    %c0_i32 = arith.constant 0 : i32
    %c0_i32_0 = arith.constant 0 : i32
    %c0_i32_1 = arith.constant 0 : i32
    return %arg1, %c0_i32, %c0_i32_0 : i32, i32, i32
  }
  func.func @transform_15(%arg0: i32, %arg1: i32) -> (i32, i32, i32) {
    %c0_i32 = arith.constant 0 : i32
    %c0_i32_0 = arith.constant 0 : i32
    %c0_i32_1 = arith.constant 0 : i32
    return %arg1, %c0_i32, %c0_i32_0 : i32, i32, i32
  }
  func.func @transform_16(%arg0: i32, %arg1: i32) -> (i32, i32, i32) {
    %c0_i32 = arith.constant 0 : i32
    %c0_i32_0 = arith.constant 0 : i32
    %c0_i32_1 = arith.constant 0 : i32
    return %arg1, %c0_i32, %c0_i32_0 : i32, i32, i32
  }
  func.func @transform_17(%arg0: i32, %arg1: i32) -> (i32, i32, i32) {
    %c0_i32 = arith.constant 0 : i32
    %c0_i32_0 = arith.constant 0 : i32
    %c0_i32_1 = arith.constant 0 : i32
    return %arg1, %c0_i32, %c0_i32_0 : i32, i32, i32
  }
  func.func @transform_18(%arg0: i32, %arg1: i32) -> (i32, i32) {
    %c0_i32 = arith.constant 0 : i32
    %c0_i32_0 = arith.constant 0 : i32
    %c0_i32_1 = arith.constant 0 : i32
    return %c0_i32, %c0_i32_0 : i32, i32
  }
  func.func @transform_19(%arg0: i32, %arg1: i32) -> (i32, i32) {
    %c0_i32 = arith.constant 0 : i32
    %c0_i32_0 = arith.constant 0 : i32
    %c0_i32_1 = arith.constant 0 : i32
    return %c0_i32, %c0_i32_0 : i32, i32
  }
  func.func @transform_20(%arg0: i32, %arg1: i32) -> (i32, i32) {
    %c0_i32 = arith.constant 0 : i32
    %c0_i32_0 = arith.constant 0 : i32
    %c0_i32_1 = arith.constant 0 : i32
    return %c0_i32, %c0_i32_0 : i32, i32
  }
  func.func @transform_21(%arg0: i32, %arg1: i32) -> (i32, i32) {
    %c0_i32 = arith.constant 0 : i32
    %c0_i32_0 = arith.constant 0 : i32
    %c0_i32_1 = arith.constant 0 : i32
    return %c0_i32, %c0_i32_0 : i32, i32
  }
  func.func @transform_22(%arg0: i32, %arg1: i32) -> (i32, i32, i32) {
    %c0_i32 = arith.constant 0 : i32
    %c0_i32_0 = arith.constant 0 : i32
    %c0_i32_1 = arith.constant 0 : i32
    return %arg0, %c0_i32, %c0_i32_0 : i32, i32, i32
  }
}

</mosaic_0001>

<bundles_post_ra>
// kernel: fmt_forward.1
= control target key start
LH: loop header
LB: loop body
LE: loop exit
PB: predicated region body
PF: predicated region fallthrough
CT: control target
= control target key end

     0   :  { %s12377_s0 = inlined_call_operand.vmem [shape: f32[2,1,36,12], index: 0, kind: input, shape index: {}]   ;;  %s12378_s1 = inlined_call_operand.hbm [shape: f32[12,128], index: 1, kind: input, shape index: {}]   ;;  %s12379_s2 = inlined_call_operand.hbm [shape: f32[1,128], index: 2, kind: input, shape index: {}]   ;;  %s12380_s3 = inlined_call_operand.hbm [shape: f32[1,128], index: 3, kind: input, shape index: {}]   ;;  %s12381_s4 = inlined_call_operand.hbm [shape: f32[40,128], index: 4, kind: input, shape index: {}]   ;;  %s12382_s5 = inlined_call_operand.vmem [shape: f32[12,128], index: 5, kind: input, shape index: {}]   ;;  %s12383_s6 = inlined_call_operand.hbm [shape: f32[12,1,128], index: 6, kind: input, shape index: {}]   ;;  %s12384_s7 = inlined_call_operand.hbm [shape: f32[12,1,128], index: 7, kind: input, shape index: {}]   ;;  %s12385_s8 = inlined_call_operand.hbm [shape: bf16[12,128,384], index: 8, kind: input, shape index: {}]   ;;  %s12386_s9 = inlined_call_operand.hbm [shape: f32[12,1,384], index: 9, kind: input, shape index: {}]   ;;  %s12387_s10 = inlined_call_operand.hbm [shape: bf16[12,128,128], index: 10, kind: input, shape index: {}]   ;;  %s12388_s11 = inlined_call_operand.hbm [shape: f32[12,1,128], index: 11, kind: input, shape index: {}]   ;;  %s12389_s12 = inlined_call_operand.hbm [shape: f32[12,1,128], index: 12, kind: input, shape index: {}]   ;;  %s12390_s13 = inlined_call_operand.hbm [shape: f32[12,1,128], index: 13, kind: input, shape index: {}]   ;;  %s12391_s14 = inlined_call_operand.hbm [shape: bf16[12,128,640], index: 14, kind: input, shape index: {}]   ;;  %s12392_s15 = inlined_call_operand.hbm [shape: f32[12,1,640], index: 15, kind: input, shape index: {}]   ;;  %s12393_s16 = inlined_call_operand.hbm [shape: bf16[12,640,128], index: 16, kind: input, shape index: {}]   ;;  %s12394_s17 = inlined_call_operand.hbm [shape: f32[12,1,128], index: 17, kind: input, shape index: {}]   ;;  %s12395_s18 = inlined_call_operand.hbm [shape: f32[1,128], index: 18, kind: input, shape index: {}]   ;;  %s12396_s19 = inlined_call_operand.hbm [shape: f32[1,128], index: 19, kind: input, shape index: {}]   ;;  %s12397_s20 = inlined_call_operand.hbm [shape: f32[128,128], index: 20, kind: input, shape index: {}]   ;;  %s12398_s21 = inlined_call_operand.hbm [shape: f32[1,128], index: 21, kind: input, shape index: {}]   ;;  %s12399_s22 = inlined_call_operand.hbm [shape: f32[2,1,128], index: 22, kind: output, shape index: {}]  }
   0x1   :  { %12458 = sst [smem:[#allocation115_spill]] %s12377_s0 }
   0x2   :  { %12459 = sst [smem:[#allocation116_spill]] %s12378_s1 }
   0x3   :  { %12460 = sst [smem:[#allocation117_spill]] %s12379_s2 }
   0x4   :  { %12461 = sst [smem:[#allocation118_spill]] %s12380_s3 }
   0x5   :  { %12462 = sst [smem:[#allocation119_spill]] %s12381_s4 }
   0x6   :  { %12463 = sst [smem:[#allocation120_spill]] %s12382_s5 }
   0x7   :  { %12464 = sst [smem:[#allocation121_spill]] %s12383_s6 }
   0x8   :  { %12465 = sst [smem:[#allocation122_spill]] %s12384_s7 }
   0x9   :  { %12466 = sst [smem:[#allocation123_spill]] %s12385_s8 }
   0xa   :  { %12467 = sst [smem:[#allocation124_spill]] %s12392_s15 }
   0xb   :  { %12468 = sst [smem:[#allocation125_spill]] %s12393_s16 }
   0xc   :  { %12469 = sst [smem:[#allocation126_spill]] %s12394_s17 }
   0xd   :  { %12470 = sst [smem:[#allocation127_spill]] %s12395_s18 }
   0xe   :  { %12471 = sst [smem:[#allocation128_spill]] %s12396_s19 }
   0xf   :  { %12472 = sst [smem:[#allocation129_spill]] %s12397_s20 }
  0x10   :  { %12473 = sst [smem:[#allocation130_spill]] %s12398_s21 }
  0x11   :  { %12474 = sst [smem:[#allocation131_spill]] %s12399_s22 }
  0x12   :  { %27 = vsyncpa [#allocation4], 0 }
  0x13   :  { %28 = vsyncpa [#allocation7], 0 }
  0x14   :  { %29 = vsyncpa [#allocation10], 0 }
  0x15   :  { %30 = vsyncpa [#allocation26], 0 }
  0x16   :  { %31 = vsyncpa [#allocation5], 0 }
  0x17   :  { %33 = vsyncpa [#allocation5 + $0x1], 0  ;;  %s9808_s3 = smov 0   ;;  %s9810_s28 = smov 0  }
  0x18   :  { %s9812_s29 = smov 0   ;;  %s9814_s30 = smov 0  }
  0x19   :  { %s9816_s4 = smov 0   ;;  %s9818_s0 = smov 0  }
  0x1a   :  { %s9820_s23 = smov 0   ;;  %s9822_s1 = smov 0  }
  0x1b   :  { %s9824_s5 = smov 0   ;;  %s9826_s24 = smov 0  }
  0x1c   :  { %s9828_s6 = smov 0  }
  0x1d LB: > { %12475 = sst [smem:[#allocation37_spill]] %s9614_s3  ;;  %s9862_s25 = sadd.s32 4294967295, %s9654_s6   ;;  %s9654_s6 = sphi %s9828_s6, %s39_s6   ;;  %s9650_s24 = sphi %s9826_s24, %s12693_s24   ;;  %s9646_s5 = sphi %s9824_s5, %s12695_s5   ;;  %s9642_s1 = sphi %s9822_s1, %s12691_s1   ;;  %s9638_s23 = sphi %s9820_s23, %s12694_s23   ;;  %s9634_s0 = sphi %s9818_s0, %s12690_s0   ;;  %s9630_s4 = sphi %s9816_s4, %s12689_s4   ;;  %s9626_s30 = sphi %s9814_s30, %s12688_s30   ;;  %s9622_s29 = sphi %s9812_s29, %s12687_s29   ;;  %s9618_s28 = sphi %s9810_s28, %s12686_s28   ;;  %s9614_s3 = sphi %s9808_s3, %s12685_s3  }
  0x1e   : > { %12476 = sst [smem:[#allocation38_spill]] %s9618_s28  ;;  %s6857_s26 = sadd.s32 4294967294, %s9654_s6  }
  0x1f   : > { %12477 = sst [smem:[#allocation39_spill]] %s9622_s29  ;;  %p202_p0 = scmp.ne.s32.totalorder %s9630_s4, %s9626_s30 }
  0x20   : > { %12478 = sst [smem:[#allocation40_spill]] %s9630_s4  ;;  %p12423_p1 = scmp.eq.s32.totalorder %s9862_s25, 0 }
  0x21   : > { %12479 = sst [smem:[#allocation41_spill]] %s9634_s0  ;;  %p595_p2 = scmp.ne.s32.totalorder %s9622_s29, %s9618_s28 }
  0x22   : > { %12480 = sst [smem:[#allocation42_spill]] %s9638_s23  ;;  %p9872_p3 = por %p12423_p1, %p202_p0 }
  0x23   : > { %12481 = sst [smem:[#allocation43_spill]] %s9642_s1  ;;  %p596_p4 = scmp.eq.s32.totalorder %s9862_s25, 23 }
  0x24   : > { %12482 = sst [smem:[#allocation44_spill]] %s9650_s24  ;;  %p601_p5 = scmp.ne.s32.totalorder %s9618_s28, %s9614_s3 }
  0x25   : > { %12483 = sst [smem:[#allocation45_spill]] %s9654_s6  ;;  %p602_p6 = scmp.eq.s32.totalorder %s6857_s26, 23 }
  0x26   : > { %12484 = sst [smem:[#allocation46_spill]] %s9862_s25  ;;  %p9879_p7 = por %p596_p4, %p595_p2 }
  0x27   : > { %s12485_s27 = scalar_select %p9872_p3, 1, 0 }
  0x28   : > { %s12487_s22 = scalar_select %p9879_p7, 1, 0 }
  0x29   : > { %12486 = sst [smem:[#allocation47_spill]] %s12485_s27  ;;  %p6858_p8 = scmp.ge.s32.totalorder %s9654_s6, 1 }
  0x2a   : > { %12488 = sst [smem:[#allocation48_spill]] %s12487_s22  ;;  %p9884_p9 = por %p602_p6, %p601_p5 }
  0x2b   : > { %p609_p10 = scmp.lt.s32.totalorder %s9654_s6, 25  ;;  %s9656_s2 = smov [#allocation3]  }
  0x2c   : > { %s12489_s23 = scalar_select %p9884_p9, 1, 0 }
  0x2d   : > { %p9889_p11 = pnand %p6858_p8, %p609_p10  ;;  %s621_s1 = sshll.u32 %s9656_s2, 4  ;;  %s622_s1 = int_to_ptr.vmem [resolvable:$true] %s621_s1 }
  0x2e   : > { %12490 = sst [smem:[#allocation49_spill]] %s12489_s23  ;;  %s8977_s3 = scalar_lea.vmem %s622_s1, 256 }
  0x2f   : > { %s12491_s30 = scalar_select %p9889_p11, 1, 0 }
  0x30   : > { %p8317_p12 = pneg %p9889_p11  ;;  %p8978_p2 = scmp.ne.s32.totalorder %s622_s1, %s8977_s3 }
  0x31   : > { %12492 = sst [smem:[#allocation50_spill]] %s12491_s30  ;;  %p8985_p6 = scmp.lt.s32.totalorder %s622_s1, %s622_s1 }
  0x32   : > { %p9897_p13 = pnand %p8317_p12, %p12423_p1  ;;  %p8986_p8 = scmp.lt.s32.totalorder %s8977_s3, %s8977_s3 }
  0x34   : > { %p9903_p0 = pneg %p9897_p13  ;;  %p8987_p10 = por %p8986_p8, %p8985_p6 }
  0x36   : > { %p8980_p4 = pnand %p8978_p2, %p9903_p0 }
  0x38   : > { %p8981_p5 = pneg %p8980_p4 }
  0x3a   : > { %p8988_p9 = pnand %p8987_p10, %p8981_p5 }
  0x3c   : > { %8991 = shalt.err (!%p8988_p9)
}
  0x3d   : > { %s12414_s2 = smov 128   ;;  %s12416_s22 = smov 8  }
  0x3e   : > { %s12495_s27 = sld [smem:[#allocation116_spill]]  ;;  %s48_s25 = sadd.s32 1, %s9646_s5 }
  0x3f   : > { %p49_p9 = scmp.ge.s32.totalorder %s48_s25, 12  ;;  %s51_s30 = sadd.s32 1, %s9650_s24 }
  0x40   : > { %s189_s17 = sadd.s32 1, %s9634_s0  ;;  %p196_p12 = scmp.ne.s32.totalorder %s9634_s0, %s9630_s4 }
  0x41   : > { %s12697_s25 = smov (%p49_p9, %s48_s25), 0  ;;  %s12699_s30 = smov (!%p49_p9, %s51_s30), %s9650_s24 }
  0x42   : > { %12496 = sst [smem:[#allocation51_spill]] %s12697_s25  ;;  %s186_s21 = ssub.s32 %s9646_s5, %s12697_s25 }
  0x43   : > { %p197_p2 = scmp.eq.s32.totalorder %s9654_s6, 0  ;;  %p53_p4 = scmp.ge.s32.totalorder %s12699_s30, 2 }
  0x44   : > { %8320 = dma.hbm_to_vmem [thread:$0]  (!%p9897_p13), %s12495_s27, 256, %s622_s1, [#allocation4], %s12414_s2, %s12414_s2, %s12416_s22  }
  0x45   : > { %p187_p5 = scmp.eq.s32.totalorder %s186_s21, 0  ;;  %p9928_p6 = por %p197_p2, %p196_p12 }
  0x46   : > { %p8391_p8 = scmp.lt.s32.totalorder %s9654_s6, 24  ;;  %s12701_s30 = smov (%p53_p4, %s12699_s30), 0 }
  0x47   : > { %12498 = sst [smem:[#allocation52_spill]] %s12701_s30  ;;  %s582_s27 = ssub.s32 %s9650_s24, %s12701_s30 }
  0x48   : > { %s9936_s1 = scalar_select %p187_p5, %s9634_s0, %s189_s17  }
  0x49   : > { %s727_s3 = sand.u32 1, %s9654_s6   ;;  %p583_p10 = scmp.eq.s32.totalorder %s582_s27, 0 }
  0x4a   : > { %12499 = sst [smem:[#allocation53_spill]] %s9936_s1  ;;  %s9942_s2 = sand.u32 1, %s9634_s0  }
  0x4b   : > { %s9945_s22 = sshll.u32 %s9646_s5, 4  ;;  %s12500_s21 = sadd.s32 1, %s9622_s29 }
  0x4c   : > { %s9950_s25 = scalar_select %p583_p10, %s9622_s29, %s12500_s21  }
  0x4d   : > { %s12502_s18 = sld [smem:[#allocation121_spill]]  ;;  %s730_s16 = scalar_lea.vmem [#allocation11], %s9942_s2 }
  0x4e   : > { %12501 = sst [smem:[#allocation54_spill]] %s9950_s25  ;;  %s737_s17 = sshll.u32 %s730_s16, 4  ;;  %s738_s17 = int_to_ptr.vmem [resolvable:$true] %s737_s17 }
  0x4f   : > { %p9959_p9 = pnand %p8391_p8, %p9928_p6  ;;  %s12504_s7 = sld [smem:[#allocation122_spill]] }
  0x50   : > { %s9967_s0 = scalar_lea.sflag [#allocation4], %s727_s3  ;;  %s9005_s16 = scalar_lea.vmem %s738_s17, 16 }
  0x51   : > { %s12503_s30 = scalar_select %p9959_p9, 1, 0 }
  0x52   : > { %p9971_p12 = pneg %p9959_p9  ;;  %p9006_p2 = scmp.ne.s32.totalorder %s738_s17, %s9005_s16 }
  0x53   : > { %s735_s20 = scalar_lea.hbm %s12502_s18, %s9945_s22  ;;  %s9659_s18 = smov [#allocation11]  }
  0x54   : > { %s12505_s21 = scalar_select %p9971_p12, 1, 0 }
  0x55   : > { %s752_s1 = scalar_lea.hbm %s12504_s7, %s9945_s22  ;;  %p9008_p4 = pnand %p9006_p2, %p9971_p12 }
  0x56   : > { %s9010_s19 = sshll.u32 %s9659_s18, 4  ;;  %s9011_s19 = int_to_ptr.vmem [resolvable:$false] %s9010_s19 }
  0x57   : > { %p9009_p5 = pneg %p9008_p4  ;;  %s9012_s4 = scalar_lea.vmem %s9011_s19, 32 }
  0x58   : > { %p9013_p6 = scmp.lt.s32.totalorder %s738_s17, %s9011_s19  ;;  %p9014_p8 = scmp.lt.s32.totalorder %s9012_s4, %s9005_s16 }
  0x5a   : > { %p9015_p10 = por %p9014_p8, %p9013_p6 }
  0x5c   : > { %p9016_p1 = pnand %p9015_p10, %p9009_p5 }
  0x5e   : > { %9019 = shalt.err (!%p9016_p1)
}
  0x5f   : > { %8345 = dma.hbm_to_vmem [thread:$0]  (!%p9959_p9), %s735_s20, 16, %s738_s17, %s9967_s0  }
  0x60   : > { %s747_s24 = scalar_lea.vmem [#allocation12], %s9942_s2  ;;  %s8244_s3 = smul.u32 192, %s9942_s2 }
  0x61   : > { %s754_s28 = sshll.u32 %s747_s24, 4  ;;  %s8245_s27 = smul.u32 3072, %s9646_s5  ;;  %s755_s28 = int_to_ptr.vmem [resolvable:$true] %s754_s28 }
  0x62   : > { %s9033_s18 = scalar_lea.vmem %s755_s28, 16  ;;  %s9660_s16 = smov [#allocation12]  }
  0x63   : > { %p9034_p2 = scmp.ne.s32.totalorder %s755_s28, %s9033_s18  ;;  %s9038_s19 = sshll.u32 %s9660_s16, 4  ;;  %s9039_s19 = int_to_ptr.vmem [resolvable:$false] %s9038_s19 }
  0x64   : > { %s9040_s4 = scalar_lea.vmem %s9039_s19, 32  ;;  %p9041_p1 = scmp.lt.s32.totalorder %s755_s28, %s9039_s19 }
  0x65   : > { %p9036_p4 = pnand %p9034_p2, %p9971_p12  ;;  %p9042_p5 = scmp.lt.s32.totalorder %s9040_s4, %s9033_s18 }
  0x67   : > { %p9037_p6 = pneg %p9036_p4  ;;  %p9043_p8 = por %p9042_p5, %p9041_p1 }
  0x69   : > { %p9044_p10 = pnand %p9043_p8, %p9037_p6 }
  0x6b   : > { %9047 = shalt.err (!%p9044_p10)
}
  0x6c   : > { %8348 = dma.hbm_to_vmem [thread:$0]  (!%p9959_p9), %s752_s1, 16, %s755_s28, %s9967_s0  }
  0x6d   : > { %s12506_s8 = sld [smem:[#allocation123_spill]]  ;;  %s765_s29 = scalar_lea.vmem [#allocation13], %s8244_s3 }
  0x6e   : > { %s772_s19 = sshll.u32 %s765_s29, 4  ;;  %s9661_s4 = smov [#allocation13]   ;;  %s773_s19 = int_to_ptr.vmem [resolvable:$true] %s772_s19 }
  0x6f   : > { %s9061_s18 = scalar_lea.vmem %s773_s19, 3072  ;;  %s9066_s6 = sshll.u32 %s9661_s4, 4  ;;  %s9067_s6 = int_to_ptr.vmem [resolvable:$false] %s9066_s6 }
  0x70   : > { %p9062_p2 = scmp.ne.s32.totalorder %s773_s19, %s9061_s18  ;;  %s9068_s20 = scalar_lea.vmem %s9067_s6, 6144 }
  0x71   : > { %p9069_p1 = scmp.lt.s32.totalorder %s773_s19, %s9067_s6  ;;  %p9070_p5 = scmp.lt.s32.totalorder %s9068_s20, %s9061_s18 }
  0x72   : > { %p9064_p4 = pnand %p9062_p2, %p9971_p12 }
  0x73   : > { %s771_s16 = scalar_lea.hbm %s12506_s8, %s8245_s27  ;;  %p9071_p8 = por %p9070_p5, %p9069_p1 }
  0x74   : > { %p9065_p6 = pneg %p9064_p4 }
  0x76   : > { %p9072_p10 = pnand %p9071_p8, %p9065_p6 }
  0x78   : > { %9075 = shalt.err (!%p9072_p10)
}
  0x79   : > { %s9662_s1 = smov 192   ;;  %s9663_s29 = smov 12  }
  0x7a   : > { %8351 = dma.hbm_to_vmem [thread:$0]  (!%p9959_p9), %s771_s16, 3072, %s773_s19, %s9967_s0, %s9662_s1, %s9662_s1, %s9663_s29  }
  0x7b   : > { %s8246_s25 = smul.u32 3, %s9942_s2  ;;  %s6872_s28 = sshll.u32 %s9942_s2, 6 }
  0x7c   : > { %s8247_s3 = smul.u32 48, %s9646_s5  ;;  %s7097_s27 = sshll.u32 %s9646_s5, 10 }
  0x7d   : > { %s786_s18 = scalar_lea.vmem [#allocation14], %s8246_s25  ;;  %s10011_s8 = scalar_lea.hbm %s12387_s10, %s7097_s27 }
  0x7e   : > { %s792_s24 = scalar_lea.hbm %s12386_s9, %s8247_s3  ;;  %s794_s4 = sshll.u32 %s786_s18, 4  ;;  %s795_s4 = int_to_ptr.vmem [resolvable:$true] %s794_s4 }
  0x7f   : > { %s9089_s15 = scalar_lea.vmem %s795_s4, 48  ;;  %s9664_s16 = smov [#allocation14]  }
  0x80   : > { %p9090_p2 = scmp.ne.s32.totalorder %s795_s4, %s9089_s15  ;;  %s9094_s19 = sshll.u32 %s9664_s16, 4  ;;  %s9095_s19 = int_to_ptr.vmem [resolvable:$false] %s9094_s19 }
  0x81   : > { %s9096_s1 = scalar_lea.vmem %s9095_s19, 96  ;;  %p9097_p1 = scmp.lt.s32.totalorder %s795_s4, %s9095_s19 }
  0x82   : > { %p9092_p4 = pnand %p9090_p2, %p9971_p12  ;;  %p9098_p5 = scmp.lt.s32.totalorder %s9096_s1, %s9089_s15 }
  0x84   : > { %p9093_p6 = pneg %p9092_p4  ;;  %p9099_p8 = por %p9098_p5, %p9097_p1 }
  0x86   : > { %p9100_p10 = pnand %p9099_p8, %p9093_p6 }
  0x88   : > { %9103 = shalt.err (!%p9100_p10)
}
  0x89   : > { %8354 = dma.hbm_to_vmem [thread:$0]  (!%p9959_p9), %s792_s24, 48, %s795_s4, %s9967_s0  }
  0x8a   : > { %s805_s7 = scalar_lea.vmem [#allocation15], %s6872_s28  ;;  %s9665_s3 = smov [#allocation15]  }
  0x8b   : > { %s812_s29 = sshll.u32 %s805_s7, 4  ;;  %s9122_s27 = sshll.u32 %s9665_s3, 4  ;;  %s813_s29 = int_to_ptr.vmem [resolvable:$true] %s812_s29  ;;  %s9123_s27 = int_to_ptr.vmem [resolvable:$false] %s9122_s27 }
  0x8c   : > { %s9117_s25 = scalar_lea.vmem %s813_s29, 1024  ;;  %s9124_s15 = scalar_lea.vmem %s9123_s27, 2048 }
  0x8d   : > { %p9118_p2 = scmp.ne.s32.totalorder %s813_s29, %s9117_s25  ;;  %p9125_p1 = scmp.lt.s32.totalorder %s813_s29, %s9123_s27 }
  0x8e   : > { %p9126_p6 = scmp.lt.s32.totalorder %s9124_s15, %s9117_s25 }
  0x8f   : > { %p9120_p4 = pnand %p9118_p2, %p9971_p12 }
  0x90   : > { %p9127_p5 = por %p9126_p6, %p9125_p1 }
  0x91   : > { %p9121_p7 = pneg %p9120_p4 }
  0x93   : > { %p9128_p8 = pnand %p9127_p5, %p9121_p7 }
  0x95   : > { %9131 = shalt.err (!%p9128_p8)
}
  0x96   : > { %s12428_s6 = smov 64   ;;  %s12429_s28 = smov 4  }
  0x97   : > { %8357 = dma.hbm_to_vmem [thread:$0]  (!%p9959_p9), %s10011_s8, 1024, %s813_s29, %s9967_s0, %s12428_s6, %s12428_s6, %s12429_s28  }
  0x98   : > { %s830_s18 = scalar_lea.hbm %s12388_s11, %s9945_s22  ;;  %s825_s4 = scalar_lea.vmem [#allocation16], %s9942_s2 }
  0x99   : > { %s832_s20 = sshll.u32 %s825_s4, 4  ;;  %s847_s1 = scalar_lea.hbm %s12389_s12, %s9945_s22  ;;  %s833_s20 = int_to_ptr.vmem [resolvable:$true] %s832_s20 }
  0x9a   : > { %s9145_s7 = scalar_lea.vmem %s833_s20, 16  ;;  %s9668_s25 = smov [#allocation16]  }
  0x9b   : > { %p9146_p7 = scmp.ne.s32.totalorder %s833_s20, %s9145_s7  ;;  %s9150_s3 = sshll.u32 %s9668_s25, 4  ;;  %s9151_s3 = int_to_ptr.vmem [resolvable:$false] %s9150_s3 }
  0x9c   : > { %s9152_s8 = scalar_lea.vmem %s9151_s3, 32  ;;  %p9153_p4 = scmp.lt.s32.totalorder %s833_s20, %s9151_s3 }
  0x9d   : > { %p9148_p10 = pnand %p9146_p7, %p9971_p12  ;;  %p9154_p1 = scmp.lt.s32.totalorder %s9152_s8, %s9145_s7 }
  0x9f   : > { %p9149_p2 = pneg %p9148_p10  ;;  %p9155_p6 = por %p9154_p1, %p9153_p4 }
  0xa1   : > { %p9156_p5 = pnand %p9155_p6, %p9149_p2 }
  0xa3   : > { %9159 = shalt.err (!%p9156_p5)
}
  0xa4   : > { %8360 = dma.hbm_to_vmem [thread:$0]  (!%p9959_p9), %s830_s18, 16, %s833_s20, %s9967_s0  }
  0xa5   : > { %s842_s29 = scalar_lea.vmem [#allocation17], %s9942_s2  ;;  %s864_s24 = scalar_lea.hbm %s12390_s13, %s9945_s22 }
  0xa6   : > { %s849_s27 = sshll.u32 %s842_s29, 4  ;;  %s9669_s16 = smov [#allocation17]   ;;  %s850_s27 = int_to_ptr.vmem [resolvable:$true] %s849_s27 }
  0xa7   : > { %s9173_s4 = scalar_lea.vmem %s850_s27, 16  ;;  %s9178_s19 = sshll.u32 %s9669_s16, 4  ;;  %s9179_s19 = int_to_ptr.vmem [resolvable:$false] %s9178_s19 }
  0xa8   : > { %p9174_p8 = scmp.ne.s32.totalorder %s850_s27, %s9173_s4  ;;  %s9180_s7 = scalar_lea.vmem %s9179_s19, 32 }
  0xa9   : > { %p9181_p2 = scmp.lt.s32.totalorder %s850_s27, %s9179_s19  ;;  %p9182_p4 = scmp.lt.s32.totalorder %s9180_s7, %s9173_s4 }
  0xaa   : > { %p9176_p7 = pnand %p9174_p8, %p9971_p12 }
  0xab   : > { %p9183_p1 = por %p9182_p4, %p9181_p2 }
  0xac   : > { %p9177_p10 = pneg %p9176_p7 }
  0xae   : > { %p9184_p6 = pnand %p9183_p1, %p9177_p10 }
  0xb0   : > { %9187 = shalt.err (!%p9184_p6)
}
  0xb1   : > { %8363 = dma.hbm_to_vmem [thread:$0]  (!%p9959_p9), %s847_s1, 16, %s850_s27, %s9967_s0  }
  0xb2   : > { %s859_s25 = scalar_lea.vmem [#allocation18], %s9942_s2  ;;  %s12430_s8 = smul.u32 320, %s9942_s2 }
  0xb3   : > { %s866_s3 = sshll.u32 %s859_s25, 4  ;;  %s8249_s29 = smul.u32 5120, %s9646_s5  ;;  %s867_s3 = int_to_ptr.vmem [resolvable:$true] %s866_s3 }
  0xb4   : > { %s9201_s15 = scalar_lea.vmem %s867_s3, 16  ;;  %s9670_s17 = smov [#allocation18]  }
  0xb5   : > { %p9202_p5 = scmp.ne.s32.totalorder %s867_s3, %s9201_s15  ;;  %s9206_s4 = sshll.u32 %s9670_s17, 4  ;;  %s9207_s4 = int_to_ptr.vmem [resolvable:$false] %s9206_s4 }
  0xb6   : > { %s9208_s16 = scalar_lea.vmem %s9207_s4, 32  ;;  %p9209_p10 = scmp.lt.s32.totalorder %s867_s3, %s9207_s4 }
  0xb7   : > { %p9204_p8 = pnand %p9202_p5, %p9971_p12  ;;  %p9210_p2 = scmp.lt.s32.totalorder %s9208_s16, %s9201_s15 }
  0xb9   : > { %p9205_p7 = pneg %p9204_p8  ;;  %p9211_p4 = por %p9210_p2, %p9209_p10 }
  0xbb   : > { %p9212_p1 = pnand %p9211_p4, %p9205_p7 }
  0xbd   : > { %9215 = shalt.err (!%p9212_p1)
}
  0xbe   : > { %8366 = dma.hbm_to_vmem [thread:$0]  (!%p9959_p9), %s864_s24, 16, %s867_s3, %s9967_s0  }
  0xbf   : > { %s883_s18 = scalar_lea.hbm %s12391_s14, %s8249_s29  ;;  %s877_s20 = scalar_lea.vmem [#allocation19], %s12430_s8 }
  0xc0   : > { %s884_s25 = sshll.u32 %s877_s20, 4  ;;  %s9671_s17 = smov [#allocation19]   ;;  %s885_s25 = int_to_ptr.vmem [resolvable:$true] %s884_s25 }
  0xc1   : > { %s9229_s15 = scalar_lea.vmem %s885_s25, 5120  ;;  %s9234_s4 = sshll.u32 %s9671_s17, 4  ;;  %s9235_s4 = int_to_ptr.vmem [resolvable:$false] %s9234_s4 }
  0xc2   : > { %p9230_p6 = scmp.ne.s32.totalorder %s885_s25, %s9229_s15  ;;  %s9236_s16 = scalar_lea.vmem %s9235_s4, 10240 }
  0xc3   : > { %p9237_p7 = scmp.lt.s32.totalorder %s885_s25, %s9235_s4  ;;  %p9238_p10 = scmp.lt.s32.totalorder %s9236_s16, %s9229_s15 }
  0xc4   : > { %p9232_p5 = pnand %p9230_p6, %p9971_p12 }
  0xc5   : > { %p9239_p2 = por %p9238_p10, %p9237_p7 }
  0xc6   : > { %p9233_p8 = pneg %p9232_p5 }
  0xc8   : > { %p9240_p4 = pnand %p9239_p2, %p9233_p8 }
  0xca   : > { %9243 = shalt.err (!%p9240_p4)
}
  0xcb   : > { %s9672_s24 = smov 320   ;;  %s9673_s3 = smov 20  }
  0xcc   : > { %8369 = dma.hbm_to_vmem [thread:$0]  (!%p9959_p9), %s883_s18, 5120, %s885_s25, %s9967_s0, %s9672_s24, %s9672_s24, %s9673_s3  }
  0xcd   : > { %s8250_s1 = smul.u32 5, %s9942_s2  ;;  %s9674_s27 = smov [#allocation6]  }
  0xce   : > { %s635_s19 = sshll.u32 %s9674_s27, 4  ;;  %s8251_s7 = smul.u32 80, %s9646_s5  ;;  %s636_s19 = int_to_ptr.vmem [resolvable:$true] %s635_s19 }
  0xcf   : > { %s9255_s20 = scalar_lea.vmem %s636_s19, 16  ;;  %s9262_s15 = scalar_lea.vmem %s636_s19, 32 }
  0xd0   : > { %p9256_p1 = scmp.ne.s32.totalorder %s636_s19, %s9255_s20  ;;  %p9263_p8 = scmp.lt.s32.totalorder %s636_s19, %s636_s19 }
  0xd1   : > { %p9264_p7 = scmp.lt.s32.totalorder %s9262_s15, %s9255_s20 }
  0xd2   : > { %p9258_p6 = pnand %p9256_p1, %p9903_p0 }
  0xd3   : > { %p9265_p10 = por %p9264_p7, %p9263_p8 }
  0xd4   : > { %p9259_p5 = pneg %p9258_p6 }
  0xd6   : > { %p9266_p2 = pnand %p9265_p10, %p9259_p5 }
  0xd8   : > { %9269 = shalt.err (!%p9266_p2)
}
  0xd9   : > { %s12507_s25 = sld [smem:[#allocation117_spill]]  ;;  %s898_s27 = scalar_lea.vmem [#allocation20], %s8250_s1 }
  0xda   : > { %s12508_s24 = sld [smem:[#allocation124_spill]]  ;;  %s906_s6 = sshll.u32 %s898_s27, 4  ;;  %s907_s6 = int_to_ptr.vmem [resolvable:$true] %s906_s6 }
  0xdb   : > { %s9283_s28 = scalar_lea.vmem %s907_s6, 80  ;;  %s9675_s20 = smov [#allocation20]  }
  0xdc   : > { %p9284_p4 = scmp.ne.s32.totalorder %s907_s6, %s9283_s28  ;;  %s9288_s15 = sshll.u32 %s9675_s20, 4  ;;  %s9289_s15 = int_to_ptr.vmem [resolvable:$false] %s9288_s15 }
  0xdd   : > { %s9290_s8 = scalar_lea.vmem %s9289_s15, 160  ;;  %p9291_p5 = scmp.lt.s32.totalorder %s907_s6, %s9289_s15 }
  0xde   : > { %p9286_p1 = pnand %p9284_p4, %p9971_p12  ;;  %p9292_p8 = scmp.lt.s32.totalorder %s9290_s8, %s9283_s28 }
  0xdf   : > { %8323 = dma.hbm_to_vmem [thread:$0]  (!%p9897_p13), %s12507_s25, 16, %s636_s19, [#allocation7]  }
  0xe0   : > { %s904_s3 = scalar_lea.hbm %s12508_s24, %s8251_s7  ;;  %p9287_p6 = pneg %p9286_p1 }
  0xe1   : > { %p9293_p7 = por %p9292_p8, %p9291_p5 }
  0xe3   : > { %p9294_p10 = pnand %p9293_p7, %p9287_p6 }
  0xe5   : > { %9297 = shalt.err (!%p9294_p10)
}
  0xe6   : > { %8372 = dma.hbm_to_vmem [thread:$0]  (!%p9959_p9), %s904_s3, 80, %s907_s6, %s9967_s0  }
  0xe7   : > { %s9676_s1 = smov [#allocation8]   ;;  %s9677_s7 = smov [#allocation9]  }
  0xe8   : > { %s646_s19 = sshll.u32 %s9676_s1, 4  ;;  %s656_s17 = sshll.u32 %s9677_s7, 4  ;;  %s647_s19 = int_to_ptr.vmem [resolvable:$true] %s646_s19  ;;  %s657_s17 = int_to_ptr.vmem [resolvable:$true] %s656_s17 }
  0xe9   : > { %s9309_s18 = scalar_lea.vmem %s647_s19, 16  ;;  %s9316_s25 = scalar_lea.vmem %s647_s19, 32 }
  0xea   : > { %p9310_p2 = scmp.ne.s32.totalorder %s647_s19, %s9309_s18  ;;  %p9317_p3 = scmp.lt.s32.totalorder %s647_s19, %s647_s19 }
  0xeb   : > { %p9318_p5 = scmp.lt.s32.totalorder %s9316_s25, %s9309_s18 }
  0xec   : > { %p9312_p4 = pnand %p9310_p2, %p9903_p0 }
  0xed   : > { %p9319_p6 = por %p9318_p5, %p9317_p3 }
  0xee   : > { %p9313_p1 = pneg %p9312_p4 }
  0xf0   : > { %p9320_p8 = pnand %p9319_p6, %p9313_p1 }
  0xf2   : > { %9323 = shalt.err (!%p9320_p8)
}
  0xf3   : > { %s12509_s8 = sld [smem:[#allocation118_spill]]  ;;  %s9335_s4 = scalar_lea.vmem %s657_s17, 640 }
  0xf4   : > { %p9336_p7 = scmp.ne.s32.totalorder %s657_s17, %s9335_s4  ;;  %p9343_p4 = scmp.lt.s32.totalorder %s657_s17, %s657_s17 }
  0xf5   : > { %p9344_p11 = scmp.lt.s32.totalorder %s9335_s4, %s9335_s4 }
  0xf6   : > { %p9338_p10 = pnand %p9336_p7, %p9903_p0 }
  0xf7   : > { %p9345_p9 = por %p9344_p11, %p9343_p4 }
  0xf8   : > { %p9339_p2 = pneg %p9338_p10 }
  0xf9   : > { %8326 = dma.hbm_to_vmem [thread:$0]  (!%p9897_p13), %s12509_s8, 16, %s647_s19, [#allocation7]  }
  0xfa   : > { %p9346_p12 = pnand %p9345_p9, %p9339_p2 }
  0xfc   : > { %9349 = shalt.err (!%p9346_p12)
}
  0xfd   : > { %s12510_s16 = smov 8   ;;  %s12511_s24 = smov 128  }
  0xfe   : > { %s12512_s20 = sld [smem:[#allocation119_spill]]  ;;  %s9678_s15 = smov [#allocation25]  }
  0xff   : > { %s694_s1 = sshll.u32 %s9678_s15, 4  ;;  %s12513_s18 = sld [smem:[#allocation125_spill]]  ;;  %s695_s1 = int_to_ptr.vmem [resolvable:$true] %s694_s1 }
 0x100   : > { %s9361_s28 = scalar_lea.vmem %s695_s1, 2048  ;;  %p9369_p12 = scmp.lt.s32.totalorder %s695_s1, %s695_s1 }
 0x101   : > { %p9362_p3 = scmp.ne.s32.totalorder %s695_s1, %s9361_s28  ;;  %p9370_p1 = scmp.lt.s32.totalorder %s9361_s28, %s9361_s28 }
 0x103   : > { %p9364_p11 = pnand %p9362_p3, %p9903_p0  ;;  %p9371_p5 = por %p9370_p1, %p9369_p12 }
 0x104   : > { %8329 = dma.hbm_to_vmem [thread:$0]  (!%p9897_p13), %s12512_s20, 640, %s657_s17, [#allocation10], %s12511_s24, %s12511_s24, %s12510_s16  }
 0x105   : > { %s10120_s25 = scalar_lea.hbm %s12513_s18, %s8249_s29  ;;  %p9365_p9 = pneg %p9364_p11 }
 0x107   : > { %p9372_p6 = pnand %p9371_p5, %p9365_p9 }
 0x109   : > { %9375 = shalt.err (!%p9372_p6)
}
 0x10a   : > { %s12514_s8 = sld [smem:[#allocation129_spill]]  ;;  %s12515_s29 = smul.u32 320, %s9942_s2 }
 0x10b   : > { %s9679_s27 = smov [#allocation23]   ;;  %p12516_p7 = scmp.ne.s32.totalorder %s12505_s21, 0 }
 0x10c   : > { %s917_s4 = scalar_lea.vmem [#allocation21], %s12515_s29  ;;  %s673_s20 = sshll.u32 %s9679_s27, 4  ;;  %s674_s20 = int_to_ptr.vmem [resolvable:$true] %s673_s20 }
 0x10d   : > { %s924_s3 = sshll.u32 %s917_s4, 4  ;;  %s9680_s19 = smov [#allocation21]   ;;  %s925_s3 = int_to_ptr.vmem [resolvable:$true] %s924_s3 }
 0x10e   : > { %s9389_s15 = scalar_lea.vmem %s925_s3, 5120  ;;  %s9394_s7 = sshll.u32 %s9680_s19, 4  ;;  %s9395_s7 = int_to_ptr.vmem [resolvable:$false] %s9394_s7 }
 0x10f   : > { %p9390_p8 = scmp.ne.s32.totalorder %s925_s3, %s9389_s15  ;;  %s9396_s18 = scalar_lea.vmem %s9395_s7, 10240 }
 0x110   : > { %8338 = dma.hbm_to_vmem [thread:$0]  (!%p9897_p13), %s12514_s8, 2048, %s695_s1, [#allocation26], %s12511_s24, %s12511_s24, %s12510_s16  }
 0x111   : > { %p9392_p10 = pnand %p9390_p8, %p12516_p7  ;;  %p9397_p4 = scmp.lt.s32.totalorder %s925_s3, %s9395_s7 }
 0x112   : > { %p9398_p3 = scmp.lt.s32.totalorder %s9396_s18, %s9389_s15 }
 0x113   : > { %p9393_p2 = pneg %p9392_p10 }
 0x114   : > { %p9399_p11 = por %p9398_p3, %p9397_p4 }
 0x116   : > { %p9400_p9 = pnand %p9399_p11, %p9393_p2 }
 0x118   : > { %9403 = shalt.err (!%p9400_p9)
}
 0x119   : > { %p12517_p12 = scmp.ne.s32.totalorder %s12503_s30, 0  ;;  %s12518_s16 = smov 4  }
 0x11a   : > { %s12519_s24 = smov 64   ;;  %s9415_s1 = scalar_lea.vmem %s674_s20, 16 }
 0x11b   : > { %8375 = dma.hbm_to_vmem [thread:$0]  (!%p12517_p12), %s10120_s25, 5120, %s925_s3, %s9967_s0, %s12519_s24, %s12519_s24, %s12518_s16  }
 0x11c   : > { %p9416_p1 = scmp.ne.s32.totalorder %s674_s20, %s9415_s1  ;;  %s9422_s28 = scalar_lea.vmem %s674_s20, 32 }
 0x11d   : > { %p9423_p8 = scmp.lt.s32.totalorder %s674_s20, %s674_s20  ;;  %p9424_p10 = scmp.lt.s32.totalorder %s9422_s28, %s9415_s1 }
 0x11e   : > { %p9418_p5 = pnand %p9416_p1, %p9903_p0 }
 0x11f   : > { %p9425_p2 = por %p9424_p10, %p9423_p8 }
 0x120   : > { %p9419_p6 = pneg %p9418_p5 }
 0x122   : > { %p9426_p4 = pnand %p9425_p2, %p9419_p6 }
 0x124   : > { %9429 = shalt.err (!%p9426_p4)
}
 0x125   : > { %s12520_s8 = sld [smem:[#allocation127_spill]]  ;;  %s9681_s25 = smov [#allocation24]  }
 0x126   : > { %s684_s29 = sshll.u32 %s9681_s25, 4  ;;  %s9682_s4 = smov [#allocation27]   ;;  %s685_s29 = int_to_ptr.vmem [resolvable:$true] %s684_s29 }
 0x127   : > { %s708_s3 = sshll.u32 %s9682_s4, 4  ;;  %s9441_s27 = scalar_lea.vmem %s685_s29, 16  ;;  %s709_s3 = int_to_ptr.vmem [resolvable:$true] %s708_s3 }
 0x128   : > { %p9442_p3 = scmp.ne.s32.totalorder %s685_s29, %s9441_s27  ;;  %s9448_s15 = scalar_lea.vmem %s685_s29, 32 }
 0x129   : > { %p9449_p1 = scmp.lt.s32.totalorder %s685_s29, %s685_s29  ;;  %p9450_p5 = scmp.lt.s32.totalorder %s9448_s15, %s9441_s27 }
 0x12a   : > { %p9444_p11 = pnand %p9442_p3, %p9903_p0 }
 0x12b   : > { %8332 = dma.hbm_to_vmem [thread:$0]  (!%p9897_p13), %s12520_s8, 16, %s674_s20, [#allocation7]  }
 0x12c   : > { %p9445_p9 = pneg %p9444_p11  ;;  %p9451_p6 = por %p9450_p5, %p9449_p1 }
 0x12e   : > { %p9452_p8 = pnand %p9451_p6, %p9445_p9 }
 0x130   : > { %9455 = shalt.err (!%p9452_p8)
}
 0x131   : > { %s12521_s7 = sld [smem:[#allocation128_spill]]  ;;  %s9467_s18 = scalar_lea.vmem %s709_s3, 16 }
 0x132   : > { %p9468_p10 = scmp.ne.s32.totalorder %s709_s3, %s9467_s18  ;;  %s9474_s16 = scalar_lea.vmem %s709_s3, 32 }
 0x133   : > { %p9475_p3 = scmp.lt.s32.totalorder %s709_s3, %s709_s3  ;;  %p9476_p11 = scmp.lt.s32.totalorder %s9474_s16, %s9467_s18 }
 0x134   : > { %p9470_p2 = pnand %p9468_p10, %p9903_p0 }
 0x135   : > { %p9477_p12 = por %p9476_p11, %p9475_p3 }
 0x136   : > { %p9471_p4 = pneg %p9470_p2 }
 0x137   : > { %8335 = dma.hbm_to_vmem [thread:$0]  (!%p9897_p13), %s12521_s7, 16, %s685_s29, [#allocation10]  }
 0x138   : > { %p9478_p1 = pnand %p9477_p12, %p9471_p4 }
 0x13a   : > { %9481 = shalt.err (!%p9478_p1)
}
 0x13b   : > { %s12522_s28 = sld [smem:[#allocation130_spill]]  ;;  %s937_s25 = scalar_lea.vmem [#allocation22], %s9942_s2 }
 0x13c   : > { %s12523_s23 = sld [smem:[#allocation126_spill]]  ;;  %s944_s29 = sshll.u32 %s937_s25, 4  ;;  %s945_s29 = int_to_ptr.vmem [resolvable:$true] %s944_s29 }
 0x13d   : > { %s9495_s4 = scalar_lea.vmem %s945_s29, 16  ;;  %s9683_s26 = smov [#allocation22]  }
 0x13e   : > { %p9496_p0 = scmp.ne.s32.totalorder %s945_s29, %s9495_s4  ;;  %s9500_s27 = sshll.u32 %s9683_s26, 4  ;;  %s9501_s27 = int_to_ptr.vmem [resolvable:$false] %s9500_s27 }
 0x13f   : > { %s9502_s15 = scalar_lea.vmem %s9501_s27, 32  ;;  %p9503_p5 = scmp.lt.s32.totalorder %s945_s29, %s9501_s27 }
 0x140   : > { %p9498_p12 = pnand %p9496_p0, %p12516_p7  ;;  %p9504_p6 = scmp.lt.s32.totalorder %s9502_s15, %s9495_s4 }
 0x141   : > { %8341 = dma.hbm_to_vmem [thread:$0]  (!%p9897_p13), %s12522_s28, 16, %s709_s3, [#allocation26]  }
 0x142   : > { %s942_s8 = scalar_lea.hbm %s12523_s23, %s9945_s22  ;;  %p9499_p9 = pneg %p9498_p12 }
 0x143   : > { %p9505_p8 = por %p9504_p6, %p9503_p5 }
 0x145   : > { %p9506_p13 = pnand %p9505_p8, %p9499_p9 }
 0x147   : > { %9509 = shalt.err (!%p9506_p13)
}
 0x148   : > { %p12524_p10 = scmp.ne.s32.totalorder %s12503_s30, 0  ;;  %s12525_s22 = sld [smem:[#allocation50_spill]] }
 0x14a   : > { %8378 = dma.hbm_to_vmem [thread:$0]  (!%p12524_p10), %s942_s8, 16, %s945_s29, %s9967_s0  }
 0x14e   : > { %p12526_p2 = scmp.ne.s32.totalorder %s12525_s22, 0 }
 0x150   : > { %953 = sbr.rel (%p12526_p2) target bundleno = 4183 (0x1057), region = 108 }
 0x155   : > { %s12527_s2 = sld [smem:[#allocation46_spill]] }
 0x15b   : > { %p12528_p4 = scmp.eq.s32.totalorder %s12527_s2, 0 }
 0x15d   : > { %9581 = dma.done.wait (%p12528_p4), [#allocation4], 256   ;;  %p12529_p7 = pmov %p12528_p4 }
 0x15e   : > { %p12530_p3 = pmov %p12528_p4 }
 0x15f   : > { %9583 = vsyncadd (%p12529_p7), [#allocation4], 4294967040 }
 0x160   : > { %9585 = dma.done.wait (%p12530_p3), [#allocation7], 32   ;;  %p12531_p11 = pmov %p12530_p3 }
 0x161   : > { %p12532_p1 = pmov %p12530_p3 }
 0x162   : > { %9587 = vsyncadd (%p12531_p11), [#allocation7], 4294967264 }
 0x163   : > { %9589 = dma.done.wait (%p12532_p1), [#allocation10], 640   ;;  %p12533_p0 = pmov %p12532_p1 }
 0x164   : > { %s12534_s0 = sld [smem:[#allocation40_spill]]  ;;  %s971_s21 = sand.u32 1, %s12527_s2  }
 0x165   : > { %9591 = vsyncadd (%p12533_p0), [#allocation10], 4294966656  ;;  %s12535_s30 = sld [smem:[#allocation47_spill]]  ;;  %s972_s19 = scalar_lea.sflag [#allocation4], %s971_s21 }
 0x16a   : > { %s10190_s3 = sand.u32 1, %s12534_s0  }
 0x16b   : > { %s974_s20 = scalar_lea.vmem [#allocation11], %s10190_s3  ;;  %p12536_p12 = scmp.ne.s32.totalorder %s12535_s30, 0 }
 0x16d   : > { %9593 = dma.done.wait (%p12536_p12), %s972_s19, 14560  }
 0x16e   : > { %9595 = vsyncadd (%p12536_p12), %s972_s19, 4294952736  ;;  %s8254_s7 = smul.u32 192, %s10190_s3  ;;  %s6887_s16 = sshll.u32 %s10190_s3, 6 }
 0x16f   : > { %s8255_s18 = smul.u32 3, %s10190_s3  ;;  %s982_s28 = scalar_lea.vmem [#allocation12], %s10190_s3 }
 0x170   : > { %s8256_s24 = smul.u32 320, %s10190_s3  ;;  %s10203_s17 = scalar_lea.vmem [#allocation13], %s8254_s7 }
 0x171   : > { %s8257_s1 = smul.u32 5, %s10190_s3  ;;  %s10205_s6 = scalar_lea.vmem [#allocation14], %s8255_s18 }
 0x172   : > { %s10207_s23 = scalar_lea.vmem [#allocation15], %s6887_s16  ;;  %s1017_s8 = scalar_lea.vmem [#allocation16], %s10190_s3 }
 0x173   : > { %s1025_s25 = scalar_lea.vmem [#allocation17], %s10190_s3  ;;  %s1033_s29 = scalar_lea.vmem [#allocation18], %s10190_s3 }
 0x174   : > { %s10212_s4 = scalar_lea.vmem [#allocation19], %s8256_s24  ;;  %s10214_s26 = scalar_lea.vmem [#allocation20], %s8257_s1 }
 0x175   : > { %s10216_s27 = scalar_lea.vmem [#allocation21], %s8256_s24  ;;  %s1068_s15 = scalar_lea.vmem [#allocation22], %s10190_s3 }
 0x176   : > { %p12537_p9 = pmov %p12533_p0 }
 0x177   : > { %p12538_p5 = pmov %p12533_p0 }
 0x178   : > { %9597 = dma.done.wait (%p12537_p9), [#allocation7], 16  }
 0x179   : > { %9599 = vsyncadd (%p12538_p5), [#allocation7], 4294967280  ;;  %p12539_p6 = pmov %p12533_p0 }
 0x17a   : > { %p12540_p8 = pmov %p12533_p0 }
 0x17b   : > { %9601 = dma.done.wait (%p12539_p6), [#allocation10], 16  }
 0x17c   : > { %9603 = vsyncadd (%p12540_p8), [#allocation10], 4294967280  ;;  %p12541_p13 = pmov %p12533_p0 }
 0x17d   : > { %p12542_p10 = pmov %p12533_p0 }
 0x17e   : > { %9605 = dma.done.wait (%p12541_p13), [#allocation26], 2064  }
 0x17f   : > { %9607 = vsyncadd (%p12542_p10), [#allocation26], 4294965232  ;;  %s12543_s22 = sld [smem:[#allocation38_spill]]  ;;  %v1204_v0 = vlaneseq  ;;  %v12442_v4 = vmov 0.0   ;;  %v9685_v6 = vmov -1e+30  }
 0x180   : > { %s12544_s0 = sld [smem:[#allocation43_spill]] }
 0x181   : > { %v1205_v1 = vand.u32 127, %v1204_v0  ;;  %v10234_v2 = vshrl.u32 %v1204_v0, 7  ;;  %s12547_s7 = sld [smem:[#allocation115_spill]] }
 0x182   : > { %s12549_s24 = sld [smem:[#allocation42_spill]] }
 0x183   : > { %12545 = vst [vmem:[#allocation55_spill] sm:$0xff] %v10234_v2  ;;  %vm1206_vm0 = vcmp.lt.s32.totalorder %v1205_v1, 120  ;;  %vm1209_vm1 = vcmp.lt.s32.totalorder %v1205_v1, 37  ;;  %v1216_v3 = vadd.s32 32, %v10234_v2 }
 0x184   : > { %v10238_v5 = vsel %vm1206_vm0, 1.0, %v12442_v4  ;;  %v10240_v7 = vsel %vm1209_vm1, 0.0, %v9685_v6 }
 0x185   : > { %s1196_s30 = sand.u32 1, %s12543_s22   ;;  %12546 = vst [vmem:[#allocation56_spill] sm:$0xff] %v10238_v5  ;;  %vm1221_vm2 = vcmp.lt.s32.totalorder %v1216_v3, 37 }
 0x186   : > { %p1198_p2 = scmp.lt.s32.totalorder %s12544_s0, 1  ;;  %v10248_v8 = vsel %vm1221_vm2, 1.0, %v12442_v4  ;;  %s10252_s16 = scalar_lea.vmem [#allocation28], %s1196_s30 }
 0x187   : > { %12548 = vst [vmem:[#allocation57_spill] sm:$0xff] %v10248_v8 }
 0x188   : > { %s12703_s0 = smov (!%p1198_p2, %s12544_s0), 1  ;;  %p6895_p4 = scmp.ne.s32.totalorder %s12549_s24, 0 }
 0x189   : > { %s8258_s21 = smul.u32 40, %s12703_s0 }
 0x18a   : > { %1235 = sbr.rel (%p6895_p4) target bundleno = 614 (0x266), region = 192 }
 0x18b   : > { %s10245_s18 = scalar_lea.vmem %s12547_s7, %s8258_s21 }
 0x18f   : > { %v1242_v9 = vld [vmem:[#allocation3 + $0x8] sm:$0xf]  ;;  %vm1266_vm3 = vcmask 1043456   ;;  %v9686_v10 = vmov 0.0   ;;  %v1241_v11 = vld [vmem:[#allocation3] sm:$0xff]  ;;  %v1236_v12 = vld [vmem:[%s10245_s18] sm:$0xff] }
 0x190   : > { %7474 = vmatprep.subr.mxu0 %v9686_v10  ;;  %8240 = vmatprep.subr.mxu1 %v9686_v10  ;;  %vm1250_vm4 = vcmask 97280   ;;  %v1239_v13 = vld [vmem:[%s10245_s18 + $0x18] sm:$0xff]  ;;  %vm9687_vm5 = vmmov 0   ;;  %v1237_v14 = vld [vmem:[%s10245_s18 + $0x8] sm:$0xff]  ;;  %v1240_v15 = vld [vmem:[%s10245_s18 + $0x20] sm:$0xf] }
 0x191   : > { %7475 = vmatpush3.msk.msra.mxu0 %vm1266_vm3, %v1242_v9  ;;  %8242 = vmatpush3.msk.msra.mxu1 %vm1266_vm3, %v1242_v9  ;;  %v1238_v16 = vld [vmem:[%s10245_s18 + $0x10] sm:$0xff]  ;;  %v6896_v17 = vld [vmem:[#allocation6] ss:$0 sm:$0xff]  ;;  %v1360_v18 = vld [vmem:[#allocation9 + $0x1] sm:$0xff]  ;;  %vm1378_vm6 = vcmask 1040384   ;;  %vm1394_vm7 = vcmask 1044480  }
 0x192   : > { %7476 = vmatprep.subr.mxu0 %v9686_v10  ;;  %8241 = vmatprep.subr.mxu1 %v9686_v10  ;;  %v1370_v20 = vld [vmem:[#allocation8] sm:$0x1]  ;;  %v1371_v21 = vld [vmem:[#allocation9] sm:$0x1]  ;;  %v1361_v32 = vld [vmem:[#allocation9 + $0x9] sm:$0xff] }
 0x193   : > { %7477 = vmatpush3.msra.mxu0 %v1241_v11  ;;  %8243 = vmatpush3.msra.mxu1 %v1241_v11  ;;  %v1363_v23 = vld [vmem:[#allocation9 + $0x19] sm:$0xff]  ;;  %v1372_v29 = vadd.f32 %v1371_v21, %v1370_v20  ;;  %v1364_v34 = vld [vmem:[#allocation9 + $0x21] sm:$0xf]  ;;  %v1362_v45 = vld [vmem:[#allocation9 + $0x11] sm:$0xff] }
 0x194   : > { %7478 = vmatprep.mubr.msk.f32.mxu0 %vm9687_vm5, %v9686_v10  ;;  %7487 = vmatprep.mubr.msk.f32.mxu1 %vm9687_vm5, %v9686_v10 }
 0x195   : > { %7479 = vmatmul.mubr.msk.f32.vlgmr.msra.gmra.mxu0 %vm1250_vm4, %v1236_v12  ;;  %7488 = vmatmul.mubr.msk.f32.vlgmr.msra.gmra.mxu1 %vm1250_vm4, %v1239_v13 }
 0x196   : > { %7481 = vmatprep.mubr.msk.f32.mxu0 %vm9687_vm5, %v9686_v10  ;;  %7490 = vmatprep.mubr.msk.f32.mxu1 %vm9687_vm5, %v9686_v10 }
 0x199   : > { %7482 = vmatmul.mubr.msk.f32.gmra.mxu0 %vm1250_vm4, %v1237_v14  ;;  %7491 = vmatmul.mubr.msk.f32.gmra.mxu1 %vm1250_vm4, %v1240_v15 }
 0x19a   : > { %7484 = vmatprep.mubr.msk.f32.mxu0 %vm9687_vm5, %v9686_v10 }
 0x19d   : > { %7485 = vmatmul.mubr.msk.f32.gmra.mxu0 %vm1250_vm4, %v1238_v16 }
 0x255   : > { %v1336_v19 = vpop.f32.mrf.mxu0  ;;  %v1351_v22 = vpop.f32.mrf.mxu1 }
 0x256   : > { %v1337_v24 = vadd.f32 %v6896_v17, %v1336_v19  ;;  %v1352_v25 = vadd.f32 %v6896_v17, %v1351_v22 }
 0x257   : > { %v7480_v26 = vpop.f32.mrf.mxu0  ;;  %v7489_v27 = vpop.f32.mrf.mxu1 }
 0x258   : > { %v1365_v28 = vadd.f32 %v1360_v18, %v1337_v24  ;;  %v1368_v30 = vadd.f32 %v1363_v23, %v1352_v25 }
 0x259   : > { %v1341_v31 = vpop.f32.mrf.mxu0  ;;  %v1356_v33 = vpop.f32.mrf.mxu1 }
 0x25a   : > { %v1379_v35 = vrot.slane %v1365_v28, 7  ;;  %v1342_v36 = vadd.f32 %v6896_v17, %v1341_v31  ;;  %v1357_v37 = vadd.f32 %v6896_v17, %v1356_v33  ;;  %v1384_v41 = vrot.slane %v1368_v30, 7 }
 0x25b   : > { %v7483_v38 = vpop.f32.mrf.mxu0  ;;  %v7492_v39 = vpop.f32.mrf.mxu1 }
 0x25c   : > { %v1393_v40 = vsel %vm1378_vm6, %v1372_v29, %v1379_v35  ;;  %v1366_v42 = vadd.f32 %v1361_v32, %v1342_v36  ;;  %v1369_v43 = vadd.f32 %v1364_v34, %v1357_v37 }
 0x25d   : > { %1396 = vst [vmem:[#allocation2 + $0x8] sm:$0xff] %v1393_v40  ;;  %v1346_v44 = vpop.f32.mrf.mxu0 }
 0x25e   : > { %v1380_v46 = vrot.slane %v1366_v42, 7  ;;  %v1386_v47 = vrot.slane %v1369_v43, 7  ;;  %v1347_v48 = vadd.f32 %v6896_v17, %v1346_v44 }
 0x25f   : > { %v7486_v49 = vpop.f32.mrf.mxu0 }
 0x260   : > { %v1381_v50 = vsel %vm1378_vm6, %v1379_v35, %v1380_v46  ;;  %v1387_v51 = vsel %vm1378_vm6, %v1384_v41, %v1386_v47  ;;  %v1367_v52 = vadd.f32 %v1362_v45, %v1347_v48 }
 0x261   : > { %1397 = vst [vmem:[#allocation2] sm:$0xff] %v1381_v50  ;;  %v1395_v53 = vsel %vm1394_vm7, %v1387_v51, 0.0 }
 0x262   : > { %1400 = vst [vmem:[#allocation2 + $0x18] sm:$0xff] %v1395_v53  ;;  %v1382_v54 = vrot.slane %v1367_v52, 7 }
 0x264   : > { %v1383_v55 = vsel %vm1378_vm6, %v1380_v46, %v1382_v54  ;;  %v1385_v56 = vsel %vm1378_vm6, %v1382_v54, %v1384_v41 }
 0x265   : > { %1398 = vst [vmem:[#allocation2 + $0x20] sm:$0xff] %v1383_v55  ;;  %1399 = vst [vmem:[#allocation2 + $0x10] sm:$0xff] %v1385_v56 }
 0x266 PF: > { %v1401_v57 = vld [vmem:[#allocation2 + $0x8] sm:$0xff]  ;;  %7493 = vmatprep.subr.bf16.mxu1 %v12442_v4  ;;  %v8513_v62 = vld [vmem:[%s10203_s17 + $0xac] ss:$12 sps:$4 sm:$0xff]   ;;  %v8515_v63 = vld [vmem:[%s10203_s17 + $0xa8] ss:$12 sps:$4 sm:$0xff]   ;;  %v12440_v47 = vmov 0  }
 0x267   : > { %1408 = vadd.xlane.f32.xlu0 %v1401_v57  ;;  %v8516_v0 = vld [vmem:[%s10203_s17 + $0xb0] ss:$12 sps:$4 sm:$0xff]   ;;  %1670 = vmatprep.subr.bf16.mxu0 %v8513_v62  ;;  %v8517_v31 = vld [vmem:[%s10203_s17 + $0x94] ss:$12 sps:$4 sm:$0xff]   ;;  %v8520_v33 = vld [vmem:[%s10203_s17 + $0x98] ss:$12 sps:$4 sm:$0xff]  }
 0x268   : > { %v1402_v59 = vld [vmem:[#allocation2] sm:$0xff]  ;;  %7494 = vmatpush3.bf16.msra.mxu1 %v8516_v0  ;;  %1671 = vmatpush1.bf16.msra.mxu0 %v8515_v63  ;;  %v8524_v36 = vld [vmem:[%s10203_s17 + $0x80] ss:$12 sps:$4 sm:$0xff]   ;;  %v8525_v37 = vld [vmem:[%s10203_s17 + $0x64] ss:$12 sps:$4 sm:$0xff]   ;;  %vm9689_vm8 = vmmov 0  }
 0x269   : > { %v1405_v61 = vld [vmem:[#allocation2 + $0x18] sm:$0xff]  ;;  %7495 = vmatprep.subr.bf16.mxu1 %v12442_v4  ;;  %1672 = vmatprep.subr.bf16.mxu0 %v8517_v31  ;;  %v8521_v34 = vld [vmem:[%s10203_s17 + $0x7c] ss:$12 sps:$4 sm:$0xff]   ;;  %v8523_v35 = vld [vmem:[%s10203_s17 + $0x78] ss:$12 sps:$4 sm:$0xff]   ;;  %vm1892_vm9 = vcmask 326656  }
 0x26a   : > { %v8519_v32 = vld [vmem:[%s10203_s17 + $0x90] ss:$12 sps:$4 sm:$0xff]   ;;  %v8527_v38 = vld [vmem:[%s10203_s17 + $0x60] ss:$12 sps:$4 sm:$0xff]   ;;  %v8528_v39 = vld [vmem:[%s10203_s17 + $0x68] ss:$12 sps:$4 sm:$0xff]   ;;  %1702 = vmatprep.mubr.bf16.mxu0 %v12440_v47  ;;  %7509 = vmatprep.mubr.msk.bf16.mxu1 %vm9689_vm8, %v12442_v4 }
 0x26b   : > { %1410 = vadd.xlane.f32.xlu0 %v1402_v59  ;;  %v8529_v40 = vld [vmem:[%s10203_s17 + $0x4c] ss:$12 sps:$4 sm:$0xff]   ;;  %v8531_v41 = vld [vmem:[%s10203_s17 + $0x48] ss:$12 sps:$4 sm:$0xff]   ;;  %v8532_v42 = vld [vmem:[%s10203_s17 + $0x50] ss:$12 sps:$4 sm:$0xff]  }
 0x26c   : > { %v1403_v58 = vld [vmem:[#allocation2 + $0x20] sm:$0xff]  ;;  %v1404_v60 = vld [vmem:[#allocation2 + $0x10] sm:$0xff]  ;;  %1673 = vmatpush1.bf16.msra.mxu0 %v8519_v32  ;;  %7496 = vmatpush3.bf16.msra.mxu1 %v8520_v33  ;;  %v8533_v43 = vld [vmem:[%s10203_s17 + $0x34] ss:$12 sps:$4 sm:$0xff]   ;;  %s12674_s3 = sld [smem:[#allocation42_spill]] }
 0x26d   : > { %1412 = vadd.xlane.f32.xlu1 %v1403_v58  ;;  %7497 = vmatprep.subr.bf16.mxu1 %v12442_v4  ;;  %v8535_v44 = vld [vmem:[%s10203_s17 + $0x30] ss:$12 sps:$4 sm:$0xff]   ;;  %v8536_v45 = vld [vmem:[%s10203_s17 + $0x38] ss:$12 sps:$4 sm:$0xff]   ;;  %v8540_v49 = vld [vmem:[%s10203_s17 + $0x20] ss:$12 sps:$4 sm:$0xff]  }
 0x26e   : > { %1674 = vmatprep.subr.bf16.mxu0 %v8521_v34  ;;  %v8537_v46 = vld [vmem:[%s10203_s17 + $0x1c] ss:$12 sps:$4 sm:$0xff]   ;;  %v8539_v48 = vld [vmem:[%s10203_s17 + $0x18] ss:$12 sps:$4 sm:$0xff]   ;;  %v8543_v51 = vld [vmem:[%s10203_s17] ss:$12 sps:$4 sm:$0xff]  }
 0x26f   : > { %1416 = vadd.xlane.f32.xlu0 %v1405_v61  ;;  %v8541_v50 = vld [vmem:[%s10203_s17 + $0x4] ss:$12 sps:$4 sm:$0xff]   ;;  %v8544_v52 = vld [vmem:[%s10203_s17 + $0x8] ss:$12 sps:$4 sm:$0xff]  }
 0x270   : > { %1675 = vmatpush1.bf16.msra.mxu0 %v8523_v35  ;;  %7498 = vmatpush3.bf16.msra.mxu1 %v8524_v36  ;;  %v1525_v35 = vld [vmem:[%s10205_s6] sm:$0x7] }
 0x271   : > { %1414 = vadd.xlane.f32.xlu1 %v1404_v60  ;;  %7499 = vmatprep.subr.bf16.mxu1 %v12442_v4 }
 0x272   : > { %1676 = vmatprep.subr.bf16.mxu0 %v8525_v37  ;;  %p7093_p7 = scmp.ne.s32.totalorder %s12674_s3, 11 }
 0x274   : > { %1677 = vmatpush1.bf16.msra.mxu0 %v8527_v38  ;;  %7500 = vmatpush3.bf16.msra.mxu1 %v8528_v39 }
 0x275   : > { %7501 = vmatprep.subr.bf16.mxu1 %v12442_v4  ;;  %1678 = vmatprep.subr.bf16.mxu0 %v8529_v40 }
 0x278   : > { %1679 = vmatpush1.bf16.msra.mxu0 %v8531_v41  ;;  %7502 = vmatpush3.bf16.msra.mxu1 %v8532_v42 }
 0x279   : > { %1680 = vmatprep.subr.bf16.mxu0 %v8533_v43  ;;  %7503 = vmatprep.subr.bf16.mxu1 %v12442_v4 }
 0x27c   : > { %1681 = vmatpush1.bf16.msra.mxu0 %v8535_v44  ;;  %7504 = vmatpush3.bf16.msra.mxu1 %v8536_v45 }
 0x27d   : > { %1682 = vmatprep.subr.bf16.mxu0 %v8537_v46  ;;  %7505 = vmatprep.subr.bf16.mxu1 %v12442_v4 }
 0x280   : > { %1683 = vmatpush1.bf16.msra.mxu0 %v8539_v48  ;;  %7506 = vmatpush3.bf16.msra.mxu1 %v8540_v49 }
 0x281   : > { %1684 = vmatprep.subr.bf16.mxu0 %v8541_v50  ;;  %7507 = vmatprep.subr.bf16.mxu1 %v12442_v4 }
 0x284   : > { %1685 = vmatpush1.bf16.msra.mxu0 %v8543_v51  ;;  %7508 = vmatpush3.bf16.msra.mxu1 %v8544_v52 }
 0x285   : > { %7571 = vmatprep.subr.mxu0 %v12442_v4  ;;  %7521 = vmatprep.subr.mxu1 %v12442_v4 }
 0x2f0   : > { %v1409_v1 = vpop.xlane.xlu0 %1408 }
 0x2f1   : > { %v1418_v6 = vmul.f32 0.008333334, %v1409_v1 }
 0x2f3   : > { %v1423_v10 = vsub.f32 %v1401_v57, %v1418_v6 }
 0x2f4   : > { %v1411_v12 = vpop.xlane.xlu0 %1410 }
 0x2f5   : > { %v1419_v14 = vmul.f32 0.008333334, %v1411_v12  ;;  %v10276_v16 = vmul.f32 %v10238_v5, %v1423_v10 }
 0x2f6   : > { %v1413_v3 = vpop.xlane.xlu1 %1412 }
 0x2f7   : > { %v1420_v9 = vmul.f32 0.008333334, %v1413_v3  ;;  %v1424_v18 = vsub.f32 %v1402_v59, %v1419_v14  ;;  %v1433_v20 = vmul.f32 %v10276_v16, %v10276_v16 }
 0x2f8   : > { %v1417_v21 = vpop.xlane.xlu0 %1416 }
 0x2f9   : > { %v1425_v11 = vsub.f32 %v1403_v58, %v1420_v9  ;;  %v1422_v22 = vmul.f32 0.008333334, %v1417_v21  ;;  %1438 = vadd.xlane.f32.xlu1 %v1433_v20  ;;  %v10286_v24 = vmul.f32 %v10238_v5, %v1424_v18  ;;  %v6904_v18 = vld [vmem:[%s982_s28] ss:$0 sm:$0xff]  ;;  %s12550_s28 = sld [smem:[#allocation120_spill]] }
 0x2fa   : > { %v1415_v13 = vpop.xlane.xlu1 %1414 }
 0x2fb   : > { %v1421_v15 = vmul.f32 0.008333334, %v1415_v13  ;;  %v10279_v17 = vmul.f32 %v10238_v5, %v1425_v11  ;;  %v1427_v26 = vsub.f32 %v1405_v61, %v1422_v22  ;;  %v1434_v27 = vmul.f32 %v10286_v24, %v10286_v24  ;;  %v6903_v11 = vld [vmem:[%s974_s20] ss:$0 sm:$0xff] }
 0x2fd   : > { %v1426_v19 = vsub.f32 %v1404_v60, %v1421_v15  ;;  %v1435_v23 = vmul.f32 %v10279_v17, %v10279_v17  ;;  %1440 = vadd.xlane.f32.xlu0 %v1434_v27  ;;  %v10296_v29 = vmul.f32 %v10238_v5, %v1427_v26 }
 0x2ff   : > { %v10289_v25 = vmul.f32 %v10238_v5, %v1426_v19  ;;  %1442 = vadd.xlane.f32.xlu1 %v1435_v23  ;;  %v1437_v30 = vmul.f32 %v10296_v29, %v10296_v29  ;;  %s12551_s17 = smov %s12550_s28  ;;  %v10358_v39 = vld [vmem:[%s12550_s28 + $0x2] ss:$0 sm:$0xff] }
 0x300   : > { %v10365_v41 = vld [vmem:[%s12551_s17 + $0x3] ss:$0 sm:$0xff]  ;;  %v10370_v42 = vld [vmem:[%s12551_s17 + $0x4] ss:$0 sm:$0xff]  ;;  %v10375_v43 = vld [vmem:[%s12551_s17 + $0x5] ss:$0 sm:$0xff] }
 0x301   : > { %v1436_v28 = vmul.f32 %v10289_v25, %v10289_v25  ;;  %v10605_v8 = vld [vmem:[%s12551_s17 + $0xa] ss:$0 sm:$0xff] }
 0x303   : > { %1444 = vadd.xlane.f32.xlu0 %v1436_v28  ;;  %1446 = vadd.xlane.f32.xlu1 %v1437_v30 }
 0x382   : > { %v1439_v53 = vpop.xlane.xlu1 %1438 }
 0x383   : > { %v1448_v54 = vmul.f32 0.008333334, %v1439_v53 }
 0x385   : > { %v1453_v55 = vadd.f32 1e-06, %v1448_v54 }
 0x386   : > { %v1441_v57 = vpop.xlane.xlu0 %1440 }
 0x387   : > { %8649 = vrsqrt.f32 %v1453_v55  ;;  %v1449_v59 = vmul.f32 0.008333334, %v1441_v57 }
 0x388   : > { %v1443_v56 = vpop.xlane.xlu1 %1442 }
 0x389   : > { %v1450_v58 = vmul.f32 0.008333334, %v1443_v56  ;;  %v1454_v60 = vadd.f32 1e-06, %v1449_v59  ;;  %v12437_v59 = vsub.s32 1, %v10234_v2 }
 0x38b   : > { %v1455_v61 = vadd.f32 1e-06, %v1450_v58  ;;  %8651 = vrsqrt.f32 %v1454_v60 }
 0x38c   : > { %v1447_v62 = vpop.xlane.xlu1 %1446  ;;  %v1445_v63 = vpop.xlane.xlu0 %1444 }
 0x38d   : > { %v1451_v0 = vmul.f32 0.008333334, %v1445_v63  ;;  %v1452_v1 = vmul.f32 0.008333334, %v1447_v62  ;;  %8653 = vrsqrt.f32 %v1455_v61 }
 0x38f   : > { %v1456_v3 = vadd.f32 1e-06, %v1451_v0  ;;  %v1457_v6 = vadd.f32 1e-06, %v1452_v1  ;;  %v12439_v0 = vsub.s32 0, %v10234_v2  ;;  %v1534_v1 = vrot.slane %v1525_v35, %v12437_v59 }
 0x391   : > { %8655 = vrsqrt.f32 %v1456_v3 }
 0x392   : > { %8657 = vrsqrt.f32 %v1457_v6 }
 0x394   : > { %v8650_v9 = vpop.eup %8649 }
 0x395   : > { %v1463_v10 = vmul.f32 %v8650_v9, %v10276_v16 }
 0x397   : > { %v1474_v14 = vmul.f32 %v6903_v11, %v1463_v10 }
 0x398   : > { %v8652_v12 = vpop.eup %8651 }
 0x399   : > { %v1464_v13 = vmul.f32 %v8652_v12, %v10286_v24  ;;  %v1485_v21 = vadd.f32 %v6904_v18, %v1474_v14 }
 0x39a   : > { %v8654_v15 = vpop.eup %8653 }
 0x39b   : > { %v1475_v19 = vmul.f32 %v6903_v11, %v1464_v13  ;;  %v1465_v23 = vmul.f32 %v8654_v15, %v10279_v17  ;;  %v10412_v13 = vld [vmem:[%s12551_s17 + $0x1] ss:$0 sm:$0xff] }
 0x39d   : > { %v1486_v22 = vadd.f32 %v6904_v18, %v1475_v19  ;;  %v1476_v30 = vmul.f32 %v6903_v11, %v1465_v23  ;;  %v10422_v19 = vrot.slane %v1525_v35, %v12439_v0  ;;  %v10429_v23 = vld [vmem:[%s12551_s17] ss:$0 sm:$0xff] }
 0x39e   : > { %v8656_v20 = vpop.eup %8655 }
 0x39f   : > { %v1466_v26 = vmul.f32 %v8656_v20, %v10289_v25  ;;  %v1490_v27 = vpack.c.bf16 %v1486_v22, %v1485_v21  ;;  %v8658_v16 = vpop.eup %8657  ;;  %v1487_v32 = vadd.f32 %v6904_v18, %v1476_v30 }
 0x3a0   : > { %v1467_v31 = vmul.f32 %v8658_v16, %v10296_v29  ;;  %v12438_v29 = vsub.s32 2, %v10234_v2 }
 0x3a1   : > { %v1477_v28 = vmul.f32 %v6903_v11, %v1466_v26  ;;  %1703 = vmatmul.mubr.bf16.vlgmr.msra.gmra.mxu0 %v1490_v27  ;;  %7510 = vmatmul.mubr.bf16.vlgmr.msra.gmra.mxu1 %v1490_v27 }
 0x3a2   : > { %1712 = vmatprep.mubr.bf16.mxu0 %v12440_v47  ;;  %7513 = vmatprep.mubr.msk.bf16.mxu1 %vm9689_vm8, %v12442_v4  ;;  %v1478_v17 = vmul.f32 %v6903_v11, %v1467_v31  ;;  %v1538_v36 = vrot.slane %v1525_v35, %v12438_v29 }
 0x3a3   : > { %v1488_v24 = vadd.f32 %v6904_v18, %v1477_v28 }
 0x3a4   : > { %v1489_v25 = vadd.f32 %v6904_v18, %v1478_v17 }
 0x3a5   : > { %v1491_v33 = vpack.c.bf16 %v1488_v24, %v1487_v32 }
 0x3a6   : > { %v1492_v34 = vpack.c.bf16 %v1489_v25, %v1489_v25 }
 0x3a9   : > { %1713 = vmatmul.mubr.bf16.gmra.mxu0 %v1491_v33  ;;  %7514 = vmatmul.mubr.bf16.gmra.mxu1 %v1491_v33 }
 0x3aa   : > { %1722 = vmatprep.mubr.bf16.mxu0 %v12440_v47  ;;  %7517 = vmatprep.mubr.msk.bf16.mxu1 %vm9689_vm8, %v12442_v4 }
 0x3b1   : > { %1723 = vmatmul.mubr.bf16.gmra.mxu0 %v1492_v34  ;;  %7518 = vmatmul.mubr.bf16.gmra.mxu1 %v1492_v34 }
 0x3b2   : > { %7531 = vmatprep.mubr.msk.f32.mxu1 %vm9689_vm8, %v12442_v4  ;;  %7581 = vmatprep.mubr.msk.f32.mxu0 %vm9689_vm8, %v12442_v4 }
 0x461   : > { %v1704_v37 = vpop.f32.mrf.mxu0  ;;  %v1765_v38 = vpop.f32.mrf.mxu1 }
 0x462   : > { %v10360_v40 = vadd.f32 %v1765_v38, %v1538_v36  ;;  %v10447_v17 = vadd.f32 %v1704_v37, %v10422_v19 }
 0x463   : > { %v1706_v44 = vpop.f32.mrf.mxu0  ;;  %v7511_v45 = vpop.f32.mrf.mxu1 }
 0x464   : > { %v10381_v49 = vmul.f32 %v10358_v39, %v10360_v40  ;;  %v10385_v50 = vmul.f32 %v10365_v41, %v10360_v40  ;;  %v10389_v51 = vmul.f32 %v10370_v42, %v10360_v40  ;;  %v10393_v52 = vmul.f32 %v10375_v43, %v10360_v40 }
 0x465   : > { %v10377_v46 = vpop.f32.mrf.mxu0  ;;  %v1768_v48 = vpop.f32.mrf.mxu1  ;;  %v10424_v20 = vadd.f32 %v1706_v44, %v1534_v1  ;;  %v2108_v35 = vmul.f32 %v10412_v13, %v10360_v40 }
 0x466   : > { %12552 = vst [vmem:[#allocation58_spill] sm:$0xff] %v10385_v50  ;;  %12553 = vst [vmem:[#allocation59_spill] sm:$0xff] %v10389_v51  ;;  %v10431_v26 = vadd.f32 %v1768_v48, %v1538_v36 }
 0x467   : > { %12554 = vst [vmem:[#allocation60_spill] sm:$0xff] %v10393_v52  ;;  %v1710_v53 = vpop.f32.mrf.mxu0  ;;  %v7512_v54 = vpop.f32.mrf.mxu1 }
 0x468   : > { %v10439_v30 = vadd.f32 %v1710_v53, %v1534_v1  ;;  %v2109_v34 = vmul.f32 %v10412_v13, %v10431_v26  ;;  %v10480_v53 = vmul.f32 %v10358_v39, %v10431_v26 }
 0x469   : > { %v10395_v55 = vpop.f32.mrf.mxu0  ;;  %v1773_v56 = vpop.f32.mrf.mxu1 }
 0x46a   : > { %v10414_v14 = vadd.f32 %v1773_v56, %v1538_v36  ;;  %v1798_v38 = vmul.f32 %v10429_v23, %v10439_v30 }
 0x46b   : > { %v1716_v57 = vpop.f32.mrf.mxu0  ;;  %v7515_v58 = vpop.f32.mrf.mxu1 }
 0x46c   : > { %v10441_v24 = vadd.f32 %v1716_v57, %v1534_v1  ;;  %v2110_v33 = vmul.f32 %v10412_v13, %v10414_v14  ;;  %v10476_v48 = vmul.f32 %v10358_v39, %v10414_v14  ;;  %v10494_v57 = vmul.f32 %v10365_v41, %v10414_v14 }
 0x46d   : > { %v10398_v60 = vpop.f32.mrf.mxu0  ;;  %v1776_v61 = vpop.f32.mrf.mxu1  ;;  %v10498_v58 = vmul.f32 %v10365_v41, %v10431_v26 }
 0x46e   : > { %v10405_v9 = vadd.f32 %v1776_v61, %v1538_v36  ;;  %v1799_v37 = vmul.f32 %v10429_v23, %v10441_v24  ;;  %v10503_v61 = vld [vmem:[%s12551_s17 + $0x6] ss:$0 sm:$0xff] }
 0x46f   : > { %v1720_v62 = vpop.f32.mrf.mxu0  ;;  %v7516_v63 = vpop.f32.mrf.mxu1  ;;  %12555 = vst [vmem:[#allocation61_spill] sm:$0xff] %v10498_v58 }
 0x470   : > { %v10433_v27 = vadd.f32 %v1720_v62, %v1534_v1  ;;  %v2111_v16 = vmul.f32 %v10412_v13, %v10405_v9  ;;  %v10472_v45 = vmul.f32 %v10358_v39, %v10405_v9  ;;  %v10490_v56 = vmul.f32 %v10365_v41, %v10405_v9 }
 0x471   : > { %v10403_v3 = vpop.f32.mrf.mxu0  ;;  %v1781_v6 = vpop.f32.mrf.mxu1  ;;  %v10511_v63 = vmul.f32 %v10370_v42, %v10405_v9 }
 0x472   : > { %v10407_v10 = vadd.f32 %v1781_v6, %v1538_v36  ;;  %v1800_v25 = vmul.f32 %v10429_v23, %v10433_v27  ;;  %v10459_v36 = vmul.f32 %v10429_v23, %v10424_v20  ;;  %v10519_v6 = vmul.f32 %v10370_v42, %v10431_v26 }
 0x473   : > { %v1726_v11 = vpop.f32.mrf.mxu0  ;;  %v7519_v12 = vpop.f32.mrf.mxu1  ;;  %12557 = vst [vmem:[#allocation63_spill] sm:$0xff] %v10511_v63 }
 0x474   : > { %v10416_v15 = vadd.f32 %v1726_v11, %v1534_v1  ;;  %v2112_v18 = vmul.f32 %v10412_v13, %v10407_v10  ;;  %v10468_v44 = vmul.f32 %v10358_v39, %v10407_v10  ;;  %v10484_v54 = vmul.f32 %v10365_v41, %v10407_v10  ;;  %12559 = vst [vmem:[#allocation65_spill] sm:$0xff] %v10519_v6  ;;  %v10525_v11 = vld [vmem:[%s12551_s17 + $0x7] ss:$0 sm:$0xff] }
 0x475   : > { %v1728_v21 = vpop.f32.mrf.mxu0  ;;  %v1784_v22 = vpop.f32.mrf.mxu1  ;;  %v10507_v62 = vmul.f32 %v10370_v42, %v10407_v10  ;;  %v10515_v1 = vmul.f32 %v10370_v42, %v10414_v14  ;;  %v10529_v12 = vmul.f32 %v10375_v43, %v10407_v10  ;;  %v10584_v59 = vmul.f32 %v10525_v11, %v10414_v14 }
 0x476   : > { %7572 = vmatpush3.msra.mxu0 %v2112_v18  ;;  %v1801_v28 = vmul.f32 %v10429_v23, %v10416_v15  ;;  %v10533_v18 = vmul.f32 %v10375_v43, %v10405_v9  ;;  %v10537_v21 = vmul.f32 %v10375_v43, %v10414_v14  ;;  %v10541_v22 = vmul.f32 %v10375_v43, %v10431_v26 }
 0x477   : > { %v1729_v31 = vpop.f32.mrf.mxu0  ;;  %v7520_v32 = vpop.f32.mrf.mxu1  ;;  %7573 = vmatprep.subr.mxu0 %v12442_v4  ;;  %12556 = vst [vmem:[#allocation62_spill] sm:$0xff] %v10507_v62  ;;  %12558 = vst [vmem:[#allocation64_spill] sm:$0xff] %v10515_v1  ;;  %v10588_v29 = vmul.f32 %v10525_v11, %v10431_v26  ;;  %v10592_v0 = vmul.f32 %v10525_v11, %v10360_v40 }
 0x478   : > { %7522 = vmatpush3.xpose.msra.mxu1 %v1801_v28  ;;  %7574 = vmatpush3.msra.mxu0 %v2111_v16  ;;  %12560 = vst [vmem:[#allocation66_spill] sm:$0xff] %v10529_v12  ;;  %12561 = vst [vmem:[#allocation67_spill] sm:$0xff] %v10533_v18  ;;  %v10546_v28 = vld [vmem:[%s12551_s17 + $0x8] ss:$0 sm:$0xff]  ;;  %v10550_v16 = vmul.f32 %v10503_v61, %v10407_v10  ;;  %v10554_v31 = vmul.f32 %v10503_v61, %v10405_v9 }
 0x479   : > { %7575 = vmatprep.subr.mxu0 %v12442_v4  ;;  %7523 = vmatprep.subr.mxu1 %v12442_v4  ;;  %12562 = vst [vmem:[#allocation68_spill] sm:$0xff] %v10537_v21  ;;  %12563 = vst [vmem:[#allocation69_spill] sm:$0xff] %v10541_v22  ;;  %v10558_v32 = vmul.f32 %v10503_v61, %v10414_v14  ;;  %v10596_v47 = vmul.f32 %v10546_v28, %v10407_v10 }
 0x47a   : > { %7576 = vmatpush3.msra.mxu0 %v2110_v33  ;;  %12564 = vst [vmem:[#allocation70_spill] sm:$0xff] %v10550_v16  ;;  %12565 = vst [vmem:[#allocation71_spill] sm:$0xff] %v10554_v31  ;;  %v10562_v33 = vmul.f32 %v10503_v61, %v10431_v26  ;;  %v10609_v2 = vmul.f32 %v10546_v28, %v10414_v14  ;;  %v10613_v5 = vmul.f32 %v10546_v28, %v10431_v26 }
 0x47b   : > { %7577 = vmatprep.subr.mxu0 %v12442_v4  ;;  %12566 = vst [vmem:[#allocation72_spill] sm:$0xff] %v10558_v32  ;;  %12571 = vst [vmem:[#allocation77_spill] sm:$0xff] %v10584_v59 }
 0x47c   : > { %7524 = vmatpush3.xpose.msra.mxu1 %v1800_v25  ;;  %7578 = vmatpush3.msra.mxu0 %v2109_v34  ;;  %12567 = vst [vmem:[#allocation73_spill] sm:$0xff] %v10562_v33  ;;  %v10568_v25 = vld [vmem:[%s12551_s17 + $0x9] ss:$0 sm:$0xff]  ;;  %v10572_v34 = vmul.f32 %v10503_v61, %v10360_v40  ;;  %12572 = vst [vmem:[#allocation78_spill] sm:$0xff] %v10588_v29  ;;  %v10647_v29 = vmul.f32 %v10605_v8, %v10407_v10 }
 0x47d   : > { %7579 = vmatprep.subr.mxu0 %v12442_v4  ;;  %7525 = vmatprep.subr.mxu1 %v12442_v4  ;;  %12573 = vst [vmem:[#allocation79_spill] sm:$0xff] %v10592_v0  ;;  %12574 = vst [vmem:[#allocation80_spill] sm:$0xff] %v10596_v47  ;;  %v10617_v47 = vmul.f32 %v10546_v28, %v10360_v40  ;;  %v10626_v0 = vld [vmem:[%s12551_s17 + $0xb] ss:$0 sm:$0xff] }
 0x47e   : > { %7580 = vmatpush3.msra.mxu0 %v2108_v35  ;;  %12568 = vst [vmem:[#allocation74_spill] sm:$0xff] %v10572_v34  ;;  %v10576_v35 = vmul.f32 %v10525_v11, %v10407_v10  ;;  %12576 = vst [vmem:[#allocation82_spill] sm:$0xff] %v10609_v2  ;;  %v10630_v2 = vmul.f32 %v10568_v25, %v10405_v9  ;;  %v10667_v59 = vmul.f32 %v10626_v0, %v10407_v10 }
 0x47f   : > { %7621 = vmatprep.subr.mxu0 %v12442_v4  ;;  %12577 = vst [vmem:[#allocation83_spill] sm:$0xff] %v10613_v5  ;;  %12578 = vst [vmem:[#allocation84_spill] sm:$0xff] %v10617_v47  ;;  %v10634_v5 = vmul.f32 %v10568_v25, %v10414_v14  ;;  %v10638_v47 = vmul.f32 %v10568_v25, %v10431_v26 }
 0x480   : > { %7526 = vmatpush3.xpose.msra.mxu1 %v1799_v37  ;;  %12569 = vst [vmem:[#allocation75_spill] sm:$0xff] %v10576_v35  ;;  %v10580_v37 = vmul.f32 %v10525_v11, %v10405_v9  ;;  %12580 = vst [vmem:[#allocation86_spill] sm:$0xff] %v10630_v2  ;;  %v10651_v2 = vmul.f32 %v10605_v8, %v10405_v9 }
 0x481   : > { %7527 = vmatprep.subr.mxu1 %v12442_v4  ;;  %v10600_v4 = vmul.f32 %v10546_v28, %v10405_v9  ;;  %12581 = vst [vmem:[#allocation87_spill] sm:$0xff] %v10634_v5  ;;  %12582 = vst [vmem:[#allocation88_spill] sm:$0xff] %v10638_v47  ;;  %v10655_v5 = vmul.f32 %v10605_v8, %v10414_v14  ;;  %v10659_v47 = vmul.f32 %v10605_v8, %v10431_v26 }
 0x482   : > { %12570 = vst [vmem:[#allocation76_spill] sm:$0xff] %v10580_v37  ;;  %12585 = vst [vmem:[#allocation90_spill] sm:$0xff] %v10647_v29  ;;  %v10671_v29 = vmul.f32 %v10626_v0, %v10405_v9 }
 0x483   : > { %12575 = vst [vmem:[#allocation81_spill] sm:$0xff] %v10600_v4  ;;  %v10621_v4 = vmul.f32 %v10568_v25, %v10407_v10  ;;  %12586 = vst [vmem:[#allocation91_spill] sm:$0xff] %v10651_v2  ;;  %v10675_v2 = vmul.f32 %v10626_v0, %v10414_v14 }
 0x484   : > { %7528 = vmatpush3.xpose.msra.mxu1 %v1798_v38  ;;  %v10642_v38 = vmul.f32 %v10568_v25, %v10360_v40  ;;  %12587 = vst [vmem:[#allocation92_spill] sm:$0xff] %v10655_v5  ;;  %12588 = vst [vmem:[#allocation93_spill] sm:$0xff] %v10659_v47  ;;  %v10679_v5 = vmul.f32 %v10626_v0, %v10431_v26  ;;  %v10683_v47 = vmul.f32 %v10626_v0, %v10360_v40 }
 0x485   : > { %12579 = vst [vmem:[#allocation85_spill] sm:$0xff] %v10621_v4  ;;  %v12584_v4 = vmov 0.0   ;;  %12590 = vst [vmem:[#allocation95_spill] sm:$0xff] %v10667_v59  ;;  %v10687_v59 = vmul.f32 0.31622776, %v10447_v17  ;;  %v1715_v17 = vadd.f32 %v10395_v55, %v10422_v19  ;;  %v1960_v55 = vmul.f32 %v10412_v13, %v10441_v24 }
 0x486   : > { %12583 = vst [vmem:[#allocation89_spill] sm:$0xff] %v10642_v38  ;;  %7529 = vmatprep.subr.mxu1 %v12584_v4  ;;  %v10663_v38 = vmul.f32 %v10605_v8, %v10360_v40  ;;  %12591 = vst [vmem:[#allocation96_spill] sm:$0xff] %v10671_v29  ;;  %v1709_v29 = vadd.f32 %v10377_v46, %v10422_v19  ;;  %v1961_v46 = vmul.f32 %v10412_v13, %v10433_v27 }
 0x487   : > { %12592 = vst [vmem:[#allocation97_spill] sm:$0xff] %v10675_v2  ;;  %12593 = vst [vmem:[#allocation98_spill] sm:$0xff] %v10679_v5  ;;  %v1962_v2 = vmul.f32 %v10412_v13, %v10416_v15 }
 0x488   : > { %12589 = vst [vmem:[#allocation94_spill] sm:$0xff] %v10663_v38  ;;  %12594 = vst [vmem:[#allocation99_spill] sm:$0xff] %v10683_v47  ;;  %7530 = vmatpush3.xpose.msra.mxu1 %v10459_v36  ;;  %v10697_v47 = vmul.f32 0.31622776, %v1709_v29  ;;  %v1719_v29 = vadd.f32 %v10398_v60, %v10422_v19  ;;  %v1959_v60 = vmul.f32 %v10412_v13, %v10439_v30 }
 0x489   : > { %7546 = vmatprep.subr.mxu1 %v12584_v4 }
 0x48a   : > { %v10717_v36 = vmul.f32 0.31622776, %v1719_v29  ;;  %v1958_v29 = vmul.f32 %v10412_v13, %v10424_v20  ;;  %v1951_v13 = vmul.f32 %v10429_v23, %v10405_v9  ;;  %v1948_v9 = vmul.f32 %v10429_v23, %v10360_v40 }
 0x48b   : > { %7532 = vmatmul.mubr.f32.vlgmr.msra.gmra.mxu1 %v10687_v59 }
 0x48c   : > { %7547 = vmatpush3.xpose.msra.mxu1 %v1962_v2  ;;  %7534 = vmatprep.mubr.msk.f32.mxu1 %vm9689_vm8, %v12584_v4  ;;  %v10707_v2 = vmul.f32 0.31622776, %v1715_v17  ;;  %v1725_v17 = vadd.f32 %v10403_v3, %v10422_v19  ;;  %v1952_v3 = vmul.f32 %v10429_v23, %v10407_v10  ;;  %v1950_v19 = vmul.f32 %v10429_v23, %v10414_v14 }
 0x48d   : > { %7548 = vmatprep.subr.mxu1 %v12584_v4  ;;  %v1949_v10 = vmul.f32 %v10429_v23, %v10431_v26 }
 0x48f   : > { %7535 = vmatmul.mubr.f32.gmra.mxu1 %v10697_v47 }
 0x490   : > { %7549 = vmatpush3.xpose.msra.mxu1 %v1961_v46  ;;  %7537 = vmatprep.mubr.msk.f32.mxu1 %vm9689_vm8, %v12584_v4  ;;  %v10727_v46 = vmul.f32 0.31622776, %v1725_v17 }
 0x491   : > { %7550 = vmatprep.subr.mxu1 %v12584_v4 }
 0x493   : > { %7538 = vmatmul.mubr.f32.gmra.mxu1 %v10707_v2 }
 0x494   : > { %7551 = vmatpush3.xpose.msra.mxu1 %v1960_v55  ;;  %7540 = vmatprep.mubr.msk.f32.mxu1 %vm9689_vm8, %v12584_v4 }
 0x495   : > { %7552 = vmatprep.subr.mxu1 %v12584_v4 }
 0x497   : > { %7541 = vmatmul.mubr.f32.gmra.mxu1 %v10717_v36 }
 0x498   : > { %7553 = vmatpush3.xpose.msra.mxu1 %v1959_v60  ;;  %7543 = vmatprep.mubr.msk.f32.mxu1 %vm9689_vm8, %v12584_v4 }
 0x499   : > { %7554 = vmatprep.subr.mxu1 %v12584_v4 }
 0x49b   : > { %7544 = vmatmul.mubr.f32.gmra.mxu1 %v10727_v46 }
 0x49c   : > { %7555 = vmatpush3.xpose.msra.mxu1 %v1958_v29  ;;  %7556 = vmatprep.mubr.msk.f32.mxu1 %vm9689_vm8, %v12584_v4 }
 0x49d   : > { %7596 = vmatprep.subr.mxu1 %v12584_v4 }
 0x49f   : > { %7557 = vmatmul.mubr.f32.vlgmr.msra.gmra.mxu1 %v10687_v59 }
 0x4a0   : > { %7597 = vmatpush3.msra.mxu1 %v1952_v3  ;;  %7559 = vmatprep.mubr.msk.f32.mxu1 %vm9689_vm8, %v12584_v4 }
 0x4a1   : > { %7598 = vmatprep.subr.mxu1 %v12584_v4 }
 0x4a2   : > { %7599 = vmatpush3.msra.mxu1 %v1951_v13 }
 0x4a3   : > { %7560 = vmatmul.mubr.f32.gmra.mxu1 %v10697_v47  ;;  %7600 = vmatprep.subr.mxu1 %v12584_v4 }
 0x4a4   : > { %7601 = vmatpush3.msra.mxu1 %v1950_v19  ;;  %7562 = vmatprep.mubr.msk.f32.mxu1 %vm9689_vm8, %v12584_v4 }
 0x4a5   : > { %7602 = vmatprep.subr.mxu1 %v12584_v4 }
 0x4a6   : > { %7603 = vmatpush3.msra.mxu1 %v1949_v10 }
 0x4a7   : > { %7563 = vmatmul.mubr.f32.gmra.mxu1 %v10707_v2  ;;  %7604 = vmatprep.subr.mxu1 %v12584_v4 }
 0x4a8   : > { %7605 = vmatpush3.msra.mxu1 %v1948_v9  ;;  %7565 = vmatprep.mubr.msk.f32.mxu1 %vm9689_vm8, %v12584_v4 }
 0x4a9   : > { %7646 = vmatprep.subr.mxu1 %v12584_v4 }
 0x4ab   : > { %7566 = vmatmul.mubr.f32.gmra.mxu1 %v10717_v36 }
 0x4ac   : > { %7568 = vmatprep.mubr.msk.f32.mxu1 %vm9689_vm8, %v12584_v4 }
 0x4af   : > { %7569 = vmatmul.mubr.f32.gmra.mxu1 %v10727_v46 }
 0x4b0   : > { %7606 = vmatprep.mubr.msk.f32.mxu1 %vm9689_vm8, %v12584_v4 }
 0x54b   : > { %v10766_v40 = vpop.f32.mrf.mxu1 }
 0x54d   : > { %v7533_v14 = vpop.f32.mrf.mxu1 }
 0x54f   : > { %v10768_v23 = vpop.f32.mrf.mxu1 }
 0x551   : > { %v7536_v26 = vpop.f32.mrf.mxu1 }
 0x553   : > { %v10770_v55 = vpop.f32.mrf.mxu1 }
 0x555   : > { %v7539_v17 = vpop.f32.mrf.mxu1 }
 0x557   : > { %v10772_v60 = vpop.f32.mrf.mxu1 }
 0x559   : > { %v7542_v29 = vpop.f32.mrf.mxu1 }
 0x55b   : > { %v10774_v3 = vpop.f32.mrf.mxu1 }
 0x55d   : > { %v7545_v13 = vpop.f32.mrf.mxu1 }
 0x55f   : > { %v2029_v19 = vpop.f32.mrf.mxu1 }
 0x560   : > { %v2030_v10 = vadd.f32 %v2029_v19, %v10240_v7 }
 0x561   : > { %v7558_v9 = vpop.f32.mrf.mxu1 }
 0x562   : > { %v2053_v5 = vsel %vm1892_vm9, %v2030_v10, -inf }
 0x563   : > { %2054 = vmax.xlane.f32.xlu0 %v2053_v5  ;;  %v2034_v14 = vpop.f32.mrf.mxu1 }
 0x564   : > { %v2035_v26 = vadd.f32 %v2034_v14, %v10240_v7 }
 0x565   : > { %v7561_v38 = vpop.f32.mrf.mxu1 }
 0x566   : > { %v2056_v17 = vsel %vm1892_vm9, %v2035_v26, -inf }
 0x567   : > { %2057 = vmax.xlane.f32.xlu1 %v2056_v17  ;;  %v2039_v37 = vpop.f32.mrf.mxu1 }
 0x568   : > { %v2040_v29 = vadd.f32 %v2039_v37, %v10240_v7 }
 0x569   : > { %v7564_v35 = vpop.f32.mrf.mxu1 }
 0x56a   : > { %v2059_v13 = vsel %vm1892_vm9, %v2040_v29, -inf }
 0x56b   : > { %2060 = vmax.xlane.f32.xlu0 %v2059_v13  ;;  %v2044_v19 = vpop.f32.mrf.mxu1 }
 0x56c   : > { %v2045_v9 = vadd.f32 %v2044_v19, %v10240_v7 }
 0x56d   : > { %v7567_v34 = vpop.f32.mrf.mxu1 }
 0x56e   : > { %v2062_v5 = vsel %vm1892_vm9, %v2045_v9, -inf }
 0x56f   : > { %2063 = vmax.xlane.f32.xlu1 %v2062_v5  ;;  %v2049_v33 = vpop.f32.mrf.mxu1 }
 0x570   : > { %v2050_v38 = vadd.f32 %v2049_v33, %v10240_v7 }
 0x571   : > { %v7570_v14 = vpop.f32.mrf.mxu1 }
 0x572   : > { %v2065_v17 = vsel %vm1892_vm9, %v2050_v38, -inf }
 0x573   : > { %2066 = vmax.xlane.f32.xlu0 %v2065_v17 }
 0x5ec   : > { %v2055_v32 = vpop.xlane.xlu0 %2054 }
 0x5ed   : > { %v2068_v37 = vsub.f32 %v2030_v10, %v2055_v32 }
 0x5ef   : > { %v2073_v35 = vmul.f32 1.442695, %v2068_v37 }
 0x5f0   : > { %v2058_v31 = vpop.xlane.xlu1 %2057 }
 0x5f1   : > { %8659 = vpow2.f32 %v2073_v35  ;;  %v2069_v13 = vsub.f32 %v2035_v26, %v2058_v31 }
 0x5f3   : > { %v2075_v16 = vmul.f32 1.442695, %v2069_v13  ;;  %v10811_v13 = vadd.f32 %v10774_v3, %v10240_v7 }
 0x5f4   : > { %v2061_v52 = vpop.xlane.xlu0 %2060 }
 0x5f5   : > { %8661 = vpow2.f32 %v2075_v16  ;;  %v2070_v34 = vsub.f32 %v2040_v29, %v2061_v52 }
 0x5f7   : > { %v2077_v19 = vmul.f32 1.442695, %v2070_v34  ;;  %v1905_v34 = vsel %vm1892_vm9, %v10811_v13, -inf }
 0x5f8   : > { %v2064_v22 = vpop.xlane.xlu1 %2063 }
 0x5f9   : > { %8663 = vpow2.f32 %v2077_v19  ;;  %v2071_v5 = vsub.f32 %v2045_v9, %v2064_v22  ;;  %v10791_v22 = vadd.f32 %v10766_v40, %v10240_v7  ;;  %v10796_v9 = vadd.f32 %v10768_v23, %v10240_v7 }
 0x5fa   : > { %v10807_v40 = vadd.f32 %v10772_v60, %v10240_v7 }
 0x5fb   : > { %v2079_v21 = vmul.f32 1.442695, %v2071_v5  ;;  %v1893_v37 = vsel %vm1892_vm9, %v10791_v22, -inf }
 0x5fc   : > { %v2067_v33 = vpop.xlane.xlu0 %2066  ;;  %v1902_v19 = vsel %vm1892_vm9, %v10807_v40, -inf }
 0x5fd   : > { %8665 = vpow2.f32 %v2079_v21  ;;  %v2072_v14 = vsub.f32 %v2050_v38, %v2067_v33  ;;  %v10800_v38 = vadd.f32 %v10770_v55, %v10240_v7  ;;  %v1896_v55 = vsel %vm1892_vm9, %v10796_v9, -inf }
 0x5fe   : > { %v8660_v18 = vpop.eup %8659 }
 0x5ff   : > { %v2081_v17 = vmul.f32 1.442695, %v2072_v14  ;;  %v2083_v32 = vsel %vm1892_vm9, %v8660_v18, 0.0  ;;  %v1899_v23 = vsel %vm1892_vm9, %v10800_v38, -inf }
 0x600   : > { %2084 = vadd.xlane.f32.xlu1 %v2083_v32 }
 0x601   : > { %8667 = vpow2.f32 %v2081_v17 }
 0x602   : > { %v8662_v10 = vpop.eup %8661 }
 0x603   : > { %v2086_v31 = vsel %vm1892_vm9, %v8662_v10, 0.0 }
 0x604   : > { %2087 = vadd.xlane.f32.xlu0 %v2086_v31  ;;  %v2332_v31 = vmul.f32 %v10358_v39, %v10416_v15 }
 0x606   : > { %v8664_v16 = vpop.eup %8663 }
 0x607   : > { %v2089_v52 = vsel %vm1892_vm9, %v8664_v16, 0.0 }
 0x608   : > { %2090 = vadd.xlane.f32.xlu1 %v2089_v52 }
 0x60a   : > { %v8666_v26 = vpop.eup %8665 }
 0x60b   : > { %v2092_v21 = vsel %vm1892_vm9, %v8666_v26, 0.0 }
 0x60c   : > { %2093 = vadd.xlane.f32.xlu0 %v2092_v21 }
 0x60e   : > { %v8668_v29 = vpop.eup %8667 }
 0x60f   : > { %v2095_v35 = vsel %vm1892_vm9, %v8668_v29, 0.0 }
 0x610   : > { %1894 = vmax.xlane.f32.xlu0 %v1893_v37  ;;  %2096 = vadd.xlane.f32.xlu1 %v2095_v35  ;;  %v2331_v37 = vmul.f32 %v10358_v39, %v10433_v27 }
 0x614   : > { %1900 = vmax.xlane.f32.xlu0 %v1899_v23  ;;  %1897 = vmax.xlane.f32.xlu1 %v1896_v55  ;;  %v2330_v23 = vmul.f32 %v10358_v39, %v10441_v24 }
 0x618   : > { %1906 = vmax.xlane.f32.xlu0 %v1905_v34  ;;  %1903 = vmax.xlane.f32.xlu1 %v1902_v19  ;;  %v2329_v34 = vmul.f32 %v10358_v39, %v10439_v30 }
 0x689   : > { %v2085_v60 = vpop.xlane.xlu1 %2084 }
 0x68a   : > { %8669 = vrcp.f32 %v2085_v60  ;;  %v2328_v60 = vmul.f32 %v10358_v39, %v10424_v20  ;;  %v2601_v39 = vmul.f32 %v10365_v41, %v10433_v27 }
 0x68d   : > { %v2088_v3 = vpop.xlane.xlu0 %2087 }
 0x68e   : > { %8671 = vrcp.f32 %v2088_v3  ;;  %v2599_v3 = vmul.f32 %v10365_v41, %v10439_v30 }
 0x691   : > { %v2091_v5 = vpop.xlane.xlu1 %2090 }
 0x692   : > { %8673 = vrcp.f32 %v2091_v5  ;;  %v2598_v5 = vmul.f32 %v10365_v41, %v10424_v20 }
 0x695   : > { %v2094_v33 = vpop.xlane.xlu0 %2093 }
 0x696   : > { %8675 = vrcp.f32 %v2094_v33  ;;  %v2872_v33 = vmul.f32 %v10370_v42, %v10416_v15 }
 0x697   : > { %v8670_v14 = vpop.eup %8669 }
 0x698   : > { %v2103_v17 = vmul.f32 %v8670_v14, %v8660_v18  ;;  %v2870_v14 = vmul.f32 %v10370_v42, %v10441_v24 }
 0x699   : > { %v2097_v32 = vpop.xlane.xlu1 %2096 }
 0x69a   : > { %8677 = vrcp.f32 %v2097_v32  ;;  %7582 = vmatmul.mubr.msk.f32.vlgmr.msra.gmra.mxu0 %vm1892_vm9, %v2103_v17  ;;  %v2869_v17 = vmul.f32 %v10370_v42, %v10439_v30  ;;  %v2868_v32 = vmul.f32 %v10370_v42, %v10424_v20 }
 0x69b   : > { %v8672_v52 = vpop.eup %8671  ;;  %7622 = vmatpush3.xpose.msra.mxu0 %v2332_v31  ;;  %7584 = vmatprep.mubr.msk.f32.mxu0 %vm9689_vm8, %v12584_v4  ;;  %v3142_v31 = vmul.f32 %v10375_v43, %v10416_v15 }
 0x69c   : > { %7623 = vmatprep.subr.mxu0 %v12584_v4  ;;  %v2104_v21 = vmul.f32 %v8672_v52, %v8662_v10  ;;  %v3140_v52 = vmul.f32 %v10375_v43, %v10441_v24 }
 0x69e   : > { %7585 = vmatmul.mubr.msk.f32.gmra.mxu0 %vm1892_vm9, %v2104_v21  ;;  %v3139_v21 = vmul.f32 %v10375_v43, %v10439_v30 }
 0x69f   : > { %v8674_v18 = vpop.eup %8673  ;;  %7624 = vmatpush3.xpose.msra.mxu0 %v2331_v37  ;;  %7587 = vmatprep.mubr.msk.f32.mxu0 %vm9689_vm8, %v12584_v4  ;;  %v3138_v37 = vmul.f32 %v10375_v43, %v10424_v20 }
 0x6a0   : > { %7625 = vmatprep.subr.mxu0 %v12584_v4  ;;  %v2105_v35 = vmul.f32 %v8674_v18, %v8664_v16  ;;  %v3412_v18 = vmul.f32 %v10503_v61, %v10416_v15 }
 0x6a2   : > { %7588 = vmatmul.mubr.msk.f32.gmra.mxu0 %vm1892_vm9, %v2105_v35  ;;  %v3410_v35 = vmul.f32 %v10503_v61, %v10441_v24 }
 0x6a3   : > { %v8676_v55 = vpop.eup %8675  ;;  %7626 = vmatpush3.xpose.msra.mxu0 %v2330_v23  ;;  %7590 = vmatprep.mubr.msk.f32.mxu0 %vm9689_vm8, %v12584_v4  ;;  %v3409_v23 = vmul.f32 %v10503_v61, %v10439_v30 }
 0x6a4   : > { %7627 = vmatprep.subr.mxu0 %v12584_v4  ;;  %v2106_v10 = vmul.f32 %v8676_v55, %v8666_v26  ;;  %v2602_v26 = vmul.f32 %v10365_v41, %v10416_v15  ;;  %v3408_v55 = vmul.f32 %v10503_v61, %v10424_v20 }
 0x6a6   : > { %7591 = vmatmul.mubr.msk.f32.gmra.mxu0 %vm1892_vm9, %v2106_v10  ;;  %v3682_v10 = vmul.f32 %v10525_v11, %v10416_v15 }
 0x6a7   : > { %v8678_v19 = vpop.eup %8677  ;;  %7628 = vmatpush3.xpose.msra.mxu0 %v2329_v34  ;;  %7593 = vmatprep.mubr.msk.f32.mxu0 %vm9689_vm8, %v12584_v4  ;;  %v3680_v34 = vmul.f32 %v10525_v11, %v10441_v24 }
 0x6a8   : > { %7629 = vmatprep.subr.mxu0 %v12584_v4  ;;  %v2107_v16 = vmul.f32 %v8678_v19, %v8668_v29  ;;  %v2600_v29 = vmul.f32 %v10365_v41, %v10441_v24  ;;  %v2871_v41 = vmul.f32 %v10370_v42, %v10433_v27  ;;  %v3141_v42 = vmul.f32 %v10375_v43, %v10433_v27 }
 0x6a9   : > { %v3411_v43 = vmul.f32 %v10503_v61, %v10433_v27  ;;  %v3681_v61 = vmul.f32 %v10525_v11, %v10433_v27  ;;  %v3679_v19 = vmul.f32 %v10525_v11, %v10439_v30 }
 0x6aa   : > { %7594 = vmatmul.mubr.msk.f32.gmra.mxu0 %vm1892_vm9, %v2107_v16  ;;  %v3678_v16 = vmul.f32 %v10525_v11, %v10424_v20  ;;  %v3951_v11 = vmul.f32 %v10546_v28, %v10433_v27 }
 0x6ab   : > { %7630 = vmatpush3.xpose.msra.mxu0 %v2328_v60  ;;  %7631 = vmatprep.mubr.msk.f32.mxu0 %vm9689_vm8, %v12584_v4  ;;  %v3952_v60 = vmul.f32 %v10546_v28, %v10416_v15 }
 0x6ac   : > { %7671 = vmatprep.subr.mxu0 %v12584_v4 }
 0x6ae   : > { %7632 = vmatmul.mubr.f32.vlgmr.msra.gmra.mxu0 %v10687_v59 }
 0x6af   : > { %7672 = vmatpush3.xpose.msra.mxu0 %v2602_v26  ;;  %7634 = vmatprep.mubr.msk.f32.mxu0 %vm9689_vm8, %v12584_v4  ;;  %v3950_v26 = vmul.f32 %v10546_v28, %v10441_v24 }
 0x6b0   : > { %7673 = vmatprep.subr.mxu0 %v12584_v4 }
 0x6b2   : > { %7635 = vmatmul.mubr.f32.gmra.mxu0 %v10697_v47 }
 0x6b3   : > { %7674 = vmatpush3.xpose.msra.mxu0 %v2601_v39  ;;  %7637 = vmatprep.mubr.msk.f32.mxu0 %vm9689_vm8, %v12584_v4  ;;  %v3949_v39 = vmul.f32 %v10546_v28, %v10439_v30 }
 0x6b4   : > { %7675 = vmatprep.subr.mxu0 %v12584_v4 }
 0x6b6   : > { %7638 = vmatmul.mubr.f32.gmra.mxu0 %v10707_v2 }
 0x6b7   : > { %7676 = vmatpush3.xpose.msra.mxu0 %v2600_v29  ;;  %7640 = vmatprep.mubr.msk.f32.mxu0 %vm9689_vm8, %v12584_v4  ;;  %v3948_v29 = vmul.f32 %v10546_v28, %v10424_v20  ;;  %v4221_v28 = vmul.f32 %v10568_v25, %v10433_v27 }
 0x6b8   : > { %7677 = vmatprep.subr.mxu0 %v12584_v4 }
 0x6ba   : > { %7641 = vmatmul.mubr.f32.gmra.mxu0 %v10717_v36 }
 0x6bb   : > { %7678 = vmatpush3.xpose.msra.mxu0 %v2599_v3  ;;  %7643 = vmatprep.mubr.msk.f32.mxu0 %vm9689_vm8, %v12584_v4  ;;  %v4222_v3 = vmul.f32 %v10568_v25, %v10416_v15 }
 0x6bc   : > { %7679 = vmatprep.subr.mxu0 %v12584_v4 }
 0x6be   : > { %7644 = vmatmul.mubr.f32.gmra.mxu0 %v10727_v46 }
 0x6bf   : > { %7680 = vmatpush3.xpose.msra.mxu0 %v2598_v5  ;;  %7681 = vmatprep.mubr.msk.f32.mxu0 %vm9689_vm8, %v12584_v4  ;;  %v4220_v5 = vmul.f32 %v10568_v25, %v10441_v24 }
 0x6c0   : > { %7721 = vmatprep.subr.mxu0 %v12584_v4 }
 0x6c2   : > { %7682 = vmatmul.mubr.f32.vlgmr.msra.gmra.mxu0 %v10687_v59 }
 0x6c3   : > { %7722 = vmatpush3.xpose.msra.mxu0 %v2872_v33  ;;  %7684 = vmatprep.mubr.msk.f32.mxu0 %vm9689_vm8, %v12584_v4  ;;  %v4219_v33 = vmul.f32 %v10568_v25, %v10439_v30 }
 0x6c4   : > { %7723 = vmatprep.subr.mxu0 %v12584_v4 }
 0x6c6   : > { %7685 = vmatmul.mubr.f32.gmra.mxu0 %v10697_v47 }
 0x6c7   : > { %7724 = vmatpush3.xpose.msra.mxu0 %v2871_v41  ;;  %7687 = vmatprep.mubr.msk.f32.mxu0 %vm9689_vm8, %v12584_v4  ;;  %v4218_v41 = vmul.f32 %v10568_v25, %v10424_v20  ;;  %v4491_v25 = vmul.f32 %v10605_v8, %v10433_v27 }
 0x6c8   : > { %7725 = vmatprep.subr.mxu0 %v12584_v4 }
 0x6ca   : > { %7688 = vmatmul.mubr.f32.gmra.mxu0 %v10707_v2 }
 0x6cb   : > { %7726 = vmatpush3.xpose.msra.mxu0 %v2870_v14  ;;  %7690 = vmatprep.mubr.msk.f32.mxu0 %vm9689_vm8, %v12584_v4  ;;  %v4492_v14 = vmul.f32 %v10605_v8, %v10416_v15 }
 0x6cc   : > { %7727 = vmatprep.subr.mxu0 %v12584_v4 }
 0x6ce   : > { %7691 = vmatmul.mubr.f32.gmra.mxu0 %v10717_v36 }
 0x6cf   : > { %7728 = vmatpush3.xpose.msra.mxu0 %v2869_v17  ;;  %7693 = vmatprep.mubr.msk.f32.mxu0 %vm9689_vm8, %v12584_v4  ;;  %v4490_v17 = vmul.f32 %v10605_v8, %v10441_v24 }
 0x6d0   : > { %7729 = vmatprep.subr.mxu0 %v12584_v4 }
 0x6d2   : > { %7694 = vmatmul.mubr.f32.gmra.mxu0 %v10727_v46 }
 0x6d3   : > { %7730 = vmatpush3.xpose.msra.mxu0 %v2868_v32  ;;  %7731 = vmatprep.mubr.msk.f32.mxu0 %vm9689_vm8, %v12584_v4  ;;  %v4489_v32 = vmul.f32 %v10605_v8, %v10439_v30 }
 0x6d4   : > { %7771 = vmatprep.subr.mxu0 %v12584_v4 }
 0x6d6   : > { %7732 = vmatmul.mubr.f32.vlgmr.msra.gmra.mxu0 %v10687_v59 }
 0x6d7   : > { %7772 = vmatpush3.xpose.msra.mxu0 %v3142_v31  ;;  %7734 = vmatprep.mubr.msk.f32.mxu0 %vm9689_vm8, %v12584_v4  ;;  %v4488_v31 = vmul.f32 %v10605_v8, %v10424_v20  ;;  %v4761_v8 = vmul.f32 %v10626_v0, %v10433_v27  ;;  %v4759_v27 = vmul.f32 %v10626_v0, %v10439_v30 }
 0x6d8   : > { %7773 = vmatprep.subr.mxu0 %v12584_v4 }
 0x6da   : > { %7735 = vmatmul.mubr.f32.gmra.mxu0 %v10697_v47 }
 0x6db   : > { %7774 = vmatpush3.xpose.msra.mxu0 %v3141_v42  ;;  %7737 = vmatprep.mubr.msk.f32.mxu0 %vm9689_vm8, %v12584_v4  ;;  %v4762_v42 = vmul.f32 %v10626_v0, %v10416_v15  ;;  %v4760_v15 = vmul.f32 %v10626_v0, %v10441_v24 }
 0x6dc   : > { %7775 = vmatprep.subr.mxu0 %v12584_v4 }
 0x6de   : > { %7738 = vmatmul.mubr.f32.gmra.mxu0 %v10707_v2 }
 0x6df   : > { %7776 = vmatpush3.xpose.msra.mxu0 %v3140_v52  ;;  %7740 = vmatprep.mubr.msk.f32.mxu0 %vm9689_vm8, %v12584_v4 }
 0x6e0   : > { %7777 = vmatprep.subr.mxu0 %v12584_v4 }
 0x6e2   : > { %7741 = vmatmul.mubr.f32.gmra.mxu0 %v10717_v36 }
 0x6e3   : > { %7778 = vmatpush3.xpose.msra.mxu0 %v3139_v21  ;;  %7743 = vmatprep.mubr.msk.f32.mxu0 %vm9689_vm8, %v12584_v4  ;;  %v4758_v21 = vmul.f32 %v10626_v0, %v10424_v20 }
 0x6e4   : > { %7779 = vmatprep.subr.mxu0 %v12584_v4 }
 0x6e6   : > { %7744 = vmatmul.mubr.f32.gmra.mxu0 %v10727_v46 }
 0x6e7   : > { %7780 = vmatpush3.xpose.msra.mxu0 %v3138_v37  ;;  %7781 = vmatprep.mubr.msk.f32.mxu0 %vm9689_vm8, %v12584_v4 }
 0x6e8   : > { %7821 = vmatprep.subr.mxu0 %v12584_v4 }
 0x6ea   : > { %7782 = vmatmul.mubr.f32.vlgmr.msra.gmra.mxu0 %v10687_v59 }
 0x6eb   : > { %7822 = vmatpush3.xpose.msra.mxu0 %v3412_v18  ;;  %7784 = vmatprep.mubr.msk.f32.mxu0 %vm9689_vm8, %v12584_v4 }
 0x6ec   : > { %7823 = vmatprep.subr.mxu0 %v12584_v4 }
 0x6ee   : > { %7785 = vmatmul.mubr.f32.gmra.mxu0 %v10697_v47 }
 0x6ef   : > { %7824 = vmatpush3.xpose.msra.mxu0 %v3411_v43  ;;  %7787 = vmatprep.mubr.msk.f32.mxu0 %vm9689_vm8, %v12584_v4 }
 0x6f0   : > { %7825 = vmatprep.subr.mxu0 %v12584_v4 }
 0x6f2   : > { %7788 = vmatmul.mubr.f32.gmra.mxu0 %v10707_v2 }
 0x6f3   : > { %7826 = vmatpush3.xpose.msra.mxu0 %v3410_v35  ;;  %7790 = vmatprep.mubr.msk.f32.mxu0 %vm9689_vm8, %v12584_v4 }
 0x6f4   : > { %7827 = vmatprep.subr.mxu0 %v12584_v4 }
 0x6f6   : > { %7791 = vmatmul.mubr.f32.gmra.mxu0 %v10717_v36 }
 0x6f7   : > { %7828 = vmatpush3.xpose.msra.mxu0 %v3409_v23  ;;  %7793 = vmatprep.mubr.msk.f32.mxu0 %vm9689_vm8, %v12584_v4 }
 0x6f8   : > { %7829 = vmatprep.subr.mxu0 %v12584_v4 }
 0x6fa   : > { %7794 = vmatmul.mubr.f32.gmra.mxu0 %v10727_v46 }
 0x6fb   : > { %7830 = vmatpush3.xpose.msra.mxu0 %v3408_v55  ;;  %7831 = vmatprep.mubr.msk.f32.mxu0 %vm9689_vm8, %v12584_v4 }
 0x6fc   : > { %7871 = vmatprep.subr.mxu0 %v12584_v4 }
 0x6fe   : > { %7832 = vmatmul.mubr.f32.vlgmr.msra.gmra.mxu0 %v10687_v59 }
 0x6ff   : > { %7872 = vmatpush3.xpose.msra.mxu0 %v3682_v10  ;;  %7834 = vmatprep.mubr.msk.f32.mxu0 %vm9689_vm8, %v12584_v4 }
 0x700   : > { %7873 = vmatprep.subr.mxu0 %v12584_v4 }
 0x702   : > { %7835 = vmatmul.mubr.f32.gmra.mxu0 %v10697_v47 }
 0x703   : > { %7874 = vmatpush3.xpose.msra.mxu0 %v3681_v61  ;;  %7837 = vmatprep.mubr.msk.f32.mxu0 %vm9689_vm8, %v12584_v4 }
 0x704   : > { %7875 = vmatprep.subr.mxu0 %v12584_v4 }
 0x706   : > { %7838 = vmatmul.mubr.f32.gmra.mxu0 %v10707_v2 }
 0x707   : > { %7876 = vmatpush3.xpose.msra.mxu0 %v3680_v34  ;;  %7840 = vmatprep.mubr.msk.f32.mxu0 %vm9689_vm8, %v12584_v4 }
 0x708   : > { %7877 = vmatprep.subr.mxu0 %v12584_v4 }
 0x70a   : > { %7841 = vmatmul.mubr.f32.gmra.mxu0 %v10717_v36 }
 0x70b   : > { %7878 = vmatpush3.xpose.msra.mxu0 %v3679_v19  ;;  %7843 = vmatprep.mubr.msk.f32.mxu0 %vm9689_vm8, %v12584_v4 }
 0x70c   : > { %7879 = vmatprep.subr.mxu0 %v12584_v4 }
 0x70e   : > { %7844 = vmatmul.mubr.f32.gmra.mxu0 %v10727_v46 }
 0x70f   : > { %7880 = vmatpush3.xpose.msra.mxu0 %v3678_v16  ;;  %7881 = vmatprep.mubr.msk.f32.mxu0 %vm9689_vm8, %v12584_v4 }
 0x710   : > { %7921 = vmatprep.subr.mxu0 %v12584_v4 }
 0x712   : > { %7882 = vmatmul.mubr.f32.vlgmr.msra.gmra.mxu0 %v10687_v59 }
 0x713   : > { %7922 = vmatpush3.xpose.msra.mxu0 %v3952_v60  ;;  %7884 = vmatprep.mubr.msk.f32.mxu0 %vm9689_vm8, %v12584_v4 }
 0x714   : > { %7923 = vmatprep.subr.mxu0 %v12584_v4 }
 0x716   : > { %7885 = vmatmul.mubr.f32.gmra.mxu0 %v10697_v47 }
 0x717   : > { %7924 = vmatpush3.xpose.msra.mxu0 %v3951_v11  ;;  %7887 = vmatprep.mubr.msk.f32.mxu0 %vm9689_vm8, %v12584_v4 }
 0x718   : > { %7925 = vmatprep.subr.mxu0 %v12584_v4 }
 0x71a   : > { %7888 = vmatmul.mubr.f32.gmra.mxu0 %v10707_v2 }
 0x71b   : > { %7926 = vmatpush3.xpose.msra.mxu0 %v3950_v26  ;;  %7890 = vmatprep.mubr.msk.f32.mxu0 %vm9689_vm8, %v12584_v4 }
 0x71c   : > { %7927 = vmatprep.subr.mxu0 %v12584_v4 }
 0x71e   : > { %7891 = vmatmul.mubr.f32.gmra.mxu0 %v10717_v36 }
 0x71f   : > { %7928 = vmatpush3.xpose.msra.mxu0 %v3949_v39  ;;  %7893 = vmatprep.mubr.msk.f32.mxu0 %vm9689_vm8, %v12584_v4 }
 0x720   : > { %7929 = vmatprep.subr.mxu0 %v12584_v4 }
 0x722   : > { %7894 = vmatmul.mubr.f32.gmra.mxu0 %v10727_v46 }
 0x723   : > { %7930 = vmatpush3.xpose.msra.mxu0 %v3948_v29  ;;  %7931 = vmatprep.mubr.msk.f32.mxu0 %vm9689_vm8, %v12584_v4 }
 0x724   : > { %7971 = vmatprep.subr.mxu0 %v12584_v4 }
 0x726   : > { %7932 = vmatmul.mubr.f32.vlgmr.msra.gmra.mxu0 %v10687_v59 }
 0x727   : > { %7972 = vmatpush3.xpose.msra.mxu0 %v4222_v3  ;;  %7934 = vmatprep.mubr.msk.f32.mxu0 %vm9689_vm8, %v12584_v4 }
 0x728   : > { %7973 = vmatprep.subr.mxu0 %v12584_v4 }
 0x72a   : > { %7935 = vmatmul.mubr.f32.gmra.mxu0 %v10697_v47 }
 0x72b   : > { %7974 = vmatpush3.xpose.msra.mxu0 %v4221_v28  ;;  %7937 = vmatprep.mubr.msk.f32.mxu0 %vm9689_vm8, %v12584_v4 }
 0x72c   : > { %7975 = vmatprep.subr.mxu0 %v12584_v4 }
 0x72e   : > { %7938 = vmatmul.mubr.f32.gmra.mxu0 %v10707_v2 }
 0x72f   : > { %7976 = vmatpush3.xpose.msra.mxu0 %v4220_v5  ;;  %7940 = vmatprep.mubr.msk.f32.mxu0 %vm9689_vm8, %v12584_v4 }
 0x730   : > { %7977 = vmatprep.subr.mxu0 %v12584_v4 }
 0x732   : > { %7941 = vmatmul.mubr.f32.gmra.mxu0 %v10717_v36 }
 0x733   : > { %7978 = vmatpush3.xpose.msra.mxu0 %v4219_v33  ;;  %7943 = vmatprep.mubr.msk.f32.mxu0 %vm9689_vm8, %v12584_v4 }
 0x734   : > { %7979 = vmatprep.subr.mxu0 %v12584_v4 }
 0x736   : > { %7944 = vmatmul.mubr.f32.gmra.mxu0 %v10727_v46 }
 0x737   : > { %7980 = vmatpush3.xpose.msra.mxu0 %v4218_v41  ;;  %7981 = vmatprep.mubr.msk.f32.mxu0 %vm9689_vm8, %v12584_v4 }
 0x738   : > { %8021 = vmatprep.subr.mxu0 %v12584_v4 }
 0x73a   : > { %7982 = vmatmul.mubr.f32.vlgmr.msra.gmra.mxu0 %v10687_v59 }
 0x73b   : > { %8022 = vmatpush3.xpose.msra.mxu0 %v4492_v14  ;;  %7984 = vmatprep.mubr.msk.f32.mxu0 %vm9689_vm8, %v12584_v4 }
 0x73c   : > { %8023 = vmatprep.subr.mxu0 %v12584_v4 }
 0x73e   : > { %7985 = vmatmul.mubr.f32.gmra.mxu0 %v10697_v47 }
 0x73f   : > { %8024 = vmatpush3.xpose.msra.mxu0 %v4491_v25  ;;  %7987 = vmatprep.mubr.msk.f32.mxu0 %vm9689_vm8, %v12584_v4 }
 0x740   : > { %8025 = vmatprep.subr.mxu0 %v12584_v4 }
 0x742   : > { %7988 = vmatmul.mubr.f32.gmra.mxu0 %v10707_v2 }
 0x743   : > { %8026 = vmatpush3.xpose.msra.mxu0 %v4490_v17  ;;  %7990 = vmatprep.mubr.msk.f32.mxu0 %vm9689_vm8, %v12584_v4 }
 0x744   : > { %8027 = vmatprep.subr.mxu0 %v12584_v4 }
 0x746   : > { %7991 = vmatmul.mubr.f32.gmra.mxu0 %v10717_v36 }
 0x747   : > { %8028 = vmatpush3.xpose.msra.mxu0 %v4489_v32  ;;  %7993 = vmatprep.mubr.msk.f32.mxu0 %vm9689_vm8, %v12584_v4 }
 0x748   : > { %8029 = vmatprep.subr.mxu0 %v12584_v4 }
 0x74a   : > { %7994 = vmatmul.mubr.f32.gmra.mxu0 %v10727_v46 }
 0x74b   : > { %8030 = vmatpush3.xpose.msra.mxu0 %v4488_v31  ;;  %8031 = vmatprep.mubr.msk.f32.mxu0 %vm9689_vm8, %v12584_v4 }
 0x74c   : > { %8071 = vmatprep.subr.mxu0 %v12584_v4 }
 0x74e   : > { %8032 = vmatmul.mubr.f32.vlgmr.msra.gmra.mxu0 %v10687_v59 }
 0x74f   : > { %8072 = vmatpush3.xpose.msra.mxu0 %v4762_v42  ;;  %8034 = vmatprep.mubr.msk.f32.mxu0 %vm9689_vm8, %v12584_v4 }
 0x750   : > { %8073 = vmatprep.subr.mxu0 %v12584_v4 }
 0x752   : > { %8035 = vmatmul.mubr.f32.gmra.mxu0 %v10697_v47 }
 0x753   : > { %8074 = vmatpush3.xpose.msra.mxu0 %v4761_v8  ;;  %8037 = vmatprep.mubr.msk.f32.mxu0 %vm9689_vm8, %v12584_v4 }
 0x754   : > { %8075 = vmatprep.subr.mxu0 %v12584_v4 }
 0x756   : > { %8038 = vmatmul.mubr.f32.gmra.mxu0 %v10707_v2 }
 0x757   : > { %8076 = vmatpush3.xpose.msra.mxu0 %v4760_v15  ;;  %8040 = vmatprep.mubr.msk.f32.mxu0 %vm9689_vm8, %v12584_v4 }
 0x758   : > { %8077 = vmatprep.subr.mxu0 %v12584_v4 }
 0x75a   : > { %v11111_v52 = vpop.f32.mrf.mxu0  ;;  %8041 = vmatmul.mubr.f32.gmra.mxu0 %v10717_v36 }
 0x75b   : > { %12595 = vst [vmem:[#allocation100_spill] sm:$0xff] %v11111_v52  ;;  %8078 = vmatpush3.xpose.msra.mxu0 %v4759_v27  ;;  %8043 = vmatprep.mubr.msk.f32.mxu0 %vm9689_vm8, %v12584_v4 }
 0x75c   : > { %v7583_v24 = vpop.f32.mrf.mxu0  ;;  %8079 = vmatprep.subr.mxu0 %v12584_v4 }
 0x75e   : > { %v11119_v37 = vpop.f32.mrf.mxu0  ;;  %8044 = vmatmul.mubr.f32.gmra.mxu0 %v10727_v46 }
 0x75f   : > { %12596 = vst [vmem:[#allocation101_spill] sm:$0xff] %v11119_v37  ;;  %8080 = vmatpush3.xpose.msra.mxu0 %v4758_v21  ;;  %8081 = vmatprep.mubr.msk.f32.mxu0 %vm9689_vm8, %v12584_v4 }
 0x760   : > { %v7586_v30 = vpop.f32.mrf.mxu0  ;;  %8121 = vmatprep.subr.bf16.mxu0 %v12584_v4 }
 0x762   : > { %v11125_v18 = vpop.f32.mrf.mxu0  ;;  %8082 = vmatmul.mubr.f32.vlgmr.msra.gmra.mxu0 %v10687_v59 }
 0x763   : > { %12597 = vst [vmem:[#allocation102_spill] sm:$0xff] %v11125_v18  ;;  %8084 = vmatprep.mubr.msk.f32.mxu0 %vm9689_vm8, %v12584_v4 }
 0x764   : > { %v7589_v43 = vpop.f32.mrf.mxu0 }
 0x766   : > { %v11130_v0 = vpop.f32.mrf.mxu0  ;;  %8085 = vmatmul.mubr.f32.gmra.mxu0 %v10697_v47 }
 0x767   : > { %12598 = vst [vmem:[#allocation103_spill] sm:$0xff] %v11130_v0  ;;  %8087 = vmatprep.mubr.msk.f32.mxu0 %vm9689_vm8, %v12584_v4 }
 0x768   : > { %v7592_v20 = vpop.f32.mrf.mxu0 }
 0x76a   : > { %v11135_v35 = vpop.f32.mrf.mxu0  ;;  %8088 = vmatmul.mubr.f32.gmra.mxu0 %v10707_v2 }
 0x76b   : > { %12599 = vst [vmem:[#allocation104_spill] sm:$0xff] %v11135_v35  ;;  %8090 = vmatprep.mubr.msk.f32.mxu0 %vm9689_vm8, %v12584_v4 }
 0x76c   : > { %v7595_v59 = vpop.f32.mrf.mxu0 }
 0x76e   : > { %v2399_v23 = vpop.f32.mrf.mxu0  ;;  %8091 = vmatmul.mubr.f32.gmra.mxu0 %v10717_v36 }
 0x76f   : > { %v11142_v55 = vadd.f32 %v2399_v23, %v10240_v7  ;;  %8093 = vmatprep.mubr.msk.f32.mxu0 %vm9689_vm8, %v12584_v4 }
 0x770   : > { %v7633_v47 = vpop.f32.mrf.mxu0 }
 0x771   : > { %v2423_v10 = vsel %vm1892_vm9, %v11142_v55, -inf }
 0x772   : > { %8094 = vmatmul.mubr.f32.gmra.mxu0 %v10727_v46  ;;  %2424 = vmax.xlane.f32.xlu1 %v2423_v10  ;;  %v2404_v2 = vpop.f32.mrf.mxu0 }
 0x773   : > { %v11150_v61 = vadd.f32 %v2404_v2, %v10240_v7  ;;  %8137 = vmatprep.mubr.msk.bf16.mxu0 %vm9689_vm8, %v12584_v4 }
 0x774   : > { %v7636_v36 = vpop.f32.mrf.mxu0 }
 0x775   : > { %v2426_v34 = vsel %vm1892_vm9, %v11150_v61, -inf }
 0x776   : > { %2427 = vmax.xlane.f32.xlu0 %v2426_v34  ;;  %v2409_v19 = vpop.f32.mrf.mxu0 }
 0x777   : > { %v11157_v16 = vadd.f32 %v2409_v19, %v10240_v7 }
 0x778   : > { %v7639_v60 = vpop.f32.mrf.mxu0 }
 0x779   : > { %v2429_v46 = vsel %vm1892_vm9, %v11157_v16, -inf }
 0x77a   : > { %2430 = vmax.xlane.f32.xlu1 %v2429_v46  ;;  %v2414_v11 = vpop.f32.mrf.mxu0  ;;  %v1895_v46 = vpop.xlane.xlu0 %1894 }
 0x77b   : > { %v11162_v26 = vadd.f32 %v2414_v11, %v10240_v7 }
 0x77c   : > { %v7642_v39 = vpop.f32.mrf.mxu0 }
 0x77d   : > { %v2432_v29 = vsel %vm1892_vm9, %v11162_v26, -inf }
 0x77e   : > { %2433 = vmax.xlane.f32.xlu0 %v2432_v29  ;;  %v2419_v3 = vpop.f32.mrf.mxu0 }
 0x77f   : > { %v11167_v28 = vadd.f32 %v2419_v3, %v10240_v7  ;;  %v1908_v3 = vsub.f32 %v10791_v22, %v1895_v46 }
 0x780   : > { %v7645_v5 = vpop.f32.mrf.mxu0 }
 0x781   : > { %v2435_v33 = vsel %vm1892_vm9, %v11167_v28, -inf }
 0x782   : > { %2436 = vmax.xlane.f32.xlu1 %v2435_v33  ;;  %v2669_v41 = vpop.f32.mrf.mxu0  ;;  %v1898_v33 = vpop.xlane.xlu1 %1897 }
 0x783   : > { %v11172_v14 = vadd.f32 %v2669_v41, %v10240_v7 }
 0x784   : > { %v7683_v25 = vpop.f32.mrf.mxu0 }
 0x785   : > { %v2693_v17 = vsel %vm1892_vm9, %v11172_v14, -inf }
 0x786   : > { %2694 = vmax.xlane.f32.xlu0 %v2693_v17  ;;  %v2674_v32 = vpop.f32.mrf.mxu0 }
 0x787   : > { %v11177_v31 = vadd.f32 %v2674_v32, %v10240_v7  ;;  %v1913_v32 = vmul.f32 1.442695, %v1908_v3 }
 0x788   : > { %v7686_v42 = vpop.f32.mrf.mxu0 }
 0x789   : > { %v2696_v8 = vsel %vm1892_vm9, %v11177_v31, -inf  ;;  %v1909_v42 = vsub.f32 %v10796_v9, %v1898_v33  ;;  %8679 = vpow2.f32 %v1913_v32 }
 0x78a   : > { %2697 = vmax.xlane.f32.xlu1 %v2696_v8  ;;  %v2679_v15 = vpop.f32.mrf.mxu0 }
 0x78b   : > { %v11182_v27 = vadd.f32 %v2679_v15, %v10240_v7  ;;  %v1901_v15 = vpop.xlane.xlu0 %1900 }
 0x78c   : > { %v7689_v24 = vpop.f32.mrf.mxu0 }
 0x78d   : > { %v2699_v21 = vsel %vm1892_vm9, %v11182_v27, -inf }
 0x78e   : > { %2700 = vmax.xlane.f32.xlu0 %v2699_v21  ;;  %v2684_v30 = vpop.f32.mrf.mxu0 }
 0x78f   : > { %v11187_v43 = vadd.f32 %v2684_v30, %v10240_v7  ;;  %v1915_v30 = vmul.f32 1.442695, %v1909_v42  ;;  %v1907_v46 = vpop.xlane.xlu0 %1906 }
 0x790   : > { %v7692_v20 = vpop.f32.mrf.mxu0 }
 0x791   : > { %v2702_v59 = vsel %vm1892_vm9, %v11187_v43, -inf  ;;  %v1910_v20 = vsub.f32 %v10800_v38, %v1901_v15  ;;  %8681 = vpow2.f32 %v1915_v30 }
 0x792   : > { %2703 = vmax.xlane.f32.xlu1 %v2702_v59  ;;  %v2689_v23 = vpop.f32.mrf.mxu0 }
 0x793   : > { %v11192_v47 = vadd.f32 %v2689_v23, %v10240_v7  ;;  %v1904_v23 = vpop.xlane.xlu1 %1903 }
 0x794   : > { %v7695_v10 = vpop.f32.mrf.mxu0 }
 0x795   : > { %v2705_v2 = vsel %vm1892_vm9, %v11192_v47, -inf }
 0x796   : > { %2706 = vmax.xlane.f32.xlu0 %v2705_v2  ;;  %v2939_v36 = vpop.f32.mrf.mxu0 }
 0x797   : > { %v11197_v34 = vadd.f32 %v2939_v36, %v10240_v7  ;;  %v1917_v36 = vmul.f32 1.442695, %v1910_v20 }
 0x798   : > { %v7733_v19 = vpop.f32.mrf.mxu0 }
 0x799   : > { %v2963_v60 = vsel %vm1892_vm9, %v11197_v34, -inf  ;;  %v1911_v19 = vsub.f32 %v10807_v40, %v1904_v23  ;;  %8683 = vpow2.f32 %v1917_v36 }
 0x79a   : > { %2964 = vmax.xlane.f32.xlu1 %v2963_v60  ;;  %v2944_v11 = vpop.f32.mrf.mxu0 }
 0x79b   : > { %v11202_v39 = vadd.f32 %v2944_v11, %v10240_v7  ;;  %v1919_v3 = vmul.f32 1.442695, %v1911_v19 }
 0x79c   : > { %v7736_v29 = vpop.f32.mrf.mxu0 }
 0x79d   : > { %v2966_v5 = vsel %vm1892_vm9, %v11202_v39, -inf  ;;  %8685 = vpow2.f32 %v1919_v3 }
 0x79e   : > { %2967 = vmax.xlane.f32.xlu0 %v2966_v5  ;;  %v2949_v41 = vpop.f32.mrf.mxu0  ;;  %v1912_v5 = vsub.f32 %v10811_v13, %v1907_v46 }
 0x79f   : > { %v11208_v25 = vadd.f32 %v2949_v41, %v10240_v7 }
 0x7a0   : > { %v7739_v17 = vpop.f32.mrf.mxu0  ;;  %v1921_v32 = vmul.f32 1.442695, %v1912_v5 }
 0x7a1   : > { %v2969_v8 = vsel %vm1892_vm9, %v11208_v25, -inf }
 0x7a2   : > { %2970 = vmax.xlane.f32.xlu1 %v2969_v8  ;;  %v2954_v24 = vpop.f32.mrf.mxu0  ;;  %v11236_v8 = vpop.eup %8679  ;;  %8687 = vpow2.f32 %v1921_v32 }
 0x7a3   : > { %v11214_v22 = vadd.f32 %v2954_v24, %v10240_v7  ;;  %v1923_v30 = vsel %vm1892_vm9, %v11236_v8, 0.0  ;;  %v11245_v20 = vpop.eup %8681 }
 0x7a4   : > { %v7742_v21 = vpop.f32.mrf.mxu0  ;;  %v1926_v36 = vsel %vm1892_vm9, %v11245_v20, 0.0 }
 0x7a5   : > { %v2972_v59 = vsel %vm1892_vm9, %v11214_v22, -inf }
 0x7a6   : > { %2973 = vmax.xlane.f32.xlu0 %v2972_v59  ;;  %v2959_v9 = vpop.f32.mrf.mxu0  ;;  %v11254_v19 = vpop.eup %8683 }
 0x7a7   : > { %v11220_v10 = vadd.f32 %v2959_v9, %v10240_v7  ;;  %v1929_v3 = vsel %vm1892_vm9, %v11254_v19, 0.0 }
 0x7a8   : > { %v7745_v2 = vpop.f32.mrf.mxu0 }
 0x7a9   : > { %v2975_v60 = vsel %vm1892_vm9, %v11220_v10, -inf }
 0x7aa   : > { %2976 = vmax.xlane.f32.xlu1 %v2975_v60  ;;  %v3209_v38 = vpop.f32.mrf.mxu0  ;;  %v11263_v5 = vpop.eup %8685 }
 0x7ab   : > { %v11226_v11 = vadd.f32 %v3209_v38, %v10240_v7 }
 0x7ac   : > { %v7783_v29 = vpop.f32.mrf.mxu0 }
 0x7ad   : > { %v3233_v33 = vsel %vm1892_vm9, %v11226_v11, -inf }
 0x7ae   : > { %3234 = vmax.xlane.f32.xlu0 %v3233_v33  ;;  %v3214_v41 = vpop.f32.mrf.mxu0 }
 0x7af   : > { %v11232_v40 = vadd.f32 %v3214_v41, %v10240_v7 }
 0x7b0   : > { %v7786_v17 = vpop.f32.mrf.mxu0 }
 0x7b1   : > { %v3236_v42 = vsel %vm1892_vm9, %v11232_v40, -inf }
 0x7b2   : > { %3237 = vmax.xlane.f32.xlu1 %v3236_v42  ;;  %v3219_v15 = vpop.f32.mrf.mxu0  ;;  %v1932_v42 = vsel %vm1892_vm9, %v11263_v5, 0.0 }
 0x7b3   : > { %v11239_v13 = vadd.f32 %v3219_v15, %v10240_v7  ;;  %v11272_v15 = vpop.eup %8687 }
 0x7b4   : > { %v7789_v24 = vpop.f32.mrf.mxu0 }
 0x7b5   : > { %v3239_v21 = vsel %vm1892_vm9, %v11239_v13, -inf }
 0x7b6   : > { %3240 = vmax.xlane.f32.xlu0 %v3239_v21  ;;  %v3224_v59 = vpop.f32.mrf.mxu0  ;;  %1924 = vadd.xlane.f32.xlu1 %v1923_v30 }
 0x7b7   : > { %v11248_v23 = vadd.f32 %v3224_v59, %v10240_v7 }
 0x7b8   : > { %v7792_v9 = vpop.f32.mrf.mxu0 }
 0x7b9   : > { %v3242_v2 = vsel %vm1892_vm9, %v11248_v23, -inf  ;;  %v1935_v9 = vsel %vm1892_vm9, %v11272_v15, 0.0 }
 0x7ba   : > { %3243 = vmax.xlane.f32.xlu0 %v3242_v2  ;;  %v3229_v60 = vpop.f32.mrf.mxu0  ;;  %1927 = vadd.xlane.f32.xlu1 %v1926_v36 }
 0x7bb   : > { %v11257_v46 = vadd.f32 %v3229_v60, %v10240_v7 }
 0x7bc   : > { %v7795_v38 = vpop.f32.mrf.mxu0 }
 0x7bd   : > { %v3245_v29 = vsel %vm1892_vm9, %v11257_v46, -inf }
 0x7be   : > { %3246 = vmax.xlane.f32.xlu0 %v3245_v29  ;;  %v3479_v33 = vpop.f32.mrf.mxu0  ;;  %1930 = vadd.xlane.f32.xlu1 %v1929_v3 }
 0x7bf   : > { %v11266_v41 = vadd.f32 %v3479_v33, %v10240_v7 }
 0x7c0   : > { %v7833_v17 = vpop.f32.mrf.mxu0 }
 0x7c1   : > { %v3503_v32 = vsel %vm1892_vm9, %v11266_v41, -inf }
 0x7c2   : > { %3504 = vmax.xlane.f32.xlu0 %v3503_v32  ;;  %v3484_v24 = vpop.f32.mrf.mxu0  ;;  %1933 = vadd.xlane.f32.xlu1 %v1932_v42 }
 0x7c3   : > { %v11275_v21 = vadd.f32 %v3484_v24, %v10240_v7 }
 0x7c4   : > { %v7836_v30 = vpop.f32.mrf.mxu0 }
 0x7c5   : > { %v3506_v59 = vsel %vm1892_vm9, %v11275_v21, -inf }
 0x7c6   : > { %3507 = vmax.xlane.f32.xlu0 %v3506_v59  ;;  %v3489_v2 = vpop.f32.mrf.mxu0  ;;  %1936 = vadd.xlane.f32.xlu1 %v1935_v9 }
 0x7c7   : > { %v11282_v36 = vadd.f32 %v3489_v2, %v10240_v7 }
 0x7c8   : > { %v7839_v60 = vpop.f32.mrf.mxu0 }
 0x7c9   : > { %v3509_v38 = vsel %vm1892_vm9, %v11282_v36, -inf }
 0x7ca   : > { %3510 = vmax.xlane.f32.xlu0 %v3509_v38  ;;  %v3494_v29 = vpop.f32.mrf.mxu0 }
 0x7cb   : > { %v11287_v3 = vadd.f32 %v3494_v29, %v10240_v7 }
 0x7cc   : > { %v7842_v33 = vpop.f32.mrf.mxu0 }
 0x7cd   : > { %v3512_v17 = vsel %vm1892_vm9, %v11287_v3, -inf }
 0x7ce   : > { %3513 = vmax.xlane.f32.xlu0 %v3512_v17  ;;  %v3499_v32 = vpop.f32.mrf.mxu0 }
 0x7cf   : > { %v11292_v42 = vadd.f32 %v3499_v32, %v10240_v7 }
 0x7d0   : > { %v7845_v24 = vpop.f32.mrf.mxu0 }
 0x7d1   : > { %v3515_v30 = vsel %vm1892_vm9, %v11292_v42, -inf }
 0x7d2   : > { %3516 = vmax.xlane.f32.xlu0 %v3515_v30  ;;  %v3749_v59 = vpop.f32.mrf.mxu0 }
 0x7d3   : > { %v11297_v9 = vadd.f32 %v3749_v59, %v10240_v7 }
 0x7d4   : > { %v7883_v2 = vpop.f32.mrf.mxu0 }
 0x7d5   : > { %v3773_v60 = vsel %vm1892_vm9, %v11297_v9, -inf }
 0x7d6   : > { %3774 = vmax.xlane.f32.xlu0 %v3773_v60  ;;  %v3754_v38 = vpop.f32.mrf.mxu0 }
 0x7d7   : > { %v11302_v29 = vadd.f32 %v3754_v38, %v10240_v7 }
 0x7d8   : > { %v7886_v33 = vpop.f32.mrf.mxu0 }
 0x7d9   : > { %v3776_v17 = vsel %vm1892_vm9, %v11302_v29, -inf }
 0x7da   : > { %3777 = vmax.xlane.f32.xlu0 %v3776_v17  ;;  %v3759_v32 = vpop.f32.mrf.mxu0 }
 0x7db   : > { %v11307_v24 = vadd.f32 %v3759_v32, %v10240_v7 }
 0x7dc   : > { %v7889_v30 = vpop.f32.mrf.mxu0 }
 0x7dd   : > { %v3779_v59 = vsel %vm1892_vm9, %v11307_v24, -inf }
 0x7de   : > { %3780 = vmax.xlane.f32.xlu0 %v3779_v59  ;;  %v3764_v2 = vpop.f32.mrf.mxu0 }
 0x7df   : > { %v11312_v60 = vadd.f32 %v3764_v2, %v10240_v7 }
 0x7e0   : > { %v7892_v38 = vpop.f32.mrf.mxu0 }
 0x7e1   : > { %v3782_v33 = vsel %vm1892_vm9, %v11312_v60, -inf }
 0x7e2   : > { %3783 = vmax.xlane.f32.xlu0 %v3782_v33  ;;  %v3769_v35 = vpop.f32.mrf.mxu0 }
 0x7e3   : > { %v11317_v17 = vadd.f32 %v3769_v35, %v10240_v7 }
 0x7e4   : > { %v7895_v32 = vpop.f32.mrf.mxu0 }
 0x7e5   : > { %v3785_v30 = vsel %vm1892_vm9, %v11317_v17, -inf }
 0x7e6   : > { %3786 = vmax.xlane.f32.xlu0 %v3785_v30  ;;  %v4019_v0 = vpop.f32.mrf.mxu0 }
 0x7e7   : > { %v11322_v59 = vadd.f32 %v4019_v0, %v10240_v7 }
 0x7e8   : > { %v7933_v2 = vpop.f32.mrf.mxu0 }
 0x7e9   : > { %v4043_v38 = vsel %vm1892_vm9, %v11322_v59, -inf }
 0x7ea   : > { %4044 = vmax.xlane.f32.xlu0 %v4043_v38  ;;  %v4024_v18 = vpop.f32.mrf.mxu0 }
 0x7eb   : > { %v11327_v33 = vadd.f32 %v4024_v18, %v10240_v7 }
 0x7ec   : > { %v7936_v35 = vpop.f32.mrf.mxu0 }
 0x7ed   : > { %v4046_v32 = vsel %vm1892_vm9, %v11327_v33, -inf }
 0x7ee   : > { %4047 = vmax.xlane.f32.xlu0 %v4046_v32  ;;  %v4029_v37 = vpop.f32.mrf.mxu0 }
 0x7ef   : > { %v11332_v30 = vadd.f32 %v4029_v37, %v10240_v7 }
 0x7f0   : > { %v7939_v0 = vpop.f32.mrf.mxu0 }
 0x7f1   : > { %v4049_v2 = vsel %vm1892_vm9, %v11332_v30, -inf }
 0x7f2   : > { %4050 = vmax.xlane.f32.xlu0 %v4049_v2  ;;  %v4034_v52 = vpop.f32.mrf.mxu0 }
 0x7f3   : > { %v11337_v38 = vadd.f32 %v4034_v52, %v10240_v7 }
 0x7f4   : > { %v7942_v18 = vpop.f32.mrf.mxu0 }
 0x7f5   : > { %v4052_v35 = vsel %vm1892_vm9, %v11337_v38, -inf }
 0x7f6   : > { %4053 = vmax.xlane.f32.xlu0 %v4052_v35  ;;  %v4039_v12 = vpop.f32.mrf.mxu0 }
 0x7f7   : > { %v11342_v32 = vadd.f32 %v4039_v12, %v10240_v7 }
 0x7f8   : > { %v7945_v37 = vpop.f32.mrf.mxu0 }
 0x7f9   : > { %v4055_v0 = vsel %vm1892_vm9, %v11342_v32, -inf }
 0x7fa   : > { %4056 = vmax.xlane.f32.xlu0 %v4055_v0  ;;  %v4289_v51 = vpop.f32.mrf.mxu0 }
 0x7fb   : > { %v11347_v2 = vadd.f32 %v4289_v51, %v10240_v7  ;;  %v2425_v52 = vpop.xlane.xlu1 %2424 }
 0x7fc   : > { %v2438_v18 = vsub.f32 %v11142_v55, %v2425_v52  ;;  %v7983_v6 = vpop.f32.mrf.mxu0 }
 0x7fd   : > { %v4313_v35 = vsel %vm1892_vm9, %v11347_v2, -inf }
 0x7fe   : > { %v2443_v1 = vmul.f32 1.442695, %v2438_v18  ;;  %4314 = vmax.xlane.f32.xlu0 %v4313_v35  ;;  %v4294_v12 = vpop.f32.mrf.mxu0 }
 0x7ff   : > { %v11353_v37 = vadd.f32 %v4294_v12, %v10240_v7  ;;  %v2428_v63 = vpop.xlane.xlu0 %2427 }
 0x800   : > { %8689 = vpow2.f32 %v2443_v1  ;;  %v2439_v0 = vsub.f32 %v11150_v61, %v2428_v63  ;;  %v7986_v62 = vpop.f32.mrf.mxu0 }
 0x801   : > { %v4316_v51 = vsel %vm1892_vm9, %v11353_v37, -inf }
 0x802   : > { %v2445_v50 = vmul.f32 1.442695, %v2439_v0  ;;  %4317 = vmax.xlane.f32.xlu0 %v4316_v51  ;;  %v4299_v6 = vpop.f32.mrf.mxu0 }
 0x803   : > { %v11359_v55 = vadd.f32 %v4299_v6, %v10240_v7  ;;  %v2431_v52 = vpop.xlane.xlu1 %2430 }
 0x804   : > { %8691 = vpow2.f32 %v2445_v50  ;;  %v2440_v18 = vsub.f32 %v11157_v16, %v2431_v52  ;;  %v7989_v35 = vpop.f32.mrf.mxu0 }
 0x805   : > { %v4319_v1 = vsel %vm1892_vm9, %v11359_v55, -inf }
 0x806   : > { %v2447_v12 = vmul.f32 1.442695, %v2440_v18  ;;  %4320 = vmax.xlane.f32.xlu0 %v4319_v1  ;;  %v4304_v62 = vpop.f32.mrf.mxu0 }
 0x807   : > { %v11365_v63 = vadd.f32 %v4304_v62, %v10240_v7  ;;  %v2434_v61 = vpop.xlane.xlu0 %2433 }
 0x808   : > { %8693 = vpow2.f32 %v2447_v12  ;;  %v2441_v0 = vsub.f32 %v11162_v26, %v2434_v61  ;;  %v7992_v51 = vpop.f32.mrf.mxu0 }
 0x809   : > { %v4322_v50 = vsel %vm1892_vm9, %v11365_v63, -inf }
 0x80a   : > { %v2449_v6 = vmul.f32 1.442695, %v2441_v0  ;;  %4323 = vmax.xlane.f32.xlu0 %v4322_v50  ;;  %v4309_v16 = vpop.f32.mrf.mxu0 }
 0x80b   : > { %v11371_v52 = vadd.f32 %v4309_v16, %v10240_v7  ;;  %v2437_v18 = vpop.xlane.xlu1 %2436 }
 0x80c   : > { %8695 = vpow2.f32 %v2449_v6  ;;  %v2442_v35 = vsub.f32 %v11167_v28, %v2437_v18  ;;  %v7995_v1 = vpop.f32.mrf.mxu0 }
 0x80d   : > { %v11374_v62 = vpop.eup %8689  ;;  %v4325_v26 = vsel %vm1892_vm9, %v11371_v52, -inf }
 0x80e   : > { %v2451_v12 = vmul.f32 1.442695, %v2442_v35  ;;  %4326 = vmax.xlane.f32.xlu0 %v4325_v26  ;;  %v4559_v61 = vpop.f32.mrf.mxu0  ;;  %v2453_v0 = vsel %vm1892_vm9, %v11374_v62, 0.0 }
 0x80f   : > { %v11381_v51 = vadd.f32 %v4559_v61, %v10240_v7  ;;  %2454 = vadd.xlane.f32.xlu1 %v2453_v0  ;;  %v2695_v50 = vpop.xlane.xlu0 %2694 }
 0x810   : > { %8697 = vpow2.f32 %v2451_v12  ;;  %v2708_v28 = vsub.f32 %v11172_v14, %v2695_v50  ;;  %v8033_v6 = vpop.f32.mrf.mxu0 }
 0x811   : > { %v11384_v16 = vpop.eup %8691  ;;  %v4583_v18 = vsel %vm1892_vm9, %v11381_v51, -inf }
 0x812   : > { %v2713_v35 = vmul.f32 1.442695, %v2708_v28  ;;  %4584 = vmax.xlane.f32.xlu0 %v4583_v18  ;;  %v4564_v1 = vpop.f32.mrf.mxu0  ;;  %v2456_v26 = vsel %vm1892_vm9, %v11384_v16, 0.0 }
 0x813   : > { %v11391_v61 = vadd.f32 %v4564_v1, %v10240_v7  ;;  %v2698_v0 = vpop.xlane.xlu1 %2697  ;;  %2457 = vadd.xlane.f32.xlu1 %v2456_v26 }
 0x814   : > { %8699 = vpow2.f32 %v2713_v35  ;;  %v2709_v14 = vsub.f32 %v11177_v31, %v2698_v0  ;;  %v8036_v12 = vpop.f32.mrf.mxu0 }
 0x815   : > { %v11394_v50 = vpop.eup %8693  ;;  %v4586_v6 = vsel %vm1892_vm9, %v11391_v61, -inf }
 0x816   : > { %12600 = vst [vmem:[#allocation105_spill] sm:$0xff] %v11394_v50  ;;  %v2715_v28 = vmul.f32 1.442695, %v2709_v14  ;;  %4587 = vmax.xlane.f32.xlu0 %v4586_v6  ;;  %v4569_v18 = vpop.f32.mrf.mxu0  ;;  %v2459_v58 = vsel %vm1892_vm9, %v11394_v50, 0.0 }
 0x817   : > { %v11401_v1 = vadd.f32 %v4569_v18, %v10240_v7  ;;  %2460 = vadd.xlane.f32.xlu1 %v2459_v58  ;;  %v2701_v26 = vpop.xlane.xlu0 %2700 }
 0x818   : > { %8701 = vpow2.f32 %v2715_v28  ;;  %v2710_v31 = vsub.f32 %v11182_v27, %v2701_v26  ;;  %v8039_v35 = vpop.f32.mrf.mxu0 }
 0x819   : > { %v11404_v0 = vpop.eup %8695  ;;  %v4589_v12 = vsel %vm1892_vm9, %v11401_v1, -inf }
 0x81a   : > { %12601 = vst [vmem:[#allocation106_spill] sm:$0xff] %v11404_v0  ;;  %v2717_v14 = vmul.f32 1.442695, %v2710_v31  ;;  %4590 = vmax.xlane.f32.xlu0 %v4589_v12  ;;  %v4574_v6 = vpop.f32.mrf.mxu0  ;;  %v2462_v50 = vsel %vm1892_vm9, %v11404_v0, 0.0 }
 0x81b   : > { %v11411_v18 = vadd.f32 %v4574_v6, %v10240_v7  ;;  %v2704_v58 = vpop.xlane.xlu1 %2703  ;;  %2463 = vadd.xlane.f32.xlu1 %v2462_v50 }
 0x81c   : > { %8703 = vpow2.f32 %v2717_v14  ;;  %v2711_v27 = vsub.f32 %v11187_v43, %v2704_v58  ;;  %v8042_v28 = vpop.f32.mrf.mxu0 }
 0x81d   : > { %v11414_v26 = vpop.eup %8697  ;;  %v4592_v35 = vsel %vm1892_vm9, %v11411_v18, -inf }
 0x81e   : > { %12602 = vst [vmem:[#allocation107_spill] sm:$0xff] %v11414_v26  ;;  %v2719_v31 = vmul.f32 1.442695, %v2711_v27  ;;  %4593 = vmax.xlane.f32.xlu0 %v4592_v35  ;;  %v4579_v12 = vpop.f32.mrf.mxu0  ;;  %v2465_v0 = vsel %vm1892_vm9, %v11414_v26, 0.0 }
 0x81f   : > { %v11421_v6 = vadd.f32 %v4579_v12, %v10240_v7  ;;  %2466 = vadd.xlane.f32.xlu1 %v2465_v0  ;;  %v2707_v50 = vpop.xlane.xlu0 %2706 }
 0x820   : > { %8705 = vpow2.f32 %v2719_v31  ;;  %v2712_v43 = vsub.f32 %v11192_v47, %v2707_v50  ;;  %v8045_v14 = vpop.f32.mrf.mxu0 }
 0x821   : > { %v11424_v58 = vpop.eup %8699  ;;  %v4595_v28 = vsel %vm1892_vm9, %v11421_v6, -inf }
 0x822   : > { %12603 = vst [vmem:[#allocation108_spill] sm:$0xff] %v11424_v58  ;;  %v2721_v27 = vmul.f32 1.442695, %v2712_v43  ;;  %4596 = vmax.xlane.f32.xlu0 %v4595_v28  ;;  %v4829_v35 = vpop.f32.mrf.mxu0  ;;  %v2723_v26 = vsel %vm1892_vm9, %v11424_v58, 0.0 }
 0x823   : > { %v11431_v12 = vadd.f32 %v4829_v35, %v10240_v7  ;;  %v2965_v0 = vpop.xlane.xlu1 %2964  ;;  %2724 = vadd.xlane.f32.xlu1 %v2723_v26 }
 0x824   : > { %8707 = vpow2.f32 %v2721_v27  ;;  %v2978_v47 = vsub.f32 %v11197_v34, %v2965_v0  ;;  %v8083_v31 = vpop.f32.mrf.mxu0 }
 0x825   : > { %12604 = vst [vmem:[#allocation109_spill] sm:$0xff] %v11431_v12  ;;  %v11434_v50 = vpop.eup %8701  ;;  %v4853_v14 = vsel %vm1892_vm9, %v11431_v12, -inf }
 0x826   : > { %12605 = vst [vmem:[#allocation110_spill] sm:$0xff] %v11434_v50  ;;  %v2983_v43 = vmul.f32 1.442695, %v2978_v47  ;;  %4854 = vmax.xlane.f32.xlu0 %v4853_v14  ;;  %v4834_v28 = vpop.f32.mrf.mxu0  ;;  %v2726_v58 = vsel %vm1892_vm9, %v11434_v50, 0.0 }
 0x827   : > { %v11441_v35 = vadd.f32 %v4834_v28, %v10240_v7  ;;  %2727 = vadd.xlane.f32.xlu1 %v2726_v58  ;;  %v2968_v26 = vpop.xlane.xlu0 %2967 }
 0x828   : > { %8709 = vpow2.f32 %v2983_v43  ;;  %v2979_v34 = vsub.f32 %v11202_v39, %v2968_v26  ;;  %v8086_v27 = vpop.f32.mrf.mxu0 }
 0x829   : > { %12606 = vst [vmem:[#allocation111_spill] sm:$0xff] %v11441_v35  ;;  %v11444_v0 = vpop.eup %8703  ;;  %v4856_v31 = vsel %vm1892_vm9, %v11441_v35, -inf }
 0x82a   : > { %12607 = vst [vmem:[#allocation112_spill] sm:$0xff] %v11444_v0  ;;  %v2985_v47 = vmul.f32 1.442695, %v2979_v34  ;;  %4857 = vmax.xlane.f32.xlu0 %v4856_v31  ;;  %v11448_v14 = vpop.f32.mrf.mxu0  ;;  %v2729_v50 = vsel %vm1892_vm9, %v11444_v0, 0.0 }
 0x82b   : > { %v2971_v28 = vpop.xlane.xlu1 %2970  ;;  %2730 = vadd.xlane.f32.xlu1 %v2729_v50 }
 0x82c   : > { %8711 = vpow2.f32 %v2985_v47  ;;  %v2980_v58 = vsub.f32 %v11208_v25, %v2971_v28  ;;  %v8089_v43 = vpop.f32.mrf.mxu0 }
 0x82d   : > { %v11453_v39 = vpop.eup %8705 }
 0x82e   : > { %v2987_v26 = vmul.f32 1.442695, %v2980_v58  ;;  %v11455_v27 = vpop.f32.mrf.mxu0  ;;  %v2732_v34 = vsel %vm1892_vm9, %v11453_v39, 0.0 }
 0x82f   : > { %2733 = vadd.xlane.f32.xlu1 %v2732_v34  ;;  %v2974_v31 = vpop.xlane.xlu0 %2973 }
 0x830   : > { %8713 = vpow2.f32 %v2987_v26  ;;  %v2981_v35 = vsub.f32 %v11214_v22, %v2974_v31  ;;  %v8092_v0 = vpop.f32.mrf.mxu0 }
 0x831   : > { %v11460_v12 = vpop.eup %8707 }
 0x832   : > { %12608 = vst [vmem:[#allocation113_spill] sm:$0xff] %v11460_v12  ;;  %v2989_v50 = vmul.f32 1.442695, %v2981_v35  ;;  %v11462_v47 = vpop.f32.mrf.mxu0  ;;  %v2735_v25 = vsel %vm1892_vm9, %v11460_v12, 0.0 }
 0x833   : > { %v2977_v28 = vpop.xlane.xlu1 %2976  ;;  %2736 = vadd.xlane.f32.xlu1 %v2735_v25 }
 0x834   : > { %8715 = vpow2.f32 %v2989_v50  ;;  %v2982_v58 = vsub.f32 %v11220_v10, %v2977_v28  ;;  %v8095_v43 = vpop.f32.mrf.mxu0 }
 0x835   : > { %v11467_v34 = vpop.eup %8709 }
 0x836   : > { %v2991_v26 = vmul.f32 1.442695, %v2982_v58  ;;  %v2993_v22 = vsel %vm1892_vm9, %v11467_v34, 0.0 }
 0x837   : > { %2994 = vadd.xlane.f32.xlu1 %v2993_v22  ;;  %v3235_v0 = vpop.xlane.xlu0 %3234 }
 0x838   : > { %8717 = vpow2.f32 %v2991_v26  ;;  %v3248_v35 = vsub.f32 %v11226_v11, %v3235_v0 }
 0x839   : > { %v11472_v31 = vpop.eup %8711 }
 0x83a   : > { %v3253_v12 = vmul.f32 1.442695, %v3248_v35  ;;  %v2996_v50 = vsel %vm1892_vm9, %v11472_v31, 0.0 }
 0x83b   : > { %v3238_v25 = vpop.xlane.xlu1 %3237  ;;  %2997 = vadd.xlane.f32.xlu1 %v2996_v50 }
 0x83c   : > { %8719 = vpow2.f32 %v3253_v12  ;;  %v3249_v10 = vsub.f32 %v11232_v40, %v3238_v25 }
 0x83d   : > { %v11477_v28 = vpop.eup %8713 }
 0x83e   : > { %v3255_v58 = vmul.f32 1.442695, %v3249_v10  ;;  %v2999_v43 = vsel %vm1892_vm9, %v11477_v28, 0.0 }
 0x83f   : > { %v1925_v26 = vpop.xlane.xlu1 %1924  ;;  %3000 = vadd.xlane.f32.xlu1 %v2999_v43  ;;  %v3241_v11 = vpop.xlane.xlu0 %3240 }
 0x840   : > { %8721 = vpow2.f32 %v3255_v58  ;;  %v3250_v22 = vsub.f32 %v11239_v13, %v3241_v11 }
 0x841   : > { %v11482_v0 = vpop.eup %8715  ;;  %8723 = vrcp.f32 %v1925_v26 }
 0x842   : > { %v3257_v35 = vmul.f32 1.442695, %v3250_v22  ;;  %v3002_v12 = vsel %vm1892_vm9, %v11482_v0, 0.0 }
 0x843   : > { %v1928_v40 = vpop.xlane.xlu1 %1927  ;;  %3003 = vadd.xlane.f32.xlu1 %v3002_v12  ;;  %v3244_v50 = vpop.xlane.xlu0 %3243 }
 0x844   : > { %8725 = vpow2.f32 %v3257_v35  ;;  %v3251_v25 = vsub.f32 %v11248_v23, %v3244_v50 }
 0x845   : > { %v11487_v10 = vpop.eup %8717  ;;  %8727 = vrcp.f32 %v1928_v40 }
 0x846   : > { %v3259_v43 = vmul.f32 1.442695, %v3251_v25  ;;  %v3005_v13 = vsel %vm1892_vm9, %v11487_v10, 0.0 }
 0x847   : > { %v1931_v58 = vpop.xlane.xlu1 %1930  ;;  %3006 = vadd.xlane.f32.xlu1 %v3005_v13  ;;  %v3247_v26 = vpop.xlane.xlu0 %3246 }
 0x848   : > { %8729 = vpow2.f32 %v3259_v43  ;;  %v3252_v11 = vsub.f32 %v11257_v46, %v3247_v26 }
 0x849   : > { %v11492_v22 = vpop.eup %8719  ;;  %8731 = vrcp.f32 %v1931_v58 }
 0x84a   : > { %12609 = vst [vmem:[#allocation114_spill] sm:$0xff] %v11492_v22  ;;  %v3261_v12 = vmul.f32 1.442695, %v3252_v11  ;;  %v3263_v23 = vsel %vm1892_vm9, %v11492_v22, 0.0 }
 0x84b   : > { %v1934_v35 = vpop.xlane.xlu1 %1933  ;;  %3264 = vadd.xlane.f32.xlu1 %v3263_v23  ;;  %v3505_v40 = vpop.xlane.xlu0 %3504 }
 0x84c   : > { %8733 = vpow2.f32 %v3261_v12  ;;  %v3518_v50 = vsub.f32 %v11266_v41, %v3505_v40 }
 0x84d   : > { %v11497_v25 = vpop.eup %8721  ;;  %8735 = vrcp.f32 %v1934_v35 }
 0x84e   : > { %v8724_v13 = vpop.eup %8723  ;;  %v3523_v43 = vmul.f32 1.442695, %v3518_v50  ;;  %v3266_v46 = vsel %vm1892_vm9, %v11497_v25, 0.0 }
 0x84f   : > { %v1943_v58 = vmul.f32 %v8724_v13, %v11236_v8  ;;  %v1937_v26 = vpop.xlane.xlu1 %1936  ;;  %3267 = vadd.xlane.f32.xlu1 %v3266_v46  ;;  %v3508_v11 = vpop.xlane.xlu0 %3507 }
 0x850   : > { %8737 = vpow2.f32 %v3523_v43  ;;  %v3519_v23 = vsub.f32 %v11275_v21, %v3508_v11 }
 0x851   : > { %v11503_v22 = vpop.eup %8725  ;;  %8739 = vrcp.f32 %v1937_v26  ;;  %7607 = vmatmul.mubr.msk.f32.vlgmr.msra.gmra.mxu1 %vm1892_vm9, %v1943_v58 }
 0x852   : > { %v8728_v41 = vpop.eup %8727  ;;  %v3525_v12 = vmul.f32 1.442695, %v3519_v23  ;;  %7647 = vmatpush3.msra.mxu1 %v10468_v44  ;;  %7609 = vmatprep.mubr.msk.f32.mxu1 %vm9689_vm8, %v12584_v4  ;;  %v3269_v8 = vsel %vm1892_vm9, %v11503_v22, 0.0 }
 0x853   : > { %7648 = vmatprep.subr.mxu1 %v12584_v4  ;;  %3270 = vadd.xlane.f32.xlu1 %v3269_v8  ;;  %v3511_v35 = vpop.xlane.xlu0 %3510  ;;  %v1944_v21 = vmul.f32 %v8728_v41, %v11245_v20 }
 0x854   : > { %8741 = vpow2.f32 %v3525_v12  ;;  %7649 = vmatpush3.msra.mxu1 %v10472_v45  ;;  %v3520_v40 = vsub.f32 %v11282_v36, %v3511_v35 }
 0x855   : > { %v11515_v50 = vpop.eup %8729  ;;  %7650 = vmatprep.subr.mxu1 %v12584_v4  ;;  %7610 = vmatmul.mubr.msk.f32.gmra.mxu1 %vm1892_vm9, %v1944_v21 }
 0x856   : > { %v8732_v44 = vpop.eup %8731  ;;  %v3527_v13 = vmul.f32 1.442695, %v3520_v40  ;;  %7651 = vmatpush3.msra.mxu1 %v10476_v48  ;;  %7612 = vmatprep.mubr.msk.f32.mxu1 %vm9689_vm8, %v12584_v4  ;;  %v3272_v20 = vsel %vm1892_vm9, %v11515_v50, 0.0 }
 0x857   : > { %7652 = vmatprep.subr.mxu1 %v12584_v4  ;;  %3273 = vadd.xlane.f32.xlu1 %v3272_v20  ;;  %v3514_v45 = vpop.xlane.xlu0 %3513  ;;  %v1945_v36 = vmul.f32 %v8732_v44, %v11254_v19 }
 0x858   : > { %8743 = vpow2.f32 %v3527_v13  ;;  %7653 = vmatpush3.msra.mxu1 %v10480_v53  ;;  %v3521_v43 = vsub.f32 %v11287_v3, %v3514_v45 }
 0x859   : > { %v11528_v46 = vpop.eup %8733  ;;  %7654 = vmatprep.subr.mxu1 %v12584_v4  ;;  %7613 = vmatmul.mubr.msk.f32.gmra.mxu1 %vm1892_vm9, %v1945_v36 }
 0x85a   : > { %v8736_v48 = vpop.eup %8735  ;;  %v3529_v58 = vmul.f32 1.442695, %v3521_v43  ;;  %7655 = vmatpush3.msra.mxu1 %v10381_v49  ;;  %7615 = vmatprep.mubr.msk.f32.mxu1 %vm9689_vm8, %v12584_v4  ;;  %v3275_v19 = vsel %vm1892_vm9, %v11528_v46, 0.0 }
 0x85b   : > { %3276 = vadd.xlane.f32.xlu1 %v3275_v19  ;;  %v3517_v53 = vpop.xlane.xlu0 %3516  ;;  %v1946_v3 = vmul.f32 %v8736_v48, %v11263_v5  ;;  %7696 = vmatprep.subr.mxu1 %v12584_v4 }
 0x85c   : > { %8745 = vpow2.f32 %v3529_v58  ;;  %v3522_v26 = vsub.f32 %v11292_v42, %v3517_v53 }
 0x85d   : > { %v11540_v11 = vpop.eup %8737  ;;  %7616 = vmatmul.mubr.msk.f32.gmra.mxu1 %vm1892_vm9, %v1946_v3 }
 0x85e   : > { %v8740_v49 = vpop.eup %8739  ;;  %v3531_v23 = vmul.f32 1.442695, %v3522_v26  ;;  %7618 = vmatprep.mubr.msk.f32.mxu1 %vm9689_vm8, %v12584_v4  ;;  %v3533_v41 = vsel %vm1892_vm9, %v11540_v11, 0.0 }
 0x85f   : > { %3534 = vadd.xlane.f32.xlu1 %v3533_v41  ;;  %v3775_v12 = vpop.xlane.xlu0 %3774  ;;  %v1947_v5 = vmul.f32 %v8740_v49, %v11272_v15 }
 0x860   : > { %8747 = vpow2.f32 %v3531_v23  ;;  %v3788_v8 = vsub.f32 %v11297_v9, %v3775_v12  ;;  %v11576_v23 = vadd.f32 %v11448_v14, %v10240_v7 }
 0x861   : > { %v11549_v42 = vpop.eup %8741  ;;  %7619 = vmatmul.mubr.msk.f32.gmra.mxu1 %vm1892_vm9, %v1947_v5 }
 0x862   : > { %v3793_v35 = vmul.f32 1.442695, %v3788_v8  ;;  %v3536_v21 = vsel %vm1892_vm9, %v11549_v42, 0.0  ;;  %7656 = vmatprep.mubr.msk.f32.mxu1 %vm9689_vm8, %v12584_v4  ;;  %v4859_v14 = vsel %vm1892_vm9, %v11576_v23, -inf }
 0x863   : > { %3537 = vadd.xlane.f32.xlu1 %v3536_v21  ;;  %v3778_v40 = vpop.xlane.xlu0 %3777 }
 0x864   : > { %8749 = vpow2.f32 %v3793_v35  ;;  %v3789_v44 = vsub.f32 %v11302_v29, %v3778_v40 }
 0x865   : > { %v11557_v15 = vpop.eup %8743 }
 0x866   : > { %v3795_v13 = vmul.f32 1.442695, %v3789_v44  ;;  %v3539_v9 = vsel %vm1892_vm9, %v11557_v15, 0.0 }
 0x867   : > { %3540 = vadd.xlane.f32.xlu1 %v3539_v9  ;;  %v3781_v20 = vpop.xlane.xlu0 %3780 }
 0x868   : > { %8751 = vpow2.f32 %v3795_v13  ;;  %v3790_v45 = vsub.f32 %v11307_v24, %v3781_v20 }
 0x869   : > { %v11562_v36 = vpop.eup %8745 }
 0x86a   : > { %v3797_v43 = vmul.f32 1.442695, %v3790_v45  ;;  %v3542_v48 = vsel %vm1892_vm9, %v11562_v36, 0.0 }
 0x86b   : > { %3543 = vadd.xlane.f32.xlu1 %v3542_v48  ;;  %v3784_v58 = vpop.xlane.xlu0 %3783 }
 0x86c   : > { %8753 = vpow2.f32 %v3797_v43  ;;  %v3791_v29 = vsub.f32 %v11312_v60, %v3784_v58 }
 0x86d   : > { %v11567_v19 = vpop.eup %8747 }
 0x86e   : > { %v3799_v53 = vmul.f32 1.442695, %v3791_v29  ;;  %v3545_v3 = vsel %vm1892_vm9, %v11567_v19, 0.0 }
 0x86f   : > { %3546 = vadd.xlane.f32.xlu1 %v3545_v3  ;;  %v3787_v26 = vpop.xlane.xlu0 %3786 }
 0x870   : > { %8755 = vpow2.f32 %v3799_v53  ;;  %v3792_v24 = vsub.f32 %v11317_v17, %v3787_v26  ;;  %v11585_v17 = vadd.f32 %v11455_v27, %v10240_v7 }
 0x871   : > { %v11572_v49 = vpop.eup %8749 }
 0x872   : > { %v3801_v41 = vmul.f32 1.442695, %v3792_v24  ;;  %v3803_v60 = vsel %vm1892_vm9, %v11572_v49, 0.0  ;;  %v4862_v27 = vsel %vm1892_vm9, %v11585_v17, -inf }
 0x873   : > { %3804 = vadd.xlane.f32.xlu0 %v3803_v60  ;;  %v4045_v12 = vpop.xlane.xlu0 %4044  ;;  %v11613_v60 = vadd.f32 %v11462_v47, %v10240_v7 }
 0x874   : > { %8757 = vpow2.f32 %v3801_v41  ;;  %v4058_v5 = vsub.f32 %v11322_v59, %v4045_v12 }
 0x875   : > { %v11581_v8 = vpop.eup %8751 }
 0x876   : > { %v4063_v35 = vmul.f32 1.442695, %v4058_v5  ;;  %v3806_v21 = vsel %vm1892_vm9, %v11581_v8, 0.0 }
 0x877   : > { %4860 = vmax.xlane.f32.xlu0 %v4859_v14  ;;  %3807 = vadd.xlane.f32.xlu1 %v3806_v21  ;;  %v4048_v40 = vpop.xlane.xlu0 %4047 }
 0x878   : > { %8759 = vpow2.f32 %v4063_v35  ;;  %v4059_v44 = vsub.f32 %v11327_v33, %v4048_v40 }
 0x879   : > { %v11592_v59 = vpop.eup %8753 }
 0x87a   : > { %v4065_v13 = vmul.f32 1.442695, %v4059_v44  ;;  %v3809_v9 = vsel %vm1892_vm9, %v11592_v59, 0.0 }
 0x87b   : > { %4863 = vmax.xlane.f32.xlu0 %v4862_v27  ;;  %3810 = vadd.xlane.f32.xlu1 %v3809_v9  ;;  %v4051_v20 = vpop.xlane.xlu0 %4050 }
 0x87c   : > { %8761 = vpow2.f32 %v4065_v13  ;;  %v4060_v45 = vsub.f32 %v11332_v30, %v4051_v20 }
 0x87d   : > { %v11599_v43 = vpop.eup %8755 }
 0x87e   : > { %v4067_v48 = vmul.f32 1.442695, %v4060_v45  ;;  %v3812_v33 = vsel %vm1892_vm9, %v11599_v43, 0.0 }
 0x87f   : > { %3813 = vadd.xlane.f32.xlu1 %v3812_v33  ;;  %v4054_v58 = vpop.xlane.xlu0 %4053 }
 0x880   : > { %8763 = vpow2.f32 %v4067_v48  ;;  %v4061_v29 = vsub.f32 %v11337_v38, %v4054_v58 }
 0x881   : > { %v11604_v53 = vpop.eup %8757 }
 0x882   : > { %v4069_v3 = vmul.f32 1.442695, %v4061_v29  ;;  %v3815_v26 = vsel %vm1892_vm9, %v11604_v53, 0.0 }
 0x883   : > { %3816 = vadd.xlane.f32.xlu0 %v3815_v26  ;;  %v4057_v24 = vpop.xlane.xlu0 %4056 }
 0x884   : > { %8765 = vpow2.f32 %v4069_v3  ;;  %v4062_v30 = vsub.f32 %v11342_v32, %v4057_v24  ;;  %v4865_v32 = vsel %vm1892_vm9, %v11613_v60, -inf }
 0x885   : > { %v11609_v41 = vpop.eup %8759 }
 0x886   : > { %v4071_v12 = vmul.f32 1.442695, %v4062_v30  ;;  %v4073_v38 = vsel %vm1892_vm9, %v11609_v41, 0.0 }
 0x887   : > { %4074 = vadd.xlane.f32.xlu1 %v4073_v38  ;;  %v4315_v5 = vpop.xlane.xlu0 %4314 }
 0x888   : > { %8767 = vpow2.f32 %v4071_v12  ;;  %v4328_v35 = vsub.f32 %v11347_v2, %v4315_v5 }
 0x889   : > { %v11618_v14 = vpop.eup %8761 }
 0x88a   : > { %v4333_v21 = vmul.f32 1.442695, %v4328_v35  ;;  %v4076_v40 = vsel %vm1892_vm9, %v11618_v14, 0.0 }
 0x88b   : > { %4866 = vmax.xlane.f32.xlu1 %v4865_v32  ;;  %4077 = vadd.xlane.f32.xlu0 %v4076_v40  ;;  %v4318_v7 = vpop.xlane.xlu0 %4317 }
 0x88c   : > { %8769 = vpow2.f32 %v4333_v21  ;;  %v4329_v47 = vsub.f32 %v11353_v37, %v4318_v7 }
 0x88d   : > { %v11625_v44 = vpop.eup %8763 }
 0x88e   : > { %v4335_v13 = vmul.f32 1.442695, %v4329_v47  ;;  %v4079_v2 = vsel %vm1892_vm9, %v11625_v44, 0.0 }
 0x88f   : > { %4080 = vadd.xlane.f32.xlu0 %v4079_v2  ;;  %v4321_v27 = vpop.xlane.xlu0 %4320 }
 0x890   : > { %8771 = vpow2.f32 %v4335_v13  ;;  %v4330_v9 = vsub.f32 %v11359_v55, %v4321_v27 }
 0x891   : > { %v11630_v20 = vpop.eup %8765 }
 0x892   : > { %v4337_v45 = vmul.f32 1.442695, %v4330_v9  ;;  %v4082_v48 = vsel %vm1892_vm9, %v11630_v20, 0.0 }
 0x893   : > { %4083 = vadd.xlane.f32.xlu1 %v4082_v48  ;;  %v4324_v33 = vpop.xlane.xlu0 %4323 }
 0x894   : > { %8773 = vpow2.f32 %v4337_v45  ;;  %v4331_v37 = vsub.f32 %v11365_v63, %v4324_v33 }
 0x895   : > { %v11635_v58 = vpop.eup %8767 }
 0x896   : > { %v4339_v29 = vmul.f32 1.442695, %v4331_v37  ;;  %v4085_v3 = vsel %vm1892_vm9, %v11635_v58, 0.0 }
 0x897   : > { %4086 = vadd.xlane.f32.xlu0 %v4085_v3  ;;  %v4327_v26 = vpop.xlane.xlu0 %4326 }
 0x898   : > { %8775 = vpow2.f32 %v4339_v29  ;;  %v4332_v55 = vsub.f32 %v11371_v52, %v4327_v26  ;;  %v2455_v24 = vpop.xlane.xlu1 %2454 }
 0x899   : > { %v11640_v30 = vpop.eup %8769  ;;  %8777 = vrcp.f32 %v2455_v24 }
 0x89a   : > { %v4341_v12 = vmul.f32 1.442695, %v4332_v55  ;;  %v4343_v38 = vsel %vm1892_vm9, %v11640_v30, 0.0 }
 0x89b   : > { %4344 = vadd.xlane.f32.xlu1 %v4343_v38  ;;  %v4585_v63 = vpop.xlane.xlu0 %4584 }
 0x89c   : > { %8779 = vpow2.f32 %v4341_v12  ;;  %v4598_v5 = vsub.f32 %v11381_v51, %v4585_v63  ;;  %v2458_v35 = vpop.xlane.xlu1 %2457 }
 0x89d   : > { %v11645_v21 = vpop.eup %8771  ;;  %8781 = vrcp.f32 %v2458_v35 }
 0x89e   : > { %v4603_v32 = vmul.f32 1.442695, %v4598_v5  ;;  %v4346_v52 = vsel %vm1892_vm9, %v11645_v21, 0.0 }
 0x89f   : > { %4347 = vadd.xlane.f32.xlu0 %v4346_v52  ;;  %v4588_v40 = vpop.xlane.xlu0 %4587 }
 0x8a0   : > { %8783 = vpow2.f32 %v4603_v32  ;;  %v4599_v7 = vsub.f32 %v11391_v61, %v4588_v40  ;;  %v2461_v47 = vpop.xlane.xlu1 %2460  ;;  %v12611_v40 = vld [vmem:[#allocation61_spill] sm:$0xff] }
 0x8a1   : > { %v11650_v13 = vpop.eup %8773  ;;  %8785 = vrcp.f32 %v2461_v47 }
 0x8a2   : > { %v4605_v2 = vmul.f32 1.442695, %v4599_v7  ;;  %v4349_v51 = vsel %vm1892_vm9, %v11650_v13, 0.0  ;;  %v12612_v7 = vld [vmem:[#allocation109_spill] sm:$0xff] }
 0x8a3   : > { %4350 = vadd.xlane.f32.xlu1 %v4349_v51  ;;  %v4591_v27 = vpop.xlane.xlu0 %4590 }
 0x8a4   : > { %8787 = vpow2.f32 %v4605_v2  ;;  %v4600_v9 = vsub.f32 %v11401_v1, %v4591_v27  ;;  %v2464_v45 = vpop.xlane.xlu1 %2463 }
 0x8a5   : > { %v11655_v48 = vpop.eup %8775  ;;  %8789 = vrcp.f32 %v2464_v45 }
 0x8a6   : > { %v8778_v33 = vpop.eup %8777  ;;  %v4607_v37 = vmul.f32 1.442695, %v4600_v9  ;;  %v4352_v61 = vsel %vm1892_vm9, %v11655_v48, 0.0  ;;  %v12613_v9 = vld [vmem:[#allocation58_spill] sm:$0xff] }
 0x8a7   : > { %v2473_v29 = vmul.f32 %v8778_v33, %v11374_v62  ;;  %4353 = vadd.xlane.f32.xlu0 %v4352_v61  ;;  %v4594_v3 = vpop.xlane.xlu0 %4593 }
 0x8a8   : > { %8791 = vpow2.f32 %v4607_v37  ;;  %v4601_v26 = vsub.f32 %v11411_v18, %v4594_v3  ;;  %v2467_v55 = vpop.xlane.xlu1 %2466  ;;  %v12614_v37 = vld [vmem:[#allocation106_spill] sm:$0xff] }
 0x8a9   : > { %v11661_v24 = vpop.eup %8779  ;;  %8793 = vrcp.f32 %v2467_v55  ;;  %7657 = vmatmul.mubr.msk.f32.vlgmr.msra.gmra.mxu1 %vm1892_vm9, %v2473_v29  ;;  %v12615_v29 = vld [vmem:[#allocation111_spill] sm:$0xff] }
 0x8aa   : > { %v8782_v1 = vpop.eup %8781  ;;  %v4609_v12 = vmul.f32 1.442695, %v4601_v26  ;;  %7697 = vmatpush3.msra.mxu1 %v10484_v54  ;;  %v4355_v38 = vsel %vm1892_vm9, %v11661_v24, 0.0  ;;  %7659 = vmatprep.mubr.msk.f32.mxu1 %vm9689_vm8, %v12584_v4 }
 0x8ab   : > { %7698 = vmatprep.subr.mxu1 %v12584_v4  ;;  %4356 = vadd.xlane.f32.xlu1 %v4355_v38  ;;  %v4597_v62 = vpop.xlane.xlu0 %4596  ;;  %v2474_v18 = vmul.f32 %v8782_v1, %v11384_v16 }
 0x8ac   : > { %8795 = vpow2.f32 %v4609_v12  ;;  %7699 = vmatpush3.msra.mxu1 %v10490_v56  ;;  %v4602_v63 = vsub.f32 %v11421_v6, %v4597_v62  ;;  %v2725_v5 = vpop.xlane.xlu1 %2724  ;;  %v12610_v6 = vld [vmem:[#allocation105_spill] sm:$0xff]  ;;  %v12616_v62 = vld [vmem:[#allocation107_spill] sm:$0xff] }
 0x8ad   : > { %v11673_v35 = vpop.eup %8783  ;;  %7700 = vmatprep.subr.mxu1 %v12584_v4  ;;  %8797 = vrcp.f32 %v2725_v5  ;;  %7660 = vmatmul.mubr.msk.f32.gmra.mxu1 %vm1892_vm9, %v2474_v18 }
 0x8ae   : > { %v8786_v54 = vpop.eup %8785  ;;  %v4611_v32 = vmul.f32 1.442695, %v4602_v63  ;;  %7701 = vmatpush3.msra.mxu1 %v10494_v57  ;;  %v4613_v16 = vsel %vm1892_vm9, %v11673_v35, 0.0  ;;  %7662 = vmatprep.mubr.msk.f32.mxu1 %vm9689_vm8, %v12584_v4 }
 0x8af   : > { %7702 = vmatprep.subr.mxu1 %v12584_v4  ;;  %4614 = vadd.xlane.f32.xlu0 %v4613_v16  ;;  %v4855_v56 = vpop.xlane.xlu0 %4854  ;;  %v2475_v52 = vmul.f32 %v8786_v54, %v12610_v6  ;;  %v12617_v16 = vld [vmem:[#allocation108_spill] sm:$0xff] }
 0x8b0   : > { %8799 = vpow2.f32 %v4611_v32  ;;  %7703 = vmatpush3.msra.mxu1 %v12611_v40  ;;  %v4868_v47 = vsub.f32 %v12612_v7, %v4855_v56  ;;  %v2728_v2 = vpop.xlane.xlu1 %2727  ;;  %v12618_v7 = vld [vmem:[#allocation62_spill] sm:$0xff] }
 0x8b1   : > { %v11686_v51 = vpop.eup %8787  ;;  %7704 = vmatprep.subr.mxu1 %v12584_v4  ;;  %8801 = vrcp.f32 %v2728_v2  ;;  %7663 = vmatmul.mubr.msk.f32.gmra.mxu1 %vm1892_vm9, %v2475_v52  ;;  %v12619_v2 = vld [vmem:[#allocation110_spill] sm:$0xff] }
 0x8b2   : > { %v8790_v57 = vpop.eup %8789  ;;  %v4873_v27 = vmul.f32 1.442695, %v4868_v47  ;;  %7705 = vmatpush3.msra.mxu1 %v12613_v9  ;;  %v4616_v45 = vsel %vm1892_vm9, %v11686_v51, 0.0  ;;  %7665 = vmatprep.mubr.msk.f32.mxu1 %vm9689_vm8, %v12584_v4 }
 0x8b3   : > { %4617 = vadd.xlane.f32.xlu1 %v4616_v45  ;;  %v4858_v33 = vpop.xlane.xlu0 %4857  ;;  %v2476_v61 = vmul.f32 %v8790_v57, %v12614_v37  ;;  %7746 = vmatprep.subr.mxu1 %v12584_v4  ;;  %v12621_v37 = vld [vmem:[#allocation64_spill] sm:$0xff] }
 0x8b4   : > { %8803 = vpow2.f32 %v4873_v27  ;;  %v4869_v3 = vsub.f32 %v12615_v29, %v4858_v33  ;;  %v2731_v26 = vpop.xlane.xlu1 %2730  ;;  %v12620_v27 = vld [vmem:[#allocation63_spill] sm:$0xff]  ;;  %v12622_v29 = vld [vmem:[#allocation112_spill] sm:$0xff] }
 0x8b5   : > { %v11698_v55 = vpop.eup %8791  ;;  %8805 = vrcp.f32 %v2731_v26  ;;  %7666 = vmatmul.mubr.msk.f32.gmra.mxu1 %vm1892_vm9, %v2476_v61  ;;  %v12623_v26 = vld [vmem:[#allocation65_spill] sm:$0xff] }
 0x8b6   : > { %v8794_v1 = vpop.eup %8793  ;;  %v4875_v12 = vmul.f32 1.442695, %v4869_v3  ;;  %v4619_v38 = vsel %vm1892_vm9, %v11698_v55, 0.0  ;;  %7668 = vmatprep.mubr.msk.f32.mxu1 %vm9689_vm8, %v12584_v4 }
 0x8b7   : > { %4620 = vadd.xlane.f32.xlu0 %v4619_v38  ;;  %v2477_v18 = vmul.f32 %v8794_v1, %v12616_v62  ;;  %v12624_v62 = vld [vmem:[#allocation59_spill] sm:$0xff] }
 0x8b8   : > { %8807 = vpow2.f32 %v4875_v12  ;;  %v2734_v63 = vpop.xlane.xlu1 %2733 }
 0x8b9   : > { %v11706_v5 = vpop.eup %8795  ;;  %8809 = vrcp.f32 %v2734_v63  ;;  %7669 = vmatmul.mubr.msk.f32.gmra.mxu1 %vm1892_vm9, %v2477_v18 }
 0x8ba   : > { %v8798_v54 = vpop.eup %8797  ;;  %v4622_v32 = vsel %vm1892_vm9, %v11706_v5, 0.0  ;;  %7706 = vmatprep.mubr.msk.f32.mxu1 %vm9689_vm8, %v12584_v4 }
 0x8bb   : > { %v2743_v56 = vmul.f32 %v8798_v54, %v12617_v16  ;;  %4623 = vadd.xlane.f32.xlu1 %v4622_v32  ;;  %v12625_v16 = vld [vmem:[#allocation113_spill] sm:$0xff] }
 0x8bc   : > { %v2737_v6 = vpop.xlane.xlu1 %2736 }
 0x8bd   : > { %v11714_v52 = vpop.eup %8799  ;;  %8811 = vrcp.f32 %v2737_v6  ;;  %7707 = vmatmul.mubr.msk.f32.vlgmr.msra.gmra.mxu1 %vm1892_vm9, %v2743_v56 }
 0x8be   : > { %v8802_v40 = vpop.eup %8801  ;;  %7747 = vmatpush3.msra.mxu1 %v12618_v7  ;;  %v4625_v47 = vsel %vm1892_vm9, %v11714_v52, 0.0  ;;  %7709 = vmatprep.mubr.msk.f32.mxu1 %vm9689_vm8, %v12584_v4 }
 0x8bf   : > { %7748 = vmatprep.subr.mxu1 %v12584_v4  ;;  %4626 = vadd.xlane.f32.xlu0 %v4625_v47  ;;  %v2744_v57 = vmul.f32 %v8802_v40, %v12619_v2  ;;  %v12626_v2 = vld [vmem:[#allocation66_spill] sm:$0xff] }
 0x8c0   : > { %7749 = vmatpush3.msra.mxu1 %v12620_v27  ;;  %v2995_v9 = vpop.xlane.xlu1 %2994  ;;  %v12627_v27 = vld [vmem:[#allocation67_spill] sm:$0xff] }
 0x8c1   : > { %v11725_v45 = vpop.eup %8803  ;;  %7750 = vmatprep.subr.mxu1 %v12584_v4  ;;  %8813 = vrcp.f32 %v2995_v9  ;;  %7710 = vmatmul.mubr.msk.f32.gmra.mxu1 %vm1892_vm9, %v2744_v57 }
 0x8c2   : > { %v8806_v33 = vpop.eup %8805  ;;  %7751 = vmatpush3.msra.mxu1 %v12621_v37  ;;  %v4883_v61 = vsel %vm1892_vm9, %v11725_v45, 0.0  ;;  %7712 = vmatprep.mubr.msk.f32.mxu1 %vm9689_vm8, %v12584_v4 }
 0x8c3   : > { %7752 = vmatprep.subr.mxu1 %v12584_v4  ;;  %4884 = vadd.xlane.f32.xlu1 %v4883_v61  ;;  %v2745_v3 = vmul.f32 %v8806_v33, %v12622_v29  ;;  %v12628_v33 = vld [vmem:[#allocation68_spill] sm:$0xff]  ;;  %v12629_v61 = vld [vmem:[#allocation69_spill] sm:$0xff] }
 0x8c4   : > { %7753 = vmatpush3.msra.mxu1 %v12623_v26  ;;  %v2998_v1 = vpop.xlane.xlu1 %2997 }
 0x8c5   : > { %v11737_v12 = vpop.eup %8807  ;;  %7754 = vmatprep.subr.mxu1 %v12584_v4  ;;  %8815 = vrcp.f32 %v2998_v1  ;;  %7713 = vmatmul.mubr.msk.f32.gmra.mxu1 %vm1892_vm9, %v2745_v3  ;;  %v12630_v3 = vld [vmem:[#allocation60_spill] sm:$0xff] }
 0x8c6   : > { %v8810_v38 = vpop.eup %8809  ;;  %7755 = vmatpush3.msra.mxu1 %v12624_v62  ;;  %v4886_v18 = vsel %vm1892_vm9, %v11737_v12, 0.0  ;;  %7715 = vmatprep.mubr.msk.f32.mxu1 %vm9689_vm8, %v12584_v4 }
 0x8c7   : > { %4887 = vadd.xlane.f32.xlu0 %v4886_v18  ;;  %v2746_v63 = vmul.f32 %v8810_v38, %v11453_v39  ;;  %7796 = vmatprep.subr.mxu1 %v12584_v4 }
 0x8c8   : > { %v3001_v54 = vpop.xlane.xlu1 %3000 }
 0x8c9   : > { %8817 = vrcp.f32 %v3001_v54  ;;  %7716 = vmatmul.mubr.msk.f32.gmra.mxu1 %vm1892_vm9, %v2746_v63 }
 0x8ca   : > { %v8812_v32 = vpop.eup %8811  ;;  %7718 = vmatprep.mubr.msk.f32.mxu1 %vm9689_vm8, %v12584_v4 }
 0x8cb   : > { %v2747_v56 = vmul.f32 %v8812_v32, %v12625_v16  ;;  %v12632_v16 = vld [vmem:[#allocation70_spill] sm:$0xff] }
 0x8cc   : > { %v3004_v6 = vpop.xlane.xlu1 %3003 }
 0x8cd   : > { %8819 = vrcp.f32 %v3004_v6  ;;  %7719 = vmatmul.mubr.msk.f32.gmra.mxu1 %vm1892_vm9, %v2747_v56  ;;  %v12633_v56 = vld [vmem:[#allocation71_spill] sm:$0xff] }
 0x8ce   : > { %v8814_v40 = vpop.eup %8813  ;;  %7756 = vmatprep.mubr.msk.f32.mxu1 %vm9689_vm8, %v12584_v4 }
 0x8cf   : > { %v3013_v39 = vmul.f32 %v8814_v40, %v11467_v34 }
 0x8d0   : > { %v3007_v7 = vpop.xlane.xlu1 %3006 }
 0x8d1   : > { %8821 = vrcp.f32 %v3007_v7  ;;  %7757 = vmatmul.mubr.msk.f32.vlgmr.msra.gmra.mxu1 %vm1892_vm9, %v3013_v39  ;;  %v12634_v39 = vld [vmem:[#allocation72_spill] sm:$0xff] }
 0x8d2   : > { %v8816_v47 = vpop.eup %8815  ;;  %7797 = vmatpush3.msra.mxu1 %v12626_v2  ;;  %7759 = vmatprep.mubr.msk.f32.mxu1 %vm9689_vm8, %v12584_v4 }
 0x8d3   : > { %7798 = vmatprep.subr.mxu1 %v12584_v4  ;;  %v3014_v57 = vmul.f32 %v8816_v47, %v11472_v31  ;;  %v12635_v47 = vld [vmem:[#allocation73_spill] sm:$0xff] }
 0x8d4   : > { %7799 = vmatpush3.msra.mxu1 %v12627_v27  ;;  %v3265_v9 = vpop.xlane.xlu1 %3264 }
 0x8d5   : > { %7800 = vmatprep.subr.mxu1 %v12584_v4  ;;  %8823 = vrcp.f32 %v3265_v9  ;;  %7760 = vmatmul.mubr.msk.f32.gmra.mxu1 %vm1892_vm9, %v3014_v57  ;;  %v12636_v57 = vld [vmem:[#allocation74_spill] sm:$0xff] }
 0x8d6   : > { %v8818_v34 = vpop.eup %8817  ;;  %7801 = vmatpush3.msra.mxu1 %v12628_v33  ;;  %7762 = vmatprep.mubr.msk.f32.mxu1 %vm9689_vm8, %v12584_v4 }
 0x8d7   : > { %7802 = vmatprep.subr.mxu1 %v12584_v4  ;;  %v3015_v37 = vmul.f32 %v8818_v34, %v11477_v28 }
 0x8d8   : > { %7803 = vmatpush3.msra.mxu1 %v12629_v61  ;;  %v3268_v31 = vpop.xlane.xlu1 %3267 }
 0x8d9   : > { %7804 = vmatprep.subr.mxu1 %v12584_v4  ;;  %8825 = vrcp.f32 %v3268_v31  ;;  %7763 = vmatmul.mubr.msk.f32.gmra.mxu1 %vm1892_vm9, %v3015_v37 }
 0x8da   : > { %v8820_v29 = vpop.eup %8819  ;;  %7805 = vmatpush3.msra.mxu1 %v12630_v3  ;;  %7765 = vmatprep.mubr.msk.f32.mxu1 %vm9689_vm8, %v12584_v4  ;;  %v12638_v3 = vld [vmem:[#allocation76_spill] sm:$0xff] }
 0x8db   : > { %v3016_v26 = vmul.f32 %v8820_v29, %v11482_v0  ;;  %7846 = vmatprep.subr.mxu1 %v12584_v4  ;;  %v12631_v0 = vld [vmem:[#allocation114_spill] sm:$0xff]  ;;  %v12637_v29 = vld [vmem:[#allocation75_spill] sm:$0xff] }
 0x8dc   : > { %v3271_v1 = vpop.xlane.xlu1 %3270 }
 0x8dd   : > { %8827 = vrcp.f32 %v3271_v1  ;;  %7766 = vmatmul.mubr.msk.f32.gmra.mxu1 %vm1892_vm9, %v3016_v26  ;;  %v12639_v1 = vld [vmem:[#allocation77_spill] sm:$0xff] }
 0x8de   : > { %v8822_v28 = vpop.eup %8821  ;;  %7768 = vmatprep.mubr.msk.f32.mxu1 %vm9689_vm8, %v12584_v4 }
 0x8df   : > { %v3017_v38 = vmul.f32 %v8822_v28, %v11487_v10 }
 0x8e0   : > { %v3274_v62 = vpop.xlane.xlu1 %3273 }
 0x8e1   : > { %8829 = vrcp.f32 %v3274_v62  ;;  %7769 = vmatmul.mubr.msk.f32.gmra.mxu1 %vm1892_vm9, %v3017_v38  ;;  %v12640_v38 = vld [vmem:[#allocation78_spill] sm:$0xff] }
 0x8e2   : > { %v8824_v18 = vpop.eup %8823  ;;  %7806 = vmatprep.mubr.msk.f32.mxu1 %vm9689_vm8, %v12584_v4 }
 0x8e3   : > { %v3283_v63 = vmul.f32 %v8824_v18, %v12631_v0 }
 0x8e4   : > { %v3277_v54 = vpop.xlane.xlu1 %3276 }
 0x8e5   : > { %8831 = vrcp.f32 %v3277_v54  ;;  %7807 = vmatmul.mubr.msk.f32.vlgmr.msra.gmra.mxu1 %vm1892_vm9, %v3283_v63  ;;  %v12641_v63 = vld [vmem:[#allocation79_spill] sm:$0xff] }
 0x8e6   : > { %v8826_v32 = vpop.eup %8825  ;;  %7847 = vmatpush3.msra.mxu1 %v12632_v16  ;;  %7809 = vmatprep.mubr.msk.f32.mxu1 %vm9689_vm8, %v12584_v4 }
 0x8e7   : > { %7848 = vmatprep.subr.mxu1 %v12584_v4  ;;  %v3284_v10 = vmul.f32 %v8826_v32, %v11497_v25 }
 0x8e8   : > { %7849 = vmatpush3.msra.mxu1 %v12633_v56  ;;  %v3535_v6 = vpop.xlane.xlu1 %3534 }
 0x8e9   : > { %7850 = vmatprep.subr.mxu1 %v12584_v4  ;;  %8833 = vrcp.f32 %v3535_v6  ;;  %7810 = vmatmul.mubr.msk.f32.gmra.mxu1 %vm1892_vm9, %v3284_v10 }
 0x8ea   : > { %v8828_v40 = vpop.eup %8827  ;;  %7851 = vmatpush3.msra.mxu1 %v12634_v39  ;;  %7812 = vmatprep.mubr.msk.f32.mxu1 %vm9689_vm8, %v12584_v4 }
 0x8eb   : > { %7852 = vmatprep.subr.mxu1 %v12584_v4  ;;  %v3285_v7 = vmul.f32 %v8828_v40, %v11503_v22 }
 0x8ec   : > { %7853 = vmatpush3.msra.mxu1 %v12635_v47  ;;  %v3538_v25 = vpop.xlane.xlu1 %3537  ;;  %v12642_v47 = vld [vmem:[#allocation80_spill] sm:$0xff] }
 0x8ed   : > { %7854 = vmatprep.subr.mxu1 %v12584_v4  ;;  %8835 = vrcp.f32 %v3538_v25  ;;  %7813 = vmatmul.mubr.msk.f32.gmra.mxu1 %vm1892_vm9, %v3285_v7  ;;  %v12643_v25 = vld [vmem:[#allocation81_spill] sm:$0xff] }
 0x8ee   : > { %v8830_v2 = vpop.eup %8829  ;;  %7855 = vmatpush3.msra.mxu1 %v12636_v57  ;;  %7815 = vmatprep.mubr.msk.f32.mxu1 %vm9689_vm8, %v12584_v4 }
 0x8ef   : > { %v3286_v27 = vmul.f32 %v8830_v2, %v11515_v50  ;;  %7896 = vmatprep.subr.mxu1 %v12584_v4 }
 0x8f0   : > { %v3541_v9 = vpop.xlane.xlu1 %3540 }
 0x8f1   : > { %8837 = vrcp.f32 %v3541_v9  ;;  %7816 = vmatmul.mubr.msk.f32.gmra.mxu1 %vm1892_vm9, %v3286_v27  ;;  %v12644_v27 = vld [vmem:[#allocation82_spill] sm:$0xff] }
 0x8f2   : > { %v8832_v22 = vpop.eup %8831  ;;  %7818 = vmatprep.mubr.msk.f32.mxu1 %vm9689_vm8, %v12584_v4 }
 0x8f3   : > { %v3287_v34 = vmul.f32 %v8832_v22, %v11528_v46 }
 0x8f4   : > { %v3544_v33 = vpop.xlane.xlu1 %3543 }
 0x8f5   : > { %8839 = vrcp.f32 %v3544_v33  ;;  %7819 = vmatmul.mubr.msk.f32.gmra.mxu1 %vm1892_vm9, %v3287_v34  ;;  %v12645_v34 = vld [vmem:[#allocation83_spill] sm:$0xff] }
 0x8f6   : > { %v8834_v37 = vpop.eup %8833  ;;  %7856 = vmatprep.mubr.msk.f32.mxu1 %vm9689_vm8, %v12584_v4 }
 0x8f7   : > { %v3553_v50 = vmul.f32 %v8834_v37, %v11540_v11 }
 0x8f8   : > { %v3547_v61 = vpop.xlane.xlu1 %3546 }
 0x8f9   : > { %8841 = vrcp.f32 %v3547_v61  ;;  %7857 = vmatmul.mubr.msk.f32.vlgmr.msra.gmra.mxu1 %vm1892_vm9, %v3553_v50 }
 0x8fa   : > { %v8836_v31 = vpop.eup %8835  ;;  %7897 = vmatpush3.msra.mxu1 %v12637_v29  ;;  %7859 = vmatprep.mubr.msk.f32.mxu1 %vm9689_vm8, %v12584_v4 }
 0x8fb   : > { %7898 = vmatprep.subr.mxu1 %v12584_v4  ;;  %v3554_v46 = vmul.f32 %v8836_v31, %v11549_v42 }
 0x8fc   : > { %7899 = vmatpush3.msra.mxu1 %v12638_v3  ;;  %v3805_v26 = vpop.xlane.xlu0 %3804 }
 0x8fd   : > { %7900 = vmatprep.subr.mxu1 %v12584_v4  ;;  %8843 = vrcp.f32 %v3805_v26  ;;  %7860 = vmatmul.mubr.msk.f32.gmra.mxu1 %vm1892_vm9, %v3554_v46  ;;  %v12646_v26 = vld [vmem:[#allocation84_spill] sm:$0xff] }
 0x8fe   : > { %v8838_v11 = vpop.eup %8837  ;;  %7901 = vmatpush3.msra.mxu1 %v12639_v1  ;;  %7862 = vmatprep.mubr.msk.f32.mxu1 %vm9689_vm8, %v12584_v4 }
 0x8ff   : > { %7902 = vmatprep.subr.mxu1 %v12584_v4  ;;  %v3555_v28 = vmul.f32 %v8838_v11, %v11557_v15 }
 0x900   : > { %7903 = vmatpush3.msra.mxu1 %v12640_v38  ;;  %v3808_v42 = vpop.xlane.xlu1 %3807  ;;  %v4861_v62 = vpop.xlane.xlu0 %4860 }
 0x901   : > { %7904 = vmatprep.subr.mxu1 %v12584_v4  ;;  %8845 = vrcp.f32 %v3808_v42  ;;  %v4870_v18 = vsub.f32 %v11576_v23, %v4861_v62  ;;  %7863 = vmatmul.mubr.msk.f32.gmra.mxu1 %vm1892_vm9, %v3555_v28 }
 0x902   : > { %v8840_v0 = vpop.eup %8839  ;;  %7905 = vmatpush3.msra.mxu1 %v12641_v63  ;;  %7865 = vmatprep.mubr.msk.f32.mxu1 %vm9689_vm8, %v12584_v4 }
 0x903   : > { %v4877_v54 = vmul.f32 1.442695, %v4870_v18  ;;  %v3556_v15 = vmul.f32 %v8840_v0, %v11562_v36  ;;  %7946 = vmatprep.subr.mxu1 %v12584_v4 }
 0x904   : > { %v3811_v32 = vpop.xlane.xlu1 %3810  ;;  %v4864_v16 = vpop.xlane.xlu0 %4863 }
 0x905   : > { %8847 = vpow2.f32 %v4877_v54  ;;  %v4871_v10 = vsub.f32 %v11585_v17, %v4864_v16  ;;  %7866 = vmatmul.mubr.msk.f32.gmra.mxu1 %vm1892_vm9, %v3556_v15 }
 0x906   : > { %v8842_v23 = vpop.eup %8841  ;;  %8849 = vrcp.f32 %v3811_v32  ;;  %7868 = vmatprep.mubr.msk.f32.mxu1 %vm9689_vm8, %v12584_v4 }
 0x907   : > { %v4879_v56 = vmul.f32 1.442695, %v4871_v10  ;;  %v3557_v6 = vmul.f32 %v8842_v23, %v11567_v19 }
 0x908   : > { %v3814_v40 = vpop.xlane.xlu1 %3813 }
 0x909   : > { %8851 = vpow2.f32 %v4879_v56  ;;  %7869 = vmatmul.mubr.msk.f32.gmra.mxu1 %vm1892_vm9, %v3557_v6  ;;  %v12648_v56 = vld [vmem:[#allocation86_spill] sm:$0xff] }
 0x90a   : > { %v8844_v36 = vpop.eup %8843  ;;  %8853 = vrcp.f32 %v3814_v40  ;;  %7906 = vmatprep.mubr.msk.f32.mxu1 %vm9689_vm8, %v12584_v4 }
 0x90b   : > { %v3823_v17 = vmul.f32 %v8844_v36, %v11572_v49  ;;  %v12649_v36 = vld [vmem:[#allocation87_spill] sm:$0xff] }
 0x90c   : > { %v3817_v39 = vpop.xlane.xlu0 %3816 }
 0x90d   : > { %8855 = vrcp.f32 %v3817_v39  ;;  %7907 = vmatmul.mubr.msk.f32.vlgmr.msra.gmra.mxu1 %vm1892_vm9, %v3823_v17 }
 0x90e   : > { %v8846_v7 = vpop.eup %8845  ;;  %7947 = vmatpush3.msra.mxu1 %v12642_v47  ;;  %7909 = vmatprep.mubr.msk.f32.mxu1 %vm9689_vm8, %v12584_v4 }
 0x90f   : > { %7948 = vmatprep.subr.mxu1 %v12584_v4  ;;  %v3824_v19 = vmul.f32 %v8846_v7, %v11581_v8  ;;  %v12650_v7 = vld [vmem:[#allocation88_spill] sm:$0xff] }
 0x910   : > { %7949 = vmatpush3.msra.mxu1 %v12643_v25  ;;  %v4075_v2 = vpop.xlane.xlu1 %4074 }
 0x911   : > { %8857 = vrcp.f32 %v4075_v2  ;;  %v11855_v57 = vpop.f32.mrf.mxu1  ;;  %7950 = vmatprep.subr.mxu1 %v12584_v4  ;;  %7910 = vmatmul.mubr.msk.f32.gmra.mxu1 %vm1892_vm9, %v3824_v19  ;;  %v12651_v19 = vld [vmem:[#allocation89_spill] sm:$0xff] }
 0x912   : > { %v11859_v49 = vpop.eup %8847  ;;  %7951 = vmatpush3.msra.mxu1 %v12644_v27  ;;  %7912 = vmatprep.mubr.msk.f32.mxu1 %vm9689_vm8, %v12584_v4 }
 0x913   : > { %v8850_v9 = vpop.eup %8849  ;;  %v7608_v22 = vpop.f32.mrf.mxu1  ;;  %7952 = vmatprep.subr.mxu1 %v12584_v4  ;;  %v4889_v8 = vsel %vm1892_vm9, %v11859_v49, 0.0 }
 0x914   : > { %7953 = vmatpush3.msra.mxu1 %v12645_v34  ;;  %v4867_v33 = vpop.xlane.xlu1 %4866  ;;  %4890 = vadd.xlane.f32.xlu1 %v4889_v8  ;;  %v4078_v37 = vpop.xlane.xlu0 %4077  ;;  %v3825_v50 = vmul.f32 %v8850_v9, %v11592_v59 }
 0x915   : > { %v4872_v61 = vsub.f32 %v11613_v60, %v4867_v33  ;;  %7954 = vmatprep.subr.mxu1 %v12584_v4  ;;  %8859 = vrcp.f32 %v4078_v37  ;;  %v11871_v31 = vpop.f32.mrf.mxu1  ;;  %v12652_v33 = vld [vmem:[#allocation90_spill] sm:$0xff] }
 0x916   : > { %v11873_v29 = vpop.eup %8851  ;;  %7913 = vmatmul.mubr.msk.f32.gmra.mxu1 %vm1892_vm9, %v3825_v50  ;;  %v12653_v50 = vld [vmem:[#allocation91_spill] sm:$0xff] }
 0x917   : > { %v8854_v46 = vpop.eup %8853  ;;  %v4881_v3 = vmul.f32 1.442695, %v4872_v61  ;;  %7955 = vmatpush3.msra.mxu1 %v12646_v26  ;;  %v7611_v11 = vpop.f32.mrf.mxu1  ;;  %7915 = vmatprep.mubr.msk.f32.mxu1 %vm9689_vm8, %v12584_v4  ;;  %v4892_v59 = vsel %vm1892_vm9, %v11873_v29, 0.0  ;;  %v12654_v61 = vld [vmem:[#allocation92_spill] sm:$0xff] }
 0x918   : > { %4893 = vadd.xlane.f32.xlu0 %v4892_v59  ;;  %v4081_v60 = vpop.xlane.xlu0 %4080  ;;  %v3826_v1 = vmul.f32 %v8854_v46, %v11599_v43  ;;  %7996 = vmatprep.subr.mxu1 %v12584_v4  ;;  %v12656_v11 = vld [vmem:[#allocation94_spill] sm:$0xff] }
 0x919   : > { %8861 = vpow2.f32 %v4881_v3  ;;  %v11883_v28 = vpop.f32.mrf.mxu1  ;;  %v12655_v3 = vld [vmem:[#allocation93_spill] sm:$0xff] }
 0x91a   : > { %v8856_v38 = vpop.eup %8855  ;;  %8863 = vrcp.f32 %v4081_v60  ;;  %7916 = vmatmul.mubr.msk.f32.gmra.mxu1 %vm1892_vm9, %v3826_v1 }
 0x91b   : > { %v7614_v42 = vpop.f32.mrf.mxu1  ;;  %7918 = vmatprep.mubr.msk.f32.mxu1 %vm9689_vm8, %v12584_v4  ;;  %v3827_v62 = vmul.f32 %v8856_v38, %v11604_v53  ;;  %v12647_v53 = vld [vmem:[#allocation85_spill] sm:$0xff] }
 0x91c   : > { %v4084_v18 = vpop.xlane.xlu1 %4083 }
 0x91d   : > { %8865 = vrcp.f32 %v4084_v18  ;;  %v11889_v0 = vpop.f32.mrf.mxu1 }
 0x91e   : > { %v8858_v43 = vpop.eup %8857  ;;  %7919 = vmatmul.mubr.msk.f32.gmra.mxu1 %vm1892_vm9, %v3827_v62 }
 0x91f   : > { %v4093_v63 = vmul.f32 %v8858_v43, %v11609_v41  ;;  %v7617_v54 = vpop.f32.mrf.mxu1  ;;  %7956 = vmatprep.mubr.msk.f32.mxu1 %vm9689_vm8, %v12584_v4  ;;  %v12657_v43 = vld [vmem:[#allocation95_spill] sm:$0xff] }
 0x920   : > { %v4087_v15 = vpop.xlane.xlu0 %4086  ;;  %v12658_v54 = vld [vmem:[#allocation96_spill] sm:$0xff] }
 0x921   : > { %8867 = vrcp.f32 %v4087_v15  ;;  %v11895_v32 = vpop.f32.mrf.mxu1  ;;  %v12659_v15 = vld [vmem:[#allocation97_spill] sm:$0xff] }
 0x922   : > { %v8860_v16 = vpop.eup %8859  ;;  %7957 = vmatmul.mubr.msk.f32.vlgmr.msra.gmra.mxu1 %vm1892_vm9, %v4093_v63 }
 0x923   : > { %7997 = vmatpush3.msra.mxu1 %v12647_v53  ;;  %v7620_v10 = vpop.f32.mrf.mxu1  ;;  %7959 = vmatprep.mubr.msk.f32.mxu1 %vm9689_vm8, %v12584_v4  ;;  %v4094_v23 = vmul.f32 %v8860_v16, %v11618_v14  ;;  %v12660_v53 = vld [vmem:[#allocation98_spill] sm:$0xff] }
 0x924   : > { %7998 = vmatprep.subr.mxu1 %v12584_v4  ;;  %v4345_v41 = vpop.xlane.xlu1 %4344 }
 0x925   : > { %7999 = vmatpush3.msra.mxu1 %v12648_v56  ;;  %8869 = vrcp.f32 %v4345_v41 }
 0x926   : > { %v11904_v6 = vpop.eup %8861  ;;  %8000 = vmatprep.subr.mxu1 %v12584_v4  ;;  %7960 = vmatmul.mubr.msk.f32.gmra.mxu1 %vm1892_vm9, %v4094_v23  ;;  %v12661_v23 = vld [vmem:[#allocation99_spill] sm:$0xff] }
 0x927   : > { %v8864_v40 = vpop.eup %8863  ;;  %8001 = vmatpush3.msra.mxu1 %v12649_v36  ;;  %v4895_v17 = vsel %vm1892_vm9, %v11904_v6, 0.0  ;;  %7962 = vmatprep.mubr.msk.f32.mxu1 %vm9689_vm8, %v12584_v4 }
 0x928   : > { %8002 = vmatprep.subr.mxu1 %v12584_v4  ;;  %4896 = vadd.xlane.f32.xlu1 %v4895_v17  ;;  %v4348_v14 = vpop.xlane.xlu0 %4347  ;;  %v4095_v39 = vmul.f32 %v8864_v40, %v11625_v44 }
 0x929   : > { %8003 = vmatpush3.msra.mxu1 %v12650_v7  ;;  %8871 = vrcp.f32 %v4348_v14 }
 0x92a   : > { %v8866_v47 = vpop.eup %8865  ;;  %8004 = vmatprep.subr.mxu1 %v12584_v4  ;;  %7963 = vmatmul.mubr.msk.f32.gmra.mxu1 %vm1892_vm9, %v4095_v39 }
 0x92b   : > { %8005 = vmatpush3.msra.mxu1 %v12651_v19  ;;  %7965 = vmatprep.mubr.msk.f32.mxu1 %vm9689_vm8, %v12584_v4  ;;  %v4096_v25 = vmul.f32 %v8866_v47, %v11630_v20  ;;  %v12663_v47 = vld [vmem:[#allocation101_spill] sm:$0xff] }
 0x92c   : > { %v4351_v2 = vpop.xlane.xlu1 %4350  ;;  %8046 = vmatprep.subr.mxu1 %v12584_v4  ;;  %v2305_v19 = vadd.f32 %v11871_v31, %v12663_v47  ;;  %v8552_v47 = vld [vmem:[%s10207_s23] sm:$0xff]  }
 0x92d   : > { %8873 = vrcp.f32 %v4351_v2 }
 0x92e   : > { %v8868_v44 = vpop.eup %8867  ;;  %7966 = vmatmul.mubr.msk.f32.gmra.mxu1 %vm1892_vm9, %v4096_v25 }
 0x92f   : > { %7968 = vmatprep.mubr.msk.f32.mxu1 %vm9689_vm8, %v12584_v4  ;;  %v4097_v27 = vmul.f32 %v8868_v44, %v11635_v58 }
 0x930   : > { %v4354_v9 = vpop.xlane.xlu0 %4353 }
 0x931   : > { %8875 = vrcp.f32 %v4354_v9 }
 0x932   : > { %v8870_v22 = vpop.eup %8869  ;;  %7969 = vmatmul.mubr.msk.f32.gmra.mxu1 %vm1892_vm9, %v4097_v27  ;;  %v12664_v27 = vld [vmem:[#allocation102_spill] sm:$0xff] }
 0x933   : > { %v4363_v8 = vmul.f32 %v8870_v22, %v11640_v30  ;;  %8006 = vmatprep.mubr.msk.f32.mxu1 %vm9689_vm8, %v12584_v4 }
 0x934   : > { %v4357_v20 = vpop.xlane.xlu1 %4356 }
 0x935   : > { %8877 = vrcp.f32 %v4357_v20  ;;  %v12665_v20 = vld [vmem:[#allocation103_spill] sm:$0xff] }
 0x936   : > { %v8872_v34 = vpop.eup %8871  ;;  %8007 = vmatmul.mubr.msk.f32.vlgmr.msra.gmra.mxu1 %vm1892_vm9, %v4363_v8 }
 0x937   : > { %8047 = vmatpush3.msra.mxu1 %v12652_v33  ;;  %8009 = vmatprep.mubr.msk.f32.mxu1 %vm9689_vm8, %v12584_v4  ;;  %v4364_v58 = vmul.f32 %v8872_v34, %v11645_v21  ;;  %v2315_v34 = vadd.f32 %v11889_v0, %v12665_v20 }
 0x938   : > { %8048 = vmatprep.subr.mxu1 %v12584_v4  ;;  %v4615_v37 = vpop.xlane.xlu0 %4614 }
 0x939   : > { %8049 = vmatpush3.msra.mxu1 %v12653_v50  ;;  %8879 = vrcp.f32 %v4615_v37  ;;  %v12666_v37 = vld [vmem:[#allocation104_spill] sm:$0xff] }
 0x93a   : > { %v8874_v30 = vpop.eup %8873  ;;  %8050 = vmatprep.subr.mxu1 %v12584_v4  ;;  %8010 = vmatmul.mubr.msk.f32.gmra.mxu1 %vm1892_vm9, %v4364_v58  ;;  %v2320_v50 = vadd.f32 %v11895_v32, %v12666_v37 }
 0x93b   : > { %8051 = vmatpush3.msra.mxu1 %v12654_v61  ;;  %8012 = vmatprep.mubr.msk.f32.mxu1 %vm9689_vm8, %v12584_v4  ;;  %v4365_v46 = vmul.f32 %v8874_v30, %v11650_v13 }
 0x93c   : > { %8052 = vmatprep.subr.mxu1 %v12584_v4  ;;  %v4618_v21 = vpop.xlane.xlu1 %4617 }
 0x93d   : > { %8053 = vmatpush3.msra.mxu1 %v12655_v3  ;;  %8881 = vrcp.f32 %v4618_v21 }
 0x93e   : > { %v8876_v26 = vpop.eup %8875  ;;  %8054 = vmatprep.subr.mxu1 %v12584_v4  ;;  %8013 = vmatmul.mubr.msk.f32.gmra.mxu1 %vm1892_vm9, %v4365_v46 }
 0x93f   : > { %8055 = vmatpush3.msra.mxu1 %v12656_v11  ;;  %8015 = vmatprep.mubr.msk.f32.mxu1 %vm9689_vm8, %v12584_v4  ;;  %v4366_v59 = vmul.f32 %v8876_v26, %v11655_v48 }
 0x940   : > { %v4621_v60 = vpop.xlane.xlu0 %4620  ;;  %8096 = vmatprep.subr.mxu1 %v12584_v4 }
 0x941   : > { %8883 = vrcp.f32 %v4621_v60 }
 0x942   : > { %v8878_v13 = vpop.eup %8877  ;;  %8016 = vmatmul.mubr.msk.f32.gmra.mxu1 %vm1892_vm9, %v4366_v59 }
 0x943   : > { %8018 = vmatprep.mubr.msk.f32.mxu1 %vm9689_vm8, %v12584_v4  ;;  %v4367_v1 = vmul.f32 %v8878_v13, %v11661_v24  ;;  %v8545_v13 = vld [vmem:[%s10207_s23 + $0x38] sm:$0xff]  }
 0x944   : > { %v4624_v38 = vpop.xlane.xlu1 %4623  ;;  %8122 = vmatpush3.bf16.msra.mxu0 %v8545_v13  ;;  %v12667_v13 = vmov 0  }
 0x945   : > { %8885 = vrcp.f32 %v4624_v38  ;;  %8123 = vmatprep.subr.bf16.mxu0 %v12584_v4 }
 0x946   : > { %v8880_v42 = vpop.eup %8879  ;;  %8019 = vmatmul.mubr.msk.f32.gmra.mxu1 %vm1892_vm9, %v4367_v1 }
 0x947   : > { %v4633_v62 = vmul.f32 %v8880_v42, %v11673_v35  ;;  %8056 = vmatprep.mubr.msk.f32.mxu1 %vm9689_vm8, %v12584_v4  ;;  %v8546_v42 = vld [vmem:[%s10207_s23 + $0x30] sm:$0xff]  }
 0x948   : > { %v4627_v48 = vpop.xlane.xlu0 %4626  ;;  %8124 = vmatpush3.bf16.msra.mxu0 %v8546_v42 }
 0x949   : > { %8887 = vrcp.f32 %v4627_v48  ;;  %8125 = vmatprep.subr.bf16.mxu0 %v12584_v4 }
 0x94a   : > { %v8882_v18 = vpop.eup %8881  ;;  %8057 = vmatmul.mubr.msk.f32.vlgmr.msra.gmra.mxu1 %vm1892_vm9, %v4633_v62 }
 0x94b   : > { %8097 = vmatpush3.msra.mxu1 %v12657_v43  ;;  %8059 = vmatprep.mubr.msk.f32.mxu1 %vm9689_vm8, %v12584_v4  ;;  %v4634_v24 = vmul.f32 %v8882_v18, %v11686_v51  ;;  %v8547_v43 = vld [vmem:[%s10207_s23 + $0x28] sm:$0xff]  }
 0x94c   : > { %8098 = vmatprep.subr.mxu1 %v12584_v4  ;;  %v4885_v63 = vpop.xlane.xlu1 %4884  ;;  %8126 = vmatpush3.bf16.msra.mxu0 %v8547_v43 }
 0x94d   : > { %8099 = vmatpush3.msra.mxu1 %v12658_v54  ;;  %8889 = vrcp.f32 %v4885_v63  ;;  %8127 = vmatprep.subr.bf16.mxu0 %v12584_v4 }
 0x94e   : > { %v8884_v35 = vpop.eup %8883  ;;  %8100 = vmatprep.subr.mxu1 %v12584_v4  ;;  %8060 = vmatmul.mubr.msk.f32.gmra.mxu1 %vm1892_vm9, %v4634_v24 }
 0x94f   : > { %8101 = vmatpush3.msra.mxu1 %v12659_v15  ;;  %8062 = vmatprep.mubr.msk.f32.mxu1 %vm9689_vm8, %v12584_v4  ;;  %v4635_v16 = vmul.f32 %v8884_v35, %v11698_v55  ;;  %v8548_v35 = vld [vmem:[%s10207_s23 + $0x20] sm:$0xff]  }
 0x950   : > { %8102 = vmatprep.subr.mxu1 %v12584_v4  ;;  %v4888_v51 = vpop.xlane.xlu0 %4887  ;;  %8128 = vmatpush3.bf16.msra.mxu0 %v8548_v35 }
 0x951   : > { %8103 = vmatpush3.msra.mxu1 %v12660_v53  ;;  %8891 = vrcp.f32 %v4888_v51  ;;  %8129 = vmatprep.subr.bf16.mxu0 %v12584_v4  ;;  %v8549_v53 = vld [vmem:[%s10207_s23 + $0x18] sm:$0xff]  }
 0x952   : > { %v8886_v10 = vpop.eup %8885  ;;  %8104 = vmatprep.subr.mxu1 %v12584_v4  ;;  %8063 = vmatmul.mubr.msk.f32.gmra.mxu1 %vm1892_vm9, %v4635_v16 }
 0x953   : > { %8105 = vmatpush3.msra.mxu1 %v12661_v23  ;;  %8065 = vmatprep.mubr.msk.f32.mxu1 %vm9689_vm8, %v12584_v4  ;;  %v4636_v41 = vmul.f32 %v8886_v10, %v11706_v5 }
 0x954   : > { %8130 = vmatpush3.bf16.msra.mxu0 %v8549_v53 }
 0x955   : > { %8131 = vmatprep.subr.bf16.mxu0 %v12584_v4 }
 0x956   : > { %v8888_v56 = vpop.eup %8887  ;;  %8066 = vmatmul.mubr.msk.f32.gmra.mxu1 %vm1892_vm9, %v4636_v41 }
 0x957   : > { %8068 = vmatprep.mubr.msk.f32.mxu1 %vm9689_vm8, %v12584_v4  ;;  %v4637_v55 = vmul.f32 %v8888_v56, %v11714_v52  ;;  %v12662_v52 = vld [vmem:[#allocation100_spill] sm:$0xff]  ;;  %v8550_v56 = vld [vmem:[%s10207_s23 + $0x10] sm:$0xff]  }
 0x958   : > { %v2300_v14 = vadd.f32 %v11855_v57, %v12662_v52  ;;  %8132 = vmatpush3.bf16.msra.mxu0 %v8550_v56 }
 0x959   : > { %8133 = vmatprep.subr.bf16.mxu0 %v12584_v4 }
 0x95a   : > { %v8890_v40 = vpop.eup %8889  ;;  %8069 = vmatmul.mubr.msk.f32.gmra.mxu1 %vm1892_vm9, %v4637_v55 }
 0x95b   : > { %v4903_v36 = vmul.f32 %v8890_v40, %v11725_v45  ;;  %8106 = vmatprep.mubr.msk.f32.mxu1 %vm9689_vm8, %v12584_v4 }
 0x95e   : > { %v8892_v17 = vpop.eup %8891  ;;  %8107 = vmatmul.mubr.msk.f32.vlgmr.msra.gmra.mxu1 %vm1892_vm9, %v4903_v36 }
 0x95f   : > { %8109 = vmatprep.mubr.msk.f32.mxu1 %vm9689_vm8, %v12584_v4  ;;  %v4904_v5 = vmul.f32 %v8892_v17, %v11737_v12  ;;  %v2310_v12 = vadd.f32 %v11883_v28, %v12664_v27 }
 0x962   : > { %8110 = vmatmul.mubr.msk.f32.gmra.mxu1 %vm1892_vm9, %v4904_v5  ;;  %v8551_v5 = vld [vmem:[%s10207_s23 + $0x8] sm:$0xff]  }
 0x963   : > { %8112 = vmatprep.mubr.msk.f32.mxu1 %vm9689_vm8, %v12584_v4  ;;  %8134 = vmatpush3.bf16.msra.mxu0 %v8551_v5 }
 0x964   : > { %8135 = vmatprep.subr.bf16.mxu0 %v12584_v4 }
 0x967   : > { %8136 = vmatpush3.bf16.msra.mxu0 %v8552_v47 }
 0x969   : > { %v2564_v45 = vpop.f32.mrf.mxu1 }
 0x96a   : > { %v2588_v39 = vadd.f32 %v2564_v45, %v2300_v14 }
 0x96b   : > { %v7658_v7 = vpop.f32.mrf.mxu1 }
 0x96d   : > { %v2569_v25 = vpop.f32.mrf.mxu1 }
 0x96e   : > { %v2589_v2 = vadd.f32 %v2569_v25, %v2305_v19 }
 0x96f   : > { %v7661_v44 = vpop.f32.mrf.mxu1 }
 0x971   : > { %v2574_v9 = vpop.f32.mrf.mxu1 }
 0x972   : > { %v2590_v22 = vadd.f32 %v2574_v9, %v2310_v12 }
 0x973   : > { %v7664_v8 = vpop.f32.mrf.mxu1 }
 0x975   : > { %v2579_v33 = vpop.f32.mrf.mxu1 }
 0x976   : > { %v2591_v57 = vadd.f32 %v2579_v33, %v2315_v34 }
 0x977   : > { %v7667_v58 = vpop.f32.mrf.mxu1 }
 0x979   : > { %v2584_v31 = vpop.f32.mrf.mxu1 }
 0x97a   : > { %v2592_v30 = vadd.f32 %v2584_v31, %v2320_v50 }
 0x97b   : > { %v7670_v61 = vpop.f32.mrf.mxu1 }
 0x97d   : > { %v2834_v46 = vpop.f32.mrf.mxu1 }
 0x97e   : > { %v2858_v21 = vadd.f32 %v2834_v46, %v2588_v39 }
 0x97f   : > { %v7708_v28 = vpop.f32.mrf.mxu1 }
 0x981   : > { %v2839_v3 = vpop.f32.mrf.mxu1 }
 0x982   : > { %v2859_v26 = vadd.f32 %v2839_v3, %v2589_v2 }
 0x983   : > { %v7711_v11 = vpop.f32.mrf.mxu1 }
 0x985   : > { %v2844_v59 = vpop.f32.mrf.mxu1 }
 0x986   : > { %v2860_v0 = vadd.f32 %v2844_v59, %v2590_v22 }
 0x987   : > { %v7714_v60 = vpop.f32.mrf.mxu1 }
 0x989   : > { %v2849_v1 = vpop.f32.mrf.mxu1 }
 0x98a   : > { %v2861_v38 = vadd.f32 %v2849_v1, %v2591_v57 }
 0x98b   : > { %v7717_v32 = vpop.f32.mrf.mxu1 }
 0x98d   : > { %v2854_v62 = vpop.f32.mrf.mxu1 }
 0x98e   : > { %v2862_v48 = vadd.f32 %v2854_v62, %v2592_v30 }
 0x98f   : > { %v7720_v18 = vpop.f32.mrf.mxu1 }
 0x991   : > { %v3104_v24 = vpop.f32.mrf.mxu1 }
 0x992   : > { %v3128_v63 = vadd.f32 %v3104_v24, %v2858_v21 }
 0x993   : > { %v7758_v54 = vpop.f32.mrf.mxu1 }
 0x995   : > { %v3109_v15 = vpop.f32.mrf.mxu1 }
 0x996   : > { %v3129_v16 = vadd.f32 %v3109_v15, %v2859_v26 }
 0x997   : > { %v7761_v51 = vpop.f32.mrf.mxu1 }
 0x999   : > { %v3114_v10 = vpop.f32.mrf.mxu1 }
 0x99a   : > { %v3130_v23 = vadd.f32 %v3114_v10, %v2860_v0 }
 0x99b   : > { %v7764_v41 = vpop.f32.mrf.mxu1 }
 0x99d   : > { %v4891_v55 = vpop.xlane.xlu1 %4890  ;;  %v3119_v40 = vpop.f32.mrf.mxu1 }
 0x99e   : > { %8893 = vrcp.f32 %v4891_v55  ;;  %v3131_v36 = vadd.f32 %v3119_v40, %v2861_v38 }
 0x99f   : > { %v7767_v17 = vpop.f32.mrf.mxu1 }
 0x9a1   : > { %v4894_v52 = vpop.xlane.xlu0 %4893  ;;  %v3124_v14 = vpop.f32.mrf.mxu1 }
 0x9a2   : > { %8895 = vrcp.f32 %v4894_v52  ;;  %v3132_v45 = vadd.f32 %v3124_v14, %v2862_v48 }
 0x9a3   : > { %v7770_v39 = vpop.f32.mrf.mxu1 }
 0x9a5   : > { %v3374_v7 = vpop.f32.mrf.mxu1 }
 0x9a6   : > { %v3398_v19 = vadd.f32 %v3374_v7, %v3128_v63 }
 0x9a7   : > { %v7808_v25 = vpop.f32.mrf.mxu1 }
 0x9a9   : > { %v3379_v2 = vpop.f32.mrf.mxu1 }
 0x9aa   : > { %v3399_v44 = vadd.f32 %v3379_v2, %v3129_v16 }
 0x9ab   : > { %v8894_v27 = vpop.eup %8893  ;;  %v7811_v12 = vpop.f32.mrf.mxu1 }
 0x9ac   : > { %v4905_v9 = vmul.f32 %v8894_v27, %v11859_v49 }
 0x9ad   : > { %v3384_v22 = vpop.f32.mrf.mxu1 }
 0x9ae   : > { %v3400_v8 = vadd.f32 %v3384_v22, %v3130_v23  ;;  %8113 = vmatmul.mubr.msk.f32.gmra.mxu1 %vm1892_vm9, %v4905_v9 }
 0x9af   : > { %v8896_v20 = vpop.eup %8895  ;;  %v7814_v34 = vpop.f32.mrf.mxu1  ;;  %8115 = vmatprep.mubr.msk.f32.mxu1 %vm9689_vm8, %v12584_v4 }
 0x9b0   : > { %v4906_v33 = vmul.f32 %v8896_v20, %v11873_v29 }
 0x9b1   : > { %v4897_v57 = vpop.xlane.xlu1 %4896  ;;  %v3389_v58 = vpop.f32.mrf.mxu1 }
 0x9b2   : > { %8897 = vrcp.f32 %v4897_v57  ;;  %v3401_v37 = vadd.f32 %v3389_v58, %v3131_v36  ;;  %8116 = vmatmul.mubr.msk.f32.gmra.mxu1 %vm1892_vm9, %v4906_v33 }
 0x9b3   : > { %v7817_v50 = vpop.f32.mrf.mxu1  ;;  %8118 = vmatprep.mubr.msk.f32.mxu1 %vm9689_vm8, %v12584_v4 }
 0x9b5   : > { %v3394_v49 = vpop.f32.mrf.mxu1 }
 0x9b6   : > { %v3402_v31 = vadd.f32 %v3394_v49, %v3132_v45 }
 0x9b7   : > { %v7820_v30 = vpop.f32.mrf.mxu1 }
 0x9b9   : > { %v3644_v61 = vpop.f32.mrf.mxu1 }
 0x9ba   : > { %v3668_v46 = vadd.f32 %v3644_v61, %v3398_v19 }
 0x9bb   : > { %v7858_v21 = vpop.f32.mrf.mxu1 }
 0x9bd   : > { %v3649_v28 = vpop.f32.mrf.mxu1 }
 0x9be   : > { %v3669_v3 = vadd.f32 %v3649_v28, %v3399_v44 }
 0x9bf   : > { %v8898_v26 = vpop.eup %8897  ;;  %v7861_v29 = vpop.f32.mrf.mxu1 }
 0x9c0   : > { %v4907_v11 = vmul.f32 %v8898_v26, %v11904_v6 }
 0x9c1   : > { %v3654_v59 = vpop.f32.mrf.mxu1 }
 0x9c2   : > { %v3670_v0 = vadd.f32 %v3654_v59, %v3400_v8  ;;  %8119 = vmatmul.mubr.msk.f32.gmra.mxu1 %vm1892_vm9, %v4907_v11 }
 0x9c3   : > { %v7864_v60 = vpop.f32.mrf.mxu1  ;;  %5565 = vmatprep.mubr.bf16.mxu1 %v12667_v13 }
 0x9c5   : > { %v3659_v1 = vpop.f32.mrf.mxu1 }
 0x9c6   : > { %v3671_v38 = vadd.f32 %v3659_v1, %v3401_v37 }
 0x9c7   : > { %v7867_v32 = vpop.f32.mrf.mxu1 }
 0x9c9   : > { %v3664_v42 = vpop.f32.mrf.mxu1 }
 0x9ca   : > { %v3672_v62 = vadd.f32 %v3664_v42, %v3402_v31 }
 0x9cb   : > { %v7870_v48 = vpop.f32.mrf.mxu1 }
 0x9cd   : > { %v3914_v18 = vpop.f32.mrf.mxu1 }
 0x9ce   : > { %v3938_v43 = vadd.f32 %v3914_v18, %v3668_v46 }
 0x9cf   : > { %v7908_v24 = vpop.f32.mrf.mxu1 }
 0x9d1   : > { %v3919_v63 = vpop.f32.mrf.mxu1 }
 0x9d2   : > { %v3939_v54 = vadd.f32 %v3919_v63, %v3669_v3 }
 0x9d3   : > { %v7911_v35 = vpop.f32.mrf.mxu1 }
 0x9d6   : > { %v3924_v6 = vpop.f32.mrf.mxu1 }
 0x9d7   : > { %v3940_v15 = vadd.f32 %v3924_v6, %v3670_v0 }
 0x9d8   : > { %v7914_v16 = vpop.f32.mrf.mxu1 }
 0x9da   : > { %v3929_v51 = vpop.f32.mrf.mxu1 }
 0x9db   : > { %v3941_v53 = vadd.f32 %v3929_v51, %v3671_v38 }
 0x9dc   : > { %v7917_v10 = vpop.f32.mrf.mxu1 }
 0x9de   : > { %v3934_v23 = vpop.f32.mrf.mxu1 }
 0x9df   : > { %v3942_v41 = vadd.f32 %v3934_v23, %v3672_v62 }
 0x9e0   : > { %v7920_v56 = vpop.f32.mrf.mxu1 }
 0x9e2   : > { %v4184_v55 = vpop.f32.mrf.mxu1 }
 0x9e3   : > { %v4208_v0 = vadd.f32 %v4184_v55, %v3938_v43 }
 0x9e4   : > { %v7958_v40 = vpop.f32.mrf.mxu1 }
 0x9e6   : > { %v4189_v36 = vpop.f32.mrf.mxu1 }
 0x9e7   : > { %v4209_v60 = vadd.f32 %v4189_v36, %v3939_v54  ;;  %v7009_v36 = vld [vmem:[%s1017_s8] ss:$0 sm:$0xff] }
 0x9e8   : > { %v7961_v17 = vpop.f32.mrf.mxu1 }
 0x9e9   : > { %v8959_v17 = vld [vmem:[#allocation2 + $0x8] sm:$0xff] }
 0x9ea   : > { %v4194_v5 = vpop.f32.mrf.mxu1 }
 0x9eb   : > { %v4210_v52 = vadd.f32 %v4194_v5, %v3940_v15 }
 0x9ec   : > { %v7964_v14 = vpop.f32.mrf.mxu1 }
 0x9ee   : > { %v4199_v45 = vpop.f32.mrf.mxu1 }
 0x9ef   : > { %v4211_v39 = vadd.f32 %v4199_v45, %v3941_v53 }
 0x9f0   : > { %v7967_v7 = vpop.f32.mrf.mxu1 }
 0x9f2   : > { %v4204_v47 = vpop.f32.mrf.mxu1 }
 0x9f3   : > { %v4212_v19 = vadd.f32 %v4204_v47, %v3942_v41 }
 0x9f4   : > { %v7970_v25 = vpop.f32.mrf.mxu1 }
 0x9f6   : > { %v4454_v2 = vpop.f32.mrf.mxu1 }
 0x9f7   : > { %v4478_v38 = vadd.f32 %v4454_v2, %v4208_v0  ;;  %v8961_v2 = vld [vmem:[#allocation2 + $0x20] sm:$0xff] }
 0x9f8   : > { %v8008_v44 = vpop.f32.mrf.mxu1 }
 0x9fa   : > { %v4459_v27 = vpop.f32.mrf.mxu1 }
 0x9fb   : > { %v4479_v32 = vadd.f32 %v4459_v27, %v4209_v60 }
 0x9fc   : > { %v8011_v12 = vpop.f32.mrf.mxu1 }
 0x9fe   : > { %v4464_v9 = vpop.f32.mrf.mxu1 }
 0x9ff   : > { %v4480_v22 = vadd.f32 %v4464_v9, %v4210_v52 }
 0xa00   : > { %v8014_v8 = vpop.f32.mrf.mxu1 }
 0xa02   : > { %v4469_v20 = vpop.f32.mrf.mxu1 }
 0xa03   : > { %v4481_v34 = vadd.f32 %v4469_v20, %v4211_v39  ;;  %v8960_v39 = vld [vmem:[#allocation2] sm:$0xff] }
 0xa04   : > { %v8017_v33 = vpop.f32.mrf.mxu1 }
 0xa06   : > { %v4474_v57 = vpop.f32.mrf.mxu1 }
 0xa07   : > { %v4482_v58 = vadd.f32 %v4474_v57, %v4212_v19  ;;  %v8963_v57 = vld [vmem:[#allocation2 + $0x18] sm:$0xff] }
 0xa08   : > { %v8020_v37 = vpop.f32.mrf.mxu1 }
 0xa0a   : > { %v4724_v50 = vpop.f32.mrf.mxu1 }
 0xa0b   : > { %v4748_v62 = vadd.f32 %v4724_v50, %v4478_v38 }
 0xa0c   : > { %v8058_v49 = vpop.f32.mrf.mxu1 }
 0xa0e   : > { %v4729_v31 = vpop.f32.mrf.mxu1 }
 0xa0f   : > { %v4749_v48 = vadd.f32 %v4729_v31, %v4479_v32 }
 0xa10   : > { %v8061_v30 = vpop.f32.mrf.mxu1 }
 0xa11   : > { %v8553_v30 = vld [vmem:[%s10212_s4 + $0x118] ss:$20 sps:$4 sm:$0xff]  }
 0xa12   : > { %v4734_v61 = vpop.f32.mrf.mxu1 }
 0xa13   : > { %v4750_v46 = vadd.f32 %v4734_v61, %v4480_v22  ;;  %v8962_v22 = vld [vmem:[#allocation2 + $0x10] sm:$0xff] }
 0xa14   : > { %v8064_v21 = vpop.f32.mrf.mxu1  ;;  %v8555_v61 = vld [vmem:[%s10212_s4 + $0x11c] ss:$20 sps:$4 sm:$0xff]  }
 0xa15   : > { %v8558_v21 = vld [vmem:[%s10212_s4 + $0x124] ss:$20 sps:$4 sm:$0xff]   ;;  %5533 = vmatprep.subr.bf16.mxu1 %v8555_v61 }
 0xa16   : > { %v4739_v28 = vpop.f32.mrf.mxu1  ;;  %5594 = vmatprep.subr.bf16.mxu0 %v8558_v21  ;;  %5534 = vmatpush1.bf16.msra.mxu1 %v8553_v30 }
 0xa17   : > { %v4751_v3 = vadd.f32 %v4739_v28, %v4481_v34 }
 0xa18   : > { %v8067_v26 = vpop.f32.mrf.mxu1 }
 0xa1a   : > { %v4744_v29 = vpop.f32.mrf.mxu1 }
 0xa1b   : > { %v4752_v11 = vadd.f32 %v4744_v29, %v4482_v58 }
 0xa1c   : > { %v8070_v59 = vpop.f32.mrf.mxu1 }
 0xa1e   : > { %v4994_v1 = vpop.f32.mrf.mxu1 }
 0xa1f   : > { %v5018_v24 = vadd.f32 %v4994_v1, %v4748_v62  ;;  %v8561_v62 = vld [vmem:[%s10212_s4 + $0xf4] ss:$20 sps:$4 sm:$0xff]  }
 0xa20   : > { %v8108_v42 = vpop.f32.mrf.mxu1  ;;  %5535 = vmatprep.subr.bf16.mxu1 %v8561_v62 }
 0xa21   : > { %v8559_v42 = vld [vmem:[%s10212_s4 + $0xf0] ss:$20 sps:$4 sm:$0xff]  }
 0xa22   : > { %v4999_v18 = vpop.f32.mrf.mxu1  ;;  %5536 = vmatpush1.bf16.msra.mxu1 %v8559_v42  ;;  %v12127_v42 = vld [vmem:[%s1033_s29] ss:$0 sm:$0xff] }
 0xa23   : > { %v5019_v63 = vadd.f32 %v4999_v18, %v4749_v48  ;;  %v8562_v48 = vld [vmem:[%s10212_s4 + $0xf8] ss:$20 sps:$4 sm:$0xff]   ;;  %v8564_v18 = vld [vmem:[%s10212_s4 + $0xfc] ss:$20 sps:$4 sm:$0xff]  }
 0xa24   : > { %v8111_v35 = vpop.f32.mrf.mxu1 }
 0xa25   : > { %v5023_v6 = vpack.c.bf16 %v5019_v63, %v5018_v24  ;;  %v8565_v24 = vld [vmem:[%s10212_s4 + $0xc8] ss:$20 sps:$4 sm:$0xff]   ;;  %v8567_v63 = vld [vmem:[%s10212_s4 + $0xcc] ss:$20 sps:$4 sm:$0xff]   ;;  %v8568_v35 = vld [vmem:[%s10212_s4 + $0xd0] ss:$20 sps:$4 sm:$0xff]  }
 0xa26   : > { %5537 = vmatprep.subr.bf16.mxu1 %v8567_v63  ;;  %v8603_v63 = vld [vmem:[%s10212_s4 + $0xd8] ss:$20 sps:$4 sm:$0xff]  }
 0xa27   : > { %8138 = vmatmul.mubr.bf16.vlgmr.msra.gmra.mxu0 %v5023_v6  ;;  %v8570_v6 = vld [vmem:[%s10212_s4 + $0xd4] ss:$20 sps:$4 sm:$0xff]   ;;  %5538 = vmatpush1.bf16.msra.mxu1 %v8565_v24 }
 0xa28   : > { %8141 = vmatprep.mubr.msk.bf16.mxu0 %vm9689_vm8, %v12584_v4 }
 0xa6e   : > { %v5004_v15 = vpop.f32.mrf.mxu1 }
 0xa6f   : > { %v5020_v54 = vadd.f32 %v5004_v15, %v4750_v46  ;;  %v8556_v46 = vld [vmem:[%s10212_s4 + $0x120] ss:$20 sps:$4 sm:$0xff]   ;;  %v8573_v15 = vld [vmem:[%s10212_s4 + $0xa4] ss:$20 sps:$4 sm:$0xff]  }
 0xa70   : > { %v8114_v16 = vpop.f32.mrf.mxu1  ;;  %5595 = vmatpush1.bf16.msra.mxu0 %v8556_v46  ;;  %5539 = vmatprep.subr.bf16.mxu1 %v8573_v15  ;;  %v8606_v15 = vld [vmem:[%s10212_s4 + $0x60] ss:$20 sps:$4 sm:$0xff]  }
 0xa71   : > { %5596 = vmatprep.subr.bf16.mxu0 %v8564_v18  ;;  %v8576_v16 = vld [vmem:[%s10212_s4 + $0xac] ss:$20 sps:$4 sm:$0xff]  }
 0xa72   : > { %v5009_v43 = vpop.f32.mrf.mxu1 }
 0xa73   : > { %v5021_v51 = vadd.f32 %v5009_v43, %v4751_v3  ;;  %v8571_v43 = vld [vmem:[%s10212_s4 + $0xa0] ss:$20 sps:$4 sm:$0xff]  }
 0xa74   : > { %v8117_v53 = vpop.f32.mrf.mxu1  ;;  %5597 = vmatpush1.bf16.msra.mxu0 %v8562_v48  ;;  %5540 = vmatpush1.bf16.msra.mxu1 %v8571_v43  ;;  %v8608_v43 = vld [vmem:[%s10212_s4 + $0x10] ss:$20 sps:$4 sm:$0xff]  }
 0xa75   : > { %v5024_v10 = vpack.c.bf16 %v5021_v51, %v5020_v54  ;;  %5598 = vmatprep.subr.bf16.mxu0 %v8570_v6  ;;  %v8574_v54 = vld [vmem:[%s10212_s4 + $0xa8] ss:$20 sps:$4 sm:$0xff]   ;;  %v8582_v53 = vld [vmem:[%s10212_s4 + $0x84] ss:$20 sps:$4 sm:$0xff]  }
 0xa76   : > { %v8579_v51 = vld [vmem:[%s10212_s4 + $0x7c] ss:$20 sps:$4 sm:$0xff]  }
 0xa77   : > { %8142 = vmatmul.mubr.bf16.gmra.mxu0 %v5024_v10  ;;  %v8577_v10 = vld [vmem:[%s10212_s4 + $0x78] ss:$20 sps:$4 sm:$0xff]   ;;  %5541 = vmatprep.subr.bf16.mxu1 %v8579_v51  ;;  %v8605_v6 = vld [vmem:[%s10212_s4 + $0x88] ss:$20 sps:$4 sm:$0xff]  }
 0xa78   : > { %8145 = vmatprep.mubr.msk.bf16.mxu0 %vm9689_vm8, %v12584_v4  ;;  %5599 = vmatpush1.bf16.msra.mxu0 %v8568_v35  ;;  %v8604_v35 = vld [vmem:[%s10212_s4 + $0xb0] ss:$20 sps:$4 sm:$0xff]  }
 0xa79   : > { %5600 = vmatprep.subr.bf16.mxu0 %v8576_v16  ;;  %5542 = vmatpush1.bf16.msra.mxu1 %v8577_v10  ;;  %v8607_v16 = vld [vmem:[%s10212_s4 + $0x38] ss:$20 sps:$4 sm:$0xff]  }
 0xa7c   : > { %5601 = vmatpush1.bf16.msra.mxu0 %v8574_v54 }
 0xa7d   : > { %5602 = vmatprep.subr.bf16.mxu0 %v8582_v53 }
 0xa82   : > { %v5014_v23 = vpop.f32.mrf.mxu1 }
 0xa83   : > { %v5022_v41 = vadd.f32 %v5014_v23, %v4752_v11  ;;  %v12668_v11 = vld [vmem:[#allocation56_spill] sm:$0xff] }
 0xa84   : > { %v8120_v56 = vpop.f32.mrf.mxu1  ;;  %v8580_v23 = vld [vmem:[%s10212_s4 + $0x80] ss:$20 sps:$4 sm:$0xff]  }
 0xa85   : > { %v5025_v55 = vpack.c.bf16 %v5022_v41, %v5022_v41  ;;  %v8585_v41 = vld [vmem:[%s10212_s4 + $0x54] ss:$20 sps:$4 sm:$0xff]   ;;  %v8588_v56 = vld [vmem:[%s10212_s4 + $0x5c] ss:$20 sps:$4 sm:$0xff]   ;;  %5603 = vmatpush1.bf16.msra.mxu0 %v8580_v23 }
 0xa86   : > { %5543 = vmatprep.subr.bf16.mxu1 %v8585_v41  ;;  %5604 = vmatprep.subr.bf16.mxu0 %v8588_v56 }
 0xa87   : > { %8146 = vmatmul.mubr.bf16.gmra.mxu0 %v5025_v55  ;;  %v8583_v55 = vld [vmem:[%s10212_s4 + $0x50] ss:$20 sps:$4 sm:$0xff]  }
 0xa88   : > { %5626 = vmatprep.mubr.bf16.mxu0 %v12667_v13  ;;  %5544 = vmatpush1.bf16.msra.mxu1 %v8583_v55 }
 0xae7   : > { %v5124_v40 = vpop.f32.mrf.mxu0 }
 0xae8   : > { %v5146_v5 = vadd.f32 %v8959_v17, %v5124_v40  ;;  %v8586_v40 = vld [vmem:[%s10212_s4 + $0x58] ss:$20 sps:$4 sm:$0xff]   ;;  %v8594_v17 = vld [vmem:[%s10212_s4 + $0x34] ss:$20 sps:$4 sm:$0xff]  }
 0xae9   : > { %v8139_v52 = vpop.f32.mrf.mxu0  ;;  %5605 = vmatpush1.bf16.msra.mxu0 %v8586_v40 }
 0xaea   : > { %v12040_v14 = vadd.f32 %v7009_v36, %v5146_v5  ;;  %v8589_v5 = vld [vmem:[%s10212_s4 + $0x28] ss:$20 sps:$4 sm:$0xff]   ;;  %v8592_v52 = vld [vmem:[%s10212_s4 + $0x30] ss:$20 sps:$4 sm:$0xff]   ;;  %5606 = vmatprep.subr.bf16.mxu0 %v8594_v17 }
 0xaeb   : > { %v5127_v45 = vpop.f32.mrf.mxu0 }
 0xaec   : > { %v5147_v7 = vadd.f32 %v8960_v39, %v5127_v45  ;;  %5165 = vadd.xlane.f32.xlu0 %v12040_v14  ;;  %v8597_v45 = vld [vmem:[%s10212_s4 + $0x4] ss:$20 sps:$4 sm:$0xff]   ;;  %v8600_v39 = vld [vmem:[%s10212_s4 + $0xc] ss:$20 sps:$4 sm:$0xff]  }
 0xaed   : > { %v8140_v47 = vpop.f32.mrf.mxu0  ;;  %5607 = vmatpush1.bf16.msra.mxu0 %v8592_v52 }
 0xaee   : > { %v12043_v19 = vadd.f32 %v7009_v36, %v5147_v7  ;;  %v8595_v7 = vld [vmem:[%s10212_s4] ss:$20 sps:$4 sm:$0xff]   ;;  %v8598_v47 = vld [vmem:[%s10212_s4 + $0x8] ss:$20 sps:$4 sm:$0xff]   ;;  %5608 = vmatprep.subr.bf16.mxu0 %v8600_v39 }
 0xaf0   : > { %5167 = vadd.xlane.f32.xlu1 %v12043_v19 }
 0xaf1   : > { %5609 = vmatpush1.bf16.msra.mxu0 %v8598_v47 }
 0xb37   : > { %v5132_v25 = vpop.f32.mrf.mxu0 }
 0xb38   : > { %v5148_v44 = vadd.f32 %v8961_v2, %v5132_v25 }
 0xb39   : > { %v8143_v27 = vpop.f32.mrf.mxu0 }
 0xb3a   : > { %v12046_v12 = vadd.f32 %v7009_v36, %v5148_v44 }
 0xb3b   : > { %v5135_v9 = vpop.f32.mrf.mxu0 }
 0xb3c   : > { %v5149_v8 = vadd.f32 %v8962_v22, %v5135_v9  ;;  %5169 = vadd.xlane.f32.xlu0 %v12046_v12 }
 0xb3d   : > { %v8144_v20 = vpop.f32.mrf.mxu0 }
 0xb3e   : > { %v12049_v34 = vadd.f32 %v7009_v36, %v5149_v8 }
 0xb40   : > { %5171 = vadd.xlane.f32.xlu1 %v12049_v34 }
 0xb47   : > { %v5140_v33 = vpop.f32.mrf.mxu0 }
 0xb48   : > { %v5150_v58 = vadd.f32 %v8963_v57, %v5140_v33 }
 0xb49   : > { %v8147_v37 = vpop.f32.mrf.mxu0 }
 0xb4a   : > { %v12052_v50 = vadd.f32 %v7009_v36, %v5150_v58  ;;  %v8591_v36 = vld [vmem:[%s10212_s4 + $0x2c] ss:$20 sps:$4 sm:$0xff]  }
 0xb4b   : > { %v5143_v49 = vpop.f32.mrf.mxu0  ;;  %5545 = vmatprep.subr.bf16.mxu1 %v8591_v36 }
 0xb4c   : > { %5173 = vadd.xlane.f32.xlu0 %v12052_v50  ;;  %5546 = vmatpush1.bf16.msra.mxu1 %v8589_v5 }
 0xb4d   : > { %v8148_v31 = vpop.f32.mrf.mxu0  ;;  %5547 = vmatprep.subr.bf16.mxu1 %v8597_v45 }
 0xb50   : > { %5548 = vmatpush1.bf16.msra.mxu1 %v8595_v7 }
 0xb51   : > { %8149 = vmatprep.subr.bf16.mxu1 %v12584_v4 }
 0xb75   : > { %v5166_v28 = vpop.xlane.xlu0 %5165 }
 0xb76   : > { %v5175_v3 = vmul.f32 0.008333334, %v5166_v28 }
 0xb78   : > { %v5180_v26 = vsub.f32 %v12040_v14, %v5175_v3 }
 0xb79   : > { %v5168_v29 = vpop.xlane.xlu1 %5167 }
 0xb7a   : > { %v12061_v59 = vmul.f32 %v12668_v11, %v5180_v26  ;;  %v5176_v0 = vmul.f32 0.008333334, %v5168_v29 }
 0xb7c   : > { %v5181_v60 = vsub.f32 %v12043_v19, %v5176_v0  ;;  %v5190_v1 = vmul.f32 %v12061_v59, %v12061_v59 }
 0xb7e   : > { %v12067_v38 = vmul.f32 %v12668_v11, %v5181_v60  ;;  %5195 = vadd.xlane.f32.xlu1 %v5190_v1 }
 0xb80   : > { %v5191_v32 = vmul.f32 %v12067_v38, %v12067_v38 }
 0xb82   : > { %5197 = vadd.xlane.f32.xlu0 %v5191_v32 }
 0xbc5   : > { %v5170_v25 = vpop.xlane.xlu0 %5169 }
 0xbc6   : > { %v5177_v2 = vmul.f32 0.008333334, %v5170_v25 }
 0xbc8   : > { %v5182_v44 = vsub.f32 %v12046_v12, %v5177_v2 }
 0xbc9   : > { %v5172_v27 = vpop.xlane.xlu1 %5171 }
 0xbca   : > { %v12102_v9 = vmul.f32 %v12668_v11, %v5182_v44  ;;  %v5178_v22 = vmul.f32 0.008333334, %v5172_v27 }
 0xbcc   : > { %v5183_v8 = vsub.f32 %v12049_v34, %v5178_v22  ;;  %v5192_v20 = vmul.f32 %v12102_v9, %v12102_v9  ;;  %v8610_v22 = vld [vmem:[%s10216_s27 + $0xf8] sm:$0xff]  }
 0xbce   : > { %v12108_v33 = vmul.f32 %v12668_v11, %v5183_v8  ;;  %5199 = vadd.xlane.f32.xlu1 %v5192_v20  ;;  %v8611_v8 = vld [vmem:[%s10216_s27 + $0x38] sm:$0xff]  }
 0xbd0   : > { %v5193_v57 = vmul.f32 %v12108_v33, %v12108_v33 }
 0xbd2   : > { %5201 = vadd.xlane.f32.xlu0 %v5193_v57  ;;  %v8615_v57 = vld [vmem:[%s10216_s27 + $0x30] sm:$0xff]  }
 0xbd5   : > { %v5174_v58 = vpop.xlane.xlu0 %5173 }
 0xbd6   : > { %v5179_v37 = vmul.f32 0.008333334, %v5174_v58  ;;  %v8617_v58 = vld [vmem:[%s10216_s27 + $0x68] sm:$0xff]  }
 0xbd8   : > { %v5184_v49 = vsub.f32 %v12052_v50, %v5179_v37  ;;  %v8619_v37 = vld [vmem:[%s10216_s27 + $0x28] sm:$0xff]  }
 0xbda   : > { %v12114_v31 = vmul.f32 %v12668_v11, %v5184_v49  ;;  %v12121_v11 = vld [vmem:[%s1025_s25] ss:$0 sm:$0xff]  ;;  %v8612_v49 = vld [vmem:[%s10216_s27 + $0xb8] sm:$0xff]  }
 0xbdc   : > { %v5194_v30 = vmul.f32 %v12114_v31, %v12114_v31 }
 0xbde   : > { %5203 = vadd.xlane.f32.xlu1 %v5194_v30  ;;  %v8621_v30 = vld [vmem:[%s10216_s27 + $0x60] sm:$0xff]  }
 0xc07   : > { %v5196_v61 = vpop.xlane.xlu1 %5195 }
 0xc08   : > { %v5205_v46 = vmul.f32 0.008333334, %v5196_v61  ;;  %v8623_v61 = vld [vmem:[%s10216_s27 + $0x20] sm:$0xff]  }
 0xc0a   : > { %v5210_v21 = vadd.f32 1e-06, %v5205_v46  ;;  %v8616_v46 = vld [vmem:[%s10216_s27 + $0xb0] sm:$0xff]  }
 0xc0b   : > { %v5198_v28 = vpop.xlane.xlu0 %5197 }
 0xc0c   : > { %8899 = vrsqrt.f32 %v5210_v21  ;;  %v5206_v3 = vmul.f32 0.008333334, %v5198_v28  ;;  %v8625_v21 = vld [vmem:[%s10216_s27 + $0x58] sm:$0xff]   ;;  %v8618_v28 = vld [vmem:[%s10216_s27 + $0xe8] sm:$0xff]  }
 0xc0e   : > { %v5211_v26 = vadd.f32 1e-06, %v5206_v3  ;;  %v8627_v3 = vld [vmem:[%s10216_s27 + $0x18] sm:$0xff]  }
 0xc10   : > { %8901 = vrsqrt.f32 %v5211_v26  ;;  %v8620_v26 = vld [vmem:[%s10216_s27 + $0xa8] sm:$0xff]  }
 0xc19   : > { %v8900_v29 = vpop.eup %8899 }
 0xc1a   : > { %v5220_v0 = vmul.f32 %v8900_v29, %v12061_v59  ;;  %v8601_v59 = vld [vmem:[%s10212_s4 + $0x128] ss:$20 sps:$4 sm:$0xff]  }
 0xc1b   : > { %v8622_v29 = vld [vmem:[%s10216_s27 + $0xe0] sm:$0xff]  }
 0xc1c   : > { %v5231_v1 = vmul.f32 %v12121_v11, %v5220_v0  ;;  %v8629_v0 = vld [vmem:[%s10216_s27 + $0x50] sm:$0xff]  }
 0xc1d   : > { %v8902_v60 = vpop.eup %8901 }
 0xc1e   : > { %v5221_v32 = vmul.f32 %v8902_v60, %v12067_v38  ;;  %v5242_v48 = vadd.f32 %v12127_v42, %v5231_v1  ;;  %v8602_v38 = vld [vmem:[%s10212_s4 + $0x100] ss:$20 sps:$4 sm:$0xff]   ;;  %v8624_v60 = vld [vmem:[%s10216_s27 + $0xa0] sm:$0xff]  }
 0xc1f   : > { %v8633_v1 = vld [vmem:[%s10216_s27 + $0x48] sm:$0xff]  }
 0xc20   : > { %v5232_v62 = vmul.f32 %v12121_v11, %v5221_v32  ;;  %v8626_v32 = vld [vmem:[%s10216_s27 + $0xd8] sm:$0xff]  }
 0xc22   : > { %v5243_v18 = vadd.f32 %v12127_v42, %v5232_v62  ;;  %v8628_v62 = vld [vmem:[%s10216_s27 + $0x98] sm:$0xff]  }
 0xc24   : > { %v12133_v24 = vpack.c.bf16 %v5243_v18, %v5242_v48  ;;  %v8637_v48 = vld [vmem:[%s10216_s27 + $0x40] sm:$0xff]   ;;  %v8630_v18 = vld [vmem:[%s10216_s27 + $0xd0] sm:$0xff]  }
 0xc26   : > { %5566 = vmatmul.mubr.bf16.vlgmr.msra.gmra.mxu1 %v12133_v24  ;;  %5627 = vmatmul.mubr.bf16.vlgmr.msra.gmra.mxu0 %v12133_v24 }
 0xc27   : > { %8150 = vmatpush3.bf16.msra.mxu1 %v8601_v59  ;;  %5575 = vmatprep.mubr.bf16.mxu1 %v12667_v13  ;;  %v8639_v59 = vld [vmem:[%s10216_s27] sm:$0xff]  }
 0xc28   : > { %8151 = vmatprep.subr.bf16.mxu1 %v12584_v4  ;;  %5636 = vmatprep.mubr.bf16.mxu0 %v12667_v13 }
 0xc2b   : > { %8152 = vmatpush3.bf16.msra.mxu1 %v8602_v38  ;;  %v8634_v38 = vld [vmem:[%s10216_s27 + $0xc8] sm:$0xff]  }
 0xc2c   : > { %8153 = vmatprep.subr.bf16.mxu1 %v12584_v4 }
 0xc2f   : > { %8154 = vmatpush3.bf16.msra.mxu1 %v8603_v63  ;;  %v8636_v63 = vld [vmem:[%s10216_s27 + $0x88] sm:$0xff]  }
 0xc30   : > { %8155 = vmatprep.subr.bf16.mxu1 %v12584_v4 }
 0xc33   : > { %8156 = vmatpush3.bf16.msra.mxu1 %v8604_v35  ;;  %v8638_v35 = vld [vmem:[%s10216_s27 + $0xc0] sm:$0xff]  }
 0xc34   : > { %8157 = vmatprep.subr.bf16.mxu1 %v12584_v4 }
 0xc37   : > { %8158 = vmatpush3.bf16.msra.mxu1 %v8605_v6  ;;  %v8640_v6 = vld [vmem:[%s10216_s27 + $0x80] sm:$0xff]  }
 0xc38   : > { %8159 = vmatprep.subr.bf16.mxu1 %v12584_v4 }
 0xc3b   : > { %8160 = vmatpush3.bf16.msra.mxu1 %v8606_v15  ;;  %v12205_v15 = vld [vmem:[%s10214_s26] sm:$0x1f] }
 0xc3c   : > { %8161 = vmatprep.subr.bf16.mxu1 %v12584_v4 }
 0xc3f   : > { %8162 = vmatpush3.bf16.msra.mxu1 %v8607_v16  ;;  %v12669_v16 = vld [vmem:[#allocation55_spill] sm:$0xff] }
 0xc40   : > { %8163 = vmatprep.subr.bf16.mxu1 %v12584_v4 }
 0xc43   : > { %8164 = vmatpush3.bf16.msra.mxu1 %v8608_v43  ;;  %v5314_v43 = vsub.s32 3, %v12669_v16 }
 0xc44   : > { %7412 = vmatprep.subr.bf16.mxu1 %v8610_v22 }
 0xc57   : > { %v5200_v54 = vpop.xlane.xlu1 %5199 }
 0xc58   : > { %v5207_v51 = vmul.f32 0.008333334, %v5200_v54  ;;  %v12670_v54 = vsub.s32 0, %v12669_v16 }
 0xc5a   : > { %v5212_v53 = vadd.f32 1e-06, %v5207_v51  ;;  %v12211_v51 = vrot.slane %v12205_v15, %v12670_v54 }
 0xc5b   : > { %v5202_v10 = vpop.xlane.xlu0 %5201 }
 0xc5c   : > { %8903 = vrsqrt.f32 %v5212_v53  ;;  %v5208_v23 = vmul.f32 0.008333334, %v5202_v10  ;;  %v12671_v53 = vsub.s32 2, %v12669_v16 }
 0xc5e   : > { %v5213_v41 = vadd.f32 1e-06, %v5208_v23  ;;  %v12216_v10 = vrot.slane %v12205_v15, %v12671_v53 }
 0xc60   : > { %8905 = vrsqrt.f32 %v5213_v41 }
 0xc67   : > { %v5204_v56 = vpop.xlane.xlu1 %5203 }
 0xc68   : > { %v5209_v55 = vmul.f32 0.008333334, %v5204_v56  ;;  %v12672_v56 = vsub.s32 1, %v12669_v16 }
 0xc69   : > { %v8904_v40 = vpop.eup %8903 }
 0xc6a   : > { %v5214_v36 = vadd.f32 1e-06, %v5209_v55  ;;  %v5222_v17 = vmul.f32 %v8904_v40, %v12102_v9  ;;  %v8609_v9 = vld [vmem:[%s10216_s27 + $0x78] sm:$0xff]   ;;  %v12221_v55 = vrot.slane %v12205_v15, %v12672_v56  ;;  %v12224_v40 = vrot.slane %v12205_v15, %v5314_v43 }
 0xc6b   : > { %7378 = vmatprep.subr.bf16.mxu0 %v8609_v9 }
 0xc6c   : > { %8907 = vrsqrt.f32 %v5214_v36  ;;  %v5233_v45 = vmul.f32 %v12121_v11, %v5222_v17  ;;  %7379 = vmatpush3.bf16.msra.mxu0 %v8611_v8 }
 0xc6d   : > { %v8906_v5 = vpop.eup %8905 }
 0xc6e   : > { %v5223_v52 = vmul.f32 %v8906_v5, %v12108_v33  ;;  %v5244_v7 = vadd.f32 %v12127_v42, %v5233_v45  ;;  %v8613_v33 = vld [vmem:[%s10216_s27 + $0x70] sm:$0xff]  }
 0xc6f   : > { %7380 = vmatprep.subr.bf16.mxu0 %v8613_v33 }
 0xc70   : > { %v5234_v39 = vmul.f32 %v12121_v11, %v5223_v52  ;;  %7381 = vmatpush3.bf16.msra.mxu0 %v8615_v57 }
 0xc71   : > { %7382 = vmatprep.subr.bf16.mxu0 %v8617_v58 }
 0xc72   : > { %v5245_v47 = vadd.f32 %v12127_v42, %v5234_v39 }
 0xc74   : > { %v5248_v25 = vpack.c.bf16 %v5245_v47, %v5244_v7  ;;  %7383 = vmatpush3.bf16.msra.mxu0 %v8619_v37 }
 0xc75   : > { %7384 = vmatprep.subr.bf16.mxu0 %v8621_v30 }
 0xc76   : > { %5576 = vmatmul.mubr.bf16.gmra.mxu1 %v5248_v25  ;;  %5637 = vmatmul.mubr.bf16.gmra.mxu0 %v5248_v25 }
 0xc77   : > { %5585 = vmatprep.mubr.bf16.mxu1 %v12667_v13  ;;  %5646 = vmatprep.mubr.bf16.mxu0 %v12667_v13 }
 0xc78   : > { %7385 = vmatpush3.bf16.msra.mxu0 %v8623_v61 }
 0xc79   : > { %v8908_v2 = vpop.eup %8907  ;;  %7386 = vmatprep.subr.bf16.mxu0 %v8625_v21 }
 0xc7a   : > { %v5224_v44 = vmul.f32 %v8908_v2, %v12114_v31  ;;  %v8614_v31 = vld [vmem:[%s10216_s27 + $0xf0] sm:$0xff]  }
 0xc7c   : > { %v5235_v27 = vmul.f32 %v12121_v11, %v5224_v44  ;;  %7387 = vmatpush3.bf16.msra.mxu0 %v8627_v3  ;;  %v8631_v11 = vld [vmem:[%s10216_s27 + $0x10] sm:$0xff]  }
 0xc7d   : > { %7388 = vmatprep.subr.bf16.mxu0 %v8629_v0 }
 0xc7e   : > { %v5246_v20 = vadd.f32 %v12127_v42, %v5235_v27  ;;  %v8635_v42 = vld [vmem:[%s10216_s27 + $0x8] sm:$0xff]  }
 0xc80   : > { %v5249_v13 = vpack.c.bf16 %v5246_v20, %v5246_v20  ;;  %7389 = vmatpush3.bf16.msra.mxu0 %v8631_v11 }
 0xc81   : > { %7390 = vmatprep.subr.bf16.mxu0 %v8633_v1 }
 0xc82   : > { %5586 = vmatmul.mubr.bf16.gmra.mxu1 %v5249_v13  ;;  %5647 = vmatmul.mubr.bf16.gmra.mxu0 %v5249_v13 }
 0xc83   : > { %8165 = vmatprep.mubr.msk.bf16.mxu1 %vm9689_vm8, %v12584_v4 }
 0xc84   : > { %7391 = vmatpush3.bf16.msra.mxu0 %v8635_v42 }
 0xc85   : > { %7392 = vmatprep.subr.bf16.mxu0 %v8637_v48 }
 0xc88   : > { %7393 = vmatpush3.bf16.msra.mxu0 %v8639_v59 }
 0xc89   : > { %8177 = vmatprep.subr.bf16.mxu0 %v12584_v4 }
 0xc8a   : > { %8166 = vmatmul.mubr.bf16.vlgmr.msra.gmra.mxu1 %v12133_v24  ;;  %v8632_v24 = vld [vmem:[%s10216_s27 + $0x90] sm:$0xff]  }
 0xc8b   : > { %8169 = vmatprep.mubr.msk.bf16.mxu1 %vm9689_vm8, %v12584_v4  ;;  %7413 = vmatpush3.bf16.msra.mxu1 %v8612_v49 }
 0xc8c   : > { %7414 = vmatprep.subr.bf16.mxu1 %v8614_v31 }
 0xc8f   : > { %7415 = vmatpush3.bf16.msra.mxu1 %v8616_v46 }
 0xc90   : > { %7416 = vmatprep.subr.bf16.mxu1 %v8618_v28 }
 0xc92   : > { %8170 = vmatmul.mubr.bf16.gmra.mxu1 %v5248_v25 }
 0xc93   : > { %8173 = vmatprep.mubr.msk.bf16.mxu1 %vm9689_vm8, %v12584_v4  ;;  %7417 = vmatpush3.bf16.msra.mxu1 %v8620_v26 }
 0xc94   : > { %7418 = vmatprep.subr.bf16.mxu1 %v8622_v29 }
 0xc97   : > { %7419 = vmatpush3.bf16.msra.mxu1 %v8624_v60 }
 0xc98   : > { %7420 = vmatprep.subr.bf16.mxu1 %v8626_v32 }
 0xc9a   : > { %8174 = vmatmul.mubr.bf16.gmra.mxu1 %v5249_v13 }
 0xc9b   : > { %7421 = vmatpush3.bf16.msra.mxu1 %v8628_v62 }
 0xc9c   : > { %7422 = vmatprep.subr.bf16.mxu1 %v8630_v18 }
 0xc9f   : > { %7423 = vmatpush3.bf16.msra.mxu1 %v8632_v24 }
 0xca0   : > { %7424 = vmatprep.subr.bf16.mxu1 %v8634_v38 }
 0xca3   : > { %7425 = vmatpush3.bf16.msra.mxu1 %v8636_v63 }
 0xca4   : > { %7426 = vmatprep.subr.bf16.mxu1 %v8638_v35 }
 0xca7   : > { %7427 = vmatpush3.bf16.msra.mxu1 %v8640_v6 }
 0xce6   : > { %v5567_v23 = vpop.f32.mrf.mxu1  ;;  %v5628_v41 = vpop.f32.mrf.mxu0 }
 0xce7   : > { %v5568_v36 = vadd.f32 %v5567_v23, %v12211_v51  ;;  %v5629_v17 = vadd.f32 %v5628_v41, %v12216_v10 }
 0xce8   : > { %v5569_v5 = vpop.f32.mrf.mxu1  ;;  %v5630_v52 = vpop.f32.mrf.mxu0 }
 0xce9   : > { %v5736_v45 = vmul.f32 0.70710677, %v5568_v36  ;;  %v5738_v39 = vmul.f32 0.70710677, %v5629_v17  ;;  %v5570_v7 = vadd.f32 %v5569_v5, %v12221_v55  ;;  %v5631_v47 = vadd.f32 %v5630_v52, %v12224_v40 }
 0xcea   : > { %v5571_v25 = vpop.f32.mrf.mxu1  ;;  %v5632_v2 = vpop.f32.mrf.mxu0  ;;  %v5711_v3 = vmul.f32 0.5, %v5568_v36  ;;  %v5713_v43 = vmul.f32 0.5, %v5629_v17  ;;  %v8642_v17 = vld [vmem:[%s10216_s27 + $0x130] sm:$0xff]  }
 0xceb   : > { %v5572_v44 = vadd.f32 %v5571_v25, %v12211_v51  ;;  %v5633_v27 = vadd.f32 %v5632_v2, %v12216_v10  ;;  %8909 = verf.f32 %v5736_v45  ;;  %v5737_v9 = vmul.f32 0.70710677, %v5570_v7  ;;  %v8641_v45 = vld [vmem:[%s10216_s27 + $0x138] sm:$0xff]   ;;  %v8643_v25 = vld [vmem:[%s10216_s27 + $0x128] sm:$0xff]   ;;  %v8644_v2 = vld [vmem:[%s10216_s27 + $0x120] sm:$0xff]  }
 0xcec   : > { %v5573_v22 = vpop.f32.mrf.mxu1  ;;  %v5634_v8 = vpop.f32.mrf.mxu0  ;;  %8911 = verf.f32 %v5738_v39  ;;  %v5739_v20 = vmul.f32 0.70710677, %v5631_v47  ;;  %v5712_v26 = vmul.f32 0.5, %v5570_v7  ;;  %v5714_v38 = vmul.f32 0.5, %v5631_v47 }
 0xced   : > { %v5741_v13 = vmul.f32 0.70710677, %v5572_v44  ;;  %8913 = verf.f32 %v5737_v9  ;;  %v5743_v33 = vmul.f32 0.70710677, %v5633_v27  ;;  %v5574_v57 = vadd.f32 %v5573_v22, %v12221_v55  ;;  %v8647_v9 = vld [vmem:[%s10216_s27 + $0x108] sm:$0xff]   ;;  %v8648_v22 = vld [vmem:[%s10216_s27 + $0x100] sm:$0xff]  }
 0xcee   : > { %v5635_v58 = vadd.f32 %v5634_v8, %v12224_v40  ;;  %8915 = verf.f32 %v5739_v20  ;;  %v5716_v32 = vmul.f32 0.5, %v5572_v44  ;;  %v5718_v18 = vmul.f32 0.5, %v5633_v27  ;;  %v8645_v44 = vld [vmem:[%s10216_s27 + $0x118] sm:$0xff]   ;;  %v8646_v27 = vld [vmem:[%s10216_s27 + $0x110] sm:$0xff]  }
 0xcef   : > { %8917 = verf.f32 %v5741_v13  ;;  %v5742_v37 = vmul.f32 0.70710677, %v5574_v57  ;;  %v5717_v59 = vmul.f32 0.5, %v5574_v57 }
 0xcf0   : > { %8919 = verf.f32 %v5743_v33  ;;  %v5744_v49 = vmul.f32 0.70710677, %v5635_v58  ;;  %v5719_v35 = vmul.f32 0.5, %v5635_v58 }
 0xcf1   : > { %8921 = verf.f32 %v5742_v37 }
 0xcf2   : > { %8923 = verf.f32 %v5744_v49 }
 0xcf8   : > { %v8910_v31 = vpop.eup %8909 }
 0xcf9   : > { %v8912_v30 = vpop.eup %8911  ;;  %v5786_v60 = vadd.f32 1.0, %v8910_v31 }
 0xcfa   : > { %v8914_v61 = vpop.eup %8913  ;;  %v5788_v48 = vadd.f32 1.0, %v8912_v30 }
 0xcfb   : > { %v8916_v46 = vpop.eup %8915  ;;  %v5787_v29 = vadd.f32 1.0, %v8914_v61  ;;  %v5811_v41 = vmul.f32 %v5786_v60, %v5711_v3 }
 0xcfc   : > { %v8918_v21 = vpop.eup %8917  ;;  %v5789_v1 = vadd.f32 1.0, %v8916_v46  ;;  %v5813_v5 = vmul.f32 %v5788_v48, %v5713_v43 }
 0xcfd   : > { %v8920_v28 = vpop.eup %8919  ;;  %v5791_v0 = vadd.f32 1.0, %v8918_v21  ;;  %v5812_v54 = vmul.f32 %v5787_v29, %v5712_v26 }
 0xcfe   : > { %v8922_v11 = vpop.eup %8921  ;;  %v5793_v42 = vadd.f32 1.0, %v8920_v28  ;;  %v5814_v56 = vmul.f32 %v5789_v1, %v5714_v38  ;;  %v5318_v38 = vsub.s32 4, %v12669_v16 }
 0xcff   : > { %v8924_v62 = vpop.eup %8923  ;;  %v5792_v24 = vadd.f32 1.0, %v8922_v11  ;;  %v5816_v63 = vmul.f32 %v5791_v0, %v5716_v32 }
 0xd00   : > { %v5794_v6 = vadd.f32 1.0, %v8924_v62  ;;  %v5818_v53 = vmul.f32 %v5793_v42, %v5718_v18 }
 0xd01   : > { %v5817_v23 = vmul.f32 %v5792_v24, %v5717_v59  ;;  %v5836_v39 = vpack.c.bf16 %v5816_v63, %v5811_v41 }
 0xd02   : > { %v5819_v36 = vmul.f32 %v5794_v6, %v5719_v35  ;;  %v5838_v47 = vpack.c.bf16 %v5818_v53, %v5813_v5 }
 0xd03   : > { %v5837_v52 = vpack.c.bf16 %v5817_v23, %v5812_v54 }
 0xd04   : > { %v5839_v7 = vpack.c.bf16 %v5819_v36, %v5814_v56 }
 0xd05   : > { %6203 = vmatprep.mubr.bf16.mxu0 %v5837_v52 }
 0xd06   : > { %6259 = vmatprep.mubr.bf16.mxu1 %v5839_v7  ;;  %6204 = vmatmul.mubr.bf16.vlgmr.msra.gmra.mxu0 %v5836_v39 }
 0xd07   : > { %6260 = vmatmul.mubr.bf16.vlgmr.msra.gmra.mxu1 %v5838_v47  ;;  %8178 = vmatpush3.bf16.msra.mxu0 %v8641_v45 }
 0xd08   : > { %8179 = vmatprep.subr.bf16.mxu0 %v12584_v4 }
 0xd0b   : > { %8180 = vmatpush3.bf16.msra.mxu0 %v8642_v17 }
 0xd0c   : > { %8181 = vmatprep.subr.bf16.mxu0 %v12584_v4 }
 0xd0f   : > { %8182 = vmatpush3.bf16.msra.mxu0 %v8643_v25 }
 0xd10   : > { %8183 = vmatprep.subr.bf16.mxu0 %v12584_v4 }
 0xd13   : > { %8184 = vmatpush3.bf16.msra.mxu0 %v8644_v2 }
 0xd14   : > { %8185 = vmatprep.subr.bf16.mxu0 %v12584_v4 }
 0xd17   : > { %8186 = vmatpush3.bf16.msra.mxu0 %v8645_v44 }
 0xd18   : > { %8187 = vmatprep.subr.bf16.mxu0 %v12584_v4 }
 0xd1b   : > { %8188 = vmatpush3.bf16.msra.mxu0 %v8646_v27 }
 0xd1c   : > { %8189 = vmatprep.subr.bf16.mxu0 %v12584_v4 }
 0xd1f   : > { %8190 = vmatpush3.bf16.msra.mxu0 %v8647_v9 }
 0xd20   : > { %8191 = vmatprep.subr.bf16.mxu0 %v12584_v4 }
 0xd23   : > { %8192 = vmatpush3.bf16.msra.mxu0 %v8648_v22 }
 0xd36   : > { %v5577_v8 = vpop.f32.mrf.mxu1  ;;  %v5638_v20 = vpop.f32.mrf.mxu0 }
 0xd37   : > { %v5578_v13 = vadd.f32 %v5577_v8, %v12211_v51  ;;  %v5639_v33 = vadd.f32 %v5638_v20, %v12216_v10 }
 0xd38   : > { %v5579_v57 = vpop.f32.mrf.mxu1  ;;  %v5640_v58 = vpop.f32.mrf.mxu0 }
 0xd39   : > { %v5746_v37 = vmul.f32 0.70710677, %v5578_v13  ;;  %v5748_v49 = vmul.f32 0.70710677, %v5639_v33  ;;  %v5580_v31 = vadd.f32 %v5579_v57, %v12221_v55  ;;  %v5641_v30 = vadd.f32 %v5640_v58, %v12224_v40 }
 0xd3a   : > { %v5581_v61 = vpop.f32.mrf.mxu1  ;;  %v5642_v46 = vpop.f32.mrf.mxu0  ;;  %v5721_v7 = vmul.f32 0.5, %v5578_v13  ;;  %v5723_v17 = vmul.f32 0.5, %v5639_v33 }
 0xd3b   : > { %v5582_v21 = vadd.f32 %v5581_v61, %v12211_v51  ;;  %v12255_v28 = vadd.f32 %v5642_v46, %v12216_v10  ;;  %8925 = verf.f32 %v5746_v37  ;;  %v5747_v3 = vmul.f32 0.70710677, %v5580_v31 }
 0xd3c   : > { %v5583_v26 = vpop.f32.mrf.mxu1  ;;  %v5644_v29 = vpop.f32.mrf.mxu0  ;;  %8927 = verf.f32 %v5748_v49  ;;  %v5749_v0 = vmul.f32 0.70710677, %v5641_v30  ;;  %v5722_v25 = vmul.f32 0.5, %v5580_v31  ;;  %v5724_v2 = vmul.f32 0.5, %v5641_v30 }
 0xd3d   : > { %v5751_v11 = vmul.f32 0.70710677, %v5582_v21  ;;  %8929 = verf.f32 %v5747_v3  ;;  %v5753_v60 = vmul.f32 0.70710677, %v12255_v28  ;;  %v5584_v1 = vadd.f32 %v5583_v26, %v12221_v55 }
 0xd3e   : > { %v5645_v32 = vadd.f32 %v5644_v29, %v12224_v40  ;;  %8931 = verf.f32 %v5749_v0  ;;  %v5726_v8 = vmul.f32 0.5, %v5582_v21  ;;  %v5728_v33 = vmul.f32 0.5, %v12255_v28 }
 0xd3f   : > { %8933 = verf.f32 %v5751_v11  ;;  %v5752_v42 = vmul.f32 0.70710677, %v5584_v1  ;;  %v5727_v31 = vmul.f32 0.5, %v5584_v1 }
 0xd40   : > { %8935 = verf.f32 %v5753_v60  ;;  %v5754_v62 = vmul.f32 0.70710677, %v5645_v32  ;;  %v5729_v29 = vmul.f32 0.5, %v5645_v32 }
 0xd41   : > { %8937 = verf.f32 %v5752_v42 }
 0xd42   : > { %v5587_v48 = vpop.f32.mrf.mxu1  ;;  %v5648_v18 = vpop.f32.mrf.mxu0  ;;  %8939 = verf.f32 %v5754_v62 }
 0xd43   : > { %v12261_v59 = vadd.f32 %v5587_v48, %v12211_v51  ;;  %v12264_v24 = vadd.f32 %v5648_v18, %v12216_v10  ;;  %v12276_v10 = vrot.slane %v12205_v15, %v5318_v38 }
 0xd44   : > { %v5589_v63 = vpop.f32.mrf.mxu1  ;;  %v5650_v35 = vpop.f32.mrf.mxu0 }
 0xd45   : > { %v5756_v6 = vmul.f32 0.70710677, %v12261_v59  ;;  %v5758_v43 = vmul.f32 0.70710677, %v12264_v24  ;;  %v12270_v54 = vadd.f32 %v5589_v63, %v12221_v55  ;;  %v12273_v53 = vadd.f32 %v5650_v35, %v12224_v40 }
 0xd46   : > { %v5591_v23 = vpop.f32.mrf.mxu1  ;;  %v5652_v51 = vpop.f32.mrf.mxu0 }
 0xd47   : > { %8941 = verf.f32 %v5756_v6  ;;  %v5757_v16 = vmul.f32 0.70710677, %v12270_v54  ;;  %v5759_v5 = vmul.f32 0.70710677, %v12273_v53 }
 0xd48   : > { %8943 = verf.f32 %v5758_v43  ;;  %v5592_v41 = vpop.f32.mrf.mxu1  ;;  %v5653_v56 = vpop.f32.mrf.mxu0 }
 0xd49   : > { %v8926_v36 = vpop.eup %8925  ;;  %8945 = verf.f32 %v5757_v16 }
 0xd4a   : > { %v8928_v52 = vpop.eup %8927  ;;  %v5689_v55 = vpop.f32.mrf.mxu1  ;;  %8947 = verf.f32 %v5759_v5  ;;  %v5796_v9 = vadd.f32 1.0, %v8926_v36 }
 0xd4b   : > { %v8930_v45 = vpop.eup %8929  ;;  %v12281_v40 = vadd.f32 %v5689_v55, %v12276_v10  ;;  %v5798_v46 = vadd.f32 1.0, %v8928_v52  ;;  %v5731_v52 = vmul.f32 0.5, %v12261_v59 }
 0xd4c   : > { %v8932_v39 = vpop.eup %8931  ;;  %v8167_v15 = vpop.f32.mrf.mxu1  ;;  %v5797_v22 = vadd.f32 1.0, %v8930_v45  ;;  %v5821_v11 = vmul.f32 %v5796_v9, %v5721_v7  ;;  %v5732_v7 = vmul.f32 0.5, %v12270_v54 }
 0xd4d   : > { %v8934_v47 = vpop.eup %8933  ;;  %v5740_v44 = vmul.f32 0.70710677, %v12281_v40  ;;  %v5799_v37 = vadd.f32 1.0, %v8932_v39  ;;  %v5823_v1 = vmul.f32 %v5798_v46, %v5723_v17  ;;  %v5733_v39 = vmul.f32 0.5, %v12264_v24 }
 0xd4e   : > { %v8936_v27 = vpop.eup %8935  ;;  %v5801_v20 = vadd.f32 1.0, %v8934_v47  ;;  %v5692_v57 = vpop.f32.mrf.mxu1  ;;  %v5822_v60 = vmul.f32 %v5797_v22, %v5722_v25  ;;  %v5734_v25 = vmul.f32 0.5, %v12273_v53 }
 0xd4f   : > { %v8938_v58 = vpop.eup %8937  ;;  %v5803_v49 = vadd.f32 1.0, %v8936_v27  ;;  %8949 = verf.f32 %v5740_v44  ;;  %v12285_v61 = vadd.f32 %v5692_v57, %v12276_v10  ;;  %v5824_v18 = vmul.f32 %v5799_v37, %v5724_v2 }
 0xd50   : > { %v8940_v13 = vpop.eup %8939  ;;  %v5802_v30 = vadd.f32 1.0, %v8938_v58  ;;  %v8168_v3 = vpop.f32.mrf.mxu1  ;;  %v5826_v26 = vmul.f32 %v5801_v20, %v5726_v8 }
 0xd51   : > { %v5804_v0 = vadd.f32 1.0, %v8940_v13  ;;  %v5745_v21 = vmul.f32 0.70710677, %v12285_v61  ;;  %v5828_v42 = vmul.f32 %v5803_v49, %v5728_v33 }
 0xd52   : > { %v5827_v62 = vmul.f32 %v5802_v30, %v5727_v31  ;;  %v5697_v48 = vpop.f32.mrf.mxu1  ;;  %v5841_v32 = vpack.c.bf16 %v5826_v26, %v5821_v11  ;;  %v5720_v31 = vmul.f32 0.5, %v12285_v61 }
 0xd53   : > { %v5829_v38 = vmul.f32 %v5804_v0, %v5729_v29  ;;  %8951 = verf.f32 %v5745_v21  ;;  %v12290_v63 = vadd.f32 %v5697_v48, %v12276_v10  ;;  %v5843_v41 = vpack.c.bf16 %v5828_v42, %v5823_v1 }
 0xd54   : > { %v8942_v28 = vpop.eup %8941  ;;  %v8171_v35 = vpop.f32.mrf.mxu1  ;;  %v5842_v6 = vpack.c.bf16 %v5827_v62, %v5822_v60 }
 0xd55   : > { %v8944_v43 = vpop.eup %8943  ;;  %v5806_v23 = vadd.f32 1.0, %v8942_v28  ;;  %v5750_v51 = vmul.f32 0.70710677, %v12290_v63  ;;  %v5844_v16 = vpack.c.bf16 %v5829_v38, %v5824_v18  ;;  %v5725_v60 = vmul.f32 0.5, %v12290_v63 }
 0xd56   : > { %v5808_v56 = vadd.f32 1.0, %v8944_v43  ;;  %6211 = vmatprep.mubr.bf16.mxu0 %v5842_v6  ;;  %v5700_v36 = vpop.f32.mrf.mxu1  ;;  %v8946_v5 = vpop.eup %8945 }
 0xd57   : > { %8953 = verf.f32 %v5750_v51  ;;  %6267 = vmatprep.mubr.bf16.mxu1 %v5844_v16  ;;  %v5701_v55 = vadd.f32 %v5700_v36, %v12276_v10  ;;  %6212 = vmatmul.mubr.bf16.gmra.mxu0 %v5841_v32  ;;  %v8948_v45 = vpop.eup %8947  ;;  %v5807_v47 = vadd.f32 1.0, %v8946_v5  ;;  %v5831_v17 = vmul.f32 %v5806_v23, %v5731_v52 }
 0xd58   : > { %6268 = vmatmul.mubr.bf16.gmra.mxu1 %v5843_v41  ;;  %v8172_v15 = vpop.f32.mrf.mxu1  ;;  %v5809_v44 = vadd.f32 1.0, %v8948_v45  ;;  %v5833_v27 = vmul.f32 %v5808_v56, %v5733_v39 }
 0xd59   : > { %v5755_v2 = vmul.f32 0.70710677, %v5701_v55  ;;  %v5832_v9 = vmul.f32 %v5807_v47, %v5732_v7  ;;  %v5846_v58 = vpack.c.bf16 %v5831_v17, %v5831_v17  ;;  %v5730_v42 = vmul.f32 0.5, %v5701_v55 }
 0xd5a   : > { %v5705_v59 = vpop.f32.mrf.mxu1  ;;  %v5834_v8 = vmul.f32 %v5809_v44, %v5734_v25  ;;  %v5848_v49 = vpack.c.bf16 %v5833_v27, %v5833_v27 }
 0xd5b   : > { %8955 = verf.f32 %v5755_v2  ;;  %v5706_v22 = vadd.f32 %v5705_v59, %v12276_v10  ;;  %v5847_v24 = vpack.c.bf16 %v5832_v9, %v5832_v9  ;;  %v5715_v10 = vmul.f32 0.5, %v12281_v40 }
 0xd5c   : > { %v8950_v20 = vpop.eup %8949  ;;  %v8175_v57 = vpop.f32.mrf.mxu1  ;;  %v5849_v37 = vpack.c.bf16 %v5834_v8, %v5834_v8 }
 0xd5d   : > { %v5760_v54 = vmul.f32 0.70710677, %v5706_v22  ;;  %6219 = vmatprep.mubr.bf16.mxu0 %v5847_v24  ;;  %v5790_v46 = vadd.f32 1.0, %v8950_v20  ;;  %v5735_v28 = vmul.f32 0.5, %v5706_v22 }
 0xd5e   : > { %v5708_v13 = vpop.f32.mrf.mxu1  ;;  %6275 = vmatprep.mubr.bf16.mxu1 %v5849_v37 }
 0xd5f   : > { %8957 = verf.f32 %v5760_v54  ;;  %6220 = vmatmul.mubr.bf16.gmra.mxu0 %v5846_v58  ;;  %v5815_v3 = vmul.f32 %v5790_v46, %v5715_v10  ;;  %v7092_v58 = vld [vmem:[%s1068_s15] ss:$0 sm:$0xff] }
 0xd60   : > { %v8952_v53 = vpop.eup %8951  ;;  %6276 = vmatmul.mubr.bf16.gmra.mxu1 %v5848_v49  ;;  %v8176_v33 = vpop.f32.mrf.mxu1  ;;  %8193 = vmatprep.mubr.msk.bf16.mxu0 %vm9689_vm8, %v12584_v4 }
 0xd61   : > { %v5795_v30 = vadd.f32 1.0, %v8952_v53 }
 0xd63   : > { %v5820_v26 = vmul.f32 %v5795_v30, %v5720_v31 }
 0xd64   : > { %v8954_v29 = vpop.eup %8953 }
 0xd65   : > { %v5840_v0 = vpack.c.bf16 %v5820_v26, %v5815_v3  ;;  %v5800_v21 = vadd.f32 1.0, %v8954_v29 }
 0xd67   : > { %8194 = vmatmul.mubr.bf16.vlgmr.msra.gmra.mxu0 %v5840_v0  ;;  %v5825_v48 = vmul.f32 %v5800_v21, %v5725_v60 }
 0xd68   : > { %v8956_v11 = vpop.eup %8955  ;;  %8197 = vmatprep.mubr.msk.bf16.mxu0 %vm9689_vm8, %v12584_v4 }
 0xd69   : > { %v5805_v62 = vadd.f32 1.0, %v8956_v11 }
 0xd6b   : > { %v5830_v18 = vmul.f32 %v5805_v62, %v5730_v42 }
 0xd6c   : > { %v8958_v40 = vpop.eup %8957 }
 0xd6d   : > { %v5845_v38 = vpack.c.bf16 %v5830_v18, %v5825_v48  ;;  %v5810_v61 = vadd.f32 1.0, %v8958_v40 }
 0xd6f   : > { %8198 = vmatmul.mubr.bf16.gmra.mxu0 %v5845_v38  ;;  %v5835_v1 = vmul.f32 %v5810_v61, %v5735_v28 }
 0xd70   : > { %8201 = vmatprep.mubr.msk.bf16.mxu0 %vm9689_vm8, %v12584_v4 }
 0xd71   : > { %v5850_v35 = vpack.c.bf16 %v5835_v1, %v5835_v1 }
 0xd77   : > { %8202 = vmatmul.mubr.bf16.gmra.mxu0 %v5850_v35 }
 0xdc6   : > { %v7394_v6 = vpop.f32.mrf.mxu0 }
 0xdc7   : > { %v7428_v43 = vpop.f32.mrf.mxu1 }
 0xdc8   : > { %v7395_v32 = vpop.f32.mrf.mxu0 }
 0xdc9   : > { %v7429_v23 = vpop.f32.mrf.mxu1  ;;  %v7396_v17 = vadd.f32 %v7395_v32, %v7394_v6 }
 0xdca   : > { %v7397_v63 = vpop.f32.mrf.mxu0  ;;  %v7430_v25 = vadd.f32 %v7429_v23, %v7428_v43 }
 0xdcb   : > { %v7431_v51 = vpop.f32.mrf.mxu1 }
 0xdcc   : > { %v7398_v16 = vpop.f32.mrf.mxu0  ;;  %v6262_v20 = vadd.f32 %v7430_v25, %v7396_v17 }
 0xdcd   : > { %v7432_v41 = vpop.f32.mrf.mxu1  ;;  %v7399_v9 = vadd.f32 %v7398_v16, %v7397_v63 }
 0xdce   : > { %v7433_v22 = vadd.f32 %v7432_v41, %v7431_v51 }
 0xdd0   : > { %v6265_v46 = vadd.f32 %v7433_v22, %v7399_v9 }
 0xe17   : > { %v7400_v56 = vpop.f32.mrf.mxu0 }
 0xe18   : > { %v7434_v36 = vpop.f32.mrf.mxu1 }
 0xe19   : > { %v7401_v5 = vpop.f32.mrf.mxu0 }
 0xe1a   : > { %v7435_v52 = vpop.f32.mrf.mxu1  ;;  %v7402_v37 = vadd.f32 %v7401_v5, %v7400_v56 }
 0xe1b   : > { %v7403_v55 = vpop.f32.mrf.mxu0  ;;  %v7436_v49 = vadd.f32 %v7435_v52, %v7434_v36 }
 0xe1c   : > { %v7437_v45 = vpop.f32.mrf.mxu1 }
 0xe1d   : > { %v7404_v39 = vpop.f32.mrf.mxu0  ;;  %v6270_v29 = vadd.f32 %v7436_v49, %v7402_v37 }
 0xe1e   : > { %v7438_v7 = vpop.f32.mrf.mxu1  ;;  %v7405_v30 = vadd.f32 %v7404_v39, %v7403_v55 }
 0xe1f   : > { %v7406_v4 = vpop.f32.mrf.mxu0  ;;  %v7439_v3 = vadd.f32 %v7438_v7, %v7437_v45 }
 0xe20   : > { %v7440_v15 = vpop.f32.mrf.mxu1 }
 0xe21   : > { %v7407_v47 = vpop.f32.mrf.mxu0  ;;  %v6273_v48 = vadd.f32 %v7439_v3, %v7405_v30 }
 0xe22   : > { %v7441_v2 = vpop.f32.mrf.mxu1  ;;  %v7408_v42 = vadd.f32 %v7407_v47, %v7406_v4 }
 0xe23   : > { %v7409_v44 = vpop.f32.mrf.mxu0  ;;  %v7442_v62 = vadd.f32 %v7441_v2, %v7440_v15 }
 0xe24   : > { %v7443_v27 = vpop.f32.mrf.mxu1 }
 0xe25   : > { %v7410_v59 = vpop.f32.mrf.mxu0  ;;  %v6278_v1 = vadd.f32 %v7442_v62, %v7408_v42 }
 0xe26   : > { %v7444_v8 = vpop.f32.mrf.mxu1 }
 0xe27   : > { %v6317_v57 = vpop.f32.mrf.mxu0 }
 0xe28   : > { %v6318_v24 = vadd.f32 %v6317_v57, %v6262_v20 }
 0xe29   : > { %v8195_v54 = vpop.f32.mrf.mxu0 }
 0xe2a   : > { %v6339_v13 = vadd.f32 %v6318_v24, %v12040_v14 }
 0xe2b   : > { %v6320_v53 = vpop.f32.mrf.mxu0 }
 0xe2c   : > { %v6351_v33 = vadd.f32 %v7092_v58, %v6339_v13  ;;  %v6321_v10 = vadd.f32 %v6320_v53, %v6265_v46 }
 0xe2d   : > { %v8196_v31 = vpop.f32.mrf.mxu0 }
 0xe2e   : > { %6361 = vst [vmem:[#allocation2 + $0x8] sm:$0xff] %v6351_v33  ;;  %v6340_v26 = vadd.f32 %v6321_v10, %v12043_v19 }
 0xe2f   : > { %v6325_v0 = vpop.f32.mrf.mxu0 }
 0xe30   : > { %v6352_v21 = vadd.f32 %v7092_v58, %v6340_v26  ;;  %v6326_v11 = vadd.f32 %v6325_v0, %v6270_v29 }
 0xe31   : > { %v8199_v60 = vpop.f32.mrf.mxu0 }
 0xe32   : > { %6362 = vst [vmem:[#allocation2] sm:$0xff] %v6352_v21  ;;  %v6341_v14 = vadd.f32 %v6326_v11, %v12046_v12  ;;  %v12673_v12 = vld [vmem:[#allocation57_spill] sm:$0xff] }
 0xe33   : > { %v6328_v18 = vpop.f32.mrf.mxu0 }
 0xe34   : > { %v6353_v40 = vadd.f32 %v7092_v58, %v6341_v14  ;;  %v6329_v38 = vadd.f32 %v6328_v18, %v6273_v48 }
 0xe35   : > { %v8200_v61 = vpop.f32.mrf.mxu0 }
 0xe36   : > { %6363 = vst [vmem:[#allocation2 + $0x20] sm:$0xff] %v6353_v40  ;;  %v6342_v28 = vadd.f32 %v6329_v38, %v12049_v34 }
 0xe37   : > { %v6333_v19 = vpop.f32.mrf.mxu0 }
 0xe38   : > { %v6354_v35 = vadd.f32 %v7092_v58, %v6342_v28  ;;  %v6334_v6 = vadd.f32 %v6333_v19, %v6278_v1 }
 0xe39   : > { %v8203_v43 = vpop.f32.mrf.mxu0 }
 0xe3a   : > { %6364 = vst [vmem:[#allocation2 + $0x10] sm:$0xff] %v6354_v35  ;;  %v6343_v32 = vadd.f32 %v6334_v6, %v12052_v50 }
 0xe3b   : > { %v6336_v23 = vpop.f32.mrf.mxu0 }
 0xe3c   : > { %v6355_v63 = vadd.f32 %v7092_v58, %v6343_v32  ;;  %6369 = sbr.rel (%p7093_p7) target bundleno = 4156 (0x103c), region = 196 }
 0xe3d   : > { %v8204_v51 = vpop.f32.mrf.mxu0 }
 0xe3e   : > { %v6360_v16 = vmul.f32 %v12673_v12, %v6355_v63 }
 0xe40   : > { %6365 = vst [vmem:[#allocation2 + $0x18] sm:$0xff] %v6360_v16 }
 0xe41   : > { %vm6372_vm10 = vcmask 1040384   ;;  %v6404_v41 = vld [vmem:[#allocation25 + $0x78] sm:$0xff]  ;;  %v9690_v56 = vmov 0.0   ;;  %v6403_v36 = vld [vmem:[#allocation25 + $0x70] sm:$0xff]  ;;  %v6402_v50 = vld [vmem:[#allocation25 + $0x68] sm:$0xff]  ;;  %vm9691_vm11 = vmmov 0  }
 0xe42   : > { %v6373_v34 = vsel %vm6372_vm10, %v6351_v33, 0.0  ;;  %8205 = vmatprep.subr.mxu0 %v9690_v56  ;;  %v6401_v5 = vld [vmem:[#allocation25 + $0x60] sm:$0xff]  ;;  %v12675_v39 = vld [vmem:[#allocation56_spill] sm:$0xff]  ;;  %v6400_v47 = vld [vmem:[#allocation25 + $0x58] sm:$0xff]  ;;  %8237 = vmatprep.mubr.msk.f32.mxu0 %vm9691_vm11, %v9690_v56 }
 0xe43   : > { %6374 = vadd.xlane.f32.xlu0 %v6373_v34  ;;  %8206 = vmatpush3.msra.mxu0 %v6404_v41  ;;  %v6399_v17 = vld [vmem:[#allocation25 + $0x50] sm:$0xff]  ;;  %v6398_v25 = vld [vmem:[#allocation25 + $0x48] sm:$0xff]  ;;  %v6397_v2 = vld [vmem:[#allocation25 + $0x40] sm:$0xff] }
 0xe44   : > { %8207 = vmatprep.subr.mxu0 %v9690_v56  ;;  %v6396_v44 = vld [vmem:[#allocation25 + $0x38] sm:$0xff]  ;;  %v6395_v27 = vld [vmem:[#allocation25 + $0x30] sm:$0xff]  ;;  %v6394_v59 = vld [vmem:[#allocation25 + $0x28] sm:$0xff] }
 0xe45   : > { %8208 = vmatpush3.msra.mxu0 %v6403_v36  ;;  %v6393_v9 = vld [vmem:[#allocation25 + $0x20] sm:$0xff]  ;;  %v6392_v22 = vld [vmem:[#allocation25 + $0x18] sm:$0xff]  ;;  %v6391_v8 = vld [vmem:[#allocation25 + $0x10] sm:$0xff] }
 0xe46   : > { %8209 = vmatprep.subr.mxu0 %v9690_v56  ;;  %v6390_v20 = vld [vmem:[#allocation25 + $0x8] sm:$0xff]  ;;  %v6389_v57 = vld [vmem:[#allocation25] sm:$0xff]  ;;  %v6370_v49 = vld [vmem:[#allocation23] sm:$0x1] }
 0xe47   : > { %8210 = vmatpush3.msra.mxu0 %v6402_v50  ;;  %v6371_v46 = vld [vmem:[#allocation24] sm:$0x1]  ;;  %v6405_v10 = vld [vmem:[#allocation27] sm:$0x1] }
 0xe48   : > { %8211 = vmatprep.subr.mxu0 %v9690_v56 }
 0xe49   : > { %8212 = vmatpush3.msra.mxu0 %v6401_v5 }
 0xe4a   : > { %8213 = vmatprep.subr.mxu0 %v9690_v56 }
 0xe4b   : > { %8214 = vmatpush3.msra.mxu0 %v6400_v47 }
 0xe4c   : > { %8215 = vmatprep.subr.mxu0 %v9690_v56 }
 0xe4d   : > { %8216 = vmatpush3.msra.mxu0 %v6399_v17 }
 0xe4e   : > { %8217 = vmatprep.subr.mxu0 %v9690_v56 }
 0xe4f   : > { %8218 = vmatpush3.msra.mxu0 %v6398_v25 }
 0xe50   : > { %8219 = vmatprep.subr.mxu0 %v9690_v56 }
 0xe51   : > { %8220 = vmatpush3.msra.mxu0 %v6397_v2 }
 0xe52   : > { %8221 = vmatprep.subr.mxu0 %v9690_v56 }
 0xe53   : > { %8222 = vmatpush3.msra.mxu0 %v6396_v44 }
 0xe54   : > { %8223 = vmatprep.subr.mxu0 %v9690_v56 }
 0xe55   : > { %8224 = vmatpush3.msra.mxu0 %v6395_v27 }
 0xe56   : > { %8225 = vmatprep.subr.mxu0 %v9690_v56 }
 0xe57   : > { %8226 = vmatpush3.msra.mxu0 %v6394_v59 }
 0xe58   : > { %8227 = vmatprep.subr.mxu0 %v9690_v56 }
 0xe59   : > { %8228 = vmatpush3.msra.mxu0 %v6393_v9 }
 0xe5a   : > { %8229 = vmatprep.subr.mxu0 %v9690_v56 }
 0xe5b   : > { %8230 = vmatpush3.msra.mxu0 %v6392_v22 }
 0xe5c   : > { %8231 = vmatprep.subr.mxu0 %v9690_v56 }
 0xe5d   : > { %8232 = vmatpush3.msra.mxu0 %v6391_v8 }
 0xe5e   : > { %8233 = vmatprep.subr.mxu0 %v9690_v56 }
 0xe5f   : > { %8234 = vmatpush3.msra.mxu0 %v6390_v20 }
 0xe60   : > { %8235 = vmatprep.subr.mxu0 %v9690_v56 }
 0xe61   : > { %8236 = vmatpush3.msra.mxu0 %v6389_v57 }
 0xecc   : > { %v6375_v52 = vpop.xlane.xlu0 %6374 }
 0xecd   : > { %v6376_v55 = vmul.f32 0.008333334, %v6375_v52 }
 0xecf   : > { %v6377_v45 = vsub.f32 %v6351_v33, %v6376_v55 }
 0xed1   : > { %v6378_v7 = vmul.f32 %v12675_v39, %v6377_v45 }
 0xed3   : > { %v6379_v4 = vmul.f32 %v6378_v7, %v6378_v7 }
 0xed5   : > { %v6380_v15 = vsel %vm6372_vm10, %v6379_v4, 0.0 }
 0xed6   : > { %6381 = vadd.xlane.f32.xlu0 %v6380_v15 }
 0xf5f   : > { %v6382_v24 = vpop.xlane.xlu0 %6381 }
 0xf60   : > { %v6383_v58 = vmul.f32 0.008333334, %v6382_v24 }
 0xf62   : > { %v6384_v54 = vadd.f32 1e-06, %v6383_v58 }
 0xf64   : > { %8964 = vrsqrt.f32 %v6384_v54 }
 0xf71   : > { %v8965_v37 = vpop.eup %8964 }
 0xf72   : > { %v6386_v13 = vmul.f32 %v8965_v37, %v6378_v7 }
 0xf74   : > { %v6387_v53 = vmul.f32 %v6386_v13, %v6370_v49 }
 0xf76   : > { %v6388_v33 = vadd.f32 %v6387_v53, %v6371_v46 }
 0xf78   : > { %8238 = vmatmul.mubr.f32.vlgmr.msra.gmra.mxu0 %v6388_v33 }
0x1038   : > { %v6472_v31 = vpop.f32.mrf.mxu0 }
0x1039   : > { %v6473_v30 = vadd.f32 %v6472_v31, %v6405_v10 }
0x103a   : > { %v8239_v3 = vpop.f32.mrf.mxu0 }
0x103b   : > { %6476 = vst [vmem:[%s10252_s16] sm:$0x1] %v6473_v30 }
0x103c PF: > { %s12676_s23 = sld [smem:[#allocation43_spill]]  ;;  %s6490_s1 = sshll.u32 %s10252_s16, 4  ;;  %s6491_s1 = int_to_ptr.vmem [resolvable:$true] %s6490_s1 }
0x103d   : > { %s12678_s25 = sld [smem:[#allocation48_spill]]  ;;  %s6478_s28 = scalar_lea.sflag [#allocation5], %s1196_s30 }
0x103e   : > { %s12679_s27 = sld [smem:[#allocation131_spill]]  ;;  %s9510_s22 = scalar_lea.vmem %s6491_s1, 16 }
0x103f   : > { %p9511_p3 = scmp.ne.s32.totalorder %s6491_s1, %s9510_s22  ;;  %s9692_s0 = smov [#allocation28]  }
0x1040   : > { %s9514_s21 = sshll.u32 %s9692_s0, 4  ;;  %s9515_s21 = int_to_ptr.vmem [resolvable:$false] %s9514_s21 }
0x1041   : > { %s9516_s2 = scalar_lea.vmem %s9515_s21, 32  ;;  %p9517_p12 = scmp.lt.s32.totalorder %s6491_s1, %s9515_s21 }
0x1042   : > { %s7094_s29 = sshll.u32 %s12676_s23, 4  ;;  %p9518_p9 = scmp.lt.s32.totalorder %s9516_s2, %s9510_s22 }
0x1043   : > { %p12680_p11 = scmp.ne.s32.totalorder %s12678_s25, 0 }
0x1044   : > { %s6488_s15 = scalar_lea.hbm %s12679_s27, %s7094_s29  ;;  %p9519_p5 = por %p9518_p9, %p9517_p12 }
0x1045   : > { %p9512_p1 = pnand %p9511_p3, %p12680_p11 }
0x1047   : > { %p9513_p0 = pneg %p9512_p1 }
0x1049   : > { %p9520_p6 = pnand %p9519_p5, %p9513_p0 }
0x104b   : > { %9523 = shalt.err (!%p9520_p6)
}
0x104c   : > { %s9524_s6 = scalar_lea.hbm %s6488_s15, 16  ;;  %s9528_s19 = scalar_lea.hbm %s12679_s27, 32 }
0x104d   : > { %p9525_p8 = scmp.ne.s32.totalorder %s6488_s15, %s9524_s6  ;;  %p9529_p2 = scmp.lt.s32.totalorder %s6488_s15, %s12679_s27 }
0x104e   : > { %p9530_p4 = scmp.lt.s32.totalorder %s9528_s19, %s9524_s6 }
0x104f   : > { %p9526_p13 = pnand %p9525_p8, %p12680_p11 }
0x1050   : > { %p9531_p7 = por %p9530_p4, %p9529_p2 }
0x1051   : > { %p9527_p10 = pneg %p9526_p13 }
0x1053   : > { %p9532_p3 = pnand %p9531_p7, %p9527_p10 }
0x1055   : > { %9535 = shalt.err (!%p9532_p3)
}
0x1056   : > { %8315 = dma.vmem_to_hbm [thread:$0]  (%p12680_p11), %s6491_s1, 16, %s6488_s15, %s6478_s28  }
0x1057 PF: > { %s12681_s24 = sld [smem:[#allocation45_spill]] }
0x1058   : > { %s12682_s20 = sld [smem:[#allocation37_spill]] }
0x1059   : > { %s12683_s3 = sld [smem:[#allocation49_spill]] }
0x105d   : > { %p8400_p1 = scmp.ge.s32.totalorder %s12681_s24, 2 }
0x105e   : > { %s6502_s23 = sand.u32 1, %s12682_s20  }
0x105f   : > { %p12684_p0 = scmp.ne.s32.totalorder %s12683_s3, 0  ;;  %s6503_s8 = scalar_lea.sflag [#allocation5], %s6502_s23 }
0x1061   : > { %p8380_p12 = pnand %p8400_p1, %p12684_p0 }
0x1063   : > { %p8381_p9 = pneg %p8380_p12 }
0x1065   : > { %9609 = dma.done.wait (%p8381_p9), %s6503_s8, 16  }
0x1066   : > { %9611 = vsyncadd (%p8381_p9), %s6503_s8, 4294967280  ;;  %s39_s6 = sadd.s32 1, %s12681_s24   ;;  %s12685_s3 = sld [smem:[#allocation38_spill]] }
0x1067   : > { %p36_p5 = scmp.ge.s32.totalorder %s39_s6, 26   ;;  %s12686_s28 = sld [smem:[#allocation39_spill]] }
0x1068   : > { %s12687_s29 = sld [smem:[#allocation54_spill]]  ;;  %s12694_s23 = smov %s9646_s5 }
0x1069   : > { %s12688_s30 = sld [smem:[#allocation40_spill]] }
0x106a   : > { %s12689_s4 = sld [smem:[#allocation41_spill]] }
0x106b   : > { %s12690_s0 = sld [smem:[#allocation53_spill]] }
0x106c   : > { %s12691_s1 = sld [smem:[#allocation44_spill]] }
0x106d   : > { %s12692_s25 = sld [smem:[#allocation51_spill]] }
0x106e   : > { %s12693_s24 = sld [smem:[#allocation52_spill]] }
0x106f   :  { %38 = sbr.rel (!%p36_p5) target bundleno = 29 (0x1d), region = 316 }
0x1073   : > { %s12695_s5 = smov %s12692_s25 }
0x1074   :  { %6507 = vsyncpa [#allocation4], 1 }
0x1075   :  { %6509 = vsyncpa [#allocation4 + $0x1], 1 }
0x1076   :  { %6510 = vsyncpa [#allocation7], 1 }
0x1077   :  { %6511 = vsyncpa [#allocation10], 1 }
0x1078   :  { %6512 = vsyncpa [#allocation26], 1 }
0x1079   :  { %6513 = vsyncpa [#allocation5], 1 }
0x107a   :  { %6515 = vsyncpa [#allocation5 + $0x1], 1 }

</bundles_post_ra>
